<compile_context>
chip_gen: v5e
topology: v5e:2x2
jax: 0.10.0
libtpu: 0.0.40
codegen_flags: <defaults>
</compile_context>

<pallas_src>
import jax
import jax.numpy as jnp
from jax.experimental import pallas as pl
from jax.experimental.pallas import tpu as pltpu


def _round_up(x, m):
    return ((x + m - 1) // m) * m


def _num_tensorcores():
    """2 for v7x-class chips (2 TCs/chip), else 1 (v5e/v6e)."""
    try:
        kind = jax.devices()[0].device_kind.lower()
    except Exception:
        return 1
    return 2 if ("v7" in kind or "tpu7" in kind or "7x" in kind) else 1


def _vmem_limit_bytes(min_needed):
    """Per-generation scoped-VMEM limit: what we need (>=32MiB) capped at 75% of physical."""
    cap = 64 * 1024 * 1024  # conservative default (v7x physical VMEM per TC)
    try:
        cap = int(getattr(pltpu.get_tpu_info(), "vmem_capacity_bytes", cap)) or cap
    except Exception:
        pass
    return int(min(cap * 3 // 4, max(int(min_needed), 32 * 1024 * 1024)))


def _choose_tile_b(B, num_tc, requested):
    """Batch tile: multiple of 128, big on single-TC chips, >=num_tc tiles on v7x."""
    if requested is None:
        requested = 512 if num_tc == 1 else 256
    tb = max(128, min(_round_up(int(requested), 128), 1024))
    tb = min(tb, _round_up(B, 128))
    if num_tc > 1 and B > 128:
        # keep at least `num_tc` grid steps so both TensorCores get tiles
        tb = min(tb, max(128, _round_up(pl.cdiv(B, num_tc), 128)))
    return tb


def _mlp_kernel(ue_ref, me_ref,
                w1u_ref, w1m_ref, b1_ref,
                w2_ref, b2_ref,
                w3_ref, b3_ref,
                w4_ref, b4_ref,
                o_ref):
    """Fused 4-layer MLP for one (tile_b, E) batch tile.

    MXU matmuls with f32 accumulation; bias/ReLU on the VPU in f32; activations
    are downcast to the compute dtype at the ReLU so inter-layer intermediates
    are narrow. fc4 (H -> 1) is a VPU multiply + lane reduction (no N=1 MXU).
    """
    cdt = w2_ref.dtype  # dtype fed to the MXU (bf16 by default, f32 optional)

    # fc1: concat(user, movie) @ W1 == ue @ W1[:E] + me @ W1[E:]
    h = jnp.dot(ue_ref[...], w1u_ref[...], preferred_element_type=jnp.float32)
    h = h + jnp.dot(me_ref[...], w1m_ref[...], preferred_element_type=jnp.float32)
    h = jnp.maximum(h + b1_ref[...], 0.0).astype(cdt)

    # fc2 + relu
    h = jnp.dot(h, w2_ref[...], preferred_element_type=jnp.float32)
    h = jnp.maximum(h + b2_ref[...], 0.0).astype(cdt)

    # fc3 + relu
    h = jnp.dot(h, w3_ref[...], preferred_element_type=jnp.float32)
    h = jnp.maximum(h + b3_ref[...], 0.0).astype(cdt)

    # fc4: (tile_b, H) . (H,) -> (tile_b, 1), f32 multiply + lane reduction.
    out = jnp.sum(h.astype(jnp.float32) * w4_ref[...], axis=-1, keepdims=True)
    o_ref[...] = (out + b4_ref[0]).astype(o_ref.dtype)


def dnn_forward(user_ids, movie_ids, params, *, tile_b=None,
                compute_dtype=jnp.bfloat16):
    """Pallas forward pass matching DNNModel.forward.

    compute_dtype: dtype fed to the MXU (default bf16; f32 also supported);
    accumulation and elementwise math are always float32.
    """
    (ue_tab, me_tab, w1, b1, w2, b2, w3, b3, w4, b4) = params

    B = user_ids.shape[0]
    E = ue_tab.shape[1]
    H = w1.shape[1]

    num_tc = _num_tensorcores()
    tb = _choose_tile_b(B, num_tc, tile_b)
    Bp = _round_up(B, tb)
    pad = Bp - B

    # --- glue: embedding gather (plain JAX; see TODO at top of file) --------
    uid = jnp.pad(user_ids, (0, pad)) if pad else user_ids
    mid = jnp.pad(movie_ids, (0, pad)) if pad else movie_ids
    ue = jnp.take(ue_tab, uid, axis=0).astype(compute_dtype)   # (Bp, E)
    me = jnp.take(me_tab, mid, axis=0).astype(compute_dtype)   # (Bp, E)

    # --- weight prep (weights stay VMEM-resident in the kernel) -------------
    w1u = w1[:E].astype(compute_dtype)         # (E, H)
    w1m = w1[E:].astype(compute_dtype)         # (E, H)
    w2c = w2.astype(compute_dtype)             # (H, H)
    w3c = w3.astype(compute_dtype)             # (H, H)
    b1r = b1.reshape(1, H).astype(jnp.float32)
    b2r = b2.reshape(1, H).astype(jnp.float32)
    b3r = b3.reshape(1, H).astype(jnp.float32)
    w4r = w4.reshape(1, H).astype(jnp.float32)
    b4s = b4.reshape(1).astype(jnp.float32)    # SMEM scalar

    # --- scoped VMEM estimate (weights + double-buffered activations + slack)
    isz = jnp.dtype(compute_dtype).itemsize
    weight_bytes = (2 * E * H + 2 * H * H) * isz + (4 * H + 1) * 4
    act_bytes = 2 * (2 * tb * E * isz) + 2 * tb * 4
    scratch_bytes = 4 * tb * H * 4
    vmem_limit = _vmem_limit_bytes(2 * weight_bytes + act_bytes + scratch_bytes)

    def _call(single_buffer_weights):
        def const_spec(arr):
            nd = arr.ndim
            idx = lambda i: (0,) * nd
            if single_buffer_weights:
                # Constant index_map -> DMA'd once; single buffer halves its VMEM.
                return pl.BlockSpec(arr.shape, idx, pipeline_mode=pl.Buffered(1))
            return pl.BlockSpec(arr.shape, idx)

        grid_spec = pltpu.PrefetchScalarGridSpec(
            num_scalar_prefetch=0,
            grid=(Bp // tb,),
            in_specs=[
                pl.BlockSpec((tb, E), lambda i: (i, 0)),   # user embeds
                pl.BlockSpec((tb, E), lambda i: (i, 0)),   # movie embeds
                const_spec(w1u), const_spec(w1m), const_spec(b1r),
                const_spec(w2c), const_spec(b2r),
                const_spec(w3c), const_spec(b3r),
                const_spec(w4r),
                pl.BlockSpec(memory_space=pltpu.MemorySpace.SMEM),  # b4 scalar
            ],
            out_specs=pl.BlockSpec((tb, 1), lambda i: (i, 0)),
        )
        return pl.pallas_call(
            _mlp_kernel,
            out_shape=jax.ShapeDtypeStruct((Bp, 1), jnp.float32),
            grid_spec=grid_spec,
            compiler_params=pltpu.CompilerParams(
                dimension_semantics=("parallel",),
                vmem_limit_bytes=vmem_limit,
            ),
        )(ue, me, w1u, w1m, b1r, w2c, b2r, w3c, b3r, w4r, b4s)

    try:
        out = _call(True)
    except Exception:
        # pipeline_mode=pl.Buffered(1) unsupported on this jax/libtpu build:
        # fall back to default double-buffered weight blocks.
        out = _call(False)

    # torch: x.squeeze() -> (B,)
    return out.reshape(Bp)[:B]


def init_params(key, num_users, num_movies, embedding_dim, hidden_dim):
    ks = jax.random.split(key, 10)
    scale = 0.02
    ue_tab = jax.random.normal(ks[0], (num_users + 1, embedding_dim), jnp.float32) * scale
    me_tab = jax.random.normal(ks[1], (num_movies + 1, embedding_dim), jnp.float32) * scale
    # Linear weights stored as (in, out) == PyTorch W.T.
    w1 = jax.random.normal(ks[2], (embedding_dim * 2, hidden_dim), jnp.float32) * scale
    b1 = jax.random.normal(ks[3], (hidden_dim,), jnp.float32) * scale
    w2 = jax.random.normal(ks[4], (hidden_dim, hidden_dim), jnp.float32) * scale
    b2 = jax.random.normal(ks[5], (hidden_dim,), jnp.float32) * scale
    w3 = jax.random.normal(ks[6], (hidden_dim, hidden_dim), jnp.float32) * scale
    b3 = jax.random.normal(ks[7], (hidden_dim,), jnp.float32) * scale
    w4 = jax.random.normal(ks[8], (hidden_dim, 1), jnp.float32) * scale
    b4 = jax.random.normal(ks[9], (1,), jnp.float32) * scale
    return (ue_tab, me_tab, w1, b1, w2, b2, w3, b3, w4, b4)


def _reference_forward(user_ids, movie_ids, params):
    (ue_tab, me_tab, w1, b1, w2, b2, w3, b3, w4, b4) = params
    x = jnp.concatenate([jnp.take(ue_tab, user_ids, axis=0),
                         jnp.take(me_tab, movie_ids, axis=0)], axis=1)
    x = jnp.maximum(x @ w1 + b1, 0.0)
    x = jnp.maximum(x @ w2 + b2, 0.0)
    x = jnp.maximum(x @ w3 + b3, 0.0)
    x = x @ w4 + b4
    return x.reshape(-1)


if __name__ == "__main__":
    # Small, TPU-tiling friendly shapes (real model uses E=512, H=1024).
    num_users, num_movies = 64, 64
    embedding_dim, hidden_dim = 128, 256
    batch = 512

    key = jax.random.PRNGKey(0)
    pkey, ukey, mkey = jax.random.split(key, 3)
    params = init_params(pkey, num_users, num_movies, embedding_dim, hidden_dim)

    user_ids = jax.random.randint(ukey, (batch,), 0, num_users + 1, dtype=jnp.int32)
    movie_ids = jax.random.randint(mkey, (batch,), 0, num_movies + 1, dtype=jnp.int32)

    ref = _reference_forward(user_ids, movie_ids, params)

    # Default path: bf16 MXU inputs, f32 accumulation.
    out_bf16 = jax.block_until_ready(dnn_forward(user_ids, movie_ids, params))
    assert out_bf16.shape == (batch,)
    assert jnp.allclose(out_bf16, ref, atol=1e-2, rtol=5e-2), \
        float(jnp.max(jnp.abs(out_bf16 - ref)))

    # f32 MXU path (tight numerical check of the kernel plumbing).
    out_f32 = jax.block_until_ready(
        dnn_forward(user_ids, movie_ids, params, compute_dtype=jnp.float32))
    assert out_f32.shape == (batch,)
    assert jnp.allclose(out_f32, ref, atol=2e-4, rtol=1e-3), \
        float(jnp.max(jnp.abs(out_f32 - ref)))

    # Ragged batch (exercises the padding path / non-tile-multiple batch).
    out_ragged = jax.block_until_ready(
        dnn_forward(user_ids[:300], movie_ids[:300], params))
    assert out_ragged.shape == (300,)
    assert jnp.allclose(out_ragged, ref[:300], atol=1e-2, rtol=5e-2)

    print("KERNEL_OK")
</pallas_src>

<mosaic_0001>
module attributes {stable_mosaic.version = 11 : i64} {
  func.func @_mlp_kernel(%arg0: i32, %arg1: memref<512x128xbf16, #tpu.memory_space<vmem>>, %arg2: memref<512x128xbf16, #tpu.memory_space<vmem>>, %arg3: memref<128x256xbf16, #tpu.memory_space<vmem>>, %arg4: memref<128x256xbf16, #tpu.memory_space<vmem>>, %arg5: memref<1x256xf32, #tpu.memory_space<vmem>>, %arg6: memref<256x256xbf16, #tpu.memory_space<vmem>>, %arg7: memref<1x256xf32, #tpu.memory_space<vmem>>, %arg8: memref<256x256xbf16, #tpu.memory_space<vmem>>, %arg9: memref<1x256xf32, #tpu.memory_space<vmem>>, %arg10: memref<1x256xf32, #tpu.memory_space<vmem>>, %arg11: memref<1xf32, #tpu.memory_space<smem>>, %arg12: memref<512x1xf32, #tpu.memory_space<vmem>>) attributes {dimension_semantics = [#tpu.dimension_semantics<parallel>], iteration_bounds = array<i64: 1>, scalar_prefetch = 0 : i64, scratch_operands = 0 : i64, tpu.core_type = #tpu.core_type<tc>, window_params = [{transform_indices = @transform_0, window_bounds = array<i64: 512, 128>}, {transform_indices = @transform_1, window_bounds = array<i64: 512, 128>}, {pipeline_mode = #tpu.pipeline_mode<synchronous>, transform_indices = @transform_2, window_bounds = array<i64: 128, 256>}, {pipeline_mode = #tpu.pipeline_mode<synchronous>, transform_indices = @transform_3, window_bounds = array<i64: 128, 256>}, {pipeline_mode = #tpu.pipeline_mode<synchronous>, transform_indices = @transform_4, window_bounds = array<i64: 1, 256>}, {pipeline_mode = #tpu.pipeline_mode<synchronous>, transform_indices = @transform_5, window_bounds = array<i64: 256, 256>}, {pipeline_mode = #tpu.pipeline_mode<synchronous>, transform_indices = @transform_6, window_bounds = array<i64: 1, 256>}, {pipeline_mode = #tpu.pipeline_mode<synchronous>, transform_indices = @transform_7, window_bounds = array<i64: 256, 256>}, {pipeline_mode = #tpu.pipeline_mode<synchronous>, transform_indices = @transform_8, window_bounds = array<i64: 1, 256>}, {pipeline_mode = #tpu.pipeline_mode<synchronous>, transform_indices = @transform_9, window_bounds = array<i64: 1, 256>}, {transform_indices = @transform_10, window_bounds = array<i64: 1>}, {transform_indices = @transform_11, window_bounds = array<i64: 512, 1>}]} {
    %c0 = arith.constant 0 : index
    %c0_0 = arith.constant 0 : index
    %0 = vector.load %arg1[%c0, %c0_0] : memref<512x128xbf16, #tpu.memory_space<vmem>>, vector<512x128xbf16>
    %c0_1 = arith.constant 0 : index
    %c0_2 = arith.constant 0 : index
    %1 = vector.load %arg3[%c0_1, %c0_2] : memref<128x256xbf16, #tpu.memory_space<vmem>>, vector<128x256xbf16>
    %cst = arith.constant dense<0.000000e+00> : vector<512x256xf32>
    %2 = tpu.matmul %0, %1, %cst {dimension_numbers = #tpu.dot_dimension_numbers<[1], [0], [0], [1], [0, 0, 1, 1], [], []>} : vector<512x128xbf16>, vector<128x256xbf16>, vector<512x256xf32> -> vector<512x256xf32>
    %c0_3 = arith.constant 0 : index
    %c0_4 = arith.constant 0 : index
    %3 = vector.load %arg2[%c0_3, %c0_4] : memref<512x128xbf16, #tpu.memory_space<vmem>>, vector<512x128xbf16>
    %c0_5 = arith.constant 0 : index
    %c0_6 = arith.constant 0 : index
    %4 = vector.load %arg4[%c0_5, %c0_6] : memref<128x256xbf16, #tpu.memory_space<vmem>>, vector<128x256xbf16>
    %cst_7 = arith.constant dense<0.000000e+00> : vector<512x256xf32>
    %5 = tpu.matmul %3, %4, %cst_7 {dimension_numbers = #tpu.dot_dimension_numbers<[1], [0], [0], [1], [0, 0, 1, 1], [], []>} : vector<512x128xbf16>, vector<128x256xbf16>, vector<512x256xf32> -> vector<512x256xf32>
    %6 = arith.addf %2, %5 : vector<512x256xf32>
    %c0_8 = arith.constant 0 : index
    %c0_9 = arith.constant 0 : index
    %7 = vector.load %arg5[%c0_8, %c0_9] : memref<1x256xf32, #tpu.memory_space<vmem>>, vector<1x256xf32>
    %8 = vector.broadcast %7 : vector<1x256xf32> to vector<512x256xf32>
    %9 = arith.addf %6, %8 : vector<512x256xf32>
    %cst_10 = arith.constant 0.000000e+00 : f32
    %10 = vector.broadcast %cst_10 : f32 to vector<512x256xf32>
    %11 = arith.maximumf %9, %10 : vector<512x256xf32>
    %12 = arith.truncf %11 : vector<512x256xf32> to vector<512x256xbf16>
    %c0_11 = arith.constant 0 : index
    %c0_12 = arith.constant 0 : index
    %13 = vector.load %arg6[%c0_11, %c0_12] : memref<256x256xbf16, #tpu.memory_space<vmem>>, vector<256x256xbf16>
    %cst_13 = arith.constant dense<0.000000e+00> : vector<512x256xf32>
    %14 = tpu.matmul %12, %13, %cst_13 {dimension_numbers = #tpu.dot_dimension_numbers<[1], [0], [0], [1], [0, 0, 1, 1], [], []>} : vector<512x256xbf16>, vector<256x256xbf16>, vector<512x256xf32> -> vector<512x256xf32>
    %c0_14 = arith.constant 0 : index
    %c0_15 = arith.constant 0 : index
    %15 = vector.load %arg7[%c0_14, %c0_15] : memref<1x256xf32, #tpu.memory_space<vmem>>, vector<1x256xf32>
    %16 = vector.broadcast %15 : vector<1x256xf32> to vector<512x256xf32>
    %17 = arith.addf %14, %16 : vector<512x256xf32>
    %cst_16 = arith.constant 0.000000e+00 : f32
    %18 = vector.broadcast %cst_16 : f32 to vector<512x256xf32>
    %19 = arith.maximumf %17, %18 : vector<512x256xf32>
    %20 = arith.truncf %19 : vector<512x256xf32> to vector<512x256xbf16>
    %c0_17 = arith.constant 0 : index
    %c0_18 = arith.constant 0 : index
    %21 = vector.load %arg8[%c0_17, %c0_18] : memref<256x256xbf16, #tpu.memory_space<vmem>>, vector<256x256xbf16>
    %cst_19 = arith.constant dense<0.000000e+00> : vector<512x256xf32>
    %22 = tpu.matmul %20, %21, %cst_19 {dimension_numbers = #tpu.dot_dimension_numbers<[1], [0], [0], [1], [0, 0, 1, 1], [], []>} : vector<512x256xbf16>, vector<256x256xbf16>, vector<512x256xf32> -> vector<512x256xf32>
    %c0_20 = arith.constant 0 : index
    %c0_21 = arith.constant 0 : index
    %23 = vector.load %arg9[%c0_20, %c0_21] : memref<1x256xf32, #tpu.memory_space<vmem>>, vector<1x256xf32>
    %24 = vector.broadcast %23 : vector<1x256xf32> to vector<512x256xf32>
    %25 = arith.addf %22, %24 : vector<512x256xf32>
    %cst_22 = arith.constant 0.000000e+00 : f32
    %26 = vector.broadcast %cst_22 : f32 to vector<512x256xf32>
    %27 = arith.maximumf %25, %26 : vector<512x256xf32>
    %28 = arith.truncf %27 : vector<512x256xf32> to vector<512x256xbf16>
    %29 = arith.extf %28 : vector<512x256xbf16> to vector<512x256xf32>
    %c0_23 = arith.constant 0 : index
    %c0_24 = arith.constant 0 : index
    %30 = vector.load %arg10[%c0_23, %c0_24] : memref<1x256xf32, #tpu.memory_space<vmem>>, vector<1x256xf32>
    %31 = vector.broadcast %30 : vector<1x256xf32> to vector<512x256xf32>
    %32 = arith.mulf %29, %31 : vector<512x256xf32>
    %cst_25 = arith.constant dense<0.000000e+00> : vector<512xf32>
    %33 = vector.multi_reduction <add>, %32, %cst_25 [1] : vector<512x256xf32> to vector<512xf32>
    %34 = vector.shape_cast %33 : vector<512xf32> to vector<512x1xf32>
    %c0_26 = arith.constant 0 : index
    %35 = memref.load %arg11[%c0_26] : memref<1xf32, #tpu.memory_space<smem>>
    %36 = vector.broadcast %35 : f32 to vector<512x1xf32>
    %37 = arith.addf %34, %36 : vector<512x1xf32>
    %c0_27 = arith.constant 0 : index
    %c0_28 = arith.constant 0 : index
    %38 = vector.load %arg12[%c0_27, %c0_28] : memref<512x1xf32, #tpu.memory_space<vmem>>, vector<512x1xf32>
    tpu.vector_store %arg12[%c0_27, %c0_28], %37 {strides = array<i32>} : memref<512x1xf32, #tpu.memory_space<vmem>>, vector<512x1xf32>,
    return
  }
  func.func @transform_0(%arg0: i32) -> (i32, i32) {
    %c0_i32 = arith.constant 0 : i32
    %c0_i32_0 = arith.constant 0 : i32
    return %arg0, %c0_i32 : i32, i32
  }
  func.func @transform_1(%arg0: i32) -> (i32, i32) {
    %c0_i32 = arith.constant 0 : i32
    %c0_i32_0 = arith.constant 0 : i32
    return %arg0, %c0_i32 : i32, i32
  }
  func.func @transform_2(%arg0: i32) -> (i32, i32) {
    %c0_i32 = arith.constant 0 : i32
    %c0_i32_0 = arith.constant 0 : i32
    %c0_i32_1 = arith.constant 0 : i32
    return %c0_i32, %c0_i32_0 : i32, i32
  }
  func.func @transform_3(%arg0: i32) -> (i32, i32) {
    %c0_i32 = arith.constant 0 : i32
    %c0_i32_0 = arith.constant 0 : i32
    %c0_i32_1 = arith.constant 0 : i32
    return %c0_i32, %c0_i32_0 : i32, i32
  }
  func.func @transform_4(%arg0: i32) -> (i32, i32) {
    %c0_i32 = arith.constant 0 : i32
    %c0_i32_0 = arith.constant 0 : i32
    %c0_i32_1 = arith.constant 0 : i32
    return %c0_i32, %c0_i32_0 : i32, i32
  }
  func.func @transform_5(%arg0: i32) -> (i32, i32) {
    %c0_i32 = arith.constant 0 : i32
    %c0_i32_0 = arith.constant 0 : i32
    %c0_i32_1 = arith.constant 0 : i32
    return %c0_i32, %c0_i32_0 : i32, i32
  }
  func.func @transform_6(%arg0: i32) -> (i32, i32) {
    %c0_i32 = arith.constant 0 : i32
    %c0_i32_0 = arith.constant 0 : i32
    %c0_i32_1 = arith.constant 0 : i32
    return %c0_i32, %c0_i32_0 : i32, i32
  }
  func.func @transform_7(%arg0: i32) -> (i32, i32) {
    %c0_i32 = arith.constant 0 : i32
    %c0_i32_0 = arith.constant 0 : i32
    %c0_i32_1 = arith.constant 0 : i32
    return %c0_i32, %c0_i32_0 : i32, i32
  }
  func.func @transform_8(%arg0: i32) -> (i32, i32) {
    %c0_i32 = arith.constant 0 : i32
    %c0_i32_0 = arith.constant 0 : i32
    %c0_i32_1 = arith.constant 0 : i32
    return %c0_i32, %c0_i32_0 : i32, i32
  }
  func.func @transform_9(%arg0: i32) -> (i32, i32) {
    %c0_i32 = arith.constant 0 : i32
    %c0_i32_0 = arith.constant 0 : i32
    %c0_i32_1 = arith.constant 0 : i32
    return %c0_i32, %c0_i32_0 : i32, i32
  }
  func.func @transform_10(%arg0: i32) -> i32 {
    %c0_i32 = arith.constant 0 : i32
    %c0_i32_0 = arith.constant 0 : i32
    return %c0_i32 : i32
  }
  func.func @transform_11(%arg0: i32) -> (i32, i32) {
    %c0_i32 = arith.constant 0 : i32
    %c0_i32_0 = arith.constant 0 : i32
    return %arg0, %c0_i32 : i32, i32
  }
}

module attributes {stable_mosaic.version = 11 : i64} {
  func.func @_mlp_kernel(%arg0: i32, %arg1: memref<512x128xbf16, #tpu.memory_space<vmem>>, %arg2: memref<512x128xbf16, #tpu.memory_space<vmem>>, %arg3: memref<128x256xbf16, #tpu.memory_space<vmem>>, %arg4: memref<128x256xbf16, #tpu.memory_space<vmem>>, %arg5: memref<1x256xf32, #tpu.memory_space<vmem>>, %arg6: memref<256x256xbf16, #tpu.memory_space<vmem>>, %arg7: memref<1x256xf32, #tpu.memory_space<vmem>>, %arg8: memref<256x256xbf16, #tpu.memory_space<vmem>>, %arg9: memref<1x256xf32, #tpu.memory_space<vmem>>, %arg10: memref<1x256xf32, #tpu.memory_space<vmem>>, %arg11: memref<1xf32, #tpu.memory_space<smem>>, %arg12: memref<512x1xf32, #tpu.memory_space<vmem>>) attributes {dimension_semantics = [#tpu.dimension_semantics<parallel>], iteration_bounds = array<i64: 1>, scalar_prefetch = 0 : i64, scratch_operands = 0 : i64, tpu.core_type = #tpu.core_type<tc>, window_params = [{transform_indices = @transform_0, window_bounds = array<i64: 512, 128>}, {transform_indices = @transform_1, window_bounds = array<i64: 512, 128>}, {pipeline_mode = #tpu.pipeline_mode<synchronous>, transform_indices = @transform_2, window_bounds = array<i64: 128, 256>}, {pipeline_mode = #tpu.pipeline_mode<synchronous>, transform_indices = @transform_3, window_bounds = array<i64: 128, 256>}, {pipeline_mode = #tpu.pipeline_mode<synchronous>, transform_indices = @transform_4, window_bounds = array<i64: 1, 256>}, {pipeline_mode = #tpu.pipeline_mode<synchronous>, transform_indices = @transform_5, window_bounds = array<i64: 256, 256>}, {pipeline_mode = #tpu.pipeline_mode<synchronous>, transform_indices = @transform_6, window_bounds = array<i64: 1, 256>}, {pipeline_mode = #tpu.pipeline_mode<synchronous>, transform_indices = @transform_7, window_bounds = array<i64: 256, 256>}, {pipeline_mode = #tpu.pipeline_mode<synchronous>, transform_indices = @transform_8, window_bounds = array<i64: 1, 256>}, {pipeline_mode = #tpu.pipeline_mode<synchronous>, transform_indices = @transform_9, window_bounds = array<i64: 1, 256>}, {transform_indices = @transform_10, window_bounds = array<i64: 1>}, {transform_indices = @transform_11, window_bounds = array<i64: 512, 1>}]} {
    %c0 = arith.constant 0 : index
    %c0_0 = arith.constant 0 : index
    %0 = vector.load %arg1[%c0, %c0_0] : memref<512x128xbf16, #tpu.memory_space<vmem>>, vector<512x128xbf16>
    %c0_1 = arith.constant 0 : index
    %c0_2 = arith.constant 0 : index
    %1 = vector.load %arg3[%c0_1, %c0_2] : memref<128x256xbf16, #tpu.memory_space<vmem>>, vector<128x256xbf16>
    %cst = arith.constant dense<0.000000e+00> : vector<512x256xf32>
    %2 = tpu.matmul %0, %1, %cst {dimension_numbers = #tpu.dot_dimension_numbers<[1], [0], [0], [1], [0, 0, 1, 1], [], []>} : vector<512x128xbf16>, vector<128x256xbf16>, vector<512x256xf32> -> vector<512x256xf32>
    %c0_3 = arith.constant 0 : index
    %c0_4 = arith.constant 0 : index
    %3 = vector.load %arg2[%c0_3, %c0_4] : memref<512x128xbf16, #tpu.memory_space<vmem>>, vector<512x128xbf16>
    %c0_5 = arith.constant 0 : index
    %c0_6 = arith.constant 0 : index
    %4 = vector.load %arg4[%c0_5, %c0_6] : memref<128x256xbf16, #tpu.memory_space<vmem>>, vector<128x256xbf16>
    %cst_7 = arith.constant dense<0.000000e+00> : vector<512x256xf32>
    %5 = tpu.matmul %3, %4, %cst_7 {dimension_numbers = #tpu.dot_dimension_numbers<[1], [0], [0], [1], [0, 0, 1, 1], [], []>} : vector<512x128xbf16>, vector<128x256xbf16>, vector<512x256xf32> -> vector<512x256xf32>
    %6 = arith.addf %2, %5 : vector<512x256xf32>
    %c0_8 = arith.constant 0 : index
    %c0_9 = arith.constant 0 : index
    %7 = vector.load %arg5[%c0_8, %c0_9] : memref<1x256xf32, #tpu.memory_space<vmem>>, vector<1x256xf32>
    %8 = vector.broadcast %7 : vector<1x256xf32> to vector<512x256xf32>
    %9 = arith.addf %6, %8 : vector<512x256xf32>
    %cst_10 = arith.constant 0.000000e+00 : f32
    %10 = vector.broadcast %cst_10 : f32 to vector<512x256xf32>
    %11 = arith.maximumf %9, %10 : vector<512x256xf32>
    %12 = arith.truncf %11 : vector<512x256xf32> to vector<512x256xbf16>
    %c0_11 = arith.constant 0 : index
    %c0_12 = arith.constant 0 : index
    %13 = vector.load %arg6[%c0_11, %c0_12] : memref<256x256xbf16, #tpu.memory_space<vmem>>, vector<256x256xbf16>
    %cst_13 = arith.constant dense<0.000000e+00> : vector<512x256xf32>
    %14 = tpu.matmul %12, %13, %cst_13 {dimension_numbers = #tpu.dot_dimension_numbers<[1], [0], [0], [1], [0, 0, 1, 1], [], []>} : vector<512x256xbf16>, vector<256x256xbf16>, vector<512x256xf32> -> vector<512x256xf32>
    %c0_14 = arith.constant 0 : index
    %c0_15 = arith.constant 0 : index
    %15 = vector.load %arg7[%c0_14, %c0_15] : memref<1x256xf32, #tpu.memory_space<vmem>>, vector<1x256xf32>
    %16 = vector.broadcast %15 : vector<1x256xf32> to vector<512x256xf32>
    %17 = arith.addf %14, %16 : vector<512x256xf32>
    %cst_16 = arith.constant 0.000000e+00 : f32
    %18 = vector.broadcast %cst_16 : f32 to vector<512x256xf32>
    %19 = arith.maximumf %17, %18 : vector<512x256xf32>
    %20 = arith.truncf %19 : vector<512x256xf32> to vector<512x256xbf16>
    %c0_17 = arith.constant 0 : index
    %c0_18 = arith.constant 0 : index
    %21 = vector.load %arg8[%c0_17, %c0_18] : memref<256x256xbf16, #tpu.memory_space<vmem>>, vector<256x256xbf16>
    %cst_19 = arith.constant dense<0.000000e+00> : vector<512x256xf32>
    %22 = tpu.matmul %20, %21, %cst_19 {dimension_numbers = #tpu.dot_dimension_numbers<[1], [0], [0], [1], [0, 0, 1, 1], [], []>} : vector<512x256xbf16>, vector<256x256xbf16>, vector<512x256xf32> -> vector<512x256xf32>
    %c0_20 = arith.constant 0 : index
    %c0_21 = arith.constant 0 : index
    %23 = vector.load %arg9[%c0_20, %c0_21] : memref<1x256xf32, #tpu.memory_space<vmem>>, vector<1x256xf32>
    %24 = vector.broadcast %23 : vector<1x256xf32> to vector<512x256xf32>
    %25 = arith.addf %22, %24 : vector<512x256xf32>
    %cst_22 = arith.constant 0.000000e+00 : f32
    %26 = vector.broadcast %cst_22 : f32 to vector<512x256xf32>
    %27 = arith.maximumf %25, %26 : vector<512x256xf32>
    %28 = arith.truncf %27 : vector<512x256xf32> to vector<512x256xbf16>
    %29 = arith.extf %28 : vector<512x256xbf16> to vector<512x256xf32>
    %c0_23 = arith.constant 0 : index
    %c0_24 = arith.constant 0 : index
    %30 = vector.load %arg10[%c0_23, %c0_24] : memref<1x256xf32, #tpu.memory_space<vmem>>, vector<1x256xf32>
    %31 = vector.broadcast %30 : vector<1x256xf32> to vector<512x256xf32>
    %32 = arith.mulf %29, %31 : vector<512x256xf32>
    %cst_25 = arith.constant dense<0.000000e+00> : vector<512xf32>
    %33 = vector.multi_reduction <add>, %32, %cst_25 [1] : vector<512x256xf32> to vector<512xf32>
    %34 = vector.shape_cast %33 : vector<512xf32> to vector<512x1xf32>
    %c0_26 = arith.constant 0 : index
    %35 = memref.load %arg11[%c0_26] : memref<1xf32, #tpu.memory_space<smem>>
    %36 = vector.broadcast %35 : f32 to vector<512x1xf32>
    %37 = arith.addf %34, %36 : vector<512x1xf32>
    %c0_27 = arith.constant 0 : index
    %c0_28 = arith.constant 0 : index
    %38 = vector.load %arg12[%c0_27, %c0_28] : memref<512x1xf32, #tpu.memory_space<vmem>>, vector<512x1xf32>
    tpu.vector_store %arg12[%c0_27, %c0_28], %37 {strides = array<i32>} : memref<512x1xf32, #tpu.memory_space<vmem>>, vector<512x1xf32>,
    return
  }
  func.func @transform_0(%arg0: i32) -> (i32, i32) {
    %c0_i32 = arith.constant 0 : i32
    %c0_i32_0 = arith.constant 0 : i32
    return %arg0, %c0_i32 : i32, i32
  }
  func.func @transform_1(%arg0: i32) -> (i32, i32) {
    %c0_i32 = arith.constant 0 : i32
    %c0_i32_0 = arith.constant 0 : i32
    return %arg0, %c0_i32 : i32, i32
  }
  func.func @transform_2(%arg0: i32) -> (i32, i32) {
    %c0_i32 = arith.constant 0 : i32
    %c0_i32_0 = arith.constant 0 : i32
    %c0_i32_1 = arith.constant 0 : i32
    return %c0_i32, %c0_i32_0 : i32, i32
  }
  func.func @transform_3(%arg0: i32) -> (i32, i32) {
    %c0_i32 = arith.constant 0 : i32
    %c0_i32_0 = arith.constant 0 : i32
    %c0_i32_1 = arith.constant 0 : i32
    return %c0_i32, %c0_i32_0 : i32, i32
  }
  func.func @transform_4(%arg0: i32) -> (i32, i32) {
    %c0_i32 = arith.constant 0 : i32
    %c0_i32_0 = arith.constant 0 : i32
    %c0_i32_1 = arith.constant 0 : i32
    return %c0_i32, %c0_i32_0 : i32, i32
  }
  func.func @transform_5(%arg0: i32) -> (i32, i32) {
    %c0_i32 = arith.constant 0 : i32
    %c0_i32_0 = arith.constant 0 : i32
    %c0_i32_1 = arith.constant 0 : i32
    return %c0_i32, %c0_i32_0 : i32, i32
  }
  func.func @transform_6(%arg0: i32) -> (i32, i32) {
    %c0_i32 = arith.constant 0 : i32
    %c0_i32_0 = arith.constant 0 : i32
    %c0_i32_1 = arith.constant 0 : i32
    return %c0_i32, %c0_i32_0 : i32, i32
  }
  func.func @transform_7(%arg0: i32) -> (i32, i32) {
    %c0_i32 = arith.constant 0 : i32
    %c0_i32_0 = arith.constant 0 : i32
    %c0_i32_1 = arith.constant 0 : i32
    return %c0_i32, %c0_i32_0 : i32, i32
  }
  func.func @transform_8(%arg0: i32) -> (i32, i32) {
    %c0_i32 = arith.constant 0 : i32
    %c0_i32_0 = arith.constant 0 : i32
    %c0_i32_1 = arith.constant 0 : i32
    return %c0_i32, %c0_i32_0 : i32, i32
  }
  func.func @transform_9(%arg0: i32) -> (i32, i32) {
    %c0_i32 = arith.constant 0 : i32
    %c0_i32_0 = arith.constant 0 : i32
    %c0_i32_1 = arith.constant 0 : i32
    return %c0_i32, %c0_i32_0 : i32, i32
  }
  func.func @transform_10(%arg0: i32) -> i32 {
    %c0_i32 = arith.constant 0 : i32
    %c0_i32_0 = arith.constant 0 : i32
    return %c0_i32 : i32
  }
  func.func @transform_11(%arg0: i32) -> (i32, i32) {
    %c0_i32 = arith.constant 0 : i32
    %c0_i32_0 = arith.constant 0 : i32
    return %arg0, %c0_i32 : i32, i32
  }
}

</mosaic_0001>

<bundles_post_ra>
// kernel: tpu_custom_call.1
= control target key start
LH: loop header
LB: loop body
LE: loop exit
PB: predicated region body
PF: predicated region fallthrough
CT: control target
= control target key end

     0   :  { %17 = vsyncpa [#allocation4], 0  ;;  %s6991_s0 = inlined_call_operand.hbm [shape: bf16[512,128], index: 0, kind: input, shape index: {}]   ;;  %s6992_s1 = inlined_call_operand.hbm [shape: bf16[512,128], index: 1, kind: input, shape index: {}]   ;;  %s6993_s2 = inlined_call_operand.hbm [shape: bf16[128,256], index: 2, kind: input, shape index: {}]   ;;  %s6994_s3 = inlined_call_operand.hbm [shape: bf16[128,256], index: 3, kind: input, shape index: {}]   ;;  %s6995_s4 = inlined_call_operand.vmem [shape: f32[1,256], index: 4, kind: input, shape index: {}]   ;;  %s6996_s5 = inlined_call_operand.hbm [shape: bf16[256,256], index: 5, kind: input, shape index: {}]   ;;  %s6997_s6 = inlined_call_operand.vmem [shape: f32[1,256], index: 6, kind: input, shape index: {}]   ;;  %s6998_s7 = inlined_call_operand.hbm [shape: bf16[256,256], index: 7, kind: input, shape index: {}]   ;;  %s6999_s8 = inlined_call_operand.vmem [shape: f32[1,256], index: 8, kind: input, shape index: {}]   ;;  %s7000_s9 = inlined_call_operand.vmem [shape: f32[1,256], index: 9, kind: input, shape index: {}]   ;;  %s7001_s10 = inlined_call_operand.<no memory space> [shape: f32[1], index: 10, kind: input, shape index: {}]   ;;  %s7002_s11 = inlined_call_operand.vmem [shape: f32[512,1], index: 11, kind: output, shape index: {}]  }
   0x1   :  { %18 = vsyncpa [#allocation6], 0 }
   0x2   :  { %19 = vsyncpa [#allocation9], 0 }
   0x3   :  { %20 = vsyncpa [#allocation12], 0  ;;  %s38_s19 = sshll.u32 %s6992_s1, 4  ;;  %s5526_s20 = smov [#allocation5]   ;;  %s39_s19 = int_to_ptr.hbm [resolvable:$true] %s38_s19 }
   0x4   :  { %s40_s21 = sshll.u32 %s5526_s20, 4  ;;  %s5527_s22 = smov 64   ;;  %s41_s21 = int_to_ptr.vmem [resolvable:$true] %s40_s21 }
   0x5   :  { %s5528_s23 = smov 4   ;;  %s64_s26 = sshll.u32 %s6994_s3, 4  ;;  %s65_s26 = int_to_ptr.hbm [resolvable:$true] %s64_s26 }
   0x6   :  { %46 = dma.hbm_to_vmem [thread:$0]  %s39_s19, 4096, %s41_s21, [#allocation6], %s5527_s22, %s5527_s22, %s5528_s23  }
   0x7   :  { %s5529_s27 = smov [#allocation8]   ;;  %s25_s12 = sshll.u32 %s6991_s0, 4  ;;  %s26_s12 = int_to_ptr.hbm [resolvable:$true] %s25_s12 }
   0x8   :  { %s66_s28 = sshll.u32 %s5529_s27, 4  ;;  %s5530_s1 = smov 128   ;;  %s67_s28 = int_to_ptr.vmem [resolvable:$true] %s66_s28 }
   0x9   :  { %s5531_s13 = smov 8   ;;  %s51_s16 = sshll.u32 %s6993_s2, 4  ;;  %s52_s16 = int_to_ptr.hbm [resolvable:$true] %s51_s16 }
   0xa   :  { %72 = dma.hbm_to_vmem [thread:$0]  %s65_s26, 2048, %s67_s28, [#allocation9], %s5530_s1, %s5530_s1, %s5531_s13  }
   0xb   :  { %s5532_s17 = smov [#allocation3]   ;;  %s5533_s3 = smov [#allocation7]  }
   0xc   :  { %s27_s18 = sshll.u32 %s5532_s17, 4  ;;  %s53_s19 = sshll.u32 %s5533_s3, 4  ;;  %s28_s18 = int_to_ptr.vmem [resolvable:$true] %s27_s18  ;;  %s54_s19 = int_to_ptr.vmem [resolvable:$true] %s53_s19 }
   0xd   :  { %33 = dma.hbm_to_vmem [thread:$0]  %s26_s12, 4096, %s28_s18, [#allocation4], %s5527_s22, %s5527_s22, %s5528_s23  }
   0xe   :  { %s79_s0 = sshll.u32 %s6996_s5, 4  ;;  %s94_s26 = sshll.u32 %s6998_s7, 4  ;;  %s80_s0 = int_to_ptr.hbm [resolvable:$true] %s79_s0  ;;  %s95_s26 = int_to_ptr.hbm [resolvable:$true] %s94_s26 }
   0xf   :  { %59 = dma.hbm_to_vmem [thread:$0]  %s52_s16, 2048, %s54_s19, [#allocation6], %s5530_s1, %s5530_s1, %s5531_s13  }
  0x10   :  { %s5534_s27 = smov [#allocation10]   ;;  %s5535_s28 = smov [#allocation11]  }
  0x11   :  { %s81_s2 = sshll.u32 %s5534_s27, 4  ;;  %s96_s22 = sshll.u32 %s5535_s28, 4  ;;  %s82_s2 = int_to_ptr.vmem [resolvable:$true] %s81_s2  ;;  %s97_s22 = int_to_ptr.vmem [resolvable:$true] %s96_s22 }
  0x12   :  { %87 = dma.hbm_to_vmem [thread:$0]  %s80_s0, 4096, %s82_s2, [#allocation9], %s5530_s1, %s5530_s1, %s5531_s13  }
  0x13   :  { %102 = dma.hbm_to_vmem [thread:$0]  %s95_s26, 4096, %s97_s22, [#allocation12], %s5530_s1, %s5530_s1, %s5531_s13  }
  0x14   :  { %5518 = dma.done.wait [#allocation4], 4096  }
  0x15   :  { %5519 = vsyncadd [#allocation4], 4294963200 }
  0x16   :  { %5520 = dma.done.wait [#allocation6], 6144  }
  0x17   :  { %5521 = vsyncadd [#allocation6], 4294961152 }
  0x18   :  { %5522 = dma.done.wait [#allocation9], 6144  }
  0x19   :  { %5523 = vsyncadd [#allocation9], 4294961152 }
  0x1a   :  { %5524 = dma.done.wait [#allocation12], 4096  }
  0x1b   :  { %5525 = vsyncadd [#allocation12], 4294963200  ;;  %v4750_v0 = vld [vmem:[#allocation8 + $0x70] sm:$0xf]  ;;  %v5299_v1 = vld [vmem:[#allocation8 + $0x74] sm:$0xf0] }
  0x1c   :  { %v5298_v2 = vld [vmem:[#allocation8 + $0x74] sm:$0xf]  ;;  %v4751_v3 = vor.u32 %v5299_v1, %v4750_v0  ;;  %v4752_v4 = vld [vmem:[#allocation8 + $0x78] sm:$0xf0]  ;;  %v4942_v5 = vld [vmem:[#allocation7 + $0x70] sm:$0xf] }
  0x1d   :  { %v5251_v6 = vld [vmem:[#allocation7 + $0x74] sm:$0xf0]  ;;  %v4755_v7 = vor.u32 %v5298_v2, %v4752_v4  ;;  %v5250_v9 = vld [vmem:[#allocation7 + $0x74] sm:$0xf]  ;;  %v4944_v10 = vld [vmem:[#allocation7 + $0x78] sm:$0xf0] }
  0x1e   :  { %v4943_v8 = vor.u32 %v5251_v6, %v4942_v5  ;;  %v4742_v11 = vld [vmem:[#allocation8 + $0x60] sm:$0xf]  ;;  %565 = vmatpush.bf16.msra.mxu0 %v4751_v3  ;;  %v4947_v12 = vor.u32 %v5250_v9, %v4944_v10  ;;  %v5297_v13 = vld [vmem:[#allocation8 + $0x64] sm:$0xf0]  ;;  %v5296_v14 = vld [vmem:[#allocation8 + $0x64] sm:$0xf] }
  0x1f   :  { %v4744_v15 = vld [vmem:[#allocation8 + $0x68] sm:$0xf0]  ;;  %734 = vmatpush.bf16.msra.mxu1 %v4755_v7  ;;  %v4743_v16 = vor.u32 %v5297_v13, %v4742_v11  ;;  %v4934_v18 = vld [vmem:[#allocation7 + $0x60] sm:$0xf]  ;;  %v5249_v19 = vld [vmem:[#allocation7 + $0x64] sm:$0xf0] }
  0x20   :  { %1175 = vmatpush.bf16.msra.mxu2 %v4943_v8  ;;  %v4747_v17 = vor.u32 %v5296_v14, %v4744_v15  ;;  %v5248_v20 = vld [vmem:[#allocation7 + $0x64] sm:$0xf]  ;;  %1344 = vmatpush.bf16.msra.mxu3 %v4947_v12  ;;  %v4935_v21 = vor.u32 %v5249_v19, %v4934_v18  ;;  %v4936_v22 = vld [vmem:[#allocation7 + $0x68] sm:$0xf0]  ;;  %v4734_v23 = vld [vmem:[#allocation8 + $0x50] sm:$0xf] }
  0x21   :  { %v5295_v24 = vld [vmem:[#allocation8 + $0x54] sm:$0xf0]  ;;  %v4939_v25 = vor.u32 %v5248_v20, %v4936_v22  ;;  %v5294_v26 = vld [vmem:[#allocation8 + $0x54] sm:$0xf]  ;;  %v4736_v27 = vld [vmem:[#allocation8 + $0x58] sm:$0xf0] }
  0x22   :  { %v4926_v28 = vld [vmem:[#allocation7 + $0x50] sm:$0xf]  ;;  %566 = vmatpush.bf16.msra.mxu0 %v4743_v16  ;;  %v4735_v29 = vor.u32 %v5295_v24, %v4734_v23  ;;  %v5247_v30 = vld [vmem:[#allocation7 + $0x54] sm:$0xf0]  ;;  %v5246_v31 = vld [vmem:[#allocation7 + $0x54] sm:$0xf]  ;;  %v4739_v33 = vor.u32 %v5294_v26, %v4736_v27 }
  0x23   :  { %v4928_v32 = vld [vmem:[#allocation7 + $0x58] sm:$0xf0]  ;;  %735 = vmatpush.bf16.msra.mxu1 %v4747_v17  ;;  %v4927_v34 = vor.u32 %v5247_v30, %v4926_v28  ;;  %v4726_v35 = vld [vmem:[#allocation8 + $0x40] sm:$0xf]  ;;  %v5293_v36 = vld [vmem:[#allocation8 + $0x44] sm:$0xf0] }
  0x24   :  { %1176 = vmatpush.bf16.msra.mxu2 %v4935_v21  ;;  %v5292_v37 = vld [vmem:[#allocation8 + $0x44] sm:$0xf]  ;;  %1345 = vmatpush.bf16.msra.mxu3 %v4939_v25  ;;  %v4931_v38 = vor.u32 %v5246_v31, %v4928_v32  ;;  %v4728_v39 = vld [vmem:[#allocation8 + $0x48] sm:$0xf0]  ;;  %v4918_v40 = vld [vmem:[#allocation7 + $0x40] sm:$0xf]  ;;  %v4727_v44 = vor.u32 %v5293_v36, %v4726_v35 }
  0x25   :  { %v5245_v41 = vld [vmem:[#allocation7 + $0x44] sm:$0xf0]  ;;  %v5244_v42 = vld [vmem:[#allocation7 + $0x44] sm:$0xf]  ;;  %v4920_v43 = vld [vmem:[#allocation7 + $0x48] sm:$0xf0]  ;;  %v4731_v45 = vor.u32 %v5292_v37, %v4728_v39 }
  0x26   :  { %567 = vmatpush.bf16.msra.mxu0 %v4735_v29  ;;  %v4919_v46 = vor.u32 %v5245_v41, %v4918_v40  ;;  %v4718_v47 = vld [vmem:[#allocation8 + $0x30] sm:$0xf]  ;;  %v5291_v48 = vld [vmem:[#allocation8 + $0x34] sm:$0xf0]  ;;  %v5290_v49 = vld [vmem:[#allocation8 + $0x34] sm:$0xf]  ;;  %v4923_v50 = vor.u32 %v5244_v42, %v4920_v43 }
  0x27   :  { %736 = vmatpush.bf16.msra.mxu1 %v4739_v33  ;;  %v4720_v51 = vld [vmem:[#allocation8 + $0x38] sm:$0xf0]  ;;  %v4910_v52 = vld [vmem:[#allocation7 + $0x30] sm:$0xf]  ;;  %v5243_v53 = vld [vmem:[#allocation7 + $0x34] sm:$0xf0]  ;;  %v4719_v56 = vor.u32 %v5291_v48, %v4718_v47 }
  0x28   :  { %1177 = vmatpush.bf16.msra.mxu2 %v4927_v34  ;;  %1346 = vmatpush.bf16.msra.mxu3 %v4931_v38  ;;  %v5242_v54 = vld [vmem:[#allocation7 + $0x34] sm:$0xf]  ;;  %v4912_v55 = vld [vmem:[#allocation7 + $0x38] sm:$0xf0]  ;;  %v4723_v57 = vor.u32 %v5290_v49, %v4720_v51  ;;  %v4911_v58 = vor.u32 %v5243_v53, %v4910_v52  ;;  %v4710_v59 = vld [vmem:[#allocation8 + $0x20] sm:$0xf] }
  0x29   :  { %v5289_v60 = vld [vmem:[#allocation8 + $0x24] sm:$0xf0]  ;;  %v5288_v61 = vld [vmem:[#allocation8 + $0x24] sm:$0xf]  ;;  %v4915_v62 = vor.u32 %v5242_v54, %v4912_v55  ;;  %v4712_v63 = vld [vmem:[#allocation8 + $0x28] sm:$0xf0] }
  0x2a   :  { %568 = vmatpush.bf16.msra.mxu0 %v4727_v44  ;;  %v4902_v0 = vld [vmem:[#allocation7 + $0x20] sm:$0xf]  ;;  %v5241_v1 = vld [vmem:[#allocation7 + $0x24] sm:$0xf0]  ;;  %v5240_v2 = vld [vmem:[#allocation7 + $0x24] sm:$0xf]  ;;  %v4711_v4 = vor.u32 %v5289_v60, %v4710_v59  ;;  %v4715_v5 = vor.u32 %v5288_v61, %v4712_v63 }
  0x2b   :  { %737 = vmatpush.bf16.msra.mxu1 %v4731_v45  ;;  %v4904_v3 = vld [vmem:[#allocation7 + $0x28] sm:$0xf0]  ;;  %v4903_v6 = vor.u32 %v5241_v1, %v4902_v0  ;;  %v4702_v7 = vld [vmem:[#allocation8 + $0x10] sm:$0xf]  ;;  %v5287_v8 = vld [vmem:[#allocation8 + $0x14] sm:$0xf0] }
  0x2c   :  { %1178 = vmatpush.bf16.msra.mxu2 %v4919_v46  ;;  %1347 = vmatpush.bf16.msra.mxu3 %v4923_v50  ;;  %v5286_v9 = vld [vmem:[#allocation8 + $0x14] sm:$0xf]  ;;  %v4907_v10 = vor.u32 %v5240_v2, %v4904_v3  ;;  %v4704_v11 = vld [vmem:[#allocation8 + $0x18] sm:$0xf0]  ;;  %v4894_v12 = vld [vmem:[#allocation7 + $0x10] sm:$0xf]  ;;  %v4703_v16 = vor.u32 %v5287_v8, %v4702_v7 }
  0x2d   :  { %v5239_v13 = vld [vmem:[#allocation7 + $0x14] sm:$0xf0]  ;;  %v5238_v14 = vld [vmem:[#allocation7 + $0x14] sm:$0xf]  ;;  %v4896_v15 = vld [vmem:[#allocation7 + $0x18] sm:$0xf0]  ;;  %v4707_v18 = vor.u32 %v5286_v9, %v4704_v11 }
  0x2e   :  { %569 = vmatpush.bf16.msra.mxu0 %v4719_v56  ;;  %v4694_v17 = vld [vmem:[#allocation8] sm:$0xf]  ;;  %v4895_v19 = vor.u32 %v5239_v13, %v4894_v12  ;;  %v5285_v20 = vld [vmem:[#allocation8 + $0x4] sm:$0xf0]  ;;  %v5284_v21 = vld [vmem:[#allocation8 + $0x4] sm:$0xf]  ;;  %v4899_v23 = vor.u32 %v5238_v14, %v4896_v15 }
  0x2f   :  { %738 = vmatpush.bf16.msra.mxu1 %v4723_v57  ;;  %v4696_v22 = vld [vmem:[#allocation8 + $0x8] sm:$0xf0]  ;;  %v4886_v24 = vld [vmem:[#allocation7] sm:$0xf]  ;;  %v5237_v25 = vld [vmem:[#allocation7 + $0x4] sm:$0xf0]  ;;  %v4695_v30 = vor.u32 %v5285_v20, %v4694_v17 }
  0x30   :  { %1179 = vmatpush.bf16.msra.mxu2 %v4911_v58  ;;  %1348 = vmatpush.bf16.msra.mxu3 %v4915_v62  ;;  %v5236_v26 = vld [vmem:[#allocation7 + $0x4] sm:$0xf]  ;;  %v4888_v27 = vld [vmem:[#allocation7 + $0x8] sm:$0xf0]  ;;  %v5314_v28 = vld [vmem:[#allocation10 + $0x74] sm:$0xf]  ;;  %v4699_v33 = vor.u32 %v5284_v21, %v4696_v22  ;;  %v4887_v34 = vor.u32 %v5237_v25, %v4886_v24 }
  0x31   :  { %v5008_v29 = vld [vmem:[#allocation10 + $0x78] sm:$0xf0]  ;;  %v5330_v31 = vld [vmem:[#allocation10 + $0xf4] sm:$0xf]  ;;  %v4891_v35 = vor.u32 %v5236_v26, %v4888_v27  ;;  %v5006_v37 = vld [vmem:[#allocation10 + $0x70] sm:$0xf] }
  0x32   :  { %570 = vmatpush.bf16.msra.mxu0 %v4711_v4  ;;  %v5072_v32 = vld [vmem:[#allocation10 + $0xf8] sm:$0xf0]  ;;  %v5011_v36 = vor.u32 %v5314_v28, %v5008_v29  ;;  %v5315_v38 = vld [vmem:[#allocation10 + $0x74] sm:$0xf0]  ;;  %v5252_v39 = vld [vmem:[#allocation5] sm:$0xff]  ;;  %vm4491_vm0 = vcmask 7168  }
  0x33   :  { %739 = vmatpush.bf16.msra.mxu1 %v4715_v5  ;;  %v5075_v40 = vor.u32 %v5330_v31, %v5072_v32  ;;  %v5070_v41 = vld [vmem:[#allocation10 + $0xf0] sm:$0xf]  ;;  %v5331_v42 = vld [vmem:[#allocation10 + $0xf4] sm:$0xf0]  ;;  %v5204_v43 = vld [vmem:[#allocation3] sm:$0xff]  ;;  %v5007_v44 = vor.u32 %v5315_v38, %v5006_v37 }
  0x34   :  { %1180 = vmatpush.bf16.msra.mxu2 %v4903_v6  ;;  %1349 = vmatpush.bf16.msra.mxu3 %v4907_v10  ;;  %v5071_v45 = vor.u32 %v5331_v42, %v5070_v41  ;;  %v5253_v46 = vld [vmem:[#allocation5 + $0x8] sm:$0xff]  ;;  %v5254_v48 = vld [vmem:[#allocation5 + $0x10] sm:$0xff]  ;;  %v5312_v50 = vld [vmem:[#allocation10 + $0x64] sm:$0xf] }
  0x35   :  { %v5205_v47 = vld [vmem:[#allocation3 + $0x8] sm:$0xff]  ;;  %v5206_v49 = vld [vmem:[#allocation3 + $0x10] sm:$0xff]  ;;  %v5328_v52 = vld [vmem:[#allocation10 + $0xe4] sm:$0xf] }
  0x36   :  { %571 = vmatpush.bf16.msra.mxu0 %v4703_v16  ;;  %v5000_v51 = vld [vmem:[#allocation10 + $0x68] sm:$0xf0]  ;;  %v4998_v55 = vld [vmem:[#allocation10 + $0x60] sm:$0xf]  ;;  %v5313_v56 = vld [vmem:[#allocation10 + $0x64] sm:$0xf0] }
  0x37   :  { %740 = vmatpush.bf16.msra.mxu1 %v4707_v18  ;;  %v5003_v53 = vor.u32 %v5312_v50, %v5000_v51  ;;  %v5064_v54 = vld [vmem:[#allocation10 + $0xe8] sm:$0xf0]  ;;  %v4999_v58 = vor.u32 %v5313_v56, %v4998_v55  ;;  %v5062_v59 = vld [vmem:[#allocation10 + $0xe0] sm:$0xf]  ;;  %v5329_v60 = vld [vmem:[#allocation10 + $0xe4] sm:$0xf0] }
  0x38   :  { %1181 = vmatpush.bf16.msra.mxu2 %v4895_v19  ;;  %1350 = vmatpush.bf16.msra.mxu3 %v4899_v23  ;;  %v5067_v57 = vor.u32 %v5328_v52, %v5064_v54  ;;  %v5063_v61 = vor.u32 %v5329_v60, %v5062_v59  ;;  %v5255_v62 = vld [vmem:[#allocation5 + $0x18] sm:$0xff]  ;;  %v5256_v0 = vld [vmem:[#allocation5 + $0x20] sm:$0xff]  ;;  %v5257_v2 = vld [vmem:[#allocation5 + $0x28] sm:$0xff] }
  0x39   :  { %v5207_v63 = vld [vmem:[#allocation3 + $0x18] sm:$0xff]  ;;  %v5208_v1 = vld [vmem:[#allocation3 + $0x20] sm:$0xff]  ;;  %v5209_v3 = vld [vmem:[#allocation3 + $0x28] sm:$0xff] }
  0x3a   :  { %572 = vmatpush.bf16.msra.mxu0 %v4695_v30  ;;  %v5258_v4 = vld [vmem:[#allocation5 + $0x30] sm:$0xff]  ;;  %v4992_v7 = vld [vmem:[#allocation10 + $0x58] sm:$0xf0]  ;;  %v5311_v13 = vld [vmem:[#allocation10 + $0x54] sm:$0xf0] }
  0x3b   :  { %741 = vmatpush.bf16.msra.mxu1 %v4699_v33  ;;  %v5210_v5 = vld [vmem:[#allocation3 + $0x30] sm:$0xff]  ;;  %v5056_v10 = vld [vmem:[#allocation10 + $0xd8] sm:$0xf0]  ;;  %v5327_v16 = vld [vmem:[#allocation10 + $0xd4] sm:$0xf0] }
  0x3c   :  { %1182 = vmatpush.bf16.msra.mxu2 %v4887_v34  ;;  %1351 = vmatpush.bf16.msra.mxu3 %v4891_v35  ;;  %v5310_v6 = vld [vmem:[#allocation10 + $0x54] sm:$0xf]  ;;  %v4990_v12 = vld [vmem:[#allocation10 + $0x50] sm:$0xf]  ;;  %v5259_v17 = vld [vmem:[#allocation5 + $0x38] sm:$0xff] }
  0x3d   :  { %573 = vmatmul.bf16.vlgmr.msra.gmra.mxu0 %v5252_v39  ;;  %v5326_v8 = vld [vmem:[#allocation10 + $0xd4] sm:$0xf]  ;;  %v4995_v9 = vor.u32 %v5310_v6, %v4992_v7  ;;  %v5054_v14 = vld [vmem:[#allocation10 + $0xd0] sm:$0xf]  ;;  %v4991_v15 = vor.u32 %v5311_v13, %v4990_v12  ;;  %v5211_v19 = vld [vmem:[#allocation3 + $0x38] sm:$0xff] }
  0x3e   :  { %742 = vmatmul.bf16.vlgmr.msra.gmra.mxu1 %v5252_v39  ;;  %2037 = vmatpush.bf16.msrb.mxu0 %v5007_v44  ;;  %v5059_v11 = vor.u32 %v5326_v8, %v5056_v10  ;;  %v5055_v18 = vor.u32 %v5327_v16, %v5054_v14  ;;  %v5260_v20 = vld [vmem:[#allocation5 + $0x40] sm:$0xff]  ;;  %v5261_v34 = vld [vmem:[#allocation5 + $0x48] sm:$0xff] }
  0x3f   :  { %1183 = vmatmul.bf16.vlgmr.msra.gmra.mxu2 %v5204_v43  ;;  %1352 = vmatmul.bf16.vlgmr.msra.gmra.mxu3 %v5204_v43  ;;  %v5212_v22 = vld [vmem:[#allocation3 + $0x40] sm:$0xff]  ;;  %v5213_v39 = vld [vmem:[#allocation3 + $0x48] sm:$0xff] }
  0x40   :  { %2375 = vmatpush.bf16.msrb.mxu2 %v5011_v36  ;;  %2544 = vmatpush.bf16.msrb.mxu3 %v5075_v40  ;;  %v1513_v28 = vld [vmem:[%s6995_s4] sm:$0x3]  ;;  %v4984_v10 = vld [vmem:[#allocation10 + $0x48] sm:$0xf0]  ;;  %v5324_v12 = vld [vmem:[#allocation10 + $0xc4] sm:$0xf] }
  0x41   :  { %2206 = vmatpush.bf16.msrb.mxu1 %v5071_v45  ;;  %v5617_v31 = vperm.slane %v1513_v28, 0  ;;  %v5619_v32 = vperm.slane %v1513_v28, 1  ;;  %v5048_v13 = vld [vmem:[#allocation10 + $0xc8] sm:$0xf0] }
  0x42   :  { %2038 = vmatpush.bf16.msrb.mxu0 %v4999_v58  ;;  %v5262_v58 = vld [vmem:[#allocation5 + $0x50] sm:$0xff]  ;;  %v5051_v16 = vor.u32 %v5324_v12, %v5048_v13 }
  0x44   :  { %2376 = vmatpush.bf16.msrb.mxu2 %v5003_v53  ;;  %2545 = vmatpush.bf16.msrb.mxu3 %v5067_v57 }
  0x45   :  { %2207 = vmatpush.bf16.msrb.mxu1 %v5063_v61 }
  0x46   :  { %2039 = vmatpush.bf16.msrb.mxu0 %v4991_v15 }
  0x48   :  { %2377 = vmatpush.bf16.msrb.mxu2 %v4995_v9  ;;  %2546 = vmatpush.bf16.msrb.mxu3 %v5059_v11  ;;  %v5308_v9 = vld [vmem:[#allocation10 + $0x44] sm:$0xf] }
  0x49   :  { %2208 = vmatpush.bf16.msrb.mxu1 %v5055_v18  ;;  %v4987_v11 = vor.u32 %v5308_v9, %v4984_v10 }
  0x4c   :  { %2378 = vmatpush.bf16.msrb.mxu2 %v4987_v11  ;;  %2547 = vmatpush.bf16.msrb.mxu3 %v5051_v16 }
  0x4d   :  { %578 = vmatmul.bf16.gmra.mxu0 %v5253_v46 }
  0x4e   :  { %747 = vmatmul.bf16.gmra.mxu1 %v5253_v46 }
  0x4f   :  { %1188 = vmatmul.bf16.gmra.mxu2 %v5205_v47  ;;  %1357 = vmatmul.bf16.gmra.mxu3 %v5205_v47 }
  0x5d   :  { %583 = vmatmul.bf16.gmra.mxu0 %v5254_v48 }
  0x5e   :  { %752 = vmatmul.bf16.gmra.mxu1 %v5254_v48 }
  0x5f   :  { %1193 = vmatmul.bf16.gmra.mxu2 %v5206_v49  ;;  %1362 = vmatmul.bf16.gmra.mxu3 %v5206_v49 }
  0x6d   :  { %588 = vmatmul.bf16.gmra.mxu0 %v5255_v62 }
  0x6e   :  { %757 = vmatmul.bf16.gmra.mxu1 %v5255_v62 }
  0x6f   :  { %1198 = vmatmul.bf16.gmra.mxu2 %v5207_v63  ;;  %1367 = vmatmul.bf16.gmra.mxu3 %v5207_v63  ;;  %v5214_v63 = vld [vmem:[#allocation3 + $0x50] sm:$0xff] }
  0x7d   :  { %593 = vmatmul.bf16.gmra.mxu0 %v5256_v0 }
  0x7e   :  { %762 = vmatmul.bf16.gmra.mxu1 %v5256_v0 }
  0x7f   :  { %1203 = vmatmul.bf16.gmra.mxu2 %v5208_v1  ;;  %1372 = vmatmul.bf16.gmra.mxu3 %v5208_v1 }
  0x8d   :  { %598 = vmatmul.bf16.gmra.mxu0 %v5257_v2 }
  0x8e   :  { %767 = vmatmul.bf16.gmra.mxu1 %v5257_v2 }
  0x8f   :  { %1208 = vmatmul.bf16.gmra.mxu2 %v5209_v3  ;;  %1377 = vmatmul.bf16.gmra.mxu3 %v5209_v3 }
  0x9d   :  { %603 = vmatmul.bf16.gmra.mxu0 %v5258_v4 }
  0x9e   :  { %772 = vmatmul.bf16.gmra.mxu1 %v5258_v4 }
  0x9f   :  { %1213 = vmatmul.bf16.gmra.mxu2 %v5210_v5  ;;  %1382 = vmatmul.bf16.gmra.mxu3 %v5210_v5 }
  0xad   :  { %608 = vmatmul.bf16.gmra.mxu0 %v5259_v17 }
  0xae   :  { %777 = vmatmul.bf16.gmra.mxu1 %v5259_v17 }
  0xaf   :  { %1218 = vmatmul.bf16.gmra.mxu2 %v5211_v19  ;;  %1387 = vmatmul.bf16.gmra.mxu3 %v5211_v19 }
  0xba   :  { %v574_v21 = vpop.f32.mrf.mxu0 }
  0xbb   :  { %v743_v23 = vpop.f32.mrf.mxu1 }
  0xbd   :  { %613 = vmatmul.bf16.gmra.mxu0 %v5260_v20 }
  0xbe   :  { %782 = vmatmul.bf16.gmra.mxu1 %v5260_v20 }
  0xbf   :  { %1223 = vmatmul.bf16.gmra.mxu2 %v5212_v22  ;;  %1392 = vmatmul.bf16.gmra.mxu3 %v5212_v22 }
  0xc2   :  { %v1184_v24 = vpop.f32.mrf.mxu2  ;;  %v1353_v26 = vpop.f32.mrf.mxu3 }
  0xc3   :  { %v1185_v25 = vadd.f32 %v1184_v24, %v574_v21  ;;  %v576_v27 = vpop.f32.mrf.mxu0  ;;  %v1354_v29 = vadd.f32 %v1353_v26, %v743_v23  ;;  %v745_v30 = vpop.f32.mrf.mxu1  ;;  %v4982_v23 = vld [vmem:[#allocation10 + $0x40] sm:$0xf]  ;;  %v5309_v24 = vld [vmem:[#allocation10 + $0x44] sm:$0xf0] }
  0xc4   :  { %v5046_v26 = vld [vmem:[#allocation10 + $0xc0] sm:$0xf] }
  0xc5   :  { %v1519_v35 = vadd.f32 %v5617_v31, %v1185_v25  ;;  %v1520_v40 = vadd.f32 %v5619_v32, %v1354_v29  ;;  %v4983_v25 = vor.u32 %v5309_v24, %v4982_v23  ;;  %v5263_v29 = vld [vmem:[#allocation5 + $0x58] sm:$0xff] }
  0xc7   :  { %v1647_v45 = vmax.f32 %v1519_v35, 0.0  ;;  %v1648_v47 = vmax.f32 %v1520_v40, 0.0  ;;  %2040 = vmatpush.bf16.msrb.mxu0 %v4983_v25  ;;  %v5217_v25 = vld [vmem:[#allocation3 + $0x68] sm:$0xff] }
  0xca   :  { %v1186_v33 = vpop.f32.mrf.mxu2  ;;  %v1355_v37 = vpop.f32.mrf.mxu3 }
  0xcb   :  { %v1187_v36 = vadd.f32 %v1186_v33, %v576_v27  ;;  %v579_v38 = vpop.f32.mrf.mxu0  ;;  %v1356_v41 = vadd.f32 %v1355_v37, %v745_v30  ;;  %v748_v42 = vpop.f32.mrf.mxu1  ;;  %v5325_v27 = vld [vmem:[#allocation10 + $0xc4] sm:$0xf0]  ;;  %v5215_v37 = vld [vmem:[#allocation3 + $0x58] sm:$0xff] }
  0xcc   :  { %v5047_v30 = vor.u32 %v5325_v27, %v5046_v26 }
  0xcd   :  { %v1521_v43 = vadd.f32 %v5617_v31, %v1187_v36  ;;  %v1522_v44 = vadd.f32 %v5619_v32, %v1356_v41  ;;  %618 = vmatmul.bf16.gmra.mxu0 %v5261_v34 }
  0xce   :  { %787 = vmatmul.bf16.gmra.mxu1 %v5261_v34 }
  0xcf   :  { %v1649_v46 = vmax.f32 %v1521_v43, 0.0  ;;  %1228 = vmatmul.bf16.gmra.mxu2 %v5213_v39  ;;  %v1650_v48 = vmax.f32 %v1522_v44, 0.0  ;;  %1397 = vmatmul.bf16.gmra.mxu3 %v5213_v39 }
  0xd0   :  { %2209 = vmatpush.bf16.msrb.mxu1 %v5047_v30 }
  0xd1   :  { %v5625_v49 = vpack.c.bf16 %v1649_v46, %v1647_v45  ;;  %v5627_v50 = vpack.c.bf16 %v1650_v48, %v1648_v47 }
  0xd2   :  { %v1189_v51 = vpop.f32.mrf.mxu2  ;;  %v1358_v53 = vpop.f32.mrf.mxu3 }
  0xd3   :  { %v1190_v52 = vadd.f32 %v1189_v51, %v579_v38  ;;  %v581_v54 = vpop.f32.mrf.mxu0  ;;  %v1359_v55 = vadd.f32 %v1358_v53, %v748_v42  ;;  %v750_v56 = vpop.f32.mrf.mxu1 }
  0xd5   :  { %v1523_v59 = vadd.f32 %v5617_v31, %v1190_v52  ;;  %v1524_v0 = vadd.f32 %v5619_v32, %v1359_v55 }
  0xd7   :  { %v1651_v5 = vmax.f32 %v1523_v59, 0.0  ;;  %v1652_v7 = vmax.f32 %v1524_v0, 0.0 }
  0xda   :  { %v1191_v57 = vpop.f32.mrf.mxu2  ;;  %v1360_v61 = vpop.f32.mrf.mxu3 }
  0xdb   :  { %v1192_v60 = vadd.f32 %v1191_v57, %v581_v54  ;;  %v584_v62 = vpop.f32.mrf.mxu0  ;;  %v1361_v1 = vadd.f32 %v1360_v61, %v750_v56  ;;  %v753_v2 = vpop.f32.mrf.mxu1 }
  0xdd   :  { %v1525_v3 = vadd.f32 %v5617_v31, %v1192_v60  ;;  %v1526_v4 = vadd.f32 %v5619_v32, %v1361_v1  ;;  %623 = vmatmul.bf16.gmra.mxu0 %v5262_v58 }
  0xde   :  { %792 = vmatmul.bf16.gmra.mxu1 %v5262_v58  ;;  %v5264_v58 = vld [vmem:[#allocation5 + $0x60] sm:$0xff] }
  0xdf   :  { %v1653_v6 = vmax.f32 %v1525_v3, 0.0  ;;  %1233 = vmatmul.bf16.gmra.mxu2 %v5214_v63  ;;  %v1654_v8 = vmax.f32 %v1526_v4, 0.0  ;;  %1402 = vmatmul.bf16.gmra.mxu3 %v5214_v63  ;;  %v5216_v63 = vld [vmem:[#allocation3 + $0x60] sm:$0xff] }
  0xe1   :  { %v5633_v14 = vpack.c.bf16 %v1653_v6, %v1651_v5  ;;  %v5635_v17 = vpack.c.bf16 %v1654_v8, %v1652_v7 }
  0xe2   :  { %v1194_v15 = vpop.f32.mrf.mxu2  ;;  %v1363_v19 = vpop.f32.mrf.mxu3 }
  0xe3   :  { %v1195_v18 = vadd.f32 %v1194_v15, %v584_v62  ;;  %v586_v20 = vpop.f32.mrf.mxu0  ;;  %v1364_v21 = vadd.f32 %v1363_v19, %v753_v2  ;;  %v755_v22 = vpop.f32.mrf.mxu1 }
  0xe5   :  { %v1527_v33 = vadd.f32 %v5617_v31, %v1195_v18  ;;  %v1528_v38 = vadd.f32 %v5619_v32, %v1364_v21 }
  0xe7   :  { %v1655_v43 = vmax.f32 %v1527_v33, 0.0  ;;  %v1656_v45 = vmax.f32 %v1528_v38, 0.0 }
  0xea   :  { %v1196_v28 = vpop.f32.mrf.mxu2  ;;  %v1365_v35 = vpop.f32.mrf.mxu3 }
  0xeb   :  { %v1197_v34 = vadd.f32 %v1196_v28, %v586_v20  ;;  %v589_v36 = vpop.f32.mrf.mxu0  ;;  %v1366_v39 = vadd.f32 %v1365_v35, %v755_v22  ;;  %v758_v40 = vpop.f32.mrf.mxu1  ;;  %v5265_v20 = vld [vmem:[#allocation5 + $0x68] sm:$0xff] }
  0xed   :  { %v1529_v41 = vadd.f32 %v5617_v31, %v1197_v34  ;;  %v1530_v42 = vadd.f32 %v5619_v32, %v1366_v39  ;;  %628 = vmatmul.bf16.gmra.mxu0 %v5263_v29 }
  0xee   :  { %797 = vmatmul.bf16.gmra.mxu1 %v5263_v29 }
  0xef   :  { %v1657_v44 = vmax.f32 %v1529_v41, 0.0  ;;  %1238 = vmatmul.bf16.gmra.mxu2 %v5215_v37  ;;  %v1658_v46 = vmax.f32 %v1530_v42, 0.0  ;;  %1407 = vmatmul.bf16.gmra.mxu3 %v5215_v37 }
  0xf1   :  { %v5641_v47 = vpack.c.bf16 %v1657_v44, %v1655_v43  ;;  %v5643_v51 = vpack.c.bf16 %v1658_v46, %v1656_v45  ;;  %v5266_v46 = vld [vmem:[#allocation5 + $0x70] sm:$0xff] }
  0xf2   :  { %v1199_v48 = vpop.f32.mrf.mxu2  ;;  %v1368_v53 = vpop.f32.mrf.mxu3 }
  0xf3   :  { %v1200_v52 = vadd.f32 %v1199_v48, %v589_v36  ;;  %v591_v54 = vpop.f32.mrf.mxu0  ;;  %v1369_v55 = vadd.f32 %v1368_v53, %v758_v40  ;;  %v760_v56 = vpop.f32.mrf.mxu1 }
  0xf5   :  { %v1531_v59 = vadd.f32 %v5617_v31, %v1200_v52  ;;  %v1532_v0 = vadd.f32 %v5619_v32, %v1369_v55  ;;  %v5218_v55 = vld [vmem:[#allocation3 + $0x70] sm:$0xff] }
  0xf7   :  { %v1659_v5 = vmax.f32 %v1531_v59, 0.0  ;;  %v1660_v7 = vmax.f32 %v1532_v0, 0.0 }
  0xfa   :  { %v1201_v57 = vpop.f32.mrf.mxu2  ;;  %v1370_v61 = vpop.f32.mrf.mxu3 }
  0xfb   :  { %v1202_v60 = vadd.f32 %v1201_v57, %v591_v54  ;;  %v594_v62 = vpop.f32.mrf.mxu0  ;;  %v1371_v1 = vadd.f32 %v1370_v61, %v760_v56  ;;  %v763_v2 = vpop.f32.mrf.mxu1 }
  0xfd   :  { %v1533_v3 = vadd.f32 %v5617_v31, %v1202_v60  ;;  %v1534_v4 = vadd.f32 %v5619_v32, %v1371_v1  ;;  %633 = vmatmul.bf16.gmra.mxu0 %v5264_v58  ;;  %v5306_v1 = vld [vmem:[#allocation10 + $0x34] sm:$0xf] }
  0xfe   :  { %802 = vmatmul.bf16.gmra.mxu1 %v5264_v58 }
  0xff   :  { %v1661_v6 = vmax.f32 %v1533_v3, 0.0  ;;  %1243 = vmatmul.bf16.gmra.mxu2 %v5216_v63  ;;  %v1662_v8 = vmax.f32 %v1534_v4, 0.0  ;;  %1412 = vmatmul.bf16.gmra.mxu3 %v5216_v63  ;;  %v5322_v4 = vld [vmem:[#allocation10 + $0xb4] sm:$0xf] }
 0x101   :  { %v5649_v9 = vpack.c.bf16 %v1661_v6, %v1659_v5  ;;  %v5651_v11 = vpack.c.bf16 %v1662_v8, %v1660_v7  ;;  %v5040_v5 = vld [vmem:[#allocation10 + $0xb8] sm:$0xf0] }
 0x102   :  { %v1204_v10 = vpop.f32.mrf.mxu2  ;;  %v1373_v13 = vpop.f32.mrf.mxu3  ;;  %v5043_v8 = vor.u32 %v5322_v4, %v5040_v5 }
 0x103   :  { %v1205_v12 = vadd.f32 %v1204_v10, %v594_v62  ;;  %v596_v15 = vpop.f32.mrf.mxu0  ;;  %v1374_v16 = vadd.f32 %v1373_v13, %v763_v2  ;;  %v765_v18 = vpop.f32.mrf.mxu1  ;;  %v4976_v2 = vld [vmem:[#allocation10 + $0x38] sm:$0xf0] }
 0x104   :  { %v4979_v3 = vor.u32 %v5306_v1, %v4976_v2  ;;  %2548 = vmatpush.bf16.msrb.mxu3 %v5043_v8 }
 0x105   :  { %v1535_v21 = vadd.f32 %v5617_v31, %v1205_v12  ;;  %v1536_v26 = vadd.f32 %v5619_v32, %v1374_v16 }
 0x106   :  { %2379 = vmatpush.bf16.msrb.mxu2 %v4979_v3 }
 0x107   :  { %v1663_v33 = vmax.f32 %v1535_v21, 0.0  ;;  %v1664_v35 = vmax.f32 %v1536_v26, 0.0 }
 0x10a   :  { %v1206_v19 = vpop.f32.mrf.mxu2  ;;  %v1375_v23 = vpop.f32.mrf.mxu3 }
 0x10b   :  { %v1207_v22 = vadd.f32 %v1206_v19, %v596_v15  ;;  %v599_v24 = vpop.f32.mrf.mxu0  ;;  %v1376_v27 = vadd.f32 %v1375_v23, %v765_v18  ;;  %v768_v28 = vpop.f32.mrf.mxu1  ;;  %v4974_v19 = vld [vmem:[#allocation10 + $0x30] sm:$0xf]  ;;  %v5323_v23 = vld [vmem:[#allocation10 + $0xb4] sm:$0xf0] }
 0x10d   :  { %v1537_v29 = vadd.f32 %v5617_v31, %v1207_v22  ;;  %v1538_v30 = vadd.f32 %v5619_v32, %v1376_v27  ;;  %638 = vmatmul.bf16.gmra.mxu0 %v5265_v20  ;;  %v5038_v22 = vld [vmem:[#allocation10 + $0xb0] sm:$0xf] }
 0x10e   :  { %807 = vmatmul.bf16.gmra.mxu1 %v5265_v20  ;;  %v5307_v20 = vld [vmem:[#allocation10 + $0x34] sm:$0xf0]  ;;  %v5039_v26 = vor.u32 %v5323_v23, %v5038_v22 }
 0x10f   :  { %v1665_v34 = vmax.f32 %v1537_v29, 0.0  ;;  %1248 = vmatmul.bf16.gmra.mxu2 %v5217_v25  ;;  %v1666_v36 = vmax.f32 %v1538_v30, 0.0  ;;  %1417 = vmatmul.bf16.gmra.mxu3 %v5217_v25  ;;  %v4975_v21 = vor.u32 %v5307_v20, %v4974_v19  ;;  %v5267_v25 = vld [vmem:[#allocation5 + $0x78] sm:$0xff] }
 0x110   :  { %2210 = vmatpush.bf16.msrb.mxu1 %v5039_v26 }
 0x111   :  { %v5657_v37 = vpack.c.bf16 %v1665_v34, %v1663_v33  ;;  %v5659_v39 = vpack.c.bf16 %v1666_v36, %v1664_v35  ;;  %v5219_v33 = vld [vmem:[#allocation3 + $0x78] sm:$0xff]  ;;  %2041 = vmatpush.bf16.msrb.mxu0 %v4975_v21 }
 0x112   :  { %v1209_v38 = vpop.f32.mrf.mxu2  ;;  %v1378_v41 = vpop.f32.mrf.mxu3 }
 0x113   :  { %v1210_v40 = vadd.f32 %v1209_v38, %v599_v24  ;;  %v601_v42 = vpop.f32.mrf.mxu0  ;;  %v1379_v43 = vadd.f32 %v1378_v41, %v768_v28  ;;  %v770_v44 = vpop.f32.mrf.mxu1 }
 0x115   :  { %v1539_v48 = vadd.f32 %v5617_v31, %v1210_v40  ;;  %v1540_v56 = vadd.f32 %v5619_v32, %v1379_v43 }
 0x117   :  { %v1667_v61 = vmax.f32 %v1539_v48, 0.0  ;;  %v1668_v63 = vmax.f32 %v1540_v56, 0.0 }
 0x11a   :  { %v1211_v45 = vpop.f32.mrf.mxu2  ;;  %v1380_v53 = vpop.f32.mrf.mxu3 }
 0x11b   :  { %v1212_v52 = vadd.f32 %v1211_v45, %v601_v42  ;;  %v604_v54 = vpop.f32.mrf.mxu0  ;;  %v1381_v57 = vadd.f32 %v1380_v53, %v770_v44  ;;  %v773_v58 = vpop.f32.mrf.mxu1 }
 0x11d   :  { %v1541_v59 = vadd.f32 %v5617_v31, %v1212_v52  ;;  %v1542_v60 = vadd.f32 %v5619_v32, %v1381_v57  ;;  %643 = vmatmul.bf16.gmra.mxu0 %v5266_v46 }
 0x11e   :  { %812 = vmatmul.bf16.gmra.mxu1 %v5266_v46 }
 0x11f   :  { %v1669_v62 = vmax.f32 %v1541_v59, 0.0  ;;  %1253 = vmatmul.bf16.gmra.mxu2 %v5218_v55  ;;  %v1670_v0 = vmax.f32 %v1542_v60, 0.0  ;;  %1422 = vmatmul.bf16.gmra.mxu3 %v5218_v55 }
 0x121   :  { %v5665_v6 = vpack.c.bf16 %v1669_v62, %v1667_v61  ;;  %v5667_v10 = vpack.c.bf16 %v1670_v0, %v1668_v63  ;;  %v5220_v63 = vld [vmem:[#allocation3 + $0x80] sm:$0xff] }
 0x122   :  { %v1214_v7 = vpop.f32.mrf.mxu2  ;;  %v1383_v13 = vpop.f32.mrf.mxu3 }
 0x123   :  { %v1215_v12 = vadd.f32 %v1214_v7, %v604_v54  ;;  %v606_v15 = vpop.f32.mrf.mxu0  ;;  %v1384_v16 = vadd.f32 %v1383_v13, %v773_v58  ;;  %v775_v18 = vpop.f32.mrf.mxu1  ;;  %v5268_v58 = vld [vmem:[#allocation5 + $0x80] sm:$0xff] }
 0x125   :  { %v1543_v27 = vadd.f32 %v5617_v31, %v1215_v12  ;;  %v1544_v34 = vadd.f32 %v5619_v32, %v1384_v16 }
 0x127   :  { %v1671_v41 = vmax.f32 %v1543_v27, 0.0  ;;  %v1672_v43 = vmax.f32 %v1544_v34, 0.0 }
 0x12a   :  { %v1216_v24 = vpop.f32.mrf.mxu2  ;;  %v1385_v29 = vpop.f32.mrf.mxu3 }
 0x12b   :  { %v1217_v28 = vadd.f32 %v1216_v24, %v606_v15  ;;  %v609_v30 = vpop.f32.mrf.mxu0  ;;  %v1386_v35 = vadd.f32 %v1385_v29, %v775_v18  ;;  %v778_v36 = vpop.f32.mrf.mxu1  ;;  %v5269_v24 = vld [vmem:[#allocation5 + $0x88] sm:$0xff] }
 0x12c   :  { %v5221_v29 = vld [vmem:[#allocation3 + $0x88] sm:$0xff] }
 0x12d   :  { %v1545_v38 = vadd.f32 %v5617_v31, %v1217_v28  ;;  %v1546_v40 = vadd.f32 %v5619_v32, %v1386_v35  ;;  %648 = vmatmul.bf16.gmra.mxu0 %v5267_v25 }
 0x12e   :  { %817 = vmatmul.bf16.gmra.mxu1 %v5267_v25 }
 0x12f   :  { %v1673_v42 = vmax.f32 %v1545_v38, 0.0  ;;  %1258 = vmatmul.bf16.gmra.mxu2 %v5219_v33  ;;  %v1674_v44 = vmax.f32 %v1546_v40, 0.0  ;;  %1427 = vmatmul.bf16.gmra.mxu3 %v5219_v33 }
 0x131   :  { %v5673_v45 = vpack.c.bf16 %v1673_v42, %v1671_v41  ;;  %v5675_v48 = vpack.c.bf16 %v1674_v44, %v1672_v43 }
 0x132   :  { %v1219_v46 = vpop.f32.mrf.mxu2  ;;  %v1388_v53 = vpop.f32.mrf.mxu3 }
 0x133   :  { %v1220_v52 = vadd.f32 %v1219_v46, %v609_v30  ;;  %v611_v54 = vpop.f32.mrf.mxu0  ;;  %v1389_v55 = vadd.f32 %v1388_v53, %v778_v36  ;;  %v780_v56 = vpop.f32.mrf.mxu1 }
 0x135   :  { %v1547_v59 = vadd.f32 %v5617_v31, %v1220_v52  ;;  %v1548_v0 = vadd.f32 %v5619_v32, %v1389_v55 }
 0x137   :  { %v1675_v5 = vmax.f32 %v1547_v59, 0.0  ;;  %v1676_v8 = vmax.f32 %v1548_v0, 0.0 }
 0x13a   :  { %v1221_v57 = vpop.f32.mrf.mxu2  ;;  %v1390_v61 = vpop.f32.mrf.mxu3 }
 0x13b   :  { %v1222_v60 = vadd.f32 %v1221_v57, %v611_v54  ;;  %v614_v62 = vpop.f32.mrf.mxu0  ;;  %v1391_v1 = vadd.f32 %v1390_v61, %v780_v56  ;;  %v783_v2 = vpop.f32.mrf.mxu1 }
 0x13d   :  { %v1549_v3 = vadd.f32 %v5617_v31, %v1222_v60  ;;  %v1550_v4 = vadd.f32 %v5619_v32, %v1391_v1  ;;  %653 = vmatmul.bf16.gmra.mxu0 %v5268_v58 }
 0x13e   :  { %822 = vmatmul.bf16.gmra.mxu1 %v5268_v58  ;;  %v5270_v58 = vld [vmem:[#allocation5 + $0x90] sm:$0xff] }
 0x13f   :  { %v1677_v7 = vmax.f32 %v1549_v3, 0.0  ;;  %1263 = vmatmul.bf16.gmra.mxu2 %v5220_v63  ;;  %v1678_v12 = vmax.f32 %v1550_v4, 0.0  ;;  %1432 = vmatmul.bf16.gmra.mxu3 %v5220_v63  ;;  %v5222_v63 = vld [vmem:[#allocation3 + $0x90] sm:$0xff] }
 0x141   :  { %v5681_v13 = vpack.c.bf16 %v1677_v7, %v1675_v5  ;;  %v5683_v16 = vpack.c.bf16 %v1678_v12, %v1676_v8 }
 0x142   :  { %v1224_v15 = vpop.f32.mrf.mxu2  ;;  %v1393_v19 = vpop.f32.mrf.mxu3 }
 0x143   :  { %v1225_v18 = vadd.f32 %v1224_v15, %v614_v62  ;;  %v616_v20 = vpop.f32.mrf.mxu0  ;;  %v1394_v21 = vadd.f32 %v1393_v19, %v783_v2  ;;  %v785_v22 = vpop.f32.mrf.mxu1  ;;  %v5304_v15 = vld [vmem:[#allocation10 + $0x24] sm:$0xf] }
 0x145   :  { %v1551_v25 = vadd.f32 %v5617_v31, %v1225_v18  ;;  %v1552_v30 = vadd.f32 %v5619_v32, %v1394_v21  ;;  %v4968_v18 = vld [vmem:[#allocation10 + $0x28] sm:$0xf0] }
 0x146   :  { %v4971_v19 = vor.u32 %v5304_v15, %v4968_v18  ;;  %v5032_v21 = vld [vmem:[#allocation10 + $0xa8] sm:$0xf0]  ;;  %v5272_v18 = vld [vmem:[#allocation5 + $0xa0] sm:$0xff] }
 0x147   :  { %v1679_v38 = vmax.f32 %v1551_v25, 0.0  ;;  %v1680_v41 = vmax.f32 %v1552_v30, 0.0 }
 0x148   :  { %2380 = vmatpush.bf16.msrb.mxu2 %v4971_v19 }
 0x14a   :  { %v1226_v23 = vpop.f32.mrf.mxu2  ;;  %v1395_v27 = vpop.f32.mrf.mxu3 }
 0x14b   :  { %v1227_v26 = vadd.f32 %v1226_v23, %v616_v20  ;;  %v619_v28 = vpop.f32.mrf.mxu0  ;;  %v1396_v33 = vadd.f32 %v1395_v27, %v785_v22  ;;  %v788_v34 = vpop.f32.mrf.mxu1  ;;  %v5320_v20 = vld [vmem:[#allocation10 + $0xa4] sm:$0xf] }
 0x14d   :  { %v1553_v35 = vadd.f32 %v5617_v31, %v1227_v26  ;;  %v1554_v36 = vadd.f32 %v5619_v32, %v1396_v33  ;;  %658 = vmatmul.bf16.gmra.mxu0 %v5269_v24  ;;  %v4966_v33 = vld [vmem:[#allocation10 + $0x20] sm:$0xf] }
 0x14e   :  { %827 = vmatmul.bf16.gmra.mxu1 %v5269_v24  ;;  %v5035_v24 = vor.u32 %v5320_v20, %v5032_v21 }
 0x14f   :  { %v1681_v40 = vmax.f32 %v1553_v35, 0.0  ;;  %1268 = vmatmul.bf16.gmra.mxu2 %v5221_v29  ;;  %v1682_v42 = vmax.f32 %v1554_v36, 0.0  ;;  %1437 = vmatmul.bf16.gmra.mxu3 %v5221_v29  ;;  %v5030_v36 = vld [vmem:[#allocation10 + $0xa0] sm:$0xf] }
 0x150   :  { %2549 = vmatpush.bf16.msrb.mxu3 %v5035_v24  ;;  %v5224_v24 = vld [vmem:[#allocation3 + $0xa0] sm:$0xff] }
 0x151   :  { %v5689_v43 = vpack.c.bf16 %v1681_v40, %v1679_v38  ;;  %v5691_v46 = vpack.c.bf16 %v1682_v42, %v1680_v41  ;;  %v5321_v38 = vld [vmem:[#allocation10 + $0xa4] sm:$0xf0]  ;;  %v5271_v41 = vld [vmem:[#allocation5 + $0x98] sm:$0xff] }
 0x152   :  { %v1229_v44 = vpop.f32.mrf.mxu2  ;;  %v1398_v53 = vpop.f32.mrf.mxu3  ;;  %v5031_v42 = vor.u32 %v5321_v38, %v5030_v36 }
 0x153   :  { %v1230_v52 = vadd.f32 %v1229_v44, %v619_v28  ;;  %v621_v54 = vpop.f32.mrf.mxu0  ;;  %v1399_v55 = vadd.f32 %v1398_v53, %v788_v34  ;;  %v790_v56 = vpop.f32.mrf.mxu1  ;;  %v5305_v34 = vld [vmem:[#allocation10 + $0x24] sm:$0xf0] }
 0x154   :  { %v4967_v35 = vor.u32 %v5305_v34, %v4966_v33  ;;  %2211 = vmatpush.bf16.msrb.mxu1 %v5031_v42 }
 0x155   :  { %v1555_v59 = vadd.f32 %v5617_v31, %v1230_v52  ;;  %v1556_v0 = vadd.f32 %v5619_v32, %v1399_v55  ;;  %v5223_v55 = vld [vmem:[#allocation3 + $0x98] sm:$0xff] }
 0x156   :  { %2042 = vmatpush.bf16.msrb.mxu0 %v4967_v35 }
 0x157   :  { %v1683_v5 = vmax.f32 %v1555_v59, 0.0  ;;  %v1684_v8 = vmax.f32 %v1556_v0, 0.0 }
 0x15a   :  { %v1231_v57 = vpop.f32.mrf.mxu2  ;;  %v1400_v61 = vpop.f32.mrf.mxu3 }
 0x15b   :  { %v1232_v60 = vadd.f32 %v1231_v57, %v621_v54  ;;  %v624_v62 = vpop.f32.mrf.mxu0  ;;  %v1401_v1 = vadd.f32 %v1400_v61, %v790_v56  ;;  %v793_v2 = vpop.f32.mrf.mxu1 }
 0x15d   :  { %v1557_v3 = vadd.f32 %v5617_v31, %v1232_v60  ;;  %v1558_v4 = vadd.f32 %v5619_v32, %v1401_v1  ;;  %663 = vmatmul.bf16.gmra.mxu0 %v5270_v58 }
 0x15e   :  { %832 = vmatmul.bf16.gmra.mxu1 %v5270_v58 }
 0x15f   :  { %v1685_v7 = vmax.f32 %v1557_v3, 0.0  ;;  %1273 = vmatmul.bf16.gmra.mxu2 %v5222_v63  ;;  %v1686_v12 = vmax.f32 %v1558_v4, 0.0  ;;  %1442 = vmatmul.bf16.gmra.mxu3 %v5222_v63 }
 0x161   :  { %v5697_v22 = vpack.c.bf16 %v1685_v7, %v1683_v5  ;;  %v5699_v25 = vpack.c.bf16 %v1686_v12, %v1684_v8 }
 0x162   :  { %v1234_v23 = vpop.f32.mrf.mxu2  ;;  %v1403_v27 = vpop.f32.mrf.mxu3 }
 0x163   :  { %v1235_v26 = vadd.f32 %v1234_v23, %v624_v62  ;;  %v626_v28 = vpop.f32.mrf.mxu0  ;;  %v1404_v29 = vadd.f32 %v1403_v27, %v793_v2  ;;  %v795_v30 = vpop.f32.mrf.mxu1 }
 0x165   :  { %v1559_v44 = vadd.f32 %v5617_v31, %v1235_v26  ;;  %v1560_v56 = vadd.f32 %v5619_v32, %v1404_v29 }
 0x167   :  { %v1687_v61 = vmax.f32 %v1559_v44, 0.0  ;;  %v1688_v63 = vmax.f32 %v1560_v56, 0.0  ;;  %v5273_v56 = vld [vmem:[#allocation5 + $0xa8] sm:$0xff] }
 0x16a   :  { %v1236_v40 = vpop.f32.mrf.mxu2  ;;  %v1405_v53 = vpop.f32.mrf.mxu3 }
 0x16b   :  { %v1237_v52 = vadd.f32 %v1236_v40, %v626_v28  ;;  %v629_v54 = vpop.f32.mrf.mxu0  ;;  %v1406_v57 = vadd.f32 %v1405_v53, %v795_v30  ;;  %v798_v58 = vpop.f32.mrf.mxu1 }
 0x16d   :  { %v1561_v59 = vadd.f32 %v5617_v31, %v1237_v52  ;;  %v1562_v60 = vadd.f32 %v5619_v32, %v1406_v57  ;;  %668 = vmatmul.bf16.gmra.mxu0 %v5271_v41 }
 0x16e   :  { %837 = vmatmul.bf16.gmra.mxu1 %v5271_v41 }
 0x16f   :  { %v1689_v62 = vmax.f32 %v1561_v59, 0.0  ;;  %1278 = vmatmul.bf16.gmra.mxu2 %v5223_v55  ;;  %v1690_v0 = vmax.f32 %v1562_v60, 0.0  ;;  %1447 = vmatmul.bf16.gmra.mxu3 %v5223_v55 }
 0x171   :  { %v5705_v1 = vpack.c.bf16 %v1689_v62, %v1687_v61  ;;  %v5707_v3 = vpack.c.bf16 %v1690_v0, %v1688_v63  ;;  %v5225_v61 = vld [vmem:[#allocation3 + $0xa8] sm:$0xff] }
 0x172   :  { %v1239_v2 = vpop.f32.mrf.mxu2  ;;  %v1408_v5 = vpop.f32.mrf.mxu3 }
 0x173   :  { %v1240_v4 = vadd.f32 %v1239_v2, %v629_v54  ;;  %v631_v7 = vpop.f32.mrf.mxu0  ;;  %v1409_v8 = vadd.f32 %v1408_v5, %v798_v58  ;;  %v800_v12 = vpop.f32.mrf.mxu1 }
 0x175   :  { %v1563_v19 = vadd.f32 %v5617_v31, %v1240_v4  ;;  %v1564_v26 = vadd.f32 %v5619_v32, %v1409_v8 }
 0x177   :  { %v1691_v33 = vmax.f32 %v1563_v19, 0.0  ;;  %v1692_v35 = vmax.f32 %v1564_v26, 0.0 }
 0x17a   :  { %v1241_v15 = vpop.f32.mrf.mxu2  ;;  %v1410_v21 = vpop.f32.mrf.mxu3 }
 0x17b   :  { %v1242_v20 = vadd.f32 %v1241_v15, %v631_v7  ;;  %v634_v23 = vpop.f32.mrf.mxu0  ;;  %v1411_v27 = vadd.f32 %v1410_v21, %v800_v12  ;;  %v803_v28 = vpop.f32.mrf.mxu1 }
 0x17d   :  { %v1565_v29 = vadd.f32 %v5617_v31, %v1242_v20  ;;  %v1566_v30 = vadd.f32 %v5619_v32, %v1411_v27  ;;  %673 = vmatmul.bf16.gmra.mxu0 %v5272_v18 }
 0x17e   :  { %842 = vmatmul.bf16.gmra.mxu1 %v5272_v18 }
 0x17f   :  { %v1693_v34 = vmax.f32 %v1565_v29, 0.0  ;;  %1283 = vmatmul.bf16.gmra.mxu2 %v5224_v24  ;;  %v1694_v36 = vmax.f32 %v1566_v30, 0.0  ;;  %1452 = vmatmul.bf16.gmra.mxu3 %v5224_v24 }
 0x181   :  { %v5713_v38 = vpack.c.bf16 %v1693_v34, %v1691_v33  ;;  %v5715_v41 = vpack.c.bf16 %v1694_v36, %v1692_v35  ;;  %v5226_v35 = vld [vmem:[#allocation3 + $0xb0] sm:$0xff] }
 0x182   :  { %v1244_v40 = vpop.f32.mrf.mxu2  ;;  %v1413_v44 = vpop.f32.mrf.mxu3 }
 0x183   :  { %v1245_v42 = vadd.f32 %v1244_v40, %v634_v23  ;;  %v636_v52 = vpop.f32.mrf.mxu0  ;;  %v1414_v53 = vadd.f32 %v1413_v44, %v803_v28  ;;  %v805_v54 = vpop.f32.mrf.mxu1  ;;  %v5274_v28 = vld [vmem:[#allocation5 + $0xb0] sm:$0xff] }
 0x185   :  { %v1567_v57 = vadd.f32 %v5617_v31, %v1245_v42  ;;  %v1568_v62 = vadd.f32 %v5619_v32, %v1414_v53 }
 0x187   :  { %v1695_v5 = vmax.f32 %v1567_v57, 0.0  ;;  %v1696_v8 = vmax.f32 %v1568_v62, 0.0  ;;  %v5302_v57 = vld [vmem:[#allocation10 + $0x14] sm:$0xf] }
 0x18a   :  { %v1246_v55 = vpop.f32.mrf.mxu2  ;;  %v1415_v59 = vpop.f32.mrf.mxu3 }
 0x18b   :  { %v1247_v58 = vadd.f32 %v1246_v55, %v636_v52  ;;  %v639_v60 = vpop.f32.mrf.mxu0  ;;  %v1416_v63 = vadd.f32 %v1415_v59, %v805_v54  ;;  %v808_v0 = vpop.f32.mrf.mxu1 }
 0x18d   :  { %v1569_v2 = vadd.f32 %v5617_v31, %v1247_v58  ;;  %v1570_v4 = vadd.f32 %v5619_v32, %v1416_v63  ;;  %678 = vmatmul.bf16.gmra.mxu0 %v5273_v56  ;;  %v4960_v58 = vld [vmem:[#allocation10 + $0x18] sm:$0xf0] }
 0x18e   :  { %847 = vmatmul.bf16.gmra.mxu1 %v5273_v56  ;;  %v4963_v59 = vor.u32 %v5302_v57, %v4960_v58 }
 0x18f   :  { %v1697_v7 = vmax.f32 %v1569_v2, 0.0  ;;  %1288 = vmatmul.bf16.gmra.mxu2 %v5225_v61  ;;  %v1698_v12 = vmax.f32 %v1570_v4, 0.0  ;;  %1457 = vmatmul.bf16.gmra.mxu3 %v5225_v61  ;;  %v5024_v61 = vld [vmem:[#allocation10 + $0x98] sm:$0xf0] }
 0x190   :  { %2381 = vmatpush.bf16.msrb.mxu2 %v4963_v59 }
 0x191   :  { %v5721_v15 = vpack.c.bf16 %v1697_v7, %v1695_v5  ;;  %v5723_v19 = vpack.c.bf16 %v1698_v12, %v1696_v8 }
 0x192   :  { %v1249_v18 = vpop.f32.mrf.mxu2  ;;  %v1418_v21 = vpop.f32.mrf.mxu3 }
 0x193   :  { %v1250_v20 = vadd.f32 %v1249_v18, %v639_v60  ;;  %v641_v23 = vpop.f32.mrf.mxu0  ;;  %v1419_v24 = vadd.f32 %v1418_v21, %v808_v0  ;;  %v810_v26 = vpop.f32.mrf.mxu1  ;;  %v5318_v60 = vld [vmem:[#allocation10 + $0x94] sm:$0xf]  ;;  %v4958_v18 = vld [vmem:[#allocation10 + $0x10] sm:$0xf] }
 0x194   :  { %v5027_v0 = vor.u32 %v5318_v60, %v5024_v61 }
 0x195   :  { %v1571_v29 = vadd.f32 %v5617_v31, %v1250_v20  ;;  %v1572_v36 = vadd.f32 %v5619_v32, %v1419_v24  ;;  %v5303_v20 = vld [vmem:[#allocation10 + $0x14] sm:$0xf0] }
 0x196   :  { %2550 = vmatpush.bf16.msrb.mxu3 %v5027_v0  ;;  %v4959_v21 = vor.u32 %v5303_v20, %v4958_v18  ;;  %v5319_v24 = vld [vmem:[#allocation10 + $0x94] sm:$0xf0] }
 0x197   :  { %v1699_v53 = vmax.f32 %v1571_v29, 0.0  ;;  %v1700_v55 = vmax.f32 %v1572_v36, 0.0 }
 0x198   :  { %2043 = vmatpush.bf16.msrb.mxu0 %v4959_v21  ;;  %v5228_v21 = vld [vmem:[#allocation3 + $0xc0] sm:$0xff] }
 0x19a   :  { %v1251_v27 = vpop.f32.mrf.mxu2  ;;  %v1420_v33 = vpop.f32.mrf.mxu3 }
 0x19b   :  { %v1252_v30 = vadd.f32 %v1251_v27, %v641_v23  ;;  %v644_v34 = vpop.f32.mrf.mxu0  ;;  %v1421_v40 = vadd.f32 %v1420_v33, %v810_v26  ;;  %v813_v42 = vpop.f32.mrf.mxu1  ;;  %v5022_v23 = vld [vmem:[#allocation10 + $0x90] sm:$0xf]  ;;  %v5275_v27 = vld [vmem:[#allocation5 + $0xb8] sm:$0xff] }
 0x19d   :  { %v1573_v44 = vadd.f32 %v5617_v31, %v1252_v30  ;;  %v1574_v52 = vadd.f32 %v5619_v32, %v1421_v40  ;;  %683 = vmatmul.bf16.gmra.mxu0 %v5274_v28 }
 0x19e   :  { %852 = vmatmul.bf16.gmra.mxu1 %v5274_v28  ;;  %v5023_v28 = vor.u32 %v5319_v24, %v5022_v23 }
 0x19f   :  { %v1701_v54 = vmax.f32 %v1573_v44, 0.0  ;;  %1293 = vmatmul.bf16.gmra.mxu2 %v5226_v35  ;;  %v1702_v56 = vmax.f32 %v1574_v52, 0.0  ;;  %1462 = vmatmul.bf16.gmra.mxu3 %v5226_v35 }
 0x1a0   :  { %2212 = vmatpush.bf16.msrb.mxu1 %v5023_v28 }
 0x1a1   :  { %v5729_v62 = vpack.c.bf16 %v1701_v54, %v1699_v53  ;;  %v5731_v2 = vpack.c.bf16 %v1702_v56, %v1700_v55 }
 0x1a2   :  { %v1254_v63 = vpop.f32.mrf.mxu2  ;;  %v1423_v5 = vpop.f32.mrf.mxu3 }
 0x1a3   :  { %v1255_v4 = vadd.f32 %v1254_v63, %v644_v34  ;;  %v646_v7 = vpop.f32.mrf.mxu0  ;;  %v1424_v8 = vadd.f32 %v1423_v5, %v813_v42  ;;  %v815_v12 = vpop.f32.mrf.mxu1  ;;  %v5227_v34 = vld [vmem:[#allocation3 + $0xb8] sm:$0xff] }
 0x1a5   :  { %v1575_v29 = vadd.f32 %v5617_v31, %v1255_v4  ;;  %v1576_v36 = vadd.f32 %v5619_v32, %v1424_v8 }
 0x1a7   :  { %v1703_v53 = vmax.f32 %v1575_v29, 0.0  ;;  %v1704_v55 = vmax.f32 %v1576_v36, 0.0 }
 0x1aa   :  { %v1256_v26 = vpop.f32.mrf.mxu2  ;;  %v1425_v33 = vpop.f32.mrf.mxu3 }
 0x1ab   :  { %v1257_v30 = vadd.f32 %v1256_v26, %v646_v7  ;;  %v649_v35 = vpop.f32.mrf.mxu0  ;;  %v1426_v40 = vadd.f32 %v1425_v33, %v815_v12  ;;  %v818_v42 = vpop.f32.mrf.mxu1  ;;  %v5276_v7 = vld [vmem:[#allocation5 + $0xc0] sm:$0xff] }
 0x1ad   :  { %v1577_v44 = vadd.f32 %v5617_v31, %v1257_v30  ;;  %v1578_v52 = vadd.f32 %v5619_v32, %v1426_v40  ;;  %688 = vmatmul.bf16.gmra.mxu0 %v5275_v27 }
 0x1ae   :  { %857 = vmatmul.bf16.gmra.mxu1 %v5275_v27 }
 0x1af   :  { %v1705_v54 = vmax.f32 %v1577_v44, 0.0  ;;  %1298 = vmatmul.bf16.gmra.mxu2 %v5227_v34  ;;  %v1706_v56 = vmax.f32 %v1578_v52, 0.0  ;;  %1467 = vmatmul.bf16.gmra.mxu3 %v5227_v34 }
 0x1b1   :  { %v5737_v57 = vpack.c.bf16 %v1705_v54, %v1703_v53  ;;  %v5739_v59 = vpack.c.bf16 %v1706_v56, %v1704_v55  ;;  %v5277_v56 = vld [vmem:[#allocation5 + $0xc8] sm:$0xff] }
 0x1b2   :  { %v1259_v58 = vpop.f32.mrf.mxu2  ;;  %v1428_v61 = vpop.f32.mrf.mxu3 }
 0x1b3   :  { %v1260_v60 = vadd.f32 %v1259_v58, %v649_v35  ;;  %v651_v63 = vpop.f32.mrf.mxu0  ;;  %v1429_v0 = vadd.f32 %v1428_v61, %v818_v42  ;;  %v820_v4 = vpop.f32.mrf.mxu1 }
 0x1b5   :  { %v1579_v8 = vadd.f32 %v5617_v31, %v1260_v60  ;;  %v1580_v23 = vadd.f32 %v5619_v32, %v1429_v0  ;;  %v5229_v0 = vld [vmem:[#allocation3 + $0xc8] sm:$0xff] }
 0x1b7   :  { %v1707_v29 = vmax.f32 %v1579_v8, 0.0  ;;  %v1708_v33 = vmax.f32 %v1580_v23, 0.0 }
 0x1ba   :  { %v1261_v5 = vpop.f32.mrf.mxu2  ;;  %v1430_v18 = vpop.f32.mrf.mxu3 }
 0x1bb   :  { %v1262_v12 = vadd.f32 %v1261_v5, %v651_v63  ;;  %v654_v20 = vpop.f32.mrf.mxu0  ;;  %v1431_v24 = vadd.f32 %v1430_v18, %v820_v4  ;;  %v823_v26 = vpop.f32.mrf.mxu1 }
 0x1bd   :  { %v1581_v27 = vadd.f32 %v5617_v31, %v1262_v12  ;;  %v1582_v28 = vadd.f32 %v5619_v32, %v1431_v24  ;;  %693 = vmatmul.bf16.gmra.mxu0 %v5276_v7 }
 0x1be   :  { %862 = vmatmul.bf16.gmra.mxu1 %v5276_v7 }
 0x1bf   :  { %v1709_v30 = vmax.f32 %v1581_v27, 0.0  ;;  %1303 = vmatmul.bf16.gmra.mxu2 %v5228_v21  ;;  %v1710_v35 = vmax.f32 %v1582_v28, 0.0  ;;  %1472 = vmatmul.bf16.gmra.mxu3 %v5228_v21 }
 0x1c1   :  { %v5745_v34 = vpack.c.bf16 %v1709_v30, %v1707_v29  ;;  %v5747_v40 = vpack.c.bf16 %v1710_v35, %v1708_v33 }
 0x1c2   :  { %v1264_v36 = vpop.f32.mrf.mxu2  ;;  %v1433_v44 = vpop.f32.mrf.mxu3 }
 0x1c3   :  { %v1265_v42 = vadd.f32 %v1264_v36, %v654_v20  ;;  %v656_v52 = vpop.f32.mrf.mxu0  ;;  %v1434_v53 = vadd.f32 %v1433_v44, %v823_v26  ;;  %v825_v54 = vpop.f32.mrf.mxu1 }
 0x1c5   :  { %v1583_v58 = vadd.f32 %v5617_v31, %v1265_v42  ;;  %v1584_v4 = vadd.f32 %v5619_v32, %v1434_v53  ;;  %v5278_v42 = vld [vmem:[#allocation5 + $0xd0] sm:$0xff] }
 0x1c7   :  { %v1711_v18 = vmax.f32 %v1583_v58, 0.0  ;;  %v1712_v21 = vmax.f32 %v1584_v4, 0.0 }
 0x1ca   :  { %v1266_v55 = vpop.f32.mrf.mxu2  ;;  %v1435_v61 = vpop.f32.mrf.mxu3 }
 0x1cb   :  { %v1267_v60 = vadd.f32 %v1266_v55, %v656_v52  ;;  %v659_v63 = vpop.f32.mrf.mxu0  ;;  %v1436_v5 = vadd.f32 %v1435_v61, %v825_v54  ;;  %v828_v7 = vpop.f32.mrf.mxu1  ;;  %v5230_v55 = vld [vmem:[#allocation3 + $0xd0] sm:$0xff] }
 0x1cd   :  { %v1585_v8 = vadd.f32 %v5617_v31, %v1267_v60  ;;  %v1586_v12 = vadd.f32 %v5619_v32, %v1436_v5  ;;  %698 = vmatmul.bf16.gmra.mxu0 %v5277_v56 }
 0x1ce   :  { %867 = vmatmul.bf16.gmra.mxu1 %v5277_v56 }
 0x1cf   :  { %v1713_v20 = vmax.f32 %v1585_v8, 0.0  ;;  %1308 = vmatmul.bf16.gmra.mxu2 %v5229_v0  ;;  %v1714_v23 = vmax.f32 %v1586_v12, 0.0  ;;  %1477 = vmatmul.bf16.gmra.mxu3 %v5229_v0  ;;  %v5300_v8 = vld [vmem:[#allocation10 + $0x4] sm:$0xf]  ;;  %v4952_v12 = vld [vmem:[#allocation10 + $0x8] sm:$0xf0] }
 0x1d1   :  { %v5753_v24 = vpack.c.bf16 %v1713_v20, %v1711_v18  ;;  %v5755_v27 = vpack.c.bf16 %v1714_v23, %v1712_v21  ;;  %v4955_v18 = vor.u32 %v5300_v8, %v4952_v12  ;;  %v5316_v20 = vld [vmem:[#allocation10 + $0x84] sm:$0xf]  ;;  %v5016_v21 = vld [vmem:[#allocation10 + $0x88] sm:$0xf0] }
 0x1d2   :  { %v1269_v26 = vpop.f32.mrf.mxu2  ;;  %v1438_v29 = vpop.f32.mrf.mxu3 }
 0x1d3   :  { %v1270_v28 = vadd.f32 %v1269_v26, %v659_v63  ;;  %v661_v30 = vpop.f32.mrf.mxu0  ;;  %v1439_v33 = vadd.f32 %v1438_v29, %v828_v7  ;;  %v830_v35 = vpop.f32.mrf.mxu1  ;;  %2382 = vmatpush.bf16.msrb.mxu2 %v4955_v18 }
 0x1d5   :  { %v1587_v44 = vadd.f32 %v5617_v31, %v1270_v28  ;;  %v1588_v56 = vadd.f32 %v5619_v32, %v1439_v33  ;;  %v5019_v28 = vor.u32 %v5316_v20, %v5016_v21 }
 0x1d7   :  { %v1715_v0 = vmax.f32 %v1587_v44, 0.0  ;;  %v1716_v5 = vmax.f32 %v1588_v56, 0.0  ;;  %2551 = vmatpush.bf16.msrb.mxu3 %v5019_v28  ;;  %v4950_v44 = vld [vmem:[#allocation10] sm:$0xf]  ;;  %v5317_v56 = vld [vmem:[#allocation10 + $0x84] sm:$0xf0] }
 0x1da   :  { %v1271_v36 = vpop.f32.mrf.mxu2  ;;  %v1440_v53 = vpop.f32.mrf.mxu3 }
 0x1db   :  { %v1272_v52 = vadd.f32 %v1271_v36, %v661_v30  ;;  %v664_v54 = vpop.f32.mrf.mxu0  ;;  %v1441_v58 = vadd.f32 %v1440_v53, %v830_v35  ;;  %v833_v60 = vpop.f32.mrf.mxu1 }
 0x1dd   :  { %v1589_v61 = vadd.f32 %v5617_v31, %v1272_v52  ;;  %v1590_v63 = vadd.f32 %v5619_v32, %v1441_v58  ;;  %703 = vmatmul.bf16.gmra.mxu0 %v5278_v42  ;;  %v5301_v52 = vld [vmem:[#allocation10 + $0x4] sm:$0xf0] }
 0x1de   :  { %872 = vmatmul.bf16.gmra.mxu1 %v5278_v42  ;;  %v4951_v53 = vor.u32 %v5301_v52, %v4950_v44 }
 0x1df   :  { %v1717_v4 = vmax.f32 %v1589_v61, 0.0  ;;  %1313 = vmatmul.bf16.gmra.mxu2 %v5230_v55  ;;  %v1718_v7 = vmax.f32 %v1590_v63, 0.0  ;;  %1482 = vmatmul.bf16.gmra.mxu3 %v5230_v55  ;;  %v5014_v55 = vld [vmem:[#allocation10 + $0x80] sm:$0xf]  ;;  %v5279_v61 = vld [vmem:[#allocation5 + $0xd8] sm:$0xff] }
 0x1e0   :  { %v5015_v63 = vor.u32 %v5317_v56, %v5014_v55  ;;  %2044 = vmatpush.bf16.msrb.mxu0 %v4951_v53 }
 0x1e1   :  { %v5761_v23 = vpack.c.bf16 %v1717_v4, %v1715_v0  ;;  %v5763_v29 = vpack.c.bf16 %v1718_v7, %v1716_v5 }
 0x1e2   :  { %v1274_v26 = vpop.f32.mrf.mxu2  ;;  %v1443_v33 = vpop.f32.mrf.mxu3  ;;  %2213 = vmatpush.bf16.msrb.mxu1 %v5015_v63 }
 0x1e3   :  { %v1275_v30 = vadd.f32 %v1274_v26, %v664_v54  ;;  %v666_v35 = vpop.f32.mrf.mxu0  ;;  %v1444_v36 = vadd.f32 %v1443_v33, %v833_v60  ;;  %v835_v42 = vpop.f32.mrf.mxu1  ;;  %v5231_v54 = vld [vmem:[#allocation3 + $0xd8] sm:$0xff] }
 0x1e5   :  { %v1591_v0 = vadd.f32 %v5617_v31, %v1275_v30  ;;  %v1592_v8 = vadd.f32 %v5619_v32, %v1444_v36 }
 0x1e7   :  { %v1719_v21 = vmax.f32 %v1591_v0, 0.0  ;;  %v1720_v28 = vmax.f32 %v1592_v8, 0.0 }
 0x1ea   :  { %v1276_v58 = vpop.f32.mrf.mxu2  ;;  %v1445_v5 = vpop.f32.mrf.mxu3 }
 0x1eb   :  { %v1277_v4 = vadd.f32 %v1276_v58, %v666_v35  ;;  %v669_v7 = vpop.f32.mrf.mxu0  ;;  %v1446_v60 = vadd.f32 %v1445_v5, %v835_v42  ;;  %v838_v12 = vpop.f32.mrf.mxu1  ;;  %v5280_v58 = vld [vmem:[#allocation5 + $0xe0] sm:$0xff] }
 0x1ec   :  { %v5232_v5 = vld [vmem:[#allocation3 + $0xe0] sm:$0xff] }
 0x1ed   :  { %v1593_v18 = vadd.f32 %v5617_v31, %v1277_v4  ;;  %v1594_v20 = vadd.f32 %v5619_v32, %v1446_v60  ;;  %708 = vmatmul.bf16.gmra.mxu0 %v5279_v61 }
 0x1ee   :  { %877 = vmatmul.bf16.gmra.mxu1 %v5279_v61 }
 0x1ef   :  { %v1721_v26 = vmax.f32 %v1593_v18, 0.0  ;;  %1318 = vmatmul.bf16.gmra.mxu2 %v5231_v54  ;;  %v1722_v30 = vmax.f32 %v1594_v20, 0.0  ;;  %1487 = vmatmul.bf16.gmra.mxu3 %v5231_v54 }
 0x1f1   :  { %v5769_v33 = vpack.c.bf16 %v1721_v26, %v1719_v21  ;;  %v5771_v44 = vpack.c.bf16 %v1722_v30, %v1720_v28 }
 0x1f2   :  { %v1279_v35 = vpop.f32.mrf.mxu2  ;;  %v1448_v42 = vpop.f32.mrf.mxu3 }
 0x1f3   :  { %7016 = vst [vmem:[#allocation17_spill] sm:$0xff] %v5771_v44  ;;  %v1280_v36 = vadd.f32 %v1279_v35, %v669_v7  ;;  %v671_v52 = vpop.f32.mrf.mxu0  ;;  %v1449_v53 = vadd.f32 %v1448_v42, %v838_v12  ;;  %v840_v55 = vpop.f32.mrf.mxu1  ;;  %v5283_v44 = vld [vmem:[#allocation5 + $0xf8] sm:$0xff] }
 0x1f5   :  { %v1595_v63 = vadd.f32 %v5617_v31, %v1280_v36  ;;  %v1596_v54 = vadd.f32 %v5619_v32, %v1449_v53 }
 0x1f7   :  { %v1723_v20 = vmax.f32 %v1595_v63, 0.0  ;;  %v1724_v21 = vmax.f32 %v1596_v54, 0.0  ;;  %v5233_v54 = vld [vmem:[#allocation3 + $0xe8] sm:$0xff] }
 0x1fa   :  { %v1281_v56 = vpop.f32.mrf.mxu2  ;;  %v1450_v61 = vpop.f32.mrf.mxu3 }
 0x1fb   :  { %v1282_v0 = vadd.f32 %v1281_v56, %v671_v52  ;;  %v674_v4 = vpop.f32.mrf.mxu0  ;;  %v1451_v8 = vadd.f32 %v1450_v61, %v840_v55  ;;  %v843_v60 = vpop.f32.mrf.mxu1 }
 0x1fd   :  { %v1597_v18 = vadd.f32 %v5617_v31, %v1282_v0  ;;  %v1598_v7 = vadd.f32 %v5619_v32, %v1451_v8  ;;  %713 = vmatmul.bf16.gmra.mxu0 %v5280_v58  ;;  %v5281_v0 = vld [vmem:[#allocation5 + $0xe8] sm:$0xff] }
 0x1fe   :  { %882 = vmatmul.bf16.gmra.mxu1 %v5280_v58 }
 0x1ff   :  { %v1725_v12 = vmax.f32 %v1597_v18, 0.0  ;;  %1323 = vmatmul.bf16.gmra.mxu2 %v5232_v5  ;;  %v1726_v26 = vmax.f32 %v1598_v7, 0.0  ;;  %1492 = vmatmul.bf16.gmra.mxu3 %v5232_v5 }
 0x201   :  { %v5777_v28 = vpack.c.bf16 %v1725_v12, %v1723_v20  ;;  %v5779_v35 = vpack.c.bf16 %v1726_v26, %v1724_v21 }
 0x202   :  { %v1284_v30 = vpop.f32.mrf.mxu2  ;;  %v1453_v42 = vpop.f32.mrf.mxu3 }
 0x203   :  { %7017 = vst [vmem:[#allocation18_spill] sm:$0xff] %v5777_v28  ;;  %v1285_v36 = vadd.f32 %v1284_v30, %v674_v4  ;;  %v676_v52 = vpop.f32.mrf.mxu0  ;;  %v1454_v53 = vadd.f32 %v1453_v42, %v843_v60  ;;  %v845_v55 = vpop.f32.mrf.mxu1  ;;  %v5198_v28 = vld [vmem:[#allocation11 + $0xf0] sm:$0xf] }
 0x204   :  { %7018 = vst [vmem:[#allocation19_spill] sm:$0xff] %v5779_v35 }
 0x205   :  { %v1599_v63 = vadd.f32 %v5617_v31, %v1285_v36  ;;  %v1600_v5 = vadd.f32 %v5619_v32, %v1454_v53 }
 0x207   :  { %v1727_v12 = vmax.f32 %v1599_v63, 0.0  ;;  %v1728_v21 = vmax.f32 %v1600_v5, 0.0  ;;  %v5234_v5 = vld [vmem:[#allocation3 + $0xf0] sm:$0xff] }
 0x20a   :  { %v1286_v56 = vpop.f32.mrf.mxu2  ;;  %v1455_v58 = vpop.f32.mrf.mxu3 }
 0x20b   :  { %v1287_v61 = vadd.f32 %v1286_v56, %v676_v52  ;;  %v679_v8 = vpop.f32.mrf.mxu0  ;;  %v1456_v18 = vadd.f32 %v1455_v58, %v845_v55  ;;  %v848_v7 = vpop.f32.mrf.mxu1 }
 0x20d   :  { %v1601_v20 = vadd.f32 %v5617_v31, %v1287_v61  ;;  %v1602_v4 = vadd.f32 %v5619_v32, %v1456_v18  ;;  %718 = vmatmul.bf16.gmra.mxu0 %v5281_v0  ;;  %v5282_v18 = vld [vmem:[#allocation5 + $0xf0] sm:$0xff] }
 0x20e   :  { %887 = vmatmul.bf16.gmra.mxu1 %v5281_v0 }
 0x20f   :  { %v1729_v60 = vmax.f32 %v1601_v20, 0.0  ;;  %1328 = vmatmul.bf16.gmra.mxu2 %v5233_v54  ;;  %v1730_v26 = vmax.f32 %v1602_v4, 0.0  ;;  %1497 = vmatmul.bf16.gmra.mxu3 %v5233_v54 }
 0x211   :  { %v5785_v30 = vpack.c.bf16 %v1729_v60, %v1727_v12  ;;  %v5787_v42 = vpack.c.bf16 %v1730_v26, %v1728_v21 }
 0x212   :  { %v1289_v36 = vpop.f32.mrf.mxu2  ;;  %v1458_v53 = vpop.f32.mrf.mxu3 }
 0x213   :  { %7019 = vst [vmem:[#allocation20_spill] sm:$0xff] %v5785_v30  ;;  %v1290_v52 = vadd.f32 %v1289_v36, %v679_v8  ;;  %v681_v55 = vpop.f32.mrf.mxu0  ;;  %v1459_v56 = vadd.f32 %v1458_v53, %v848_v7  ;;  %v850_v61 = vpop.f32.mrf.mxu1  ;;  %v5136_v53 = vld [vmem:[#allocation11 + $0x78] sm:$0xf0] }
 0x214   :  { %7020 = vst [vmem:[#allocation21_spill] sm:$0xff] %v5787_v42  ;;  %v5200_v42 = vld [vmem:[#allocation11 + $0xf8] sm:$0xf0] }
 0x215   :  { %v1603_v63 = vadd.f32 %v5617_v31, %v1290_v52  ;;  %v1604_v54 = vadd.f32 %v5619_v32, %v1459_v56  ;;  %v5346_v52 = vld [vmem:[#allocation11 + $0x74] sm:$0xf] }
 0x217   :  { %v1731_v21 = vmax.f32 %v1603_v63, 0.0  ;;  %v1732_v26 = vmax.f32 %v1604_v54, 0.0  ;;  %v5134_v54 = vld [vmem:[#allocation11 + $0x70] sm:$0xf] }
 0x21a   :  { %v1291_v58 = vpop.f32.mrf.mxu2  ;;  %v1460_v0 = vpop.f32.mrf.mxu3 }
 0x21b   :  { %v1292_v20 = vadd.f32 %v1291_v58, %v681_v55  ;;  %v684_v35 = vpop.f32.mrf.mxu0  ;;  %v1461_v4 = vadd.f32 %v1460_v0, %v850_v61  ;;  %v853_v12 = vpop.f32.mrf.mxu1  ;;  %v5139_v55 = vor.u32 %v5346_v52, %v5136_v53  ;;  %v5362_v58 = vld [vmem:[#allocation11 + $0xf4] sm:$0xf]  ;;  %v5363_v52 = vld [vmem:[#allocation11 + $0xf4] sm:$0xf0] }
 0x21c   :  { %v5203_v0 = vor.u32 %v5362_v58, %v5200_v42 }
 0x21d   :  { %v1605_v60 = vadd.f32 %v5617_v31, %v1292_v20  ;;  %v1606_v8 = vadd.f32 %v5619_v32, %v1461_v4  ;;  %723 = vmatmul.bf16.gmra.mxu0 %v5282_v18  ;;  %3441 = vmatpush.bf16.msra.mxu2 %v5139_v55 }
 0x21e   :  { %892 = vmatmul.bf16.gmra.mxu1 %v5282_v18  ;;  %3610 = vmatpush.bf16.msra.mxu3 %v5203_v0 }
 0x21f   :  { %v1733_v7 = vmax.f32 %v1605_v60, 0.0  ;;  %1333 = vmatmul.bf16.gmra.mxu2 %v5234_v5  ;;  %v1734_v36 = vmax.f32 %v1606_v8, 0.0  ;;  %1502 = vmatmul.bf16.gmra.mxu3 %v5234_v5  ;;  %v5347_v5 = vld [vmem:[#allocation11 + $0x74] sm:$0xf0] }
 0x220   :  { %v5135_v8 = vor.u32 %v5347_v5, %v5134_v54 }
 0x221   :  { %v5793_v56 = vpack.c.bf16 %v1733_v7, %v1731_v21  ;;  %v5795_v20 = vpack.c.bf16 %v1734_v36, %v1732_v26  ;;  %v5199_v21 = vor.u32 %v5363_v52, %v5198_v28 }
 0x222   :  { %v1294_v61 = vpop.f32.mrf.mxu2  ;;  %v1463_v30 = vpop.f32.mrf.mxu3  ;;  %3103 = vmatpush.bf16.msra.mxu0 %v5135_v8 }
 0x223   :  { %v1295_v4 = vadd.f32 %v1294_v61, %v684_v35  ;;  %v686_v63 = vpop.f32.mrf.mxu0  ;;  %v1464_v18 = vadd.f32 %v1463_v30, %v853_v12  ;;  %v855_v60 = vpop.f32.mrf.mxu1  ;;  %v5235_v35 = vld [vmem:[#allocation3 + $0xf8] sm:$0xff]  ;;  %3272 = vmatpush.bf16.msra.mxu1 %v5199_v21 }
 0x225   :  { %v1607_v7 = vadd.f32 %v5617_v31, %v1295_v4  ;;  %v1608_v55 = vadd.f32 %v5619_v32, %v1464_v18 }
 0x227   :  { %v1735_v0 = vmax.f32 %v1607_v7, 0.0  ;;  %v1736_v28 = vmax.f32 %v1608_v55, 0.0 }
 0x22a   :  { %v1296_v53 = vpop.f32.mrf.mxu2  ;;  %v1465_v26 = vpop.f32.mrf.mxu3 }
 0x22b   :  { %v1297_v42 = vadd.f32 %v1296_v53, %v686_v63  ;;  %v689_v36 = vpop.f32.mrf.mxu0  ;;  %v1466_v30 = vadd.f32 %v1465_v26, %v855_v60  ;;  %v858_v12 = vpop.f32.mrf.mxu1 }
 0x22d   :  { %v1609_v58 = vadd.f32 %v5617_v31, %v1297_v42  ;;  %v1610_v61 = vadd.f32 %v5619_v32, %v1466_v30  ;;  %728 = vmatmul.bf16.gmra.mxu0 %v5283_v44 }
 0x22e   :  { %897 = vmatmul.bf16.gmra.mxu1 %v5283_v44 }
 0x22f   :  { %v1737_v54 = vmax.f32 %v1609_v58, 0.0  ;;  %1338 = vmatmul.bf16.gmra.mxu2 %v5235_v35  ;;  %v1738_v4 = vmax.f32 %v1610_v61, 0.0  ;;  %1507 = vmatmul.bf16.gmra.mxu3 %v5235_v35 }
 0x231   :  { %v5801_v63 = vpack.c.bf16 %v1737_v54, %v1735_v0  ;;  %v5803_v8 = vpack.c.bf16 %v1738_v4, %v1736_v28 }
 0x232   :  { %v1299_v5 = vpop.f32.mrf.mxu2  ;;  %v1468_v60 = vpop.f32.mrf.mxu3 }
 0x233   :  { %v1300_v18 = vadd.f32 %v1299_v5, %v689_v36  ;;  %v691_v52 = vpop.f32.mrf.mxu0  ;;  %v1469_v53 = vadd.f32 %v1468_v60, %v858_v12  ;;  %v860_v21 = vpop.f32.mrf.mxu1 }
 0x235   :  { %v1611_v26 = vadd.f32 %v5617_v31, %v1300_v18  ;;  %v1612_v55 = vadd.f32 %v5619_v32, %v1469_v53 }
 0x237   :  { %v1739_v36 = vmax.f32 %v1611_v26, 0.0  ;;  %v1740_v12 = vmax.f32 %v1612_v55, 0.0 }
 0x23a   :  { %v1301_v42 = vpop.f32.mrf.mxu2  ;;  %v1470_v30 = vpop.f32.mrf.mxu3 }
 0x23b   :  { %v1302_v7 = vadd.f32 %v1301_v42, %v691_v52  ;;  %v694_v44 = vpop.f32.mrf.mxu0  ;;  %v1471_v58 = vadd.f32 %v1470_v30, %v860_v21  ;;  %v863_v35 = vpop.f32.mrf.mxu1 }
 0x23d   :  { %v1613_v61 = vadd.f32 %v5617_v31, %v1302_v7  ;;  %v1614_v0 = vadd.f32 %v5619_v32, %v1471_v58  ;;  %2045 = vmatmul.bf16.vlgmr.msrb.gmra.mxu0 %v5625_v49 }
 0x23e   :  { %2214 = vmatmul.bf16.vlgmr.msrb.gmra.mxu1 %v5627_v50 }
 0x23f   :  { %v1741_v54 = vmax.f32 %v1613_v61, 0.0  ;;  %2383 = vmatmul.bf16.vlgmr.msrb.gmra.mxu2 %v5625_v49  ;;  %v1742_v28 = vmax.f32 %v1614_v0, 0.0  ;;  %2552 = vmatmul.bf16.vlgmr.msrb.gmra.mxu3 %v5627_v50 }
 0x241   :  { %v5813_v4 = vpack.c.bf16 %v1741_v54, %v1739_v36  ;;  %v5815_v18 = vpack.c.bf16 %v1742_v28, %v1740_v12 }
 0x242   :  { %v1304_v5 = vpop.f32.mrf.mxu2  ;;  %v1473_v52 = vpop.f32.mrf.mxu3 }
 0x243   :  { %v1305_v60 = vadd.f32 %v1304_v5, %v694_v44  ;;  %v696_v53 = vpop.f32.mrf.mxu0  ;;  %v1474_v21 = vadd.f32 %v1473_v52, %v863_v35  ;;  %v865_v42 = vpop.f32.mrf.mxu1 }
 0x245   :  { %v1615_v7 = vadd.f32 %v5617_v31, %v1305_v60  ;;  %v1616_v55 = vadd.f32 %v5619_v32, %v1474_v21 }
 0x247   :  { %v1743_v44 = vmax.f32 %v1615_v7, 0.0  ;;  %v1744_v35 = vmax.f32 %v1616_v55, 0.0 }
 0x24a   :  { %v1306_v26 = vpop.f32.mrf.mxu2  ;;  %v1475_v58 = vpop.f32.mrf.mxu3 }
 0x24b   :  { %v1307_v30 = vadd.f32 %v1306_v26, %v696_v53  ;;  %v699_v49 = vpop.f32.mrf.mxu0  ;;  %v1476_v61 = vadd.f32 %v1475_v58, %v865_v42  ;;  %v868_v50 = vpop.f32.mrf.mxu1 }
 0x24d   :  { %v1617_v0 = vadd.f32 %v5617_v31, %v1307_v30  ;;  %v1618_v36 = vadd.f32 %v5619_v32, %v1476_v61  ;;  %2050 = vmatmul.bf16.gmra.mxu0 %v5633_v14 }
 0x24e   :  { %2219 = vmatmul.bf16.gmra.mxu1 %v5635_v17 }
 0x24f   :  { %v1745_v54 = vmax.f32 %v1617_v0, 0.0  ;;  %2388 = vmatmul.bf16.gmra.mxu2 %v5633_v14  ;;  %v1746_v12 = vmax.f32 %v1618_v36, 0.0  ;;  %2557 = vmatmul.bf16.gmra.mxu3 %v5635_v17 }
 0x251   :  { %v5825_v28 = vpack.c.bf16 %v1745_v54, %v1743_v44  ;;  %v5827_v60 = vpack.c.bf16 %v1746_v12, %v1744_v35  ;;  %v5344_v12 = vld [vmem:[#allocation11 + $0x64] sm:$0xf] }
 0x252   :  { %v1309_v5 = vpop.f32.mrf.mxu2  ;;  %v1478_v53 = vpop.f32.mrf.mxu3 }
 0x253   :  { %7021 = vst [vmem:[#allocation22_spill] sm:$0xff] %v5825_v28  ;;  %v1310_v52 = vadd.f32 %v1309_v5, %v699_v49  ;;  %v701_v21 = vpop.f32.mrf.mxu0  ;;  %v1479_v42 = vadd.f32 %v1478_v53, %v868_v50  ;;  %v870_v26 = vpop.f32.mrf.mxu1  ;;  %v5128_v5 = vld [vmem:[#allocation11 + $0x68] sm:$0xf0]  ;;  %v5360_v53 = vld [vmem:[#allocation11 + $0xe4] sm:$0xf] }
 0x254   :  { %7022 = vst [vmem:[#allocation23_spill] sm:$0xff] %v5827_v60  ;;  %v5190_v60 = vld [vmem:[#allocation11 + $0xe0] sm:$0xf] }
 0x255   :  { %v1619_v30 = vadd.f32 %v5617_v31, %v1310_v52  ;;  %v1620_v55 = vadd.f32 %v5619_v32, %v1479_v42  ;;  %v5131_v52 = vor.u32 %v5344_v12, %v5128_v5  ;;  %v5361_v12 = vld [vmem:[#allocation11 + $0xe4] sm:$0xf0] }
 0x256   :  { %v5191_v28 = vor.u32 %v5361_v12, %v5190_v60 }
 0x257   :  { %v1747_v49 = vmax.f32 %v1619_v30, 0.0  ;;  %v1748_v50 = vmax.f32 %v1620_v55, 0.0  ;;  %3442 = vmatpush.bf16.msra.mxu2 %v5131_v52 }
 0x258   :  { %3273 = vmatpush.bf16.msra.mxu1 %v5191_v28 }
 0x25a   :  { %v1311_v7 = vpop.f32.mrf.mxu2  ;;  %v1480_v61 = vpop.f32.mrf.mxu3 }
 0x25b   :  { %v1312_v58 = vadd.f32 %v1311_v7, %v701_v21  ;;  %v704_v14 = vpop.f32.mrf.mxu0  ;;  %v1481_v0 = vadd.f32 %v1480_v61, %v870_v26  ;;  %v873_v17 = vpop.f32.mrf.mxu1  ;;  %v5192_v21 = vld [vmem:[#allocation11 + $0xe8] sm:$0xf0] }
 0x25c   :  { %v5195_v7 = vor.u32 %v5360_v53, %v5192_v21 }
 0x25d   :  { %v1621_v36 = vadd.f32 %v5617_v31, %v1312_v58  ;;  %v1622_v44 = vadd.f32 %v5619_v32, %v1481_v0  ;;  %2055 = vmatmul.bf16.gmra.mxu0 %v5641_v47 }
 0x25e   :  { %2224 = vmatmul.bf16.gmra.mxu1 %v5643_v51  ;;  %3611 = vmatpush.bf16.msra.mxu3 %v5195_v7 }
 0x25f   :  { %v1749_v54 = vmax.f32 %v1621_v36, 0.0  ;;  %2393 = vmatmul.bf16.gmra.mxu2 %v5641_v47  ;;  %v1750_v35 = vmax.f32 %v1622_v44, 0.0  ;;  %2562 = vmatmul.bf16.gmra.mxu3 %v5643_v51  ;;  %v5126_v36 = vld [vmem:[#allocation11 + $0x60] sm:$0xf]  ;;  %v5345_v51 = vld [vmem:[#allocation11 + $0x64] sm:$0xf0] }
 0x260   :  { %v5127_v44 = vor.u32 %v5345_v51, %v5126_v36 }
 0x261   :  { %v5837_v42 = vpack.c.bf16 %v1749_v54, %v1747_v49  ;;  %v5839_v58 = vpack.c.bf16 %v1750_v35, %v1748_v50 }
 0x262   :  { %v1314_v26 = vpop.f32.mrf.mxu2  ;;  %v1483_v61 = vpop.f32.mrf.mxu3  ;;  %3104 = vmatpush.bf16.msra.mxu0 %v5127_v44 }
 0x263   :  { %v1315_v30 = vadd.f32 %v1314_v26, %v704_v14  ;;  %v706_v0 = vpop.f32.mrf.mxu0  ;;  %v1484_v47 = vadd.f32 %v1483_v61, %v873_v17  ;;  %v875_v55 = vpop.f32.mrf.mxu1 }
 0x265   :  { %v1623_v49 = vadd.f32 %v5617_v31, %v1315_v30  ;;  %v1624_v14 = vadd.f32 %v5619_v32, %v1484_v47 }
 0x267   :  { %v1751_v26 = vmax.f32 %v1623_v49, 0.0  ;;  %v1752_v60 = vmax.f32 %v1624_v14, 0.0 }
 0x26a   :  { %v1316_v5 = vpop.f32.mrf.mxu2  ;;  %v1485_v53 = vpop.f32.mrf.mxu3 }
 0x26b   :  { %v1317_v54 = vadd.f32 %v1316_v5, %v706_v0  ;;  %v709_v50 = vpop.f32.mrf.mxu0  ;;  %v1486_v35 = vadd.f32 %v1485_v53, %v875_v55  ;;  %v878_v52 = vpop.f32.mrf.mxu1 }
 0x26d   :  { %v1625_v17 = vadd.f32 %v5617_v31, %v1317_v54  ;;  %v1626_v21 = vadd.f32 %v5619_v32, %v1486_v35  ;;  %2060 = vmatmul.bf16.gmra.mxu0 %v5649_v9 }
 0x26e   :  { %2229 = vmatmul.bf16.gmra.mxu1 %v5651_v11 }
 0x26f   :  { %v1753_v7 = vmax.f32 %v1625_v17, 0.0  ;;  %2398 = vmatmul.bf16.gmra.mxu2 %v5649_v9  ;;  %v1754_v30 = vmax.f32 %v1626_v21, 0.0  ;;  %2567 = vmatmul.bf16.gmra.mxu3 %v5651_v11 }
 0x271   :  { %v5849_v61 = vpack.c.bf16 %v1753_v7, %v1751_v26  ;;  %v5851_v28 = vpack.c.bf16 %v1754_v30, %v1752_v60 }
 0x272   :  { %v1319_v0 = vpop.f32.mrf.mxu2  ;;  %v1488_v55 = vpop.f32.mrf.mxu3 }
 0x273   :  { %v1320_v47 = vadd.f32 %v1319_v0, %v709_v50  ;;  %v711_v36 = vpop.f32.mrf.mxu0  ;;  %v1489_v51 = vadd.f32 %v1488_v55, %v878_v52  ;;  %v880_v44 = vpop.f32.mrf.mxu1 }
 0x275   :  { %v1627_v5 = vadd.f32 %v5617_v31, %v1320_v47  ;;  %v1628_v53 = vadd.f32 %v5619_v32, %v1489_v51 }
 0x277   :  { %v1755_v50 = vmax.f32 %v1627_v5, 0.0  ;;  %v1756_v52 = vmax.f32 %v1628_v53, 0.0 }
 0x27a   :  { %v1321_v12 = vpop.f32.mrf.mxu2  ;;  %v1490_v54 = vpop.f32.mrf.mxu3 }
 0x27b   :  { %v1322_v49 = vadd.f32 %v1321_v12, %v711_v36  ;;  %v714_v9 = vpop.f32.mrf.mxu0  ;;  %v1491_v14 = vadd.f32 %v1490_v54, %v880_v44  ;;  %v883_v11 = vpop.f32.mrf.mxu1 }
 0x27d   :  { %v1629_v35 = vadd.f32 %v5617_v31, %v1322_v49  ;;  %v1630_v17 = vadd.f32 %v5619_v32, %v1491_v14  ;;  %2065 = vmatmul.bf16.gmra.mxu0 %v5657_v37 }
 0x27e   :  { %2234 = vmatmul.bf16.gmra.mxu1 %v5659_v39 }
 0x27f   :  { %v1757_v21 = vmax.f32 %v1629_v35, 0.0  ;;  %2403 = vmatmul.bf16.gmra.mxu2 %v5657_v37  ;;  %v1758_v26 = vmax.f32 %v1630_v17, 0.0  ;;  %2572 = vmatmul.bf16.gmra.mxu3 %v5659_v39 }
 0x281   :  { %v5861_v7 = vpack.c.bf16 %v1757_v21, %v1755_v50  ;;  %v5863_v30 = vpack.c.bf16 %v1758_v26, %v1756_v52 }
 0x282   :  { %v1324_v60 = vpop.f32.mrf.mxu2  ;;  %v1493_v47 = vpop.f32.mrf.mxu3 }
 0x283   :  { %v1325_v0 = vadd.f32 %v1324_v60, %v714_v9  ;;  %v716_v55 = vpop.f32.mrf.mxu0  ;;  %v1494_v36 = vadd.f32 %v1493_v47, %v883_v11  ;;  %v885_v51 = vpop.f32.mrf.mxu1 }
 0x285   :  { %v1631_v12 = vadd.f32 %v5617_v31, %v1325_v0  ;;  %v1632_v54 = vadd.f32 %v5619_v32, %v1494_v36 }
 0x287   :  { %v1759_v9 = vmax.f32 %v1631_v12, 0.0  ;;  %v1760_v11 = vmax.f32 %v1632_v54, 0.0 }
 0x28a   :  { %v1326_v44 = vpop.f32.mrf.mxu2  ;;  %v1495_v49 = vpop.f32.mrf.mxu3 }
 0x28b   :  { %v1327_v5 = vadd.f32 %v1326_v44, %v716_v55  ;;  %v719_v37 = vpop.f32.mrf.mxu0  ;;  %v1496_v53 = vadd.f32 %v1495_v49, %v885_v51  ;;  %v888_v39 = vpop.f32.mrf.mxu1 }
 0x28d   :  { %v1633_v14 = vadd.f32 %v5617_v31, %v1327_v5  ;;  %v1634_v35 = vadd.f32 %v5619_v32, %v1496_v53  ;;  %2070 = vmatmul.bf16.gmra.mxu0 %v5665_v6 }
 0x28e   :  { %2239 = vmatmul.bf16.gmra.mxu1 %v5667_v10 }
 0x28f   :  { %v1761_v17 = vmax.f32 %v1633_v14, 0.0  ;;  %2408 = vmatmul.bf16.gmra.mxu2 %v5665_v6  ;;  %v1762_v50 = vmax.f32 %v1634_v35, 0.0  ;;  %2577 = vmatmul.bf16.gmra.mxu3 %v5667_v10 }
 0x291   :  { %v5873_v21 = vpack.c.bf16 %v1761_v17, %v1759_v9  ;;  %v5875_v26 = vpack.c.bf16 %v1762_v50, %v1760_v11  ;;  %v5342_v17 = vld [vmem:[#allocation11 + $0x54] sm:$0xf]  ;;  %v5120_v11 = vld [vmem:[#allocation11 + $0x58] sm:$0xf0] }
 0x292   :  { %v1329_v52 = vpop.f32.mrf.mxu2  ;;  %v1498_v0 = vpop.f32.mrf.mxu3  ;;  %v5123_v50 = vor.u32 %v5342_v17, %v5120_v11 }
 0x293   :  { %v1330_v60 = vadd.f32 %v1329_v52, %v719_v37  ;;  %v721_v47 = vpop.f32.mrf.mxu0  ;;  %v1499_v55 = vadd.f32 %v1498_v0, %v888_v39  ;;  %v890_v36 = vpop.f32.mrf.mxu1  ;;  %v5358_v52 = vld [vmem:[#allocation11 + $0xd4] sm:$0xf] }
 0x294   :  { %3443 = vmatpush.bf16.msra.mxu2 %v5123_v50 }
 0x295   :  { %v1635_v44 = vadd.f32 %v5617_v31, %v1330_v60  ;;  %v1636_v49 = vadd.f32 %v5619_v32, %v1499_v55  ;;  %v5184_v60 = vld [vmem:[#allocation11 + $0xd8] sm:$0xf0] }
 0x296   :  { %v5187_v55 = vor.u32 %v5358_v52, %v5184_v60  ;;  %v5359_v52 = vld [vmem:[#allocation11 + $0xd4] sm:$0xf0] }
 0x297   :  { %v1763_v37 = vmax.f32 %v1635_v44, 0.0  ;;  %v1764_v39 = vmax.f32 %v1636_v49, 0.0 }
 0x298   :  { %3612 = vmatpush.bf16.msra.mxu3 %v5187_v55 }
 0x29a   :  { %v1331_v51 = vpop.f32.mrf.mxu2  ;;  %v1500_v5 = vpop.f32.mrf.mxu3 }
 0x29b   :  { %v1332_v12 = vadd.f32 %v1331_v51, %v721_v47  ;;  %v724_v6 = vpop.f32.mrf.mxu0  ;;  %v1501_v54 = vadd.f32 %v1500_v5, %v890_v36  ;;  %v893_v10 = vpop.f32.mrf.mxu1 }
 0x29d   :  { %v1637_v53 = vadd.f32 %v5617_v31, %v1332_v12  ;;  %v1638_v14 = vadd.f32 %v5619_v32, %v1501_v54  ;;  %2075 = vmatmul.bf16.gmra.mxu0 %v5673_v45  ;;  %v5343_v54 = vld [vmem:[#allocation11 + $0x54] sm:$0xf0] }
 0x29e   :  { %2244 = vmatmul.bf16.gmra.mxu1 %v5675_v48 }
 0x29f   :  { %v1765_v35 = vmax.f32 %v1637_v53, 0.0  ;;  %2413 = vmatmul.bf16.gmra.mxu2 %v5673_v45  ;;  %v1766_v9 = vmax.f32 %v1638_v14, 0.0  ;;  %2582 = vmatmul.bf16.gmra.mxu3 %v5675_v48  ;;  %v5118_v48 = vld [vmem:[#allocation11 + $0x50] sm:$0xf] }
 0x2a0   :  { %v5182_v53 = vld [vmem:[#allocation11 + $0xd0] sm:$0xf]  ;;  %v5119_v11 = vor.u32 %v5343_v54, %v5118_v48 }
 0x2a1   :  { %v5885_v0 = vpack.c.bf16 %v1765_v35, %v1763_v37  ;;  %v5887_v36 = vpack.c.bf16 %v1766_v9, %v1764_v39  ;;  %v5183_v60 = vor.u32 %v5359_v52, %v5182_v53 }
 0x2a2   :  { %v1334_v47 = vpop.f32.mrf.mxu2  ;;  %v1503_v44 = vpop.f32.mrf.mxu3  ;;  %3105 = vmatpush.bf16.msra.mxu0 %v5119_v11 }
 0x2a3   :  { %v1335_v51 = vadd.f32 %v1334_v47, %v724_v6  ;;  %v726_v12 = vpop.f32.mrf.mxu0  ;;  %v1504_v45 = vadd.f32 %v1503_v44, %v893_v10  ;;  %v895_v5 = vpop.f32.mrf.mxu1  ;;  %3274 = vmatpush.bf16.msra.mxu1 %v5183_v60 }
 0x2a5   :  { %v1639_v14 = vadd.f32 %v5617_v31, %v1335_v51  ;;  %v1640_v39 = vadd.f32 %v5619_v32, %v1504_v45 }
 0x2a7   :  { %v1767_v47 = vmax.f32 %v1639_v14, 0.0  ;;  %v1768_v51 = vmax.f32 %v1640_v39, 0.0  ;;  %v1871_v14 = vld [vmem:[%s6997_s6] sm:$0x3] }
 0x2aa   :  { %v1336_v49 = vpop.f32.mrf.mxu2  ;;  %v1505_v37 = vpop.f32.mrf.mxu3 }
 0x2ab   :  { %v1337_v17 = vadd.f32 %v1336_v49, %v726_v12  ;;  %v729_v35 = vpop.f32.mrf.mxu0  ;;  %v1506_v6 = vadd.f32 %v1505_v37, %v895_v5  ;;  %v898_v9 = vpop.f32.mrf.mxu1  ;;  %v5904_v37 = vperm.slane %v1871_v14, 0 }
 0x2ad   :  { %v1641_v10 = vadd.f32 %v5617_v31, %v1337_v17  ;;  %v1642_v50 = vadd.f32 %v5619_v32, %v1506_v6  ;;  %2080 = vmatmul.bf16.gmra.mxu0 %v5681_v13 }
 0x2ae   :  { %2249 = vmatmul.bf16.gmra.mxu1 %v5683_v16 }
 0x2af   :  { %v1769_v55 = vmax.f32 %v1641_v10, 0.0  ;;  %2418 = vmatmul.bf16.gmra.mxu2 %v5681_v13  ;;  %v1770_v44 = vmax.f32 %v1642_v50, 0.0  ;;  %2587 = vmatmul.bf16.gmra.mxu3 %v5683_v16 }
 0x2b1   :  { %v5897_v12 = vpack.c.bf16 %v1769_v55, %v1767_v47  ;;  %v5899_v5 = vpack.c.bf16 %v1770_v44, %v1768_v51  ;;  %v5914_v44 = vperm.slane %v1871_v14, 1 }
 0x2b2   :  { %v1339_v45 = vpop.f32.mrf.mxu2  ;;  %v1508_v48 = vpop.f32.mrf.mxu3 }
 0x2b3   :  { %v1340_v49 = vadd.f32 %v1339_v45, %v729_v35  ;;  %v731_v54 = vpop.f32.mrf.mxu0  ;;  %v1509_v53 = vadd.f32 %v1508_v48, %v898_v9  ;;  %v900_v17 = vpop.f32.mrf.mxu1 }
 0x2b5   :  { %v1643_v11 = vadd.f32 %v5617_v31, %v1340_v49  ;;  %v1644_v6 = vadd.f32 %v5619_v32, %v1509_v53 }
 0x2b7   :  { %v1771_v55 = vmax.f32 %v1643_v11, 0.0  ;;  %v1772_v45 = vmax.f32 %v1644_v6, 0.0 }
 0x2ba   :  { %v1341_v13 = vpop.f32.mrf.mxu2  ;;  %v1510_v52 = vpop.f32.mrf.mxu3 }
 0x2bb   :  { %v1342_v16 = vadd.f32 %v1341_v13, %v731_v54  ;;  %v2046_v39 = vpop.f32.mrf.mxu0  ;;  %v1511_v60 = vadd.f32 %v1510_v52, %v900_v17  ;;  %v2215_v10 = vpop.f32.mrf.mxu1 }
 0x2bc   :  { %v2047_v35 = vadd.f32 %v2046_v39, %v5904_v37 }
 0x2bd   :  { %v1645_v9 = vadd.f32 %v5617_v31, %v1342_v16  ;;  %v1646_v50 = vadd.f32 %v5619_v32, %v1511_v60  ;;  %2085 = vmatmul.bf16.gmra.mxu0 %v5689_v43 }
 0x2be   :  { %v2216_v47 = vadd.f32 %v2215_v10, %v2047_v35  ;;  %2254 = vmatmul.bf16.gmra.mxu1 %v5691_v46 }
 0x2bf   :  { %v1773_v51 = vmax.f32 %v1645_v9, 0.0  ;;  %2423 = vmatmul.bf16.gmra.mxu2 %v5689_v43  ;;  %v1774_v49 = vmax.f32 %v1646_v50, 0.0  ;;  %2592 = vmatmul.bf16.gmra.mxu3 %v5691_v46 }
 0x2c0   :  { %v2713_v14 = vmax.f32 %v2216_v47, 0.0 }
 0x2c1   :  { %v5917_v48 = vpack.c.bf16 %v1773_v51, %v1771_v55  ;;  %v5919_v54 = vpack.c.bf16 %v1774_v49, %v1772_v45 }
 0x2c2   :  { %v2384_v31 = vpop.f32.mrf.mxu2  ;;  %v2553_v53 = vpop.f32.mrf.mxu3 }
 0x2c3   :  { %v2385_v32 = vadd.f32 %v2384_v31, %v5914_v44  ;;  %v2048_v17 = vpop.f32.mrf.mxu0  ;;  %v2217_v11 = vpop.f32.mrf.mxu1 }
 0x2c4   :  { %v2049_v13 = vadd.f32 %v2048_v17, %v5904_v37 }
 0x2c5   :  { %v2554_v16 = vadd.f32 %v2553_v53, %v2385_v32 }
 0x2c6   :  { %v2218_v43 = vadd.f32 %v2217_v11, %v2049_v13 }
 0x2c7   :  { %v2714_v51 = vmax.f32 %v2554_v16, 0.0 }
 0x2c8   :  { %v2715_v52 = vmax.f32 %v2218_v43, 0.0 }
 0x2ca   :  { %v5923_v39 = vpack.c.bf16 %v2715_v52, %v2713_v14  ;;  %v2386_v6 = vpop.f32.mrf.mxu2  ;;  %v2555_v60 = vpop.f32.mrf.mxu3 }
 0x2cb   :  { %v2387_v46 = vadd.f32 %v2386_v6, %v5914_v44  ;;  %v2051_v35 = vpop.f32.mrf.mxu0  ;;  %v2220_v9 = vpop.f32.mrf.mxu1 }
 0x2cc   :  { %v2052_v10 = vadd.f32 %v2051_v35, %v5904_v37 }
 0x2cd   :  { %v2556_v50 = vadd.f32 %v2555_v60, %v2387_v46  ;;  %2090 = vmatmul.bf16.gmra.mxu0 %v5697_v22 }
 0x2ce   :  { %v2221_v55 = vadd.f32 %v2220_v9, %v2052_v10  ;;  %2259 = vmatmul.bf16.gmra.mxu1 %v5699_v25 }
 0x2cf   :  { %v2716_v45 = vmax.f32 %v2556_v50, 0.0  ;;  %2428 = vmatmul.bf16.gmra.mxu2 %v5697_v22  ;;  %2597 = vmatmul.bf16.gmra.mxu3 %v5699_v25 }
 0x2d0   :  { %v2717_v16 = vmax.f32 %v2221_v55, 0.0  ;;  %v5340_v55 = vld [vmem:[#allocation11 + $0x44] sm:$0xf] }
 0x2d1   :  { %v5931_v47 = vpack.c.bf16 %v2716_v45, %v2714_v51  ;;  %v5112_v45 = vld [vmem:[#allocation11 + $0x48] sm:$0xf0] }
 0x2d2   :  { %v2389_v49 = vpop.f32.mrf.mxu2  ;;  %v2558_v32 = vpop.f32.mrf.mxu3 }
 0x2d3   :  { %v2390_v31 = vadd.f32 %v2389_v49, %v5914_v44  ;;  %v2053_v53 = vpop.f32.mrf.mxu0  ;;  %v2222_v13 = vpop.f32.mrf.mxu1  ;;  %v5115_v49 = vor.u32 %v5340_v55, %v5112_v45 }
 0x2d4   :  { %v2054_v17 = vadd.f32 %v2053_v53, %v5904_v37 }
 0x2d5   :  { %v2559_v11 = vadd.f32 %v2558_v32, %v2390_v31  ;;  %v5356_v31 = vld [vmem:[#allocation11 + $0xc4] sm:$0xf]  ;;  %v5176_v32 = vld [vmem:[#allocation11 + $0xc8] sm:$0xf0]  ;;  %3444 = vmatpush.bf16.msra.mxu2 %v5115_v49 }
 0x2d6   :  { %v2223_v43 = vadd.f32 %v2222_v13, %v2054_v17  ;;  %v5179_v13 = vor.u32 %v5356_v31, %v5176_v32 }
 0x2d7   :  { %v2718_v50 = vmax.f32 %v2559_v11, 0.0 }
 0x2d8   :  { %v2719_v14 = vmax.f32 %v2223_v43, 0.0  ;;  %3613 = vmatpush.bf16.msra.mxu3 %v5179_v13 }
 0x2da   :  { %v2391_v52 = vpop.f32.mrf.mxu2  ;;  %v5935_v6 = vpack.c.bf16 %v2719_v14, %v2717_v16  ;;  %v2560_v25 = vpop.f32.mrf.mxu3 }
 0x2db   :  { %v2392_v22 = vadd.f32 %v2391_v52, %v5914_v44  ;;  %v2056_v46 = vpop.f32.mrf.mxu0  ;;  %v2225_v35 = vpop.f32.mrf.mxu1 }
 0x2dc   :  { %v2057_v60 = vadd.f32 %v2056_v46, %v5904_v37  ;;  %v5110_v46 = vld [vmem:[#allocation11 + $0x40] sm:$0xf] }
 0x2dd   :  { %v2561_v10 = vadd.f32 %v2560_v25, %v2392_v22  ;;  %2095 = vmatmul.bf16.gmra.mxu0 %v5705_v1 }
 0x2de   :  { %v2226_v9 = vadd.f32 %v2225_v35, %v2057_v60  ;;  %2264 = vmatmul.bf16.gmra.mxu1 %v5707_v3  ;;  %v5341_v60 = vld [vmem:[#allocation11 + $0x44] sm:$0xf0] }
 0x2df   :  { %v2720_v51 = vmax.f32 %v2561_v10, 0.0  ;;  %2433 = vmatmul.bf16.gmra.mxu2 %v5705_v1  ;;  %2602 = vmatmul.bf16.gmra.mxu3 %v5707_v3  ;;  %v5111_v35 = vor.u32 %v5341_v60, %v5110_v46  ;;  %v5174_v10 = vld [vmem:[#allocation11 + $0xc0] sm:$0xf] }
 0x2e0   :  { %v2721_v22 = vmax.f32 %v2226_v9, 0.0 }
 0x2e1   :  { %v5943_v53 = vpack.c.bf16 %v2720_v51, %v2718_v50  ;;  %v5357_v50 = vld [vmem:[#allocation11 + $0xc4] sm:$0xf0]  ;;  %3106 = vmatpush.bf16.msra.mxu0 %v5111_v35 }
 0x2e2   :  { %v2394_v17 = vpop.f32.mrf.mxu2  ;;  %v2563_v16 = vpop.f32.mrf.mxu3  ;;  %v5175_v55 = vor.u32 %v5357_v50, %v5174_v10 }
 0x2e3   :  { %v2395_v43 = vadd.f32 %v2394_v17, %v5914_v44  ;;  %v2058_v11 = vpop.f32.mrf.mxu0  ;;  %v2227_v52 = vpop.f32.mrf.mxu1 }
 0x2e4   :  { %v2059_v14 = vadd.f32 %v2058_v11, %v5904_v37  ;;  %3275 = vmatpush.bf16.msra.mxu1 %v5175_v55 }
 0x2e5   :  { %v2564_v1 = vadd.f32 %v2563_v16, %v2395_v43 }
 0x2e6   :  { %v2228_v3 = vadd.f32 %v2227_v52, %v2059_v14 }
 0x2e7   :  { %v2722_v16 = vmax.f32 %v2564_v1, 0.0 }
 0x2e8   :  { %v2723_v25 = vmax.f32 %v2228_v3, 0.0 }
 0x2ea   :  { %v2396_v51 = vpop.f32.mrf.mxu2  ;;  %v5947_v45 = vpack.c.bf16 %v2723_v25, %v2721_v22  ;;  %v2565_v49 = vpop.f32.mrf.mxu3 }
 0x2eb   :  { %v2397_v31 = vadd.f32 %v2396_v51, %v5914_v44  ;;  %v2061_v32 = vpop.f32.mrf.mxu0  ;;  %v2230_v13 = vpop.f32.mrf.mxu1 }
 0x2ec   :  { %v2062_v17 = vadd.f32 %v2061_v32, %v5904_v37 }
 0x2ed   :  { %v2566_v9 = vadd.f32 %v2565_v49, %v2397_v31  ;;  %2100 = vmatmul.bf16.gmra.mxu0 %v5713_v38 }
 0x2ee   :  { %v2231_v43 = vadd.f32 %v2230_v13, %v2062_v17  ;;  %2269 = vmatmul.bf16.gmra.mxu1 %v5715_v41 }
 0x2ef   :  { %v2724_v11 = vmax.f32 %v2566_v9, 0.0  ;;  %2438 = vmatmul.bf16.gmra.mxu2 %v5713_v38  ;;  %2607 = vmatmul.bf16.gmra.mxu3 %v5715_v41 }
 0x2f0   :  { %v2725_v1 = vmax.f32 %v2231_v43, 0.0 }
 0x2f1   :  { %v5955_v14 = vpack.c.bf16 %v2724_v11, %v2722_v16 }
 0x2f2   :  { %v2399_v52 = vpop.f32.mrf.mxu2  ;;  %v2568_v22 = vpop.f32.mrf.mxu3 }
 0x2f3   :  { %v2400_v3 = vadd.f32 %v2399_v52, %v5914_v44  ;;  %v2063_v25 = vpop.f32.mrf.mxu0  ;;  %v2232_v60 = vpop.f32.mrf.mxu1 }
 0x2f4   :  { %v2064_v46 = vadd.f32 %v2063_v25, %v5904_v37 }
 0x2f5   :  { %v2569_v35 = vadd.f32 %v2568_v22, %v2400_v3 }
 0x2f6   :  { %v2233_v10 = vadd.f32 %v2232_v60, %v2064_v46 }
 0x2f7   :  { %v2726_v9 = vmax.f32 %v2569_v35, 0.0 }
 0x2f8   :  { %v2727_v50 = vmax.f32 %v2233_v10, 0.0 }
 0x2fa   :  { %v2401_v51 = vpop.f32.mrf.mxu2  ;;  %v5959_v55 = vpack.c.bf16 %v2727_v50, %v2725_v1  ;;  %v2570_v41 = vpop.f32.mrf.mxu3 }
 0x2fb   :  { %v2402_v38 = vadd.f32 %v2401_v51, %v5914_v44  ;;  %v2066_v31 = vpop.f32.mrf.mxu0  ;;  %v2235_v32 = vpop.f32.mrf.mxu1 }
 0x2fc   :  { %v2067_v49 = vadd.f32 %v2066_v31, %v5904_v37 }
 0x2fd   :  { %v2571_v17 = vadd.f32 %v2570_v41, %v2402_v38  ;;  %2105 = vmatmul.bf16.gmra.mxu0 %v5721_v15 }
 0x2fe   :  { %v2236_v13 = vadd.f32 %v2235_v32, %v2067_v49  ;;  %2274 = vmatmul.bf16.gmra.mxu1 %v5723_v19 }
 0x2ff   :  { %v2728_v16 = vmax.f32 %v2571_v17, 0.0  ;;  %2443 = vmatmul.bf16.gmra.mxu2 %v5721_v15  ;;  %2612 = vmatmul.bf16.gmra.mxu3 %v5723_v19 }
 0x300   :  { %v2729_v35 = vmax.f32 %v2236_v13, 0.0 }
 0x301   :  { %v5967_v43 = vpack.c.bf16 %v2728_v16, %v2726_v9 }
 0x302   :  { %v2404_v11 = vpop.f32.mrf.mxu2  ;;  %v2573_v3 = vpop.f32.mrf.mxu3 }
 0x303   :  { %v2405_v52 = vadd.f32 %v2404_v11, %v5914_v44  ;;  %v2068_v22 = vpop.f32.mrf.mxu0  ;;  %v2237_v46 = vpop.f32.mrf.mxu1 }
 0x304   :  { %v2069_v25 = vadd.f32 %v2068_v22, %v5904_v37 }
 0x305   :  { %v2574_v60 = vadd.f32 %v2573_v3, %v2405_v52 }
 0x306   :  { %v2238_v10 = vadd.f32 %v2237_v46, %v2069_v25 }
 0x307   :  { %v2730_v17 = vmax.f32 %v2574_v60, 0.0 }
 0x308   :  { %v2731_v1 = vmax.f32 %v2238_v10, 0.0 }
 0x30a   :  { %v2406_v50 = vpop.f32.mrf.mxu2  ;;  %v5971_v51 = vpack.c.bf16 %v2731_v1, %v2729_v35  ;;  %v2575_v19 = vpop.f32.mrf.mxu3 }
 0x30b   :  { %v2407_v15 = vadd.f32 %v2406_v50, %v5914_v44  ;;  %v2071_v38 = vpop.f32.mrf.mxu0  ;;  %v2240_v31 = vpop.f32.mrf.mxu1 }
 0x30c   :  { %v2072_v41 = vadd.f32 %v2071_v38, %v5904_v37 }
 0x30d   :  { %v2576_v49 = vadd.f32 %v2575_v19, %v2407_v15  ;;  %2110 = vmatmul.bf16.gmra.mxu0 %v5729_v62 }
 0x30e   :  { %v2241_v32 = vadd.f32 %v2240_v31, %v2072_v41  ;;  %2279 = vmatmul.bf16.gmra.mxu1 %v5731_v2 }
 0x30f   :  { %v2732_v9 = vmax.f32 %v2576_v49, 0.0  ;;  %2448 = vmatmul.bf16.gmra.mxu2 %v5729_v62  ;;  %2617 = vmatmul.bf16.gmra.mxu3 %v5731_v2 }
 0x310   :  { %v2733_v60 = vmax.f32 %v2241_v32, 0.0  ;;  %v5338_v32 = vld [vmem:[#allocation11 + $0x34] sm:$0xf] }
 0x311   :  { %v5979_v13 = vpack.c.bf16 %v2732_v9, %v2730_v17  ;;  %v5104_v9 = vld [vmem:[#allocation11 + $0x38] sm:$0xf0] }
 0x312   :  { %v2409_v16 = vpop.f32.mrf.mxu2  ;;  %v2578_v52 = vpop.f32.mrf.mxu3 }
 0x313   :  { %v2410_v11 = vadd.f32 %v2409_v16, %v5914_v44  ;;  %v2073_v3 = vpop.f32.mrf.mxu0  ;;  %v2242_v25 = vpop.f32.mrf.mxu1  ;;  %v5107_v16 = vor.u32 %v5338_v32, %v5104_v9 }
 0x314   :  { %v2074_v22 = vadd.f32 %v2073_v3, %v5904_v37 }
 0x315   :  { %v2579_v46 = vadd.f32 %v2578_v52, %v2410_v11  ;;  %v5354_v11 = vld [vmem:[#allocation11 + $0xb4] sm:$0xf]  ;;  %v5168_v52 = vld [vmem:[#allocation11 + $0xb8] sm:$0xf0]  ;;  %3445 = vmatpush.bf16.msra.mxu2 %v5107_v16 }
 0x316   :  { %v2243_v10 = vadd.f32 %v2242_v25, %v2074_v22  ;;  %v5171_v25 = vor.u32 %v5354_v11, %v5168_v52 }
 0x317   :  { %v2734_v49 = vmax.f32 %v2579_v46, 0.0 }
 0x318   :  { %v2735_v35 = vmax.f32 %v2243_v10, 0.0  ;;  %3614 = vmatpush.bf16.msra.mxu3 %v5171_v25 }
 0x31a   :  { %v2411_v1 = vpop.f32.mrf.mxu2  ;;  %v5983_v50 = vpack.c.bf16 %v2735_v35, %v2733_v60  ;;  %v2580_v2 = vpop.f32.mrf.mxu3 }
 0x31b   :  { %v2412_v62 = vadd.f32 %v2411_v1, %v5914_v44  ;;  %v2076_v15 = vpop.f32.mrf.mxu0  ;;  %v2245_v38 = vpop.f32.mrf.mxu1 }
 0x31c   :  { %v2077_v19 = vadd.f32 %v2076_v15, %v5904_v37  ;;  %v5102_v15 = vld [vmem:[#allocation11 + $0x30] sm:$0xf] }
 0x31d   :  { %v2581_v41 = vadd.f32 %v2580_v2, %v2412_v62  ;;  %2115 = vmatmul.bf16.gmra.mxu0 %v5737_v57 }
 0x31e   :  { %v2246_v31 = vadd.f32 %v2245_v38, %v2077_v19  ;;  %2284 = vmatmul.bf16.gmra.mxu1 %v5739_v59  ;;  %v5339_v19 = vld [vmem:[#allocation11 + $0x34] sm:$0xf0] }
 0x31f   :  { %v2736_v17 = vmax.f32 %v2581_v41, 0.0  ;;  %2453 = vmatmul.bf16.gmra.mxu2 %v5737_v57  ;;  %2622 = vmatmul.bf16.gmra.mxu3 %v5739_v59  ;;  %v5103_v38 = vor.u32 %v5339_v19, %v5102_v15  ;;  %v5166_v41 = vld [vmem:[#allocation11 + $0xb0] sm:$0xf] }
 0x320   :  { %v2737_v62 = vmax.f32 %v2246_v31, 0.0 }
 0x321   :  { %v5991_v3 = vpack.c.bf16 %v2736_v17, %v2734_v49  ;;  %v5355_v49 = vld [vmem:[#allocation11 + $0xb4] sm:$0xf0]  ;;  %3107 = vmatpush.bf16.msra.mxu0 %v5103_v38 }
 0x322   :  { %v2414_v22 = vpop.f32.mrf.mxu2  ;;  %v2583_v60 = vpop.f32.mrf.mxu3  ;;  %v5167_v32 = vor.u32 %v5355_v49, %v5166_v41 }
 0x323   :  { %v2415_v10 = vadd.f32 %v2414_v22, %v5914_v44  ;;  %v2078_v46 = vpop.f32.mrf.mxu0  ;;  %v2247_v1 = vpop.f32.mrf.mxu1 }
 0x324   :  { %v2079_v35 = vadd.f32 %v2078_v46, %v5904_v37  ;;  %3276 = vmatpush.bf16.msra.mxu1 %v5167_v32 }
 0x325   :  { %v2584_v57 = vadd.f32 %v2583_v60, %v2415_v10 }
 0x326   :  { %v2248_v59 = vadd.f32 %v2247_v1, %v2079_v35 }
 0x327   :  { %v2738_v60 = vmax.f32 %v2584_v57, 0.0 }
 0x328   :  { %v2739_v2 = vmax.f32 %v2248_v59, 0.0 }
 0x32a   :  { %v2416_v17 = vpop.f32.mrf.mxu2  ;;  %v5995_v9 = vpack.c.bf16 %v2739_v2, %v2737_v62  ;;  %v2585_v16 = vpop.f32.mrf.mxu3 }
 0x32b   :  { %v2417_v11 = vadd.f32 %v2416_v17, %v5914_v44  ;;  %v2081_v52 = vpop.f32.mrf.mxu0  ;;  %v2250_v25 = vpop.f32.mrf.mxu1 }
 0x32c   :  { %v2082_v22 = vadd.f32 %v2081_v52, %v5904_v37 }
 0x32d   :  { %v2586_v31 = vadd.f32 %v2585_v16, %v2417_v11  ;;  %2120 = vmatmul.bf16.gmra.mxu0 %v5745_v34 }
 0x32e   :  { %v2251_v10 = vadd.f32 %v2250_v25, %v2082_v22  ;;  %2289 = vmatmul.bf16.gmra.mxu1 %v5747_v40 }
 0x32f   :  { %v2740_v46 = vmax.f32 %v2586_v31, 0.0  ;;  %2458 = vmatmul.bf16.gmra.mxu2 %v5745_v34  ;;  %2627 = vmatmul.bf16.gmra.mxu3 %v5747_v40 }
 0x330   :  { %v2741_v57 = vmax.f32 %v2251_v10, 0.0 }
 0x331   :  { %v6003_v35 = vpack.c.bf16 %v2740_v46, %v2738_v60 }
 0x332   :  { %v2419_v1 = vpop.f32.mrf.mxu2  ;;  %v2588_v62 = vpop.f32.mrf.mxu3 }
 0x333   :  { %v2420_v59 = vadd.f32 %v2419_v1, %v5914_v44  ;;  %v2083_v2 = vpop.f32.mrf.mxu0  ;;  %v2252_v19 = vpop.f32.mrf.mxu1 }
 0x334   :  { %v2084_v15 = vadd.f32 %v2083_v2, %v5904_v37 }
 0x335   :  { %v2589_v38 = vadd.f32 %v2588_v62, %v2420_v59 }
 0x336   :  { %v2253_v41 = vadd.f32 %v2252_v19, %v2084_v15 }
 0x337   :  { %v2742_v31 = vmax.f32 %v2589_v38, 0.0 }
 0x338   :  { %v2743_v49 = vmax.f32 %v2253_v41, 0.0 }
 0x33a   :  { %v2421_v17 = vpop.f32.mrf.mxu2  ;;  %v6007_v32 = vpack.c.bf16 %v2743_v49, %v2741_v57  ;;  %v2590_v40 = vpop.f32.mrf.mxu3 }
 0x33b   :  { %v2422_v34 = vadd.f32 %v2421_v17, %v5914_v44  ;;  %v2086_v11 = vpop.f32.mrf.mxu0  ;;  %v2255_v52 = vpop.f32.mrf.mxu1 }
 0x33c   :  { %v2087_v16 = vadd.f32 %v2086_v11, %v5904_v37 }
 0x33d   :  { %v2591_v22 = vadd.f32 %v2590_v40, %v2422_v34  ;;  %2125 = vmatmul.bf16.gmra.mxu0 %v5753_v24 }
 0x33e   :  { %v2256_v25 = vadd.f32 %v2255_v52, %v2087_v16  ;;  %2294 = vmatmul.bf16.gmra.mxu1 %v5755_v27 }
 0x33f   :  { %v2744_v60 = vmax.f32 %v2591_v22, 0.0  ;;  %2463 = vmatmul.bf16.gmra.mxu2 %v5753_v24  ;;  %2632 = vmatmul.bf16.gmra.mxu3 %v5755_v27 }
 0x340   :  { %v2745_v38 = vmax.f32 %v2256_v25, 0.0 }
 0x341   :  { %v6015_v10 = vpack.c.bf16 %v2744_v60, %v2742_v31 }
 0x342   :  { %v2424_v46 = vpop.f32.mrf.mxu2  ;;  %v2593_v59 = vpop.f32.mrf.mxu3 }
 0x343   :  { %v2425_v1 = vadd.f32 %v2424_v46, %v5914_v44  ;;  %v2088_v62 = vpop.f32.mrf.mxu0  ;;  %v2257_v15 = vpop.f32.mrf.mxu1 }
 0x344   :  { %v2089_v2 = vadd.f32 %v2088_v62, %v5904_v37 }
 0x345   :  { %v2594_v19 = vadd.f32 %v2593_v59, %v2425_v1 }
 0x346   :  { %v2258_v41 = vadd.f32 %v2257_v15, %v2089_v2 }
 0x347   :  { %v2746_v22 = vmax.f32 %v2594_v19, 0.0 }
 0x348   :  { %v2747_v57 = vmax.f32 %v2258_v41, 0.0 }
 0x34a   :  { %v2426_v49 = vpop.f32.mrf.mxu2  ;;  %v6019_v17 = vpack.c.bf16 %v2747_v57, %v2745_v38  ;;  %v2595_v27 = vpop.f32.mrf.mxu3 }
 0x34b   :  { %v2427_v24 = vadd.f32 %v2426_v49, %v5914_v44  ;;  %v2091_v34 = vpop.f32.mrf.mxu0  ;;  %v2260_v11 = vpop.f32.mrf.mxu1 }
 0x34c   :  { %v2092_v40 = vadd.f32 %v2091_v34, %v5904_v37 }
 0x34d   :  { %v2596_v16 = vadd.f32 %v2595_v27, %v2427_v24  ;;  %2130 = vmatmul.bf16.gmra.mxu0 %v5761_v23 }
 0x34e   :  { %v2261_v52 = vadd.f32 %v2260_v11, %v2092_v40  ;;  %2299 = vmatmul.bf16.gmra.mxu1 %v5763_v29 }
 0x34f   :  { %v2748_v31 = vmax.f32 %v2596_v16, 0.0  ;;  %2468 = vmatmul.bf16.gmra.mxu2 %v5761_v23  ;;  %2637 = vmatmul.bf16.gmra.mxu3 %v5763_v29 }
 0x350   :  { %v2749_v19 = vmax.f32 %v2261_v52, 0.0  ;;  %v5336_v52 = vld [vmem:[#allocation11 + $0x24] sm:$0xf] }
 0x351   :  { %v6027_v25 = vpack.c.bf16 %v2748_v31, %v2746_v22  ;;  %v7023_v31 = vld [vmem:[#allocation17_spill] sm:$0xff] }
 0x352   :  { %v2429_v60 = vpop.f32.mrf.mxu2  ;;  %v2598_v1 = vpop.f32.mrf.mxu3 }
 0x353   :  { %v2430_v46 = vadd.f32 %v2429_v60, %v5914_v44  ;;  %v2093_v59 = vpop.f32.mrf.mxu0  ;;  %v2262_v2 = vpop.f32.mrf.mxu1  ;;  %v5096_v60 = vld [vmem:[#allocation11 + $0x28] sm:$0xf0] }
 0x354   :  { %v2094_v62 = vadd.f32 %v2093_v59, %v5904_v37  ;;  %v5160_v59 = vld [vmem:[#allocation11 + $0xa8] sm:$0xf0] }
 0x355   :  { %v2599_v15 = vadd.f32 %v2598_v1, %v2430_v46  ;;  %v5099_v46 = vor.u32 %v5336_v52, %v5096_v60  ;;  %v5352_v1 = vld [vmem:[#allocation11 + $0xa4] sm:$0xf] }
 0x356   :  { %v2263_v41 = vadd.f32 %v2262_v2, %v2094_v62 }
 0x357   :  { %v2750_v16 = vmax.f32 %v2599_v15, 0.0  ;;  %3446 = vmatpush.bf16.msra.mxu2 %v5099_v46 }
 0x358   :  { %v2751_v38 = vmax.f32 %v2263_v41, 0.0  ;;  %v5163_v41 = vor.u32 %v5352_v1, %v5160_v59 }
 0x35a   :  { %v2431_v57 = vpop.f32.mrf.mxu2  ;;  %v6031_v49 = vpack.c.bf16 %v2751_v38, %v2749_v19  ;;  %v2600_v29 = vpop.f32.mrf.mxu3  ;;  %3615 = vmatpush.bf16.msra.mxu3 %v5163_v41 }
 0x35b   :  { %v2432_v23 = vadd.f32 %v2431_v57, %v5914_v44  ;;  %v2096_v24 = vpop.f32.mrf.mxu0  ;;  %v2265_v34 = vpop.f32.mrf.mxu1 }
 0x35c   :  { %v2097_v27 = vadd.f32 %v2096_v24, %v5904_v37 }
 0x35d   :  { %v2601_v40 = vadd.f32 %v2600_v29, %v2432_v23  ;;  %2135 = vmatmul.bf16.gmra.mxu0 %v5769_v33 }
 0x35e   :  { %v2266_v11 = vadd.f32 %v2265_v34, %v2097_v27  ;;  %2304 = vmatmul.bf16.gmra.mxu1 %v7023_v31  ;;  %v5094_v34 = vld [vmem:[#allocation11 + $0x20] sm:$0xf] }
 0x35f   :  { %v2752_v22 = vmax.f32 %v2601_v40, 0.0  ;;  %2473 = vmatmul.bf16.gmra.mxu2 %v5769_v33  ;;  %2642 = vmatmul.bf16.gmra.mxu3 %v7023_v31  ;;  %v5337_v40 = vld [vmem:[#allocation11 + $0x24] sm:$0xf0] }
 0x360   :  { %v2753_v24 = vmax.f32 %v2266_v11, 0.0  ;;  %v5095_v31 = vor.u32 %v5337_v40, %v5094_v34 }
 0x361   :  { %v6039_v62 = vpack.c.bf16 %v2752_v22, %v2750_v16  ;;  %v5158_v16 = vld [vmem:[#allocation11 + $0xa0] sm:$0xf]  ;;  %v5353_v22 = vld [vmem:[#allocation11 + $0xa4] sm:$0xf0] }
 0x362   :  { %v2434_v2 = vpop.f32.mrf.mxu2  ;;  %v2603_v38 = vpop.f32.mrf.mxu3  ;;  %v5159_v60 = vor.u32 %v5353_v22, %v5158_v16  ;;  %3108 = vmatpush.bf16.msra.mxu0 %v5095_v31 }
 0x363   :  { %v2435_v19 = vadd.f32 %v2434_v2, %v5914_v44  ;;  %v2098_v15 = vpop.f32.mrf.mxu0  ;;  %v2267_v23 = vpop.f32.mrf.mxu1 }
 0x364   :  { %v2099_v57 = vadd.f32 %v2098_v15, %v5904_v37  ;;  %3277 = vmatpush.bf16.msra.mxu1 %v5159_v60  ;;  %v7024_v15 = vld [vmem:[#allocation18_spill] sm:$0xff] }
 0x365   :  { %v2604_v33 = vadd.f32 %v2603_v38, %v2435_v19 }
 0x366   :  { %v2268_v29 = vadd.f32 %v2267_v23, %v2099_v57 }
 0x367   :  { %v2754_v57 = vmax.f32 %v2604_v33, 0.0 }
 0x368   :  { %v2755_v27 = vmax.f32 %v2268_v29, 0.0  ;;  %v7025_v29 = vld [vmem:[#allocation19_spill] sm:$0xff] }
 0x36a   :  { %v2436_v52 = vpop.f32.mrf.mxu2  ;;  %v6043_v1 = vpack.c.bf16 %v2755_v27, %v2753_v24  ;;  %v2605_v46 = vpop.f32.mrf.mxu3 }
 0x36b   :  { %v2437_v59 = vadd.f32 %v2436_v52, %v5914_v44  ;;  %v2101_v2 = vpop.f32.mrf.mxu0  ;;  %v2270_v19 = vpop.f32.mrf.mxu1 }
 0x36c   :  { %v2102_v41 = vadd.f32 %v2101_v2, %v5904_v37 }
 0x36d   :  { %v2606_v11 = vadd.f32 %v2605_v46, %v2437_v59  ;;  %2140 = vmatmul.bf16.gmra.mxu0 %v7024_v15 }
 0x36e   :  { %v2271_v38 = vadd.f32 %v2270_v19, %v2102_v41  ;;  %2309 = vmatmul.bf16.gmra.mxu1 %v7025_v29 }
 0x36f   :  { %v2756_v23 = vmax.f32 %v2606_v11, 0.0  ;;  %2478 = vmatmul.bf16.gmra.mxu2 %v7024_v15  ;;  %2647 = vmatmul.bf16.gmra.mxu3 %v7025_v29 }
 0x370   :  { %v2757_v33 = vmax.f32 %v2271_v38, 0.0 }
 0x371   :  { %v6051_v24 = vpack.c.bf16 %v2756_v23, %v2754_v57 }
 0x372   :  { %v2439_v27 = vpop.f32.mrf.mxu2  ;;  %v2608_v40 = vpop.f32.mrf.mxu3 }
 0x373   :  { %7026 = vst [vmem:[#allocation17_spill] sm:$0xff] %v6051_v24  ;;  %v2440_v34 = vadd.f32 %v2439_v27, %v5914_v44  ;;  %v2103_v31 = vpop.f32.mrf.mxu0  ;;  %v2272_v22 = vpop.f32.mrf.mxu1  ;;  %v7027_v27 = vld [vmem:[#allocation20_spill] sm:$0xff] }
 0x374   :  { %v2104_v16 = vadd.f32 %v2103_v31, %v5904_v37 }
 0x375   :  { %v2609_v52 = vadd.f32 %v2608_v40, %v2440_v34  ;;  %v7028_v34 = vld [vmem:[#allocation21_spill] sm:$0xff] }
 0x376   :  { %v2273_v60 = vadd.f32 %v2272_v22, %v2104_v16 }
 0x377   :  { %v2758_v31 = vmax.f32 %v2609_v52, 0.0 }
 0x378   :  { %v2759_v59 = vmax.f32 %v2273_v60, 0.0 }
 0x37a   :  { %v2441_v46 = vpop.f32.mrf.mxu2  ;;  %v6055_v2 = vpack.c.bf16 %v2759_v59, %v2757_v33  ;;  %v2610_v19 = vpop.f32.mrf.mxu3 }
 0x37b   :  { %v2442_v41 = vadd.f32 %v2441_v46, %v5914_v44  ;;  %v2106_v11 = vpop.f32.mrf.mxu0  ;;  %v2275_v57 = vpop.f32.mrf.mxu1 }
 0x37c   :  { %v2107_v15 = vadd.f32 %v2106_v11, %v5904_v37 }
 0x37d   :  { %v2611_v23 = vadd.f32 %v2610_v19, %v2442_v41  ;;  %2145 = vmatmul.bf16.gmra.mxu0 %v7027_v27 }
 0x37e   :  { %v2276_v29 = vadd.f32 %v2275_v57, %v2107_v15  ;;  %2314 = vmatmul.bf16.gmra.mxu1 %v7028_v34 }
 0x37f   :  { %v2760_v24 = vmax.f32 %v2611_v23, 0.0  ;;  %2483 = vmatmul.bf16.gmra.mxu2 %v7027_v27  ;;  %2652 = vmatmul.bf16.gmra.mxu3 %v7028_v34 }
 0x380   :  { %v2761_v52 = vmax.f32 %v2276_v29, 0.0 }
 0x381   :  { %v6063_v38 = vpack.c.bf16 %v2760_v24, %v2758_v31 }
 0x382   :  { %v2444_v40 = vpop.f32.mrf.mxu2  ;;  %v2613_v22 = vpop.f32.mrf.mxu3 }
 0x383   :  { %7029 = vst [vmem:[#allocation18_spill] sm:$0xff] %v6063_v38  ;;  %v2445_v16 = vadd.f32 %v2444_v40, %v5914_v44  ;;  %v2108_v60 = vpop.f32.mrf.mxu0  ;;  %v2277_v59 = vpop.f32.mrf.mxu1 }
 0x384   :  { %v2109_v33 = vadd.f32 %v2108_v60, %v5904_v37 }
 0x385   :  { %v2614_v46 = vadd.f32 %v2613_v22, %v2445_v16 }
 0x386   :  { %v2278_v41 = vadd.f32 %v2277_v59, %v2109_v33 }
 0x387   :  { %v2762_v60 = vmax.f32 %v2614_v46, 0.0 }
 0x388   :  { %v2763_v19 = vmax.f32 %v2278_v41, 0.0 }
 0x38a   :  { %v2446_v11 = vpop.f32.mrf.mxu2  ;;  %v6067_v15 = vpack.c.bf16 %v2763_v19, %v2761_v52  ;;  %v2615_v23 = vpop.f32.mrf.mxu3 }
 0x38b   :  { %v2447_v57 = vadd.f32 %v2446_v11, %v5914_v44  ;;  %v2111_v24 = vpop.f32.mrf.mxu0  ;;  %v2280_v31 = vpop.f32.mrf.mxu1 }
 0x38c   :  { %v2112_v27 = vadd.f32 %v2111_v24, %v5904_v37 }
 0x38d   :  { %v2616_v34 = vadd.f32 %v2615_v23, %v2447_v57  ;;  %2150 = vmatmul.bf16.gmra.mxu0 %v5793_v56 }
 0x38e   :  { %v2281_v40 = vadd.f32 %v2280_v31, %v2112_v27  ;;  %2319 = vmatmul.bf16.gmra.mxu1 %v5795_v20 }
 0x38f   :  { %v2764_v38 = vmax.f32 %v2616_v34, 0.0  ;;  %2488 = vmatmul.bf16.gmra.mxu2 %v5793_v56  ;;  %2657 = vmatmul.bf16.gmra.mxu3 %v5795_v20 }
 0x390   :  { %v2765_v46 = vmax.f32 %v2281_v40, 0.0  ;;  %v5334_v40 = vld [vmem:[#allocation11 + $0x14] sm:$0xf] }
 0x391   :  { %v6075_v29 = vpack.c.bf16 %v2764_v38, %v2762_v60 }
 0x392   :  { %v2449_v16 = vpop.f32.mrf.mxu2  ;;  %v2618_v33 = vpop.f32.mrf.mxu3 }
 0x393   :  { %v2450_v22 = vadd.f32 %v2449_v16, %v5914_v44  ;;  %v2113_v59 = vpop.f32.mrf.mxu0  ;;  %v2282_v52 = vpop.f32.mrf.mxu1 }
 0x394   :  { %v2114_v41 = vadd.f32 %v2113_v59, %v5904_v37 }
 0x395   :  { %v2619_v19 = vadd.f32 %v2618_v33, %v2450_v22  ;;  %v5088_v22 = vld [vmem:[#allocation11 + $0x18] sm:$0xf0] }
 0x396   :  { %v2283_v11 = vadd.f32 %v2282_v52, %v2114_v41  ;;  %v5091_v33 = vor.u32 %v5334_v40, %v5088_v22  ;;  %v5350_v41 = vld [vmem:[#allocation11 + $0x94] sm:$0xf]  ;;  %v5152_v52 = vld [vmem:[#allocation11 + $0x98] sm:$0xf0]  ;;  %v5335_v40 = vld [vmem:[#allocation11 + $0x14] sm:$0xf0] }
 0x397   :  { %v2766_v16 = vmax.f32 %v2619_v19, 0.0 }
 0x398   :  { %v2767_v57 = vmax.f32 %v2283_v11, 0.0  ;;  %3447 = vmatpush.bf16.msra.mxu2 %v5091_v33 }
 0x39a   :  { %v2451_v23 = vpop.f32.mrf.mxu2  ;;  %v6079_v24 = vpack.c.bf16 %v2767_v57, %v2765_v46  ;;  %v2620_v20 = vpop.f32.mrf.mxu3  ;;  %v5155_v57 = vor.u32 %v5350_v41, %v5152_v52 }
 0x39b   :  { %v2452_v56 = vadd.f32 %v2451_v23, %v5914_v44  ;;  %v2116_v38 = vpop.f32.mrf.mxu0  ;;  %v2285_v31 = vpop.f32.mrf.mxu1 }
 0x39c   :  { %7030 = vst [vmem:[#allocation19_spill] sm:$0xff] %v6079_v24  ;;  %v2117_v27 = vadd.f32 %v2116_v38, %v5904_v37  ;;  %3616 = vmatpush.bf16.msra.mxu3 %v5155_v57 }
 0x39d   :  { %v2621_v34 = vadd.f32 %v2620_v20, %v2452_v56  ;;  %2155 = vmatmul.bf16.gmra.mxu0 %v5801_v63 }
 0x39e   :  { %v2286_v60 = vadd.f32 %v2285_v31, %v2117_v27  ;;  %2324 = vmatmul.bf16.gmra.mxu1 %v5803_v8 }
 0x39f   :  { %v2768_v59 = vmax.f32 %v2621_v34, 0.0  ;;  %2493 = vmatmul.bf16.gmra.mxu2 %v5801_v63  ;;  %2662 = vmatmul.bf16.gmra.mxu3 %v5803_v8  ;;  %v5086_v34 = vld [vmem:[#allocation11 + $0x10] sm:$0xf] }
 0x3a0   :  { %v2769_v27 = vmax.f32 %v2286_v60, 0.0  ;;  %v5087_v22 = vor.u32 %v5335_v40, %v5086_v34 }
 0x3a1   :  { %v6087_v11 = vpack.c.bf16 %v2768_v59, %v2766_v16  ;;  %v5150_v16 = vld [vmem:[#allocation11 + $0x90] sm:$0xf]  ;;  %v5351_v59 = vld [vmem:[#allocation11 + $0x94] sm:$0xf0] }
 0x3a2   :  { %v2454_v46 = vpop.f32.mrf.mxu2  ;;  %v2623_v56 = vpop.f32.mrf.mxu3  ;;  %v5151_v41 = vor.u32 %v5351_v59, %v5150_v16  ;;  %3109 = vmatpush.bf16.msra.mxu0 %v5087_v22 }
 0x3a3   :  { %7031 = vst [vmem:[#allocation20_spill] sm:$0xff] %v6087_v11  ;;  %v2455_v23 = vadd.f32 %v2454_v46, %v5914_v44  ;;  %v2118_v19 = vpop.f32.mrf.mxu0  ;;  %v2287_v38 = vpop.f32.mrf.mxu1 }
 0x3a4   :  { %v2119_v20 = vadd.f32 %v2118_v19, %v5904_v37  ;;  %3278 = vmatpush.bf16.msra.mxu1 %v5151_v41 }
 0x3a5   :  { %v2624_v63 = vadd.f32 %v2623_v56, %v2455_v23 }
 0x3a6   :  { %v2288_v8 = vadd.f32 %v2287_v38, %v2119_v20 }
 0x3a7   :  { %v2770_v19 = vmax.f32 %v2624_v63, 0.0 }
 0x3a8   :  { %v2771_v31 = vmax.f32 %v2288_v8, 0.0 }
 0x3aa   :  { %v2456_v11 = vpop.f32.mrf.mxu2  ;;  %v6091_v52 = vpack.c.bf16 %v2771_v31, %v2769_v27  ;;  %v2625_v33 = vpop.f32.mrf.mxu3 }
 0x3ab   :  { %v2457_v46 = vadd.f32 %v2456_v11, %v5914_v44  ;;  %v2121_v24 = vpop.f32.mrf.mxu0  ;;  %v2290_v23 = vpop.f32.mrf.mxu1 }
 0x3ac   :  { %v2122_v57 = vadd.f32 %v2121_v24, %v5904_v37 }
 0x3ad   :  { %v2626_v60 = vadd.f32 %v2625_v33, %v2457_v46  ;;  %2160 = vmatmul.bf16.gmra.mxu0 %v5813_v4 }
 0x3ae   :  { %v2291_v56 = vadd.f32 %v2290_v23, %v2122_v57  ;;  %2329 = vmatmul.bf16.gmra.mxu1 %v5815_v18 }
 0x3af   :  { %v2772_v20 = vmax.f32 %v2626_v60, 0.0  ;;  %2498 = vmatmul.bf16.gmra.mxu2 %v5813_v4  ;;  %2667 = vmatmul.bf16.gmra.mxu3 %v5815_v18 }
 0x3b0   :  { %v2773_v63 = vmax.f32 %v2291_v56, 0.0 }
 0x3b1   :  { %v6099_v11 = vpack.c.bf16 %v2772_v20, %v2770_v19  ;;  %v7032_v19 = vld [vmem:[#allocation22_spill] sm:$0xff] }
 0x3b2   :  { %v2459_v38 = vpop.f32.mrf.mxu2  ;;  %v2628_v24 = vpop.f32.mrf.mxu3 }
 0x3b3   :  { %v2460_v8 = vadd.f32 %v2459_v38, %v5914_v44  ;;  %v2123_v27 = vpop.f32.mrf.mxu0  ;;  %v2292_v34 = vpop.f32.mrf.mxu1 }
 0x3b4   :  { %v2124_v31 = vadd.f32 %v2123_v27, %v5904_v37 }
 0x3b5   :  { %v2629_v40 = vadd.f32 %v2628_v24, %v2460_v8  ;;  %v7033_v8 = vld [vmem:[#allocation23_spill] sm:$0xff] }
 0x3b6   :  { %v2293_v22 = vadd.f32 %v2292_v34, %v2124_v31 }
 0x3b7   :  { %v2774_v20 = vmax.f32 %v2629_v40, 0.0 }
 0x3b8   :  { %v2775_v16 = vmax.f32 %v2293_v22, 0.0 }
 0x3ba   :  { %v2461_v59 = vpop.f32.mrf.mxu2  ;;  %v6103_v41 = vpack.c.bf16 %v2775_v16, %v2773_v63  ;;  %v2630_v18 = vpop.f32.mrf.mxu3 }
 0x3bb   :  { %v2462_v4 = vadd.f32 %v2461_v59, %v5914_v44  ;;  %v2126_v46 = vpop.f32.mrf.mxu0  ;;  %v2295_v57 = vpop.f32.mrf.mxu1 }
 0x3bc   :  { %v2127_v33 = vadd.f32 %v2126_v46, %v5904_v37 }
 0x3bd   :  { %v2631_v23 = vadd.f32 %v2630_v18, %v2462_v4  ;;  %2165 = vmatmul.bf16.gmra.mxu0 %v7032_v19 }
 0x3be   :  { %v2296_v60 = vadd.f32 %v2295_v57, %v2127_v33  ;;  %2334 = vmatmul.bf16.gmra.mxu1 %v7033_v8 }
 0x3bf   :  { %v2776_v38 = vmax.f32 %v2631_v23, 0.0  ;;  %2503 = vmatmul.bf16.gmra.mxu2 %v7032_v19  ;;  %2672 = vmatmul.bf16.gmra.mxu3 %v7033_v8 }
 0x3c0   :  { %v2777_v40 = vmax.f32 %v2296_v60, 0.0 }
 0x3c1   :  { %v6111_v56 = vpack.c.bf16 %v2776_v38, %v2774_v20 }
 0x3c2   :  { %v2464_v24 = vpop.f32.mrf.mxu2  ;;  %v2633_v31 = vpop.f32.mrf.mxu3 }
 0x3c3   :  { %v2465_v27 = vadd.f32 %v2464_v24, %v5914_v44  ;;  %v2128_v34 = vpop.f32.mrf.mxu0  ;;  %v2297_v63 = vpop.f32.mrf.mxu1 }
 0x3c4   :  { %v2129_v22 = vadd.f32 %v2128_v34, %v5904_v37 }
 0x3c5   :  { %v2634_v16 = vadd.f32 %v2633_v31, %v2465_v27 }
 0x3c6   :  { %v2298_v59 = vadd.f32 %v2297_v63, %v2129_v22 }
 0x3c7   :  { %v2778_v24 = vmax.f32 %v2634_v16, 0.0 }
 0x3c8   :  { %v2779_v4 = vmax.f32 %v2298_v59, 0.0 }
 0x3ca   :  { %v2466_v18 = vpop.f32.mrf.mxu2  ;;  %v6115_v46 = vpack.c.bf16 %v2779_v4, %v2777_v40  ;;  %v2635_v57 = vpop.f32.mrf.mxu3 }
 0x3cb   :  { %v2467_v33 = vadd.f32 %v2466_v18, %v5914_v44  ;;  %v2131_v23 = vpop.f32.mrf.mxu0  ;;  %v2300_v20 = vpop.f32.mrf.mxu1 }
 0x3cc   :  { %v2132_v19 = vadd.f32 %v2131_v23, %v5904_v37 }
 0x3cd   :  { %v2636_v38 = vadd.f32 %v2635_v57, %v2467_v33  ;;  %2170 = vmatmul.bf16.gmra.mxu0 %v5837_v42 }
 0x3ce   :  { %v2301_v8 = vadd.f32 %v2300_v20, %v2132_v19  ;;  %2339 = vmatmul.bf16.gmra.mxu1 %v5839_v58 }
 0x3cf   :  { %v2780_v34 = vmax.f32 %v2636_v38, 0.0  ;;  %2508 = vmatmul.bf16.gmra.mxu2 %v5837_v42  ;;  %2677 = vmatmul.bf16.gmra.mxu3 %v5839_v58 }
 0x3d0   :  { %v2781_v16 = vmax.f32 %v2301_v8, 0.0  ;;  %v5332_v8 = vld [vmem:[#allocation11 + $0x4] sm:$0xf] }
 0x3d1   :  { %v6123_v60 = vpack.c.bf16 %v2780_v34, %v2778_v24 }
 0x3d2   :  { %v2469_v27 = vpop.f32.mrf.mxu2  ;;  %v2638_v22 = vpop.f32.mrf.mxu3 }
 0x3d3   :  { %v2470_v31 = vadd.f32 %v2469_v27, %v5914_v44  ;;  %v2133_v63 = vpop.f32.mrf.mxu0  ;;  %v2302_v40 = vpop.f32.mrf.mxu1 }
 0x3d4   :  { %v2134_v59 = vadd.f32 %v2133_v63, %v5904_v37 }
 0x3d5   :  { %v2639_v4 = vadd.f32 %v2638_v22, %v2470_v31  ;;  %v5080_v31 = vld [vmem:[#allocation11 + $0x8] sm:$0xf0] }
 0x3d6   :  { %v2303_v18 = vadd.f32 %v2302_v40, %v2134_v59  ;;  %v5083_v22 = vor.u32 %v5332_v8, %v5080_v31  ;;  %v5348_v59 = vld [vmem:[#allocation11 + $0x84] sm:$0xf]  ;;  %v5144_v40 = vld [vmem:[#allocation11 + $0x88] sm:$0xf0]  ;;  %v5333_v8 = vld [vmem:[#allocation11 + $0x4] sm:$0xf0] }
 0x3d7   :  { %v2782_v27 = vmax.f32 %v2639_v4, 0.0 }
 0x3d8   :  { %v2783_v33 = vmax.f32 %v2303_v18, 0.0  ;;  %3448 = vmatpush.bf16.msra.mxu2 %v5083_v22 }
 0x3da   :  { %v2471_v57 = vpop.f32.mrf.mxu2  ;;  %v6127_v23 = vpack.c.bf16 %v2783_v33, %v2781_v16  ;;  %v2640_v58 = vpop.f32.mrf.mxu3  ;;  %v5147_v33 = vor.u32 %v5348_v59, %v5144_v40 }
 0x3db   :  { %v2472_v42 = vadd.f32 %v2471_v57, %v5914_v44  ;;  %v2136_v19 = vpop.f32.mrf.mxu0  ;;  %v2305_v38 = vpop.f32.mrf.mxu1 }
 0x3dc   :  { %7034 = vst [vmem:[#allocation21_spill] sm:$0xff] %v6127_v23  ;;  %v2137_v20 = vadd.f32 %v2136_v19, %v5904_v37  ;;  %3617 = vmatpush.bf16.msra.mxu3 %v5147_v33 }
 0x3dd   :  { %v2641_v24 = vadd.f32 %v2640_v58, %v2472_v42  ;;  %2175 = vmatmul.bf16.gmra.mxu0 %v5849_v61 }
 0x3de   :  { %v2306_v34 = vadd.f32 %v2305_v38, %v2137_v20  ;;  %2344 = vmatmul.bf16.gmra.mxu1 %v5851_v28 }
 0x3df   :  { %v2784_v63 = vmax.f32 %v2641_v24, 0.0  ;;  %2513 = vmatmul.bf16.gmra.mxu2 %v5849_v61  ;;  %2682 = vmatmul.bf16.gmra.mxu3 %v5851_v28  ;;  %v5078_v24 = vld [vmem:[#allocation11] sm:$0xf] }
 0x3e0   :  { %v2785_v20 = vmax.f32 %v2306_v34, 0.0  ;;  %v5079_v31 = vor.u32 %v5333_v8, %v5078_v24 }
 0x3e1   :  { %v6135_v18 = vpack.c.bf16 %v2784_v63, %v2782_v27  ;;  %v5142_v27 = vld [vmem:[#allocation11 + $0x80] sm:$0xf]  ;;  %v5349_v63 = vld [vmem:[#allocation11 + $0x84] sm:$0xf0] }
 0x3e2   :  { %v2474_v16 = vpop.f32.mrf.mxu2  ;;  %v2643_v42 = vpop.f32.mrf.mxu3  ;;  %v5143_v59 = vor.u32 %v5349_v63, %v5142_v27  ;;  %3110 = vmatpush.bf16.msra.mxu0 %v5079_v31 }
 0x3e3   :  { %7035 = vst [vmem:[#allocation22_spill] sm:$0xff] %v6135_v18  ;;  %v2475_v57 = vadd.f32 %v2474_v16, %v5914_v44  ;;  %v2138_v4 = vpop.f32.mrf.mxu0  ;;  %v2307_v19 = vpop.f32.mrf.mxu1 }
 0x3e4   :  { %v2139_v58 = vadd.f32 %v2138_v4, %v5904_v37  ;;  %3279 = vmatpush.bf16.msra.mxu1 %v5143_v59 }
 0x3e5   :  { %v2644_v61 = vadd.f32 %v2643_v42, %v2475_v57 }
 0x3e6   :  { %v2308_v28 = vadd.f32 %v2307_v19, %v2139_v58 }
 0x3e7   :  { %v2786_v4 = vmax.f32 %v2644_v61, 0.0 }
 0x3e8   :  { %v2787_v38 = vmax.f32 %v2308_v28, 0.0 }
 0x3ea   :  { %v2476_v18 = vpop.f32.mrf.mxu2  ;;  %v6139_v40 = vpack.c.bf16 %v2787_v38, %v2785_v20  ;;  %v2645_v22 = vpop.f32.mrf.mxu3 }
 0x3eb   :  { %v2477_v16 = vadd.f32 %v2476_v18, %v5914_v44  ;;  %v2141_v23 = vpop.f32.mrf.mxu0  ;;  %v2310_v57 = vpop.f32.mrf.mxu1 }
 0x3ec   :  { %v2142_v33 = vadd.f32 %v2141_v23, %v5904_v37 }
 0x3ed   :  { %v2646_v34 = vadd.f32 %v2645_v22, %v2477_v16  ;;  %2180 = vmatmul.bf16.gmra.mxu0 %v5861_v7 }
 0x3ee   :  { %v2311_v42 = vadd.f32 %v2310_v57, %v2142_v33  ;;  %2349 = vmatmul.bf16.gmra.mxu1 %v5863_v30 }
 0x3ef   :  { %v2788_v58 = vmax.f32 %v2646_v34, 0.0  ;;  %2518 = vmatmul.bf16.gmra.mxu2 %v5861_v7  ;;  %2687 = vmatmul.bf16.gmra.mxu3 %v5863_v30 }
 0x3f0   :  { %v2789_v61 = vmax.f32 %v2311_v42, 0.0 }
 0x3f1   :  { %v6147_v18 = vpack.c.bf16 %v2788_v58, %v2786_v4 }
 0x3f2   :  { %v2479_v19 = vpop.f32.mrf.mxu2  ;;  %v2648_v23 = vpop.f32.mrf.mxu3 }
 0x3f3   :  { %v2480_v28 = vadd.f32 %v2479_v19, %v5914_v44  ;;  %v2143_v20 = vpop.f32.mrf.mxu0  ;;  %v2312_v24 = vpop.f32.mrf.mxu1 }
 0x3f4   :  { %v2144_v38 = vadd.f32 %v2143_v20, %v5904_v37 }
 0x3f5   :  { %v2649_v8 = vadd.f32 %v2648_v23, %v2480_v28 }
 0x3f6   :  { %v2313_v31 = vadd.f32 %v2312_v24, %v2144_v38 }
 0x3f7   :  { %v2790_v4 = vmax.f32 %v2649_v8, 0.0 }
 0x3f8   :  { %v2791_v27 = vmax.f32 %v2313_v31, 0.0 }
 0x3fa   :  { %v2481_v63 = vpop.f32.mrf.mxu2  ;;  %v6151_v59 = vpack.c.bf16 %v2791_v27, %v2789_v61  ;;  %v2650_v30 = vpop.f32.mrf.mxu3 }
 0x3fb   :  { %v2482_v7 = vadd.f32 %v2481_v63, %v5914_v44  ;;  %v2146_v16 = vpop.f32.mrf.mxu0  ;;  %v2315_v33 = vpop.f32.mrf.mxu1 }
 0x3fc   :  { %v2147_v22 = vadd.f32 %v2146_v16, %v5904_v37 }
 0x3fd   :  { %v2651_v57 = vadd.f32 %v2650_v30, %v2482_v7  ;;  %2185 = vmatmul.bf16.gmra.mxu0 %v5873_v21 }
 0x3fe   :  { %v2316_v34 = vadd.f32 %v2315_v33, %v2147_v22  ;;  %2354 = vmatmul.bf16.gmra.mxu1 %v5875_v26 }
 0x3ff   :  { %v2792_v58 = vmax.f32 %v2651_v57, 0.0  ;;  %2523 = vmatmul.bf16.gmra.mxu2 %v5873_v21  ;;  %2692 = vmatmul.bf16.gmra.mxu3 %v5875_v26 }
 0x400   :  { %v2793_v8 = vmax.f32 %v2316_v34, 0.0 }
 0x401   :  { %v6159_v42 = vpack.c.bf16 %v2792_v58, %v2790_v4 }
 0x402   :  { %v2484_v19 = vpop.f32.mrf.mxu2  ;;  %v2653_v23 = vpop.f32.mrf.mxu3 }
 0x403   :  { %v2485_v28 = vadd.f32 %v2484_v19, %v5914_v44  ;;  %v2148_v20 = vpop.f32.mrf.mxu0  ;;  %v2317_v24 = vpop.f32.mrf.mxu1 }
 0x404   :  { %v2149_v38 = vadd.f32 %v2148_v20, %v5904_v37 }
 0x405   :  { %v2654_v31 = vadd.f32 %v2653_v23, %v2485_v28 }
 0x406   :  { %v2318_v61 = vadd.f32 %v2317_v24, %v2149_v38 }
 0x407   :  { %v2794_v4 = vmax.f32 %v2654_v31, 0.0 }
 0x408   :  { %v2795_v27 = vmax.f32 %v2318_v61, 0.0 }
 0x40a   :  { %v2486_v63 = vpop.f32.mrf.mxu2  ;;  %v6163_v7 = vpack.c.bf16 %v2795_v27, %v2793_v8  ;;  %v2655_v26 = vpop.f32.mrf.mxu3 }
 0x40b   :  { %v2487_v21 = vadd.f32 %v2486_v63, %v5914_v44  ;;  %v2151_v30 = vpop.f32.mrf.mxu0  ;;  %v2320_v22 = vpop.f32.mrf.mxu1 }
 0x40c   :  { %v2152_v16 = vadd.f32 %v2151_v30, %v5904_v37 }
 0x40d   :  { %v2656_v33 = vadd.f32 %v2655_v26, %v2487_v21  ;;  %2190 = vmatmul.bf16.gmra.mxu0 %v5885_v0 }
 0x40e   :  { %v2321_v57 = vadd.f32 %v2320_v22, %v2152_v16  ;;  %2359 = vmatmul.bf16.gmra.mxu1 %v5887_v36 }
 0x40f   :  { %v2796_v58 = vmax.f32 %v2656_v33, 0.0  ;;  %2528 = vmatmul.bf16.gmra.mxu2 %v5885_v0  ;;  %2697 = vmatmul.bf16.gmra.mxu3 %v5887_v36 }
 0x410   :  { %v2797_v31 = vmax.f32 %v2321_v57, 0.0 }
 0x411   :  { %v6171_v34 = vpack.c.bf16 %v2796_v58, %v2794_v4 }
 0x412   :  { %v2489_v19 = vpop.f32.mrf.mxu2  ;;  %v2658_v23 = vpop.f32.mrf.mxu3 }
 0x413   :  { %v2490_v28 = vadd.f32 %v2489_v19, %v5914_v44  ;;  %v2153_v20 = vpop.f32.mrf.mxu0  ;;  %v2322_v24 = vpop.f32.mrf.mxu1 }
 0x414   :  { %v2154_v38 = vadd.f32 %v2153_v20, %v5904_v37 }
 0x415   :  { %v2659_v61 = vadd.f32 %v2658_v23, %v2490_v28 }
 0x416   :  { %v2323_v8 = vadd.f32 %v2322_v24, %v2154_v38 }
 0x417   :  { %v2798_v4 = vmax.f32 %v2659_v61, 0.0 }
 0x418   :  { %v2799_v27 = vmax.f32 %v2323_v8, 0.0 }
 0x41a   :  { %v2491_v63 = vpop.f32.mrf.mxu2  ;;  %v6175_v21 = vpack.c.bf16 %v2799_v27, %v2797_v31  ;;  %v2660_v36 = vpop.f32.mrf.mxu3 }
 0x41b   :  { %v2492_v0 = vadd.f32 %v2491_v63, %v5914_v44  ;;  %v2156_v26 = vpop.f32.mrf.mxu0  ;;  %v2325_v16 = vpop.f32.mrf.mxu1 }
 0x41c   :  { %v2157_v30 = vadd.f32 %v2156_v26, %v5904_v37 }
 0x41d   :  { %v2661_v22 = vadd.f32 %v2660_v36, %v2492_v0  ;;  %2195 = vmatmul.bf16.gmra.mxu0 %v5897_v12 }
 0x41e   :  { %v2326_v33 = vadd.f32 %v2325_v16, %v2157_v30  ;;  %2364 = vmatmul.bf16.gmra.mxu1 %v5899_v5 }
 0x41f   :  { %v2800_v58 = vmax.f32 %v2661_v22, 0.0  ;;  %2533 = vmatmul.bf16.gmra.mxu2 %v5897_v12  ;;  %2702 = vmatmul.bf16.gmra.mxu3 %v5899_v5 }
 0x420   :  { %v2801_v61 = vmax.f32 %v2326_v33, 0.0 }
 0x421   :  { %v6183_v57 = vpack.c.bf16 %v2800_v58, %v2798_v4 }
 0x422   :  { %v2494_v19 = vpop.f32.mrf.mxu2  ;;  %v2663_v23 = vpop.f32.mrf.mxu3 }
 0x423   :  { %v2495_v28 = vadd.f32 %v2494_v19, %v5914_v44  ;;  %v2158_v20 = vpop.f32.mrf.mxu0  ;;  %v2327_v24 = vpop.f32.mrf.mxu1 }
 0x424   :  { %v2159_v38 = vadd.f32 %v2158_v20, %v5904_v37 }
 0x425   :  { %v2664_v8 = vadd.f32 %v2663_v23, %v2495_v28 }
 0x426   :  { %v2328_v31 = vadd.f32 %v2327_v24, %v2159_v38 }
 0x427   :  { %v2802_v4 = vmax.f32 %v2664_v8, 0.0 }
 0x428   :  { %v2803_v27 = vmax.f32 %v2328_v31, 0.0 }
 0x42a   :  { %v2496_v63 = vpop.f32.mrf.mxu2  ;;  %v6187_v0 = vpack.c.bf16 %v2803_v27, %v2801_v61  ;;  %v2665_v5 = vpop.f32.mrf.mxu3 }
 0x42b   :  { %v2497_v12 = vadd.f32 %v2496_v63, %v5914_v44  ;;  %v2161_v36 = vpop.f32.mrf.mxu0  ;;  %v2330_v30 = vpop.f32.mrf.mxu1 }
 0x42c   :  { %v2162_v26 = vadd.f32 %v2161_v36, %v5904_v37 }
 0x42d   :  { %v2666_v16 = vadd.f32 %v2665_v5, %v2497_v12  ;;  %2200 = vmatmul.bf16.gmra.mxu0 %v5917_v48 }
 0x42e   :  { %v2331_v22 = vadd.f32 %v2330_v30, %v2162_v26  ;;  %2369 = vmatmul.bf16.gmra.mxu1 %v5919_v54 }
 0x42f   :  { %v2804_v58 = vmax.f32 %v2666_v16, 0.0  ;;  %2538 = vmatmul.bf16.gmra.mxu2 %v5917_v48  ;;  %2707 = vmatmul.bf16.gmra.mxu3 %v5919_v54 }
 0x430   :  { %v2805_v8 = vmax.f32 %v2331_v22, 0.0 }
 0x431   :  { %v6195_v33 = vpack.c.bf16 %v2804_v58, %v2802_v4 }
 0x432   :  { %v2499_v19 = vpop.f32.mrf.mxu2  ;;  %v2668_v23 = vpop.f32.mrf.mxu3 }
 0x433   :  { %v2500_v28 = vadd.f32 %v2499_v19, %v5914_v44  ;;  %v2163_v20 = vpop.f32.mrf.mxu0  ;;  %v2332_v24 = vpop.f32.mrf.mxu1 }
 0x434   :  { %v2164_v38 = vadd.f32 %v2163_v20, %v5904_v37 }
 0x435   :  { %v2669_v31 = vadd.f32 %v2668_v23, %v2500_v28 }
 0x436   :  { %v2333_v61 = vadd.f32 %v2332_v24, %v2164_v38 }
 0x437   :  { %v2806_v4 = vmax.f32 %v2669_v31, 0.0 }
 0x438   :  { %v2807_v27 = vmax.f32 %v2333_v61, 0.0 }
 0x43a   :  { %v2501_v63 = vpop.f32.mrf.mxu2  ;;  %v6199_v12 = vpack.c.bf16 %v2807_v27, %v2805_v8  ;;  %v2670_v54 = vpop.f32.mrf.mxu3 }
 0x43b   :  { %v2502_v48 = vadd.f32 %v2501_v63, %v5914_v44  ;;  %v2166_v5 = vpop.f32.mrf.mxu0  ;;  %v2335_v26 = vpop.f32.mrf.mxu1 }
 0x43c   :  { %v2167_v36 = vadd.f32 %v2166_v5, %v5904_v37 }
 0x43d   :  { %v2671_v30 = vadd.f32 %v2670_v54, %v2502_v48  ;;  %3111 = vmatmul.bf16.vlgmr.msra.gmra.mxu0 %v5923_v39 }
 0x43e   :  { %v2336_v16 = vadd.f32 %v2335_v26, %v2167_v36  ;;  %3280 = vmatmul.bf16.vlgmr.msra.gmra.mxu1 %v5931_v47 }
 0x43f   :  { %v2808_v58 = vmax.f32 %v2671_v30, 0.0  ;;  %3449 = vmatmul.bf16.vlgmr.msra.gmra.mxu2 %v5923_v39  ;;  %3618 = vmatmul.bf16.vlgmr.msra.gmra.mxu3 %v5931_v47 }
 0x440   :  { %v2809_v31 = vmax.f32 %v2336_v16, 0.0 }
 0x441   :  { %v6207_v22 = vpack.c.bf16 %v2808_v58, %v2806_v4 }
 0x442   :  { %v2504_v19 = vpop.f32.mrf.mxu2  ;;  %v2673_v23 = vpop.f32.mrf.mxu3 }
 0x443   :  { %v2505_v28 = vadd.f32 %v2504_v19, %v5914_v44  ;;  %v2168_v20 = vpop.f32.mrf.mxu0  ;;  %v2337_v24 = vpop.f32.mrf.mxu1 }
 0x444   :  { %v2169_v38 = vadd.f32 %v2168_v20, %v5904_v37 }
 0x445   :  { %v2674_v61 = vadd.f32 %v2673_v23, %v2505_v28 }
 0x446   :  { %v2338_v8 = vadd.f32 %v2337_v24, %v2169_v38 }
 0x447   :  { %v2810_v4 = vmax.f32 %v2674_v61, 0.0 }
 0x448   :  { %v2811_v27 = vmax.f32 %v2338_v8, 0.0 }
 0x44a   :  { %v2506_v63 = vpop.f32.mrf.mxu2  ;;  %v6211_v48 = vpack.c.bf16 %v2811_v27, %v2809_v31  ;;  %v2675_v47 = vpop.f32.mrf.mxu3 }
 0x44b   :  { %v2507_v39 = vadd.f32 %v2506_v63, %v5914_v44  ;;  %v2171_v54 = vpop.f32.mrf.mxu0  ;;  %v2340_v36 = vpop.f32.mrf.mxu1 }
 0x44c   :  { %v2172_v5 = vadd.f32 %v2171_v54, %v5904_v37 }
 0x44d   :  { %v2676_v26 = vadd.f32 %v2675_v47, %v2507_v39  ;;  %3116 = vmatmul.bf16.gmra.mxu0 %v5935_v6 }
 0x44e   :  { %v2341_v30 = vadd.f32 %v2340_v36, %v2172_v5  ;;  %3285 = vmatmul.bf16.gmra.mxu1 %v5943_v53 }
 0x44f   :  { %v2812_v58 = vmax.f32 %v2676_v26, 0.0  ;;  %3454 = vmatmul.bf16.gmra.mxu2 %v5935_v6  ;;  %3623 = vmatmul.bf16.gmra.mxu3 %v5943_v53 }
 0x450   :  { %v2813_v61 = vmax.f32 %v2341_v30, 0.0 }
 0x451   :  { %v6219_v16 = vpack.c.bf16 %v2812_v58, %v2810_v4 }
 0x452   :  { %v2509_v19 = vpop.f32.mrf.mxu2  ;;  %v2678_v23 = vpop.f32.mrf.mxu3 }
 0x453   :  { %v2510_v28 = vadd.f32 %v2509_v19, %v5914_v44  ;;  %v2173_v20 = vpop.f32.mrf.mxu0  ;;  %v2342_v24 = vpop.f32.mrf.mxu1 }
 0x454   :  { %v2174_v38 = vadd.f32 %v2173_v20, %v5904_v37 }
 0x455   :  { %v2679_v8 = vadd.f32 %v2678_v23, %v2510_v28 }
 0x456   :  { %v2343_v31 = vadd.f32 %v2342_v24, %v2174_v38 }
 0x457   :  { %v2814_v4 = vmax.f32 %v2679_v8, 0.0 }
 0x458   :  { %v2815_v27 = vmax.f32 %v2343_v31, 0.0 }
 0x45a   :  { %v2511_v63 = vpop.f32.mrf.mxu2  ;;  %v6223_v39 = vpack.c.bf16 %v2815_v27, %v2813_v61  ;;  %v2680_v53 = vpop.f32.mrf.mxu3 }
 0x45b   :  { %v2512_v6 = vadd.f32 %v2511_v63, %v5914_v44  ;;  %v2176_v47 = vpop.f32.mrf.mxu0  ;;  %v2345_v5 = vpop.f32.mrf.mxu1 }
 0x45c   :  { %v2177_v54 = vadd.f32 %v2176_v47, %v5904_v37 }
 0x45d   :  { %v2681_v36 = vadd.f32 %v2680_v53, %v2512_v6  ;;  %3121 = vmatmul.bf16.gmra.mxu0 %v5947_v45 }
 0x45e   :  { %v2346_v26 = vadd.f32 %v2345_v5, %v2177_v54  ;;  %3290 = vmatmul.bf16.gmra.mxu1 %v5955_v14 }
 0x45f   :  { %v2816_v58 = vmax.f32 %v2681_v36, 0.0  ;;  %3459 = vmatmul.bf16.gmra.mxu2 %v5947_v45  ;;  %3628 = vmatmul.bf16.gmra.mxu3 %v5955_v14 }
 0x460   :  { %v2817_v8 = vmax.f32 %v2346_v26, 0.0 }
 0x461   :  { %v6231_v30 = vpack.c.bf16 %v2816_v58, %v2814_v4 }
 0x462   :  { %v2514_v19 = vpop.f32.mrf.mxu2  ;;  %v2683_v23 = vpop.f32.mrf.mxu3 }
 0x463   :  { %v2515_v28 = vadd.f32 %v2514_v19, %v5914_v44  ;;  %v2178_v20 = vpop.f32.mrf.mxu0  ;;  %v2347_v24 = vpop.f32.mrf.mxu1 }
 0x464   :  { %v2179_v38 = vadd.f32 %v2178_v20, %v5904_v37 }
 0x465   :  { %v2684_v31 = vadd.f32 %v2683_v23, %v2515_v28 }
 0x466   :  { %v2348_v61 = vadd.f32 %v2347_v24, %v2179_v38 }
 0x467   :  { %v2818_v4 = vmax.f32 %v2684_v31, 0.0 }
 0x468   :  { %v2819_v27 = vmax.f32 %v2348_v61, 0.0 }
 0x46a   :  { %v2516_v63 = vpop.f32.mrf.mxu2  ;;  %v6235_v6 = vpack.c.bf16 %v2819_v27, %v2817_v8  ;;  %v2685_v14 = vpop.f32.mrf.mxu3 }
 0x46b   :  { %v2517_v45 = vadd.f32 %v2516_v63, %v5914_v44  ;;  %v2181_v53 = vpop.f32.mrf.mxu0  ;;  %v2350_v54 = vpop.f32.mrf.mxu1 }
 0x46c   :  { %v2182_v47 = vadd.f32 %v2181_v53, %v5904_v37 }
 0x46d   :  { %v2686_v5 = vadd.f32 %v2685_v14, %v2517_v45  ;;  %3126 = vmatmul.bf16.gmra.mxu0 %v5959_v55 }
 0x46e   :  { %v2351_v36 = vadd.f32 %v2350_v54, %v2182_v47  ;;  %3295 = vmatmul.bf16.gmra.mxu1 %v5967_v43 }
 0x46f   :  { %v2820_v58 = vmax.f32 %v2686_v5, 0.0  ;;  %3464 = vmatmul.bf16.gmra.mxu2 %v5959_v55  ;;  %3633 = vmatmul.bf16.gmra.mxu3 %v5967_v43 }
 0x470   :  { %v2821_v31 = vmax.f32 %v2351_v36, 0.0 }
 0x471   :  { %v6243_v26 = vpack.c.bf16 %v2820_v58, %v2818_v4 }
 0x472   :  { %v2519_v19 = vpop.f32.mrf.mxu2  ;;  %v2688_v23 = vpop.f32.mrf.mxu3 }
 0x473   :  { %v2520_v28 = vadd.f32 %v2519_v19, %v5914_v44  ;;  %v2183_v20 = vpop.f32.mrf.mxu0  ;;  %v2352_v24 = vpop.f32.mrf.mxu1 }
 0x474   :  { %v2184_v38 = vadd.f32 %v2183_v20, %v5904_v37 }
 0x475   :  { %v2689_v61 = vadd.f32 %v2688_v23, %v2520_v28 }
 0x476   :  { %v2353_v8 = vadd.f32 %v2352_v24, %v2184_v38 }
 0x477   :  { %v2822_v4 = vmax.f32 %v2689_v61, 0.0 }
 0x478   :  { %v2823_v27 = vmax.f32 %v2353_v8, 0.0 }
 0x47a   :  { %v2521_v63 = vpop.f32.mrf.mxu2  ;;  %v6247_v45 = vpack.c.bf16 %v2823_v27, %v2821_v31  ;;  %v2690_v43 = vpop.f32.mrf.mxu3 }
 0x47b   :  { %v2522_v55 = vadd.f32 %v2521_v63, %v5914_v44  ;;  %v2186_v14 = vpop.f32.mrf.mxu0  ;;  %v2355_v47 = vpop.f32.mrf.mxu1 }
 0x47c   :  { %v2187_v53 = vadd.f32 %v2186_v14, %v5904_v37 }
 0x47d   :  { %v2691_v54 = vadd.f32 %v2690_v43, %v2522_v55  ;;  %3131 = vmatmul.bf16.gmra.mxu0 %v5971_v51 }
 0x47e   :  { %v2356_v5 = vadd.f32 %v2355_v47, %v2187_v53  ;;  %3300 = vmatmul.bf16.gmra.mxu1 %v5979_v13 }
 0x47f   :  { %v2824_v58 = vmax.f32 %v2691_v54, 0.0  ;;  %3469 = vmatmul.bf16.gmra.mxu2 %v5971_v51  ;;  %3638 = vmatmul.bf16.gmra.mxu3 %v5979_v13 }
 0x480   :  { %v2825_v61 = vmax.f32 %v2356_v5, 0.0 }
 0x481   :  { %v6255_v36 = vpack.c.bf16 %v2824_v58, %v2822_v4 }
 0x482   :  { %v2524_v19 = vpop.f32.mrf.mxu2  ;;  %v2693_v23 = vpop.f32.mrf.mxu3 }
 0x483   :  { %v2525_v28 = vadd.f32 %v2524_v19, %v5914_v44  ;;  %v2188_v20 = vpop.f32.mrf.mxu0  ;;  %v2357_v24 = vpop.f32.mrf.mxu1 }
 0x484   :  { %v2189_v38 = vadd.f32 %v2188_v20, %v5904_v37 }
 0x485   :  { %v2694_v8 = vadd.f32 %v2693_v23, %v2525_v28 }
 0x486   :  { %v2358_v31 = vadd.f32 %v2357_v24, %v2189_v38 }
 0x487   :  { %v2826_v4 = vmax.f32 %v2694_v8, 0.0 }
 0x488   :  { %v2827_v27 = vmax.f32 %v2358_v31, 0.0 }
 0x48a   :  { %v2526_v63 = vpop.f32.mrf.mxu2  ;;  %v6259_v55 = vpack.c.bf16 %v2827_v27, %v2825_v61  ;;  %v2695_v13 = vpop.f32.mrf.mxu3 }
 0x48b   :  { %v2527_v51 = vadd.f32 %v2526_v63, %v5914_v44  ;;  %v2191_v43 = vpop.f32.mrf.mxu0  ;;  %v2360_v53 = vpop.f32.mrf.mxu1 }
 0x48c   :  { %v2192_v14 = vadd.f32 %v2191_v43, %v5904_v37 }
 0x48d   :  { %v2696_v47 = vadd.f32 %v2695_v13, %v2527_v51  ;;  %3136 = vmatmul.bf16.gmra.mxu0 %v5983_v50 }
 0x48e   :  { %v2361_v54 = vadd.f32 %v2360_v53, %v2192_v14  ;;  %3305 = vmatmul.bf16.gmra.mxu1 %v5991_v3 }
 0x48f   :  { %v2828_v58 = vmax.f32 %v2696_v47, 0.0  ;;  %3474 = vmatmul.bf16.gmra.mxu2 %v5983_v50  ;;  %3643 = vmatmul.bf16.gmra.mxu3 %v5991_v3 }
 0x490   :  { %v2829_v8 = vmax.f32 %v2361_v54, 0.0 }
 0x491   :  { %v6267_v5 = vpack.c.bf16 %v2828_v58, %v2826_v4 }
 0x492   :  { %v2529_v19 = vpop.f32.mrf.mxu2  ;;  %v2698_v23 = vpop.f32.mrf.mxu3 }
 0x493   :  { %v2530_v28 = vadd.f32 %v2529_v19, %v5914_v44  ;;  %v2193_v20 = vpop.f32.mrf.mxu0  ;;  %v2362_v24 = vpop.f32.mrf.mxu1 }
 0x494   :  { %v2194_v38 = vadd.f32 %v2193_v20, %v5904_v37 }
 0x495   :  { %v2699_v31 = vadd.f32 %v2698_v23, %v2530_v28 }
 0x496   :  { %v2363_v61 = vadd.f32 %v2362_v24, %v2194_v38 }
 0x497   :  { %v2830_v4 = vmax.f32 %v2699_v31, 0.0 }
 0x498   :  { %v2831_v27 = vmax.f32 %v2363_v61, 0.0 }
 0x49a   :  { %v2531_v63 = vpop.f32.mrf.mxu2  ;;  %v6271_v51 = vpack.c.bf16 %v2831_v27, %v2829_v8  ;;  %v2700_v3 = vpop.f32.mrf.mxu3 }
 0x49b   :  { %v2532_v50 = vadd.f32 %v2531_v63, %v5914_v44  ;;  %v2196_v13 = vpop.f32.mrf.mxu0  ;;  %v2365_v14 = vpop.f32.mrf.mxu1 }
 0x49c   :  { %v2197_v43 = vadd.f32 %v2196_v13, %v5904_v37 }
 0x49d   :  { %v2701_v53 = vadd.f32 %v2700_v3, %v2532_v50  ;;  %3141 = vmatmul.bf16.gmra.mxu0 %v5995_v9 }
 0x49e   :  { %v2366_v47 = vadd.f32 %v2365_v14, %v2197_v43  ;;  %3310 = vmatmul.bf16.gmra.mxu1 %v6003_v35 }
 0x49f   :  { %v2832_v58 = vmax.f32 %v2701_v53, 0.0  ;;  %3479 = vmatmul.bf16.gmra.mxu2 %v5995_v9  ;;  %3648 = vmatmul.bf16.gmra.mxu3 %v6003_v35 }
 0x4a0   :  { %v2833_v31 = vmax.f32 %v2366_v47, 0.0 }
 0x4a1   :  { %v6279_v54 = vpack.c.bf16 %v2832_v58, %v2830_v4 }
 0x4a2   :  { %v2534_v19 = vpop.f32.mrf.mxu2  ;;  %v2703_v23 = vpop.f32.mrf.mxu3 }
 0x4a3   :  { %v2535_v28 = vadd.f32 %v2534_v19, %v5914_v44  ;;  %v2198_v20 = vpop.f32.mrf.mxu0  ;;  %v2367_v24 = vpop.f32.mrf.mxu1 }
 0x4a4   :  { %v2199_v38 = vadd.f32 %v2198_v20, %v5904_v37 }
 0x4a5   :  { %v2704_v61 = vadd.f32 %v2703_v23, %v2535_v28 }
 0x4a6   :  { %v2368_v8 = vadd.f32 %v2367_v24, %v2199_v38 }
 0x4a7   :  { %v2834_v4 = vmax.f32 %v2704_v61, 0.0 }
 0x4a8   :  { %v2835_v27 = vmax.f32 %v2368_v8, 0.0 }
 0x4aa   :  { %v2536_v63 = vpop.f32.mrf.mxu2  ;;  %v6283_v50 = vpack.c.bf16 %v2835_v27, %v2833_v31  ;;  %v2705_v35 = vpop.f32.mrf.mxu3 }
 0x4ab   :  { %v2537_v9 = vadd.f32 %v2536_v63, %v5914_v44  ;;  %v2201_v3 = vpop.f32.mrf.mxu0  ;;  %v2370_v43 = vpop.f32.mrf.mxu1 }
 0x4ac   :  { %v2202_v13 = vadd.f32 %v2201_v3, %v5904_v37 }
 0x4ad   :  { %v2706_v14 = vadd.f32 %v2705_v35, %v2537_v9  ;;  %3146 = vmatmul.bf16.gmra.mxu0 %v6007_v32 }
 0x4ae   :  { %v2371_v53 = vadd.f32 %v2370_v43, %v2202_v13  ;;  %3315 = vmatmul.bf16.gmra.mxu1 %v6015_v10 }
 0x4af   :  { %v2836_v58 = vmax.f32 %v2706_v14, 0.0  ;;  %3484 = vmatmul.bf16.gmra.mxu2 %v6007_v32  ;;  %3653 = vmatmul.bf16.gmra.mxu3 %v6015_v10  ;;  %v2937_v32 = vld [vmem:[%s6999_s8] sm:$0x3] }
 0x4b0   :  { %v2837_v61 = vmax.f32 %v2371_v53, 0.0  ;;  %v6301_v3 = vperm.slane %v2937_v32, 0 }
 0x4b1   :  { %v6291_v47 = vpack.c.bf16 %v2836_v58, %v2834_v4  ;;  %v6307_v58 = vperm.slane %v2937_v32, 1 }
 0x4b2   :  { %v2539_v19 = vpop.f32.mrf.mxu2  ;;  %v2708_v23 = vpop.f32.mrf.mxu3 }
 0x4b3   :  { %v2540_v28 = vadd.f32 %v2539_v19, %v5914_v44  ;;  %v2203_v20 = vpop.f32.mrf.mxu0  ;;  %v2372_v24 = vpop.f32.mrf.mxu1 }
 0x4b4   :  { %v2204_v38 = vadd.f32 %v2203_v20, %v5904_v37 }
 0x4b5   :  { %v2709_v8 = vadd.f32 %v2708_v23, %v2540_v28 }
 0x4b6   :  { %v2373_v31 = vadd.f32 %v2372_v24, %v2204_v38 }
 0x4b7   :  { %v2838_v14 = vmax.f32 %v2709_v8, 0.0 }
 0x4b8   :  { %v2839_v27 = vmax.f32 %v2373_v31, 0.0  ;;  %v4099_v31 = vld [vmem:[%s7000_s9] sm:$0x3] }
 0x4ba   :  { %v2541_v63 = vpop.f32.mrf.mxu2  ;;  %v6298_v10 = vpack.c.bf16 %v2839_v27, %v2837_v61  ;;  %v2710_v35 = vpop.f32.mrf.mxu3 }
 0x4bb   :  { %v2542_v9 = vadd.f32 %v2541_v63, %v5914_v44  ;;  %v3112_v13 = vpop.f32.mrf.mxu0  ;;  %v3281_v43 = vpop.f32.mrf.mxu1  ;;  %v6319_v63 = vperm.slane %v4099_v31, 1 }
 0x4bc   :  { %v3113_v4 = vadd.f32 %v3112_v13, %v6301_v3 }
 0x4bd   :  { %v2711_v37 = vadd.f32 %v2710_v35, %v2542_v9  ;;  %3151 = vmatmul.bf16.gmra.mxu0 %v6019_v17 }
 0x4be   :  { %3320 = vmatmul.bf16.gmra.mxu1 %v6027_v25  ;;  %v3282_v28 = vadd.f32 %v3281_v43, %v3113_v4 }
 0x4bf   :  { %v2840_v53 = vmax.f32 %v2711_v37, 0.0  ;;  %3489 = vmatmul.bf16.gmra.mxu2 %v6019_v17  ;;  %3658 = vmatmul.bf16.gmra.mxu3 %v6027_v25  ;;  %v6317_v25 = vperm.slane %v4099_v31, 0 }
 0x4c0   :  { %v3779_v61 = vmax.f32 %v3282_v28, 0.0 }
 0x4c1   :  { %v6310_v44 = vpack.c.bf16 %v2840_v53, %v2838_v14 }
 0x4c2   :  { %v3450_v19 = vpop.f32.mrf.mxu2  ;;  %v3619_v20 = vpop.f32.mrf.mxu3 }
 0x4c3   :  { %v3451_v23 = vadd.f32 %v3450_v19, %v6307_v58  ;;  %v3114_v38 = vpop.f32.mrf.mxu0  ;;  %v3283_v24 = vpop.f32.mrf.mxu1 }
 0x4c4   :  { %v3115_v27 = vadd.f32 %v3114_v38, %v6301_v3 }
 0x4c5   :  { %v3620_v8 = vadd.f32 %v3619_v20, %v3451_v23 }
 0x4c6   :  { %v3284_v35 = vadd.f32 %v3283_v24, %v3115_v27 }
 0x4c7   :  { %v3780_v17 = vmax.f32 %v3620_v8, 0.0 }
 0x4c8   :  { %v3781_v20 = vmax.f32 %v3284_v35, 0.0 }
 0x4c9   :  { %v3907_v32 = vpack.c.bf16 %v3780_v17, %v3779_v61 }
 0x4ca   :  { %v3452_v9 = vpop.f32.mrf.mxu2  ;;  %v3621_v43 = vpop.f32.mrf.mxu3 }
 0x4cb   :  { %v3453_v13 = vadd.f32 %v3452_v9, %v6307_v58  ;;  %v3117_v37 = vpop.f32.mrf.mxu0  ;;  %v3971_v14 = vunpack.c.l.bf16 %v3907_v32  ;;  %v3972_v53 = vunpack.c.h.bf16 %v3907_v32  ;;  %v3286_v4 = vpop.f32.mrf.mxu1 }
 0x4cc   :  { %v3118_v8 = vadd.f32 %v3117_v37, %v6301_v3 }
 0x4cd   :  { %v3622_v19 = vadd.f32 %v3621_v43, %v3453_v13  ;;  %v4105_v28 = vmul.f32 %v6317_v25, %v3971_v14  ;;  %v4106_v23 = vmul.f32 %v6319_v63, %v3972_v53  ;;  %3156 = vmatmul.bf16.gmra.mxu0 %v6031_v49 }
 0x4ce   :  { %3325 = vmatmul.bf16.gmra.mxu1 %v6039_v62  ;;  %v3287_v17 = vadd.f32 %v3286_v4, %v3118_v8 }
 0x4cf   :  { %v3782_v38 = vmax.f32 %v3622_v19, 0.0  ;;  %3494 = vmatmul.bf16.gmra.mxu2 %v6031_v49  ;;  %v4233_v24 = vadd.f32 %v4106_v23, %v4105_v28  ;;  %3663 = vmatmul.bf16.gmra.mxu3 %v6039_v62 }
 0x4d0   :  { %v3783_v49 = vmax.f32 %v3287_v17, 0.0 }
 0x4d1   :  { %v3908_v31 = vpack.c.bf16 %v3782_v38, %v3781_v20  ;;  %4234 = vadd.xlane.f32.xlu0 %v4233_v24 }
 0x4d2   :  { %v3455_v61 = vpop.f32.mrf.mxu2  ;;  %v3624_v32 = vpop.f32.mrf.mxu3 }
 0x4d3   :  { %v3456_v27 = vadd.f32 %v3455_v61, %v6307_v58  ;;  %v3119_v9 = vpop.f32.mrf.mxu0  ;;  %v3973_v13 = vunpack.c.l.bf16 %v3908_v31  ;;  %v3974_v35 = vunpack.c.h.bf16 %v3908_v31  ;;  %v3288_v43 = vpop.f32.mrf.mxu1 }
 0x4d4   :  { %v3120_v62 = vadd.f32 %v3119_v9, %v6301_v3 }
 0x4d5   :  { %v3625_v14 = vadd.f32 %v3624_v32, %v3456_v27  ;;  %v4107_v37 = vmul.f32 %v6317_v25, %v3973_v13  ;;  %v4108_v53 = vmul.f32 %v6319_v63, %v3974_v35 }
 0x4d6   :  { %v3289_v20 = vadd.f32 %v3288_v43, %v3120_v62 }
 0x4d7   :  { %v3784_v19 = vmax.f32 %v3625_v14, 0.0  ;;  %v4236_v28 = vadd.f32 %v4108_v53, %v4107_v37  ;;  %v7036_v37 = vld [vmem:[#allocation17_spill] sm:$0xff] }
 0x4d8   :  { %v3785_v9 = vmax.f32 %v3289_v20, 0.0 }
 0x4d9   :  { %v3909_v23 = vpack.c.bf16 %v3784_v19, %v3783_v49  ;;  %4237 = vadd.xlane.f32.xlu0 %v4236_v28 }
 0x4da   :  { %v3457_v4 = vpop.f32.mrf.mxu2  ;;  %v3626_v8 = vpop.f32.mrf.mxu3 }
 0x4db   :  { %v3458_v38 = vadd.f32 %v3457_v4, %v6307_v58  ;;  %v3122_v24 = vpop.f32.mrf.mxu0  ;;  %v3975_v31 = vunpack.c.l.bf16 %v3909_v23  ;;  %v3976_v61 = vunpack.c.h.bf16 %v3909_v23  ;;  %v3291_v27 = vpop.f32.mrf.mxu1 }
 0x4dc   :  { %v3123_v14 = vadd.f32 %v3122_v24, %v6301_v3 }
 0x4dd   :  { %v3627_v32 = vadd.f32 %v3626_v8, %v3458_v38  ;;  %v4109_v13 = vmul.f32 %v6317_v25, %v3975_v31  ;;  %v4110_v17 = vmul.f32 %v6319_v63, %v3976_v61  ;;  %3161 = vmatmul.bf16.gmra.mxu0 %v6043_v1 }
 0x4de   :  { %3330 = vmatmul.bf16.gmra.mxu1 %v7036_v37  ;;  %v3292_v19 = vadd.f32 %v3291_v27, %v3123_v14 }
 0x4df   :  { %v3786_v35 = vmax.f32 %v3627_v32, 0.0  ;;  %3499 = vmatmul.bf16.gmra.mxu2 %v6043_v1  ;;  %v4239_v43 = vadd.f32 %v4110_v17, %v4109_v13  ;;  %3668 = vmatmul.bf16.gmra.mxu3 %v7036_v37 }
 0x4e0   :  { %v3787_v1 = vmax.f32 %v3292_v19, 0.0 }
 0x4e1   :  { %v3910_v53 = vpack.c.bf16 %v3786_v35, %v3785_v9  ;;  %4240 = vadd.xlane.f32.xlu1 %v4239_v43 }
 0x4e2   :  { %v3460_v49 = vpop.f32.mrf.mxu2  ;;  %v3629_v28 = vpop.f32.mrf.mxu3 }
 0x4e3   :  { %v3461_v62 = vadd.f32 %v3460_v49, %v6307_v58  ;;  %v3124_v23 = vpop.f32.mrf.mxu0  ;;  %v3977_v4 = vunpack.c.l.bf16 %v3910_v53  ;;  %v3978_v20 = vunpack.c.h.bf16 %v3910_v53  ;;  %v3293_v38 = vpop.f32.mrf.mxu1 }
 0x4e4   :  { %v3125_v32 = vadd.f32 %v3124_v23, %v6301_v3 }
 0x4e5   :  { %v3630_v8 = vadd.f32 %v3629_v28, %v3461_v62  ;;  %v4111_v24 = vmul.f32 %v6317_v25, %v3977_v4  ;;  %v4112_v31 = vmul.f32 %v6319_v63, %v3978_v20 }
 0x4e6   :  { %v3294_v9 = vadd.f32 %v3293_v38, %v3125_v32 }
 0x4e7   :  { %v3788_v61 = vmax.f32 %v3630_v8, 0.0  ;;  %v4242_v13 = vadd.f32 %v4112_v31, %v4111_v24  ;;  %v7037_v8 = vld [vmem:[#allocation18_spill] sm:$0xff] }
 0x4e8   :  { %v3789_v23 = vmax.f32 %v3294_v9, 0.0 }
 0x4e9   :  { %v3911_v17 = vpack.c.bf16 %v3788_v61, %v3787_v1  ;;  %4243 = vadd.xlane.f32.xlu1 %v4242_v13 }
 0x4ea   :  { %v3462_v27 = vpop.f32.mrf.mxu2  ;;  %v3631_v14 = vpop.f32.mrf.mxu3 }
 0x4eb   :  { %v3463_v35 = vadd.f32 %v3462_v27, %v6307_v58  ;;  %v3127_v37 = vpop.f32.mrf.mxu0  ;;  %v3979_v43 = vunpack.c.l.bf16 %v3911_v17  ;;  %v3980_v53 = vunpack.c.h.bf16 %v3911_v17  ;;  %v3296_v49 = vpop.f32.mrf.mxu1 }
 0x4ec   :  { %v3128_v20 = vadd.f32 %v3127_v37, %v6301_v3 }
 0x4ed   :  { %v3632_v62 = vadd.f32 %v3631_v14, %v3463_v35  ;;  %v4113_v28 = vmul.f32 %v6317_v25, %v3979_v43  ;;  %v4114_v19 = vmul.f32 %v6319_v63, %v3980_v53  ;;  %3166 = vmatmul.bf16.gmra.mxu0 %v6055_v2 }
 0x4ee   :  { %3335 = vmatmul.bf16.gmra.mxu1 %v7037_v8  ;;  %v3297_v1 = vadd.f32 %v3296_v49, %v3128_v20 }
 0x4ef   :  { %v3790_v4 = vmax.f32 %v3632_v62, 0.0  ;;  %3504 = vmatmul.bf16.gmra.mxu2 %v6055_v2  ;;  %v4245_v38 = vadd.f32 %v4114_v19, %v4113_v28  ;;  %3673 = vmatmul.bf16.gmra.mxu3 %v7037_v8 }
 0x4f0   :  { %v3791_v2 = vmax.f32 %v3297_v1, 0.0 }
 0x4f1   :  { %v3912_v24 = vpack.c.bf16 %v3790_v4, %v3789_v23  ;;  %4246 = vadd.xlane.f32.xlu2 %v4245_v38 }
 0x4f2   :  { %v3465_v31 = vpop.f32.mrf.mxu2  ;;  %v3634_v32 = vpop.f32.mrf.mxu3 }
 0x4f3   :  { %v3466_v61 = vadd.f32 %v3465_v31, %v6307_v58  ;;  %v3129_v13 = vpop.f32.mrf.mxu0  ;;  %v3981_v17 = vunpack.c.l.bf16 %v3912_v24  ;;  %v3982_v27 = vunpack.c.h.bf16 %v3912_v24  ;;  %v3298_v9 = vpop.f32.mrf.mxu1 }
 0x4f4   :  { %v3130_v53 = vadd.f32 %v3129_v13, %v6301_v3 }
 0x4f5   :  { %v3635_v35 = vadd.f32 %v3634_v32, %v3466_v61  ;;  %v4115_v14 = vmul.f32 %v6317_v25, %v3981_v17  ;;  %v4116_v37 = vmul.f32 %v6319_v63, %v3982_v27 }
 0x4f6   :  { %v3299_v4 = vadd.f32 %v3298_v9, %v3130_v53 }
 0x4f7   :  { %v3792_v43 = vmax.f32 %v3635_v35, 0.0  ;;  %v4248_v62 = vadd.f32 %v4116_v37, %v4115_v14 }
 0x4f8   :  { %v3793_v32 = vmax.f32 %v3299_v4, 0.0 }
 0x4f9   :  { %v3913_v28 = vpack.c.bf16 %v3792_v43, %v3791_v2  ;;  %4249 = vadd.xlane.f32.xlu2 %v4248_v62 }
 0x4fa   :  { %v3467_v49 = vpop.f32.mrf.mxu2  ;;  %v3636_v8 = vpop.f32.mrf.mxu3 }
 0x4fb   :  { %v3983_v19 = vunpack.c.l.bf16 %v3913_v28  ;;  %v3984_v23 = vunpack.c.h.bf16 %v3913_v28  ;;  %v3468_v20 = vadd.f32 %v3467_v49, %v6307_v58  ;;  %v3132_v38 = vpop.f32.mrf.mxu0  ;;  %v3301_v24 = vpop.f32.mrf.mxu1 }
 0x4fc   :  { %v3133_v17 = vadd.f32 %v3132_v38, %v6301_v3 }
 0x4fd   :  { %v3637_v31 = vadd.f32 %v3636_v8, %v3468_v20  ;;  %v4117_v61 = vmul.f32 %v6317_v25, %v3983_v19  ;;  %v4118_v1 = vmul.f32 %v6319_v63, %v3984_v23  ;;  %3171 = vmatmul.bf16.gmra.mxu0 %v6067_v15 }
 0x4fe   :  { %3340 = vmatmul.bf16.gmra.mxu1 %v6075_v29  ;;  %v3302_v14 = vadd.f32 %v3301_v24, %v3133_v17 }
 0x4ff   :  { %v3794_v13 = vmax.f32 %v3637_v31, 0.0  ;;  %3509 = vmatmul.bf16.gmra.mxu2 %v6067_v15  ;;  %v4251_v27 = vadd.f32 %v4118_v1, %v4117_v61  ;;  %3678 = vmatmul.bf16.gmra.mxu3 %v6075_v29 }
 0x500   :  { %v3795_v15 = vmax.f32 %v3302_v14, 0.0  ;;  %v7038_v14 = vld [vmem:[#allocation19_spill] sm:$0xff] }
 0x501   :  { %v3914_v9 = vpack.c.bf16 %v3794_v13, %v3793_v32  ;;  %4252 = vadd.xlane.f32.xlu0 %v4251_v27 }
 0x502   :  { %v3470_v35 = vpop.f32.mrf.mxu2  ;;  %v3639_v2 = vpop.f32.mrf.mxu3 }
 0x503   :  { %v3471_v37 = vadd.f32 %v3470_v35, %v6307_v58  ;;  %v3134_v43 = vpop.f32.mrf.mxu0  ;;  %v3985_v53 = vunpack.c.l.bf16 %v3914_v9  ;;  %v3986_v62 = vunpack.c.h.bf16 %v3914_v9  ;;  %v3303_v28 = vpop.f32.mrf.mxu1 }
 0x504   :  { %v3135_v29 = vadd.f32 %v3134_v43, %v6301_v3 }
 0x505   :  { %v3640_v49 = vadd.f32 %v3639_v2, %v3471_v37  ;;  %v4119_v19 = vmul.f32 %v6317_v25, %v3985_v53  ;;  %v4120_v23 = vmul.f32 %v6319_v63, %v3986_v62  ;;  %v7039_v53 = vld [vmem:[#allocation20_spill] sm:$0xff] }
 0x506   :  { %v3304_v61 = vadd.f32 %v3303_v28, %v3135_v29 }
 0x507   :  { %v3796_v4 = vmax.f32 %v3640_v49, 0.0  ;;  %v4254_v20 = vadd.f32 %v4120_v23, %v4119_v19 }
 0x508   :  { %v3797_v37 = vmax.f32 %v3304_v61, 0.0 }
 0x509   :  { %v3915_v8 = vpack.c.bf16 %v3796_v4, %v3795_v15  ;;  %4255 = vadd.xlane.f32.xlu1 %v4254_v20 }
 0x50a   :  { %v3472_v38 = vpop.f32.mrf.mxu2  ;;  %v3641_v32 = vpop.f32.mrf.mxu3 }
 0x50b   :  { %v3987_v24 = vunpack.c.l.bf16 %v3915_v8  ;;  %v3988_v31 = vunpack.c.h.bf16 %v3915_v8  ;;  %v3473_v1 = vadd.f32 %v3472_v38, %v6307_v58  ;;  %v3137_v13 = vpop.f32.mrf.mxu0  ;;  %v3306_v17 = vpop.f32.mrf.mxu1 }
 0x50c   :  { %v3138_v43 = vadd.f32 %v3137_v13, %v6301_v3 }
 0x50d   :  { %v3642_v27 = vadd.f32 %v3641_v32, %v3473_v1  ;;  %v4121_v9 = vmul.f32 %v6317_v25, %v3987_v24  ;;  %v4122_v35 = vmul.f32 %v6319_v63, %v3988_v31  ;;  %3176 = vmatmul.bf16.gmra.mxu0 %v7038_v14 }
 0x50e   :  { %3345 = vmatmul.bf16.gmra.mxu1 %v7039_v53  ;;  %v3307_v19 = vadd.f32 %v3306_v17, %v3138_v43 }
 0x50f   :  { %v3798_v2 = vmax.f32 %v3642_v27, 0.0  ;;  %3514 = vmatmul.bf16.gmra.mxu2 %v7038_v14  ;;  %v4257_v62 = vadd.f32 %v4122_v35, %v4121_v9  ;;  %3683 = vmatmul.bf16.gmra.mxu3 %v7039_v53 }
 0x510   :  { %v3799_v61 = vmax.f32 %v3307_v19, 0.0 }
 0x511   :  { %v3916_v28 = vpack.c.bf16 %v3798_v2, %v3797_v37  ;;  %4258 = vadd.xlane.f32.xlu2 %v4257_v62 }
 0x512   :  { %v3475_v49 = vpop.f32.mrf.mxu2  ;;  %v3644_v15 = vpop.f32.mrf.mxu3 }
 0x513   :  { %v3476_v23 = vadd.f32 %v3475_v49, %v6307_v58  ;;  %v3139_v4 = vpop.f32.mrf.mxu0  ;;  %v3989_v29 = vunpack.c.l.bf16 %v3916_v28  ;;  %v3990_v20 = vunpack.c.h.bf16 %v3916_v28  ;;  %v3308_v8 = vpop.f32.mrf.mxu1 }
 0x514   :  { %v3140_v32 = vadd.f32 %v3139_v4, %v6301_v3 }
 0x515   :  { %v3645_v38 = vadd.f32 %v3644_v15, %v3476_v23  ;;  %v4123_v24 = vmul.f32 %v6317_v25, %v3989_v29  ;;  %v4124_v31 = vmul.f32 %v6319_v63, %v3990_v20 }
 0x516   :  { %v3309_v14 = vadd.f32 %v3308_v8, %v3140_v32 }
 0x517   :  { %v3800_v1 = vmax.f32 %v3645_v38, 0.0  ;;  %v4260_v13 = vadd.f32 %v4124_v31, %v4123_v24 }
 0x518   :  { %v3801_v19 = vmax.f32 %v3309_v14, 0.0 }
 0x519   :  { %v3917_v27 = vpack.c.bf16 %v3800_v1, %v3799_v61  ;;  %4261 = vadd.xlane.f32.xlu0 %v4260_v13 }
 0x51a   :  { %v3477_v17 = vpop.f32.mrf.mxu2  ;;  %v3646_v2 = vpop.f32.mrf.mxu3 }
 0x51b   :  { %v3991_v9 = vunpack.c.l.bf16 %v3917_v27  ;;  %v3992_v35 = vunpack.c.h.bf16 %v3917_v27  ;;  %v3478_v37 = vadd.f32 %v3477_v17, %v6307_v58  ;;  %v3142_v43 = vpop.f32.mrf.mxu0  ;;  %v3311_v53 = vpop.f32.mrf.mxu1 }
 0x51c   :  { %v3143_v15 = vadd.f32 %v3142_v43, %v6301_v3 }
 0x51d   :  { %v3647_v62 = vadd.f32 %v3646_v2, %v3478_v37  ;;  %v4125_v28 = vmul.f32 %v6317_v25, %v3991_v9  ;;  %v4126_v49 = vmul.f32 %v6319_v63, %v3992_v35  ;;  %3181 = vmatmul.bf16.gmra.mxu0 %v6091_v52 }
 0x51e   :  { %3350 = vmatmul.bf16.gmra.mxu1 %v6099_v11  ;;  %v3312_v8 = vadd.f32 %v3311_v53, %v3143_v15 }
 0x51f   :  { %v3802_v23 = vmax.f32 %v3647_v62, 0.0  ;;  %3519 = vmatmul.bf16.gmra.mxu2 %v6091_v52  ;;  %v4263_v4 = vadd.f32 %v4126_v49, %v4125_v28  ;;  %3688 = vmatmul.bf16.gmra.mxu3 %v6099_v11 }
 0x520   :  { %v3803_v52 = vmax.f32 %v3312_v8, 0.0 }
 0x521   :  { %v3918_v29 = vpack.c.bf16 %v3802_v23, %v3801_v19  ;;  %4264 = vadd.xlane.f32.xlu1 %v4263_v4 }
 0x522   :  { %v3480_v20 = vpop.f32.mrf.mxu2  ;;  %v3649_v24 = vpop.f32.mrf.mxu3 }
 0x523   :  { %v3481_v38 = vadd.f32 %v3480_v20, %v6307_v58  ;;  %v3144_v31 = vpop.f32.mrf.mxu0  ;;  %v3993_v61 = vunpack.c.l.bf16 %v3918_v29  ;;  %v3994_v1 = vunpack.c.h.bf16 %v3918_v29  ;;  %v3313_v32 = vpop.f32.mrf.mxu1 }
 0x524   :  { %v3145_v11 = vadd.f32 %v3144_v31, %v6301_v3 }
 0x525   :  { %v3650_v13 = vadd.f32 %v3649_v24, %v3481_v38  ;;  %v4127_v27 = vmul.f32 %v6317_v25, %v3993_v61  ;;  %v4128_v17 = vmul.f32 %v6319_v63, %v3994_v1 }
 0x526   :  { %v3314_v53 = vadd.f32 %v3313_v32, %v3145_v11 }
 0x527   :  { %v3804_v9 = vmax.f32 %v3650_v13, 0.0  ;;  %v4266_v35 = vadd.f32 %v4128_v17, %v4127_v27 }
 0x528   :  { %v3805_v29 = vmax.f32 %v3314_v53, 0.0 }
 0x529   :  { %v3919_v14 = vpack.c.bf16 %v3804_v9, %v3803_v52  ;;  %4267 = vadd.xlane.f32.xlu2 %v4266_v35 }
 0x52a   :  { %v3482_v37 = vpop.f32.mrf.mxu2  ;;  %v3651_v28 = vpop.f32.mrf.mxu3 }
 0x52b   :  { %v3995_v2 = vunpack.c.l.bf16 %v3919_v14  ;;  %v3996_v43 = vunpack.c.h.bf16 %v3919_v14  ;;  %v3483_v62 = vadd.f32 %v3482_v37, %v6307_v58  ;;  %v3147_v49 = vpop.f32.mrf.mxu0  ;;  %v3316_v19 = vpop.f32.mrf.mxu1 }
 0x52c   :  { %v3148_v8 = vadd.f32 %v3147_v49, %v6301_v3 }
 0x52d   :  { %v3652_v23 = vadd.f32 %v3651_v28, %v3483_v62  ;;  %v4129_v15 = vmul.f32 %v6317_v25, %v3995_v2  ;;  %v4130_v4 = vmul.f32 %v6319_v63, %v3996_v43  ;;  %3186 = vmatmul.bf16.gmra.mxu0 %v6103_v41 }
 0x52e   :  { %3355 = vmatmul.bf16.gmra.mxu1 %v6111_v56  ;;  %v3317_v61 = vadd.f32 %v3316_v19, %v3148_v8 }
 0x52f   :  { %v3806_v20 = vmax.f32 %v3652_v23, 0.0  ;;  %3524 = vmatmul.bf16.gmra.mxu2 %v6103_v41  ;;  %v4269_v38 = vadd.f32 %v4130_v4, %v4129_v15  ;;  %3693 = vmatmul.bf16.gmra.mxu3 %v6111_v56 }
 0x530   :  { %v3807_v41 = vmax.f32 %v3317_v61, 0.0 }
 0x531   :  { %v3920_v24 = vpack.c.bf16 %v3806_v20, %v3805_v29  ;;  %4270 = vadd.xlane.f32.xlu0 %v4269_v38 }
 0x532   :  { %v3485_v31 = vpop.f32.mrf.mxu2  ;;  %v3654_v32 = vpop.f32.mrf.mxu3 }
 0x533   :  { %v3486_v1 = vadd.f32 %v3485_v31, %v6307_v58  ;;  %v3149_v13 = vpop.f32.mrf.mxu0  ;;  %v3997_v27 = vunpack.c.l.bf16 %v3920_v24  ;;  %v3998_v17 = vunpack.c.h.bf16 %v3920_v24  ;;  %v3318_v52 = vpop.f32.mrf.mxu1 }
 0x534   :  { %v3150_v56 = vadd.f32 %v3149_v13, %v6301_v3 }
 0x535   :  { %v3655_v9 = vadd.f32 %v3654_v32, %v3486_v1  ;;  %v4131_v11 = vmul.f32 %v6317_v25, %v3997_v27  ;;  %v4132_v35 = vmul.f32 %v6319_v63, %v3998_v17  ;;  %v6416_v32 = vstv %s7001_s10 }
 0x536   :  { %v3319_v28 = vadd.f32 %v3318_v52, %v3150_v56 }
 0x537   :  { %v3808_v14 = vmax.f32 %v3655_v9, 0.0  ;;  %v4272_v37 = vadd.f32 %v4132_v35, %v4131_v11 }
 0x538   :  { %v3809_v8 = vmax.f32 %v3319_v28, 0.0 }
 0x539   :  { %v3921_v2 = vpack.c.bf16 %v3808_v14, %v3807_v41  ;;  %4273 = vadd.xlane.f32.xlu1 %v4272_v37 }
 0x53a   :  { %v3487_v43 = vpop.f32.mrf.mxu2  ;;  %v3656_v19 = vpop.f32.mrf.mxu3 }
 0x53b   :  { %v3999_v53 = vunpack.c.l.bf16 %v3921_v2  ;;  %v4000_v62 = vunpack.c.h.bf16 %v3921_v2  ;;  %v3488_v49 = vadd.f32 %v3487_v43, %v6307_v58  ;;  %v3152_v23 = vpop.f32.mrf.mxu0  ;;  %v3321_v15 = vpop.f32.mrf.mxu1 }
 0x53c   :  { %v3153_v24 = vadd.f32 %v3152_v23, %v6301_v3 }
 0x53d   :  { %v3657_v4 = vadd.f32 %v3656_v19, %v3488_v49  ;;  %v4133_v29 = vmul.f32 %v6317_v25, %v3999_v53  ;;  %v4134_v20 = vmul.f32 %v6319_v63, %v4000_v62  ;;  %3191 = vmatmul.bf16.gmra.mxu0 %v6115_v46 }
 0x53e   :  { %3360 = vmatmul.bf16.gmra.mxu1 %v6123_v60  ;;  %v3322_v13 = vadd.f32 %v3321_v15, %v3153_v24 }
 0x53f   :  { %v3810_v38 = vmax.f32 %v3657_v4, 0.0  ;;  %3529 = vmatmul.bf16.gmra.mxu2 %v6115_v46  ;;  %v4275_v31 = vadd.f32 %v4134_v20, %v4133_v29  ;;  %3698 = vmatmul.bf16.gmra.mxu3 %v6123_v60 }
 0x540   :  { %v3811_v37 = vmax.f32 %v3322_v13, 0.0 }
 0x541   :  { %v3922_v61 = vpack.c.bf16 %v3810_v38, %v3809_v8  ;;  %4276 = vadd.xlane.f32.xlu2 %v4275_v31 }
 0x542   :  { %v3490_v1 = vpop.f32.mrf.mxu2  ;;  %v3659_v17 = vpop.f32.mrf.mxu3 }
 0x543   :  { %v3491_v27 = vadd.f32 %v3490_v1, %v6307_v58  ;;  %v3154_v52 = vpop.f32.mrf.mxu0  ;;  %v4001_v9 = vunpack.c.l.bf16 %v3922_v61  ;;  %v4002_v11 = vunpack.c.h.bf16 %v3922_v61  ;;  %v3323_v35 = vpop.f32.mrf.mxu1  ;;  %v7040_v1 = vld [vmem:[#allocation21_spill] sm:$0xff] }
 0x544   :  { %v4235_v46 = vpop.xlane.xlu0 %4234  ;;  %v3155_v43 = vadd.f32 %v3154_v52, %v6301_v3  ;;  %v7041_v52 = vld [vmem:[#allocation22_spill] sm:$0xff] }
 0x545   :  { %v3660_v41 = vadd.f32 %v3659_v17, %v3491_v27  ;;  %v4427_v60 = vadd.f32 %v6416_v32, %v4235_v46  ;;  %v4135_v14 = vmul.f32 %v6317_v25, %v4001_v9  ;;  %v4136_v56 = vmul.f32 %v6319_v63, %v4002_v11 }
 0x546   :  { %v3324_v23 = vadd.f32 %v3323_v35, %v3155_v43 }
 0x547   :  { %v3812_v2 = vmax.f32 %v3660_v41, 0.0  ;;  %4492 = vst.msk [vmem:[%s7002_s11] sm:$0xff] %vm4491_vm0, %v4427_v60  ;;  %v4278_v53 = vadd.f32 %v4136_v56, %v4135_v14 }
 0x548   :  { %v3813_v13 = vmax.f32 %v3324_v23, 0.0 }
 0x549   :  { %v3923_v62 = vpack.c.bf16 %v3812_v2, %v3811_v37  ;;  %4279 = vadd.xlane.f32.xlu0 %v4278_v53 }
 0x54a   :  { %v3492_v28 = vpop.f32.mrf.mxu2  ;;  %v3661_v4 = vpop.f32.mrf.mxu3 }
 0x54b   :  { %v4003_v49 = vunpack.c.l.bf16 %v3923_v62  ;;  %v4004_v19 = vunpack.c.h.bf16 %v3923_v62  ;;  %v3493_v15 = vadd.f32 %v3492_v28, %v6307_v58  ;;  %v3157_v29 = vpop.f32.mrf.mxu0  ;;  %v3326_v20 = vpop.f32.mrf.mxu1 }
 0x54c   :  { %v4238_v8 = vpop.xlane.xlu0 %4237  ;;  %v3158_v17 = vadd.f32 %v3157_v29, %v6301_v3 }
 0x54d   :  { %v3662_v38 = vadd.f32 %v3661_v4, %v3493_v15  ;;  %v4428_v24 = vadd.f32 %v6416_v32, %v4238_v8  ;;  %v4137_v31 = vmul.f32 %v6317_v25, %v4003_v49  ;;  %v4138_v61 = vmul.f32 %v6319_v63, %v4004_v19  ;;  %3196 = vmatmul.bf16.gmra.mxu0 %v7040_v1 }
 0x54e   :  { %3365 = vmatmul.bf16.gmra.mxu1 %v7041_v52  ;;  %v3327_v46 = vadd.f32 %v3326_v20, %v3158_v17 }
 0x54f   :  { %v3814_v27 = vmax.f32 %v3662_v38, 0.0  ;;  %4493 = vst.msk [vmem:[%s7002_s11 + $0x8] sm:$0xff] %vm4491_vm0, %v4428_v24  ;;  %3534 = vmatmul.bf16.gmra.mxu2 %v7040_v1  ;;  %v4281_v9 = vadd.f32 %v4138_v61, %v4137_v31  ;;  %3703 = vmatmul.bf16.gmra.mxu3 %v7041_v52 }
 0x550   :  { %v3815_v19 = vmax.f32 %v3327_v46, 0.0 }
 0x551   :  { %v3924_v11 = vpack.c.bf16 %v3814_v27, %v3813_v13  ;;  %4282 = vadd.xlane.f32.xlu1 %v4281_v9 }
 0x552   :  { %v3495_v35 = vpop.f32.mrf.mxu2  ;;  %v3664_v60 = vpop.f32.mrf.mxu3 }
 0x553   :  { %v3496_v41 = vadd.f32 %v3495_v35, %v6307_v58  ;;  %v3159_v14 = vpop.f32.mrf.mxu0  ;;  %v4005_v56 = vunpack.c.l.bf16 %v3924_v11  ;;  %v4006_v37 = vunpack.c.h.bf16 %v3924_v11  ;;  %v3328_v2 = vpop.f32.mrf.mxu1 }
 0x554   :  { %v4241_v43 = vpop.xlane.xlu1 %4240  ;;  %v3160_v15 = vadd.f32 %v3159_v14, %v6301_v3 }
 0x555   :  { %v3665_v53 = vadd.f32 %v3664_v60, %v3496_v41  ;;  %v4429_v62 = vadd.f32 %v6416_v32, %v4241_v43  ;;  %v4139_v28 = vmul.f32 %v6317_v25, %v4005_v56  ;;  %v4140_v49 = vmul.f32 %v6319_v63, %v4006_v37 }
 0x556   :  { %v3329_v24 = vadd.f32 %v3328_v2, %v3160_v15 }
 0x557   :  { %v3816_v23 = vmax.f32 %v3665_v53, 0.0  ;;  %4494 = vst.msk [vmem:[%s7002_s11 + $0x10] sm:$0xff] %vm4491_vm0, %v4429_v62  ;;  %v4284_v4 = vadd.f32 %v4140_v49, %v4139_v28 }
 0x558   :  { %v3817_v35 = vmax.f32 %v3329_v24, 0.0 }
 0x559   :  { %v3925_v29 = vpack.c.bf16 %v3816_v23, %v3815_v19  ;;  %4285 = vadd.xlane.f32.xlu2 %v4284_v4 }
 0x55a   :  { %v3497_v20 = vpop.f32.mrf.mxu2  ;;  %v3666_v61 = vpop.f32.mrf.mxu3 }
 0x55b   :  { %v4007_v8 = vunpack.c.l.bf16 %v3925_v29  ;;  %v4008_v38 = vunpack.c.h.bf16 %v3925_v29  ;;  %v3498_v31 = vadd.f32 %v3497_v20, %v6307_v58  ;;  %v3162_v1 = vpop.f32.mrf.mxu0  ;;  %v3331_v13 = vpop.f32.mrf.mxu1 }
 0x55c   :  { %v4244_v27 = vpop.xlane.xlu1 %4243  ;;  %v3163_v41 = vadd.f32 %v3162_v1, %v6301_v3 }
 0x55d   :  { %v3667_v17 = vadd.f32 %v3666_v61, %v3498_v31  ;;  %v4430_v52 = vadd.f32 %v6416_v32, %v4244_v27  ;;  %v4141_v9 = vmul.f32 %v6317_v25, %v4007_v8  ;;  %v4142_v11 = vmul.f32 %v6319_v63, %v4008_v38  ;;  %3201 = vmatmul.bf16.gmra.mxu0 %v6139_v40 }
 0x55e   :  { %3370 = vmatmul.bf16.gmra.mxu1 %v6147_v18  ;;  %v3332_v37 = vadd.f32 %v3331_v13, %v3163_v41 }
 0x55f   :  { %v3818_v46 = vmax.f32 %v3667_v17, 0.0  ;;  %4495 = vst.msk [vmem:[%s7002_s11 + $0x18] sm:$0xff] %vm4491_vm0, %v4430_v52  ;;  %3539 = vmatmul.bf16.gmra.mxu2 %v6139_v40  ;;  %v4287_v60 = vadd.f32 %v4142_v11, %v4141_v9  ;;  %3708 = vmatmul.bf16.gmra.mxu3 %v6147_v18 }
 0x560   :  { %v3819_v18 = vmax.f32 %v3332_v37, 0.0 }
 0x561   :  { %v3926_v14 = vpack.c.bf16 %v3818_v46, %v3817_v35  ;;  %4288 = vadd.xlane.f32.xlu0 %v4287_v60 }
 0x562   :  { %v3500_v56 = vpop.f32.mrf.mxu2  ;;  %v3669_v43 = vpop.f32.mrf.mxu3 }
 0x563   :  { %v3501_v2 = vadd.f32 %v3500_v56, %v6307_v58  ;;  %v3164_v53 = vpop.f32.mrf.mxu0  ;;  %v4009_v62 = vunpack.c.l.bf16 %v3926_v14  ;;  %v4010_v28 = vunpack.c.h.bf16 %v3926_v14  ;;  %v3333_v49 = vpop.f32.mrf.mxu1 }
 0x564   :  { %v4247_v19 = vpop.xlane.xlu2 %4246  ;;  %v3165_v20 = vadd.f32 %v3164_v53, %v6301_v3 }
 0x565   :  { %v3670_v23 = vadd.f32 %v3669_v43, %v3501_v2  ;;  %v4431_v15 = vadd.f32 %v6416_v32, %v4247_v19  ;;  %v4143_v40 = vmul.f32 %v6317_v25, %v4009_v62  ;;  %v4144_v4 = vmul.f32 %v6319_v63, %v4010_v28 }
 0x566   :  { %v3334_v1 = vadd.f32 %v3333_v49, %v3165_v20 }
 0x567   :  { %v3820_v29 = vmax.f32 %v3670_v23, 0.0  ;;  %4496 = vst.msk [vmem:[%s7002_s11 + $0x20] sm:$0xff] %vm4491_vm0, %v4431_v15  ;;  %v4290_v8 = vadd.f32 %v4144_v4, %v4143_v40 }
 0x568   :  { %v3821_v60 = vmax.f32 %v3334_v1, 0.0 }
 0x569   :  { %v3927_v38 = vpack.c.bf16 %v3820_v29, %v3819_v18  ;;  %4291 = vadd.xlane.f32.xlu1 %v4290_v8 }
 0x56a   :  { %v3502_v24 = vpop.f32.mrf.mxu2  ;;  %v3671_v27 = vpop.f32.mrf.mxu3 }
 0x56b   :  { %v4011_v31 = vunpack.c.l.bf16 %v3927_v38  ;;  %v4012_v61 = vunpack.c.h.bf16 %v3927_v38  ;;  %v3503_v13 = vadd.f32 %v3502_v24, %v6307_v58  ;;  %v3167_v17 = vpop.f32.mrf.mxu0  ;;  %v3336_v52 = vpop.f32.mrf.mxu1 }
 0x56c   :  { %v4250_v9 = vpop.xlane.xlu2 %4249  ;;  %v3168_v56 = vadd.f32 %v3167_v17, %v6301_v3 }
 0x56d   :  { %v3672_v11 = vadd.f32 %v3671_v27, %v3503_v13  ;;  %v4432_v35 = vadd.f32 %v6416_v32, %v4250_v9  ;;  %v4145_v46 = vmul.f32 %v6317_v25, %v4011_v31  ;;  %v4146_v41 = vmul.f32 %v6319_v63, %v4012_v61  ;;  %3206 = vmatmul.bf16.gmra.mxu0 %v6151_v59 }
 0x56e   :  { %3375 = vmatmul.bf16.gmra.mxu1 %v6159_v42  ;;  %v3337_v53 = vadd.f32 %v3336_v52, %v3168_v56 }
 0x56f   :  { %v3822_v14 = vmax.f32 %v3672_v11, 0.0  ;;  %4497 = vst.msk [vmem:[%s7002_s11 + $0x28] sm:$0xff] %vm4491_vm0, %v4432_v35  ;;  %3544 = vmatmul.bf16.gmra.mxu2 %v6151_v59  ;;  %v4293_v37 = vadd.f32 %v4146_v41, %v4145_v46  ;;  %3713 = vmatmul.bf16.gmra.mxu3 %v6159_v42 }
 0x570   :  { %v3823_v42 = vmax.f32 %v3337_v53, 0.0 }
 0x571   :  { %v3928_v2 = vpack.c.bf16 %v3822_v14, %v3821_v60  ;;  %4294 = vadd.xlane.f32.xlu2 %v4293_v37 }
 0x572   :  { %v3505_v43 = vpop.f32.mrf.mxu2  ;;  %v3674_v28 = vpop.f32.mrf.mxu3 }
 0x573   :  { %v3506_v62 = vadd.f32 %v3505_v43, %v6307_v58  ;;  %v3169_v49 = vpop.f32.mrf.mxu0  ;;  %v4013_v19 = vunpack.c.l.bf16 %v3928_v2  ;;  %v4014_v23 = vunpack.c.h.bf16 %v3928_v2  ;;  %v3338_v15 = vpop.f32.mrf.mxu1 }
 0x574   :  { %v4253_v40 = vpop.xlane.xlu0 %4252  ;;  %v3170_v8 = vadd.f32 %v3169_v49, %v6301_v3 }
 0x575   :  { %v3675_v4 = vadd.f32 %v3674_v28, %v3506_v62  ;;  %v4433_v18 = vadd.f32 %v6416_v32, %v4253_v40  ;;  %v4147_v59 = vmul.f32 %v6317_v25, %v4013_v19  ;;  %v4148_v29 = vmul.f32 %v6319_v63, %v4014_v23 }
 0x576   :  { %v3339_v13 = vadd.f32 %v3338_v15, %v3170_v8 }
 0x577   :  { %v3824_v20 = vmax.f32 %v3675_v4, 0.0  ;;  %4498 = vst.msk [vmem:[%s7002_s11 + $0x30] sm:$0xff] %vm4491_vm0, %v4433_v18  ;;  %v4296_v38 = vadd.f32 %v4148_v29, %v4147_v59 }
 0x578   :  { %v3825_v14 = vmax.f32 %v3339_v13, 0.0 }
 0x579   :  { %v3929_v24 = vpack.c.bf16 %v3824_v20, %v3823_v42  ;;  %4297 = vadd.xlane.f32.xlu0 %v4296_v38 }
 0x57a   :  { %v3507_v31 = vpop.f32.mrf.mxu2  ;;  %v3676_v17 = vpop.f32.mrf.mxu3 }
 0x57b   :  { %v4015_v61 = vunpack.c.l.bf16 %v3929_v24  ;;  %v4016_v1 = vunpack.c.h.bf16 %v3929_v24  ;;  %v3508_v27 = vadd.f32 %v3507_v31, %v6307_v58  ;;  %v3172_v52 = vpop.f32.mrf.mxu0  ;;  %v3341_v9 = vpop.f32.mrf.mxu1 }
 0x57c   :  { %v4256_v11 = vpop.xlane.xlu1 %4255  ;;  %v3173_v37 = vadd.f32 %v3172_v52, %v6301_v3 }
 0x57d   :  { %v3677_v35 = vadd.f32 %v3676_v17, %v3508_v27  ;;  %v4434_v46 = vadd.f32 %v6416_v32, %v4256_v11  ;;  %v4149_v41 = vmul.f32 %v6317_v25, %v4015_v61  ;;  %v4150_v60 = vmul.f32 %v6319_v63, %v4016_v1  ;;  %3211 = vmatmul.bf16.gmra.mxu0 %v6163_v7 }
 0x57e   :  { %3380 = vmatmul.bf16.gmra.mxu1 %v6171_v34  ;;  %v3342_v62 = vadd.f32 %v3341_v9, %v3173_v37 }
 0x57f   :  { %v3826_v56 = vmax.f32 %v3677_v35, 0.0  ;;  %4499 = vst.msk [vmem:[%s7002_s11 + $0x38] sm:$0xff] %vm4491_vm0, %v4434_v46  ;;  %3549 = vmatmul.bf16.gmra.mxu2 %v6163_v7  ;;  %v4299_v2 = vadd.f32 %v4150_v60, %v4149_v41  ;;  %3718 = vmatmul.bf16.gmra.mxu3 %v6171_v34 }
 0x580   :  { %v3827_v34 = vmax.f32 %v3342_v62, 0.0 }
 0x581   :  { %v3930_v43 = vpack.c.bf16 %v3826_v56, %v3825_v14  ;;  %4300 = vadd.xlane.f32.xlu1 %v4299_v2 }
 0x582   :  { %v3510_v53 = vpop.f32.mrf.mxu2  ;;  %v3679_v49 = vpop.f32.mrf.mxu3 }
 0x583   :  { %v3511_v28 = vadd.f32 %v3510_v53, %v6307_v58  ;;  %v3174_v19 = vpop.f32.mrf.mxu0  ;;  %v4017_v23 = vunpack.c.l.bf16 %v3930_v43  ;;  %v4018_v15 = vunpack.c.h.bf16 %v3930_v43  ;;  %v3343_v40 = vpop.f32.mrf.mxu1 }
 0x584   :  { %v4259_v4 = vpop.xlane.xlu2 %4258  ;;  %v3175_v20 = vadd.f32 %v3174_v19, %v6301_v3 }
 0x585   :  { %v3680_v18 = vadd.f32 %v3679_v49, %v3511_v28  ;;  %v4435_v59 = vadd.f32 %v6416_v32, %v4259_v4  ;;  %v4151_v7 = vmul.f32 %v6317_v25, %v4017_v23  ;;  %v4152_v29 = vmul.f32 %v6319_v63, %v4018_v15 }
 0x586   :  { %v3344_v1 = vadd.f32 %v3343_v40, %v3175_v20 }
 0x587   :  { %v3828_v42 = vmax.f32 %v3680_v18, 0.0  ;;  %4500 = vst.msk [vmem:[%s7002_s11 + $0x40] sm:$0xff] %vm4491_vm0, %v4435_v59  ;;  %v4302_v8 = vadd.f32 %v4152_v29, %v4151_v7 }
 0x588   :  { %v3829_v60 = vmax.f32 %v3344_v1, 0.0 }
 0x589   :  { %v3931_v38 = vpack.c.bf16 %v3828_v42, %v3827_v34  ;;  %4303 = vadd.xlane.f32.xlu2 %v4302_v8 }
 0x58a   :  { %v3512_v24 = vpop.f32.mrf.mxu2  ;;  %v3681_v27 = vpop.f32.mrf.mxu3 }
 0x58b   :  { %v4019_v31 = vunpack.c.l.bf16 %v3931_v38  ;;  %v4020_v61 = vunpack.c.h.bf16 %v3931_v38  ;;  %v3513_v13 = vadd.f32 %v3512_v24, %v6307_v58  ;;  %v3177_v17 = vpop.f32.mrf.mxu0  ;;  %v3346_v52 = vpop.f32.mrf.mxu1 }
 0x58c   :  { %v4262_v9 = vpop.xlane.xlu0 %4261  ;;  %v3178_v56 = vadd.f32 %v3177_v17, %v6301_v3 }
 0x58d   :  { %v3682_v11 = vadd.f32 %v3681_v27, %v3513_v13  ;;  %v4436_v35 = vadd.f32 %v6416_v32, %v4262_v9  ;;  %v4153_v46 = vmul.f32 %v6317_v25, %v4019_v31  ;;  %v4154_v41 = vmul.f32 %v6319_v63, %v4020_v61  ;;  %3216 = vmatmul.bf16.gmra.mxu0 %v6175_v21 }
 0x58e   :  { %3385 = vmatmul.bf16.gmra.mxu1 %v6183_v57  ;;  %v3347_v53 = vadd.f32 %v3346_v52, %v3178_v56 }
 0x58f   :  { %v3830_v14 = vmax.f32 %v3682_v11, 0.0  ;;  %4501 = vst.msk [vmem:[%s7002_s11 + $0x48] sm:$0xff] %vm4491_vm0, %v4436_v35  ;;  %3554 = vmatmul.bf16.gmra.mxu2 %v6175_v21  ;;  %v4305_v37 = vadd.f32 %v4154_v41, %v4153_v46  ;;  %3723 = vmatmul.bf16.gmra.mxu3 %v6183_v57 }
 0x590   :  { %v3831_v57 = vmax.f32 %v3347_v53, 0.0 }
 0x591   :  { %v3932_v2 = vpack.c.bf16 %v3830_v14, %v3829_v60  ;;  %4306 = vadd.xlane.f32.xlu0 %v4305_v37 }
 0x592   :  { %v3515_v43 = vpop.f32.mrf.mxu2  ;;  %v3684_v28 = vpop.f32.mrf.mxu3 }
 0x593   :  { %v3516_v62 = vadd.f32 %v3515_v43, %v6307_v58  ;;  %v3179_v49 = vpop.f32.mrf.mxu0  ;;  %v4021_v19 = vunpack.c.l.bf16 %v3932_v2  ;;  %v4022_v23 = vunpack.c.h.bf16 %v3932_v2  ;;  %v3348_v15 = vpop.f32.mrf.mxu1 }
 0x594   :  { %v4265_v40 = vpop.xlane.xlu1 %4264  ;;  %v3180_v29 = vadd.f32 %v3179_v49, %v6301_v3 }
 0x595   :  { %v3685_v4 = vadd.f32 %v3684_v28, %v3516_v62  ;;  %v4437_v18 = vadd.f32 %v6416_v32, %v4265_v40  ;;  %v4155_v21 = vmul.f32 %v6317_v25, %v4021_v19  ;;  %v4156_v59 = vmul.f32 %v6319_v63, %v4022_v23 }
 0x596   :  { %v3349_v24 = vadd.f32 %v3348_v15, %v3180_v29 }
 0x597   :  { %v3832_v7 = vmax.f32 %v3685_v4, 0.0  ;;  %4502 = vst.msk [vmem:[%s7002_s11 + $0x50] sm:$0xff] %vm4491_vm0, %v4437_v18  ;;  %v4308_v34 = vadd.f32 %v4156_v59, %v4155_v21 }
 0x598   :  { %v3833_v35 = vmax.f32 %v3349_v24, 0.0 }
 0x599   :  { %v3933_v42 = vpack.c.bf16 %v3832_v7, %v3831_v57  ;;  %4309 = vadd.xlane.f32.xlu1 %v4308_v34 }
 0x59a   :  { %v3517_v20 = vpop.f32.mrf.mxu2  ;;  %v3686_v61 = vpop.f32.mrf.mxu3 }
 0x59b   :  { %v4023_v8 = vunpack.c.l.bf16 %v3933_v42  ;;  %v4024_v38 = vunpack.c.h.bf16 %v3933_v42  ;;  %v3518_v31 = vadd.f32 %v3517_v20, %v6307_v58  ;;  %v3182_v1 = vpop.f32.mrf.mxu0  ;;  %v3351_v13 = vpop.f32.mrf.mxu1 }
 0x59c   :  { %v4268_v27 = vpop.xlane.xlu2 %4267  ;;  %v3183_v41 = vadd.f32 %v3182_v1, %v6301_v3 }
 0x59d   :  { %v3687_v17 = vadd.f32 %v3686_v61, %v3518_v31  ;;  %v4438_v52 = vadd.f32 %v6416_v32, %v4268_v27  ;;  %v4157_v9 = vmul.f32 %v6317_v25, %v4023_v8  ;;  %v4158_v11 = vmul.f32 %v6319_v63, %v4024_v38  ;;  %3221 = vmatmul.bf16.gmra.mxu0 %v6187_v0 }
 0x59e   :  { %3390 = vmatmul.bf16.gmra.mxu1 %v6195_v33  ;;  %v3352_v37 = vadd.f32 %v3351_v13, %v3183_v41 }
 0x59f   :  { %v3834_v46 = vmax.f32 %v3687_v17, 0.0  ;;  %4503 = vst.msk [vmem:[%s7002_s11 + $0x58] sm:$0xff] %vm4491_vm0, %v4438_v52  ;;  %3559 = vmatmul.bf16.gmra.mxu2 %v6187_v0  ;;  %v4311_v60 = vadd.f32 %v4158_v11, %v4157_v9  ;;  %3728 = vmatmul.bf16.gmra.mxu3 %v6195_v33 }
 0x5a0   :  { %v3835_v33 = vmax.f32 %v3352_v37, 0.0 }
 0x5a1   :  { %v3934_v14 = vpack.c.bf16 %v3834_v46, %v3833_v35  ;;  %4312 = vadd.xlane.f32.xlu2 %v4311_v60 }
 0x5a2   :  { %v3520_v56 = vpop.f32.mrf.mxu2  ;;  %v3689_v43 = vpop.f32.mrf.mxu3 }
 0x5a3   :  { %v3521_v2 = vadd.f32 %v3520_v56, %v6307_v58  ;;  %v3184_v53 = vpop.f32.mrf.mxu0  ;;  %v4025_v62 = vunpack.c.l.bf16 %v3934_v14  ;;  %v4026_v28 = vunpack.c.h.bf16 %v3934_v14  ;;  %v3353_v49 = vpop.f32.mrf.mxu1 }
 0x5a4   :  { %v4271_v19 = vpop.xlane.xlu0 %4270  ;;  %v3185_v18 = vadd.f32 %v3184_v53, %v6301_v3 }
 0x5a5   :  { %v3690_v23 = vadd.f32 %v3689_v43, %v3521_v2  ;;  %v4439_v15 = vadd.f32 %v6416_v32, %v4271_v19  ;;  %v4159_v0 = vmul.f32 %v6317_v25, %v4025_v62  ;;  %v4160_v40 = vmul.f32 %v6319_v63, %v4026_v28 }
 0x5a6   :  { %v3354_v34 = vadd.f32 %v3353_v49, %v3185_v18 }
 0x5a7   :  { %v3836_v4 = vmax.f32 %v3690_v23, 0.0  ;;  %4504 = vst.msk [vmem:[%s7002_s11 + $0x60] sm:$0xff] %vm4491_vm0, %v4439_v15  ;;  %v4314_v21 = vadd.f32 %v4160_v40, %v4159_v0 }
 0x5a8   :  { %v3837_v27 = vmax.f32 %v3354_v34, 0.0 }
 0x5a9   :  { %v3935_v59 = vpack.c.bf16 %v3836_v4, %v3835_v33  ;;  %4315 = vadd.xlane.f32.xlu0 %v4314_v21 }
 0x5aa   :  { %v3522_v57 = vpop.f32.mrf.mxu2  ;;  %v3691_v20 = vpop.f32.mrf.mxu3 }
 0x5ab   :  { %v4027_v7 = vunpack.c.l.bf16 %v3935_v59  ;;  %v4028_v29 = vunpack.c.h.bf16 %v3935_v59  ;;  %v3523_v42 = vadd.f32 %v3522_v57, %v6307_v58  ;;  %v3187_v8 = vpop.f32.mrf.mxu0  ;;  %v3356_v38 = vpop.f32.mrf.mxu1 }
 0x5ac   :  { %v4274_v24 = vpop.xlane.xlu1 %4273  ;;  %v3188_v52 = vadd.f32 %v3187_v8, %v6301_v3 }
 0x5ad   :  { %v3692_v31 = vadd.f32 %v3691_v20, %v3523_v42  ;;  %v4440_v61 = vadd.f32 %v6416_v32, %v4274_v24  ;;  %v4161_v1 = vmul.f32 %v6317_v25, %v4027_v7  ;;  %v4162_v13 = vmul.f32 %v6319_v63, %v4028_v29  ;;  %3226 = vmatmul.bf16.gmra.mxu0 %v6199_v12 }
 0x5ae   :  { %3395 = vmatmul.bf16.gmra.mxu1 %v6207_v22  ;;  %v3357_v46 = vadd.f32 %v3356_v38, %v3188_v52 }
 0x5af   :  { %v3838_v17 = vmax.f32 %v3692_v31, 0.0  ;;  %4505 = vst.msk [vmem:[%s7002_s11 + $0x68] sm:$0xff] %vm4491_vm0, %v4440_v61  ;;  %3564 = vmatmul.bf16.gmra.mxu2 %v6199_v12  ;;  %v4317_v9 = vadd.f32 %v4162_v13, %v4161_v1  ;;  %3733 = vmatmul.bf16.gmra.mxu3 %v6207_v22 }
 0x5b0   :  { %v3839_v22 = vmax.f32 %v3357_v46, 0.0 }
 0x5b1   :  { %v3936_v11 = vpack.c.bf16 %v3838_v17, %v3837_v27  ;;  %4318 = vadd.xlane.f32.xlu1 %v4317_v9 }
 0x5b2   :  { %v3525_v35 = vpop.f32.mrf.mxu2  ;;  %v3694_v60 = vpop.f32.mrf.mxu3 }
 0x5b3   :  { %v3526_v41 = vadd.f32 %v3525_v35, %v6307_v58  ;;  %v3189_v14 = vpop.f32.mrf.mxu0  ;;  %v4029_v56 = vunpack.c.l.bf16 %v3936_v11  ;;  %v4030_v37 = vunpack.c.h.bf16 %v3936_v11  ;;  %v3358_v2 = vpop.f32.mrf.mxu1 }
 0x5b4   :  { %v4277_v43 = vpop.xlane.xlu2 %4276  ;;  %v3190_v19 = vadd.f32 %v3189_v14, %v6301_v3 }
 0x5b5   :  { %v3695_v53 = vadd.f32 %v3694_v60, %v3526_v41  ;;  %v4441_v62 = vadd.f32 %v6416_v32, %v4277_v43  ;;  %v4163_v12 = vmul.f32 %v6317_v25, %v4029_v56  ;;  %v4164_v28 = vmul.f32 %v6319_v63, %v4030_v37 }
 0x5b6   :  { %v3359_v4 = vadd.f32 %v3358_v2, %v3190_v19 }
 0x5b7   :  { %v3840_v49 = vmax.f32 %v3695_v53, 0.0  ;;  %4506 = vst.msk [vmem:[%s7002_s11 + $0x70] sm:$0xff] %vm4491_vm0, %v4441_v62  ;;  %v4320_v23 = vadd.f32 %v4164_v28, %v4163_v12 }
 0x5b8   :  { %v3841_v8 = vmax.f32 %v3359_v4, 0.0 }
 0x5b9   :  { %v3937_v15 = vpack.c.bf16 %v3840_v49, %v3839_v22  ;;  %4321 = vadd.xlane.f32.xlu2 %v4320_v23 }
 0x5ba   :  { %v3527_v0 = vpop.f32.mrf.mxu2  ;;  %v3696_v21 = vpop.f32.mrf.mxu3 }
 0x5bb   :  { %v4031_v40 = vunpack.c.l.bf16 %v3937_v15  ;;  %v4032_v33 = vunpack.c.h.bf16 %v3937_v15  ;;  %v3528_v18 = vadd.f32 %v3527_v0, %v6307_v58  ;;  %v3192_v59 = vpop.f32.mrf.mxu0  ;;  %v3361_v57 = vpop.f32.mrf.mxu1 }
 0x5bc   :  { %v4280_v7 = vpop.xlane.xlu0 %4279  ;;  %v3193_v24 = vadd.f32 %v3192_v59, %v6301_v3 }
 0x5bd   :  { %v3697_v29 = vadd.f32 %v3696_v21, %v3528_v18  ;;  %v4442_v34 = vadd.f32 %v6416_v32, %v4280_v7  ;;  %v4165_v42 = vmul.f32 %v6317_v25, %v4031_v40  ;;  %v4166_v20 = vmul.f32 %v6319_v63, %v4032_v33  ;;  %3231 = vmatmul.bf16.gmra.mxu0 %v6211_v48 }
 0x5be   :  { %3400 = vmatmul.bf16.gmra.mxu1 %v6219_v16  ;;  %v3362_v13 = vadd.f32 %v3361_v57, %v3193_v24 }
 0x5bf   :  { %v3842_v38 = vmax.f32 %v3697_v29, 0.0  ;;  %4507 = vst.msk [vmem:[%s7002_s11 + $0x78] sm:$0xff] %vm4491_vm0, %v4442_v34  ;;  %3569 = vmatmul.bf16.gmra.mxu2 %v6211_v48  ;;  %v4323_v31 = vadd.f32 %v4166_v20, %v4165_v42  ;;  %3738 = vmatmul.bf16.gmra.mxu3 %v6219_v16 }
 0x5c0   :  { %v3843_v16 = vmax.f32 %v3362_v13, 0.0 }
 0x5c1   :  { %v3938_v61 = vpack.c.bf16 %v3842_v38, %v3841_v8  ;;  %4324 = vadd.xlane.f32.xlu0 %v4323_v31 }
 0x5c2   :  { %v3530_v1 = vpop.f32.mrf.mxu2  ;;  %v3699_v17 = vpop.f32.mrf.mxu3 }
 0x5c3   :  { %v3531_v27 = vadd.f32 %v3530_v1, %v6307_v58  ;;  %v3194_v52 = vpop.f32.mrf.mxu0  ;;  %v4033_v9 = vunpack.c.l.bf16 %v3938_v61  ;;  %v4034_v11 = vunpack.c.h.bf16 %v3938_v61  ;;  %v3363_v35 = vpop.f32.mrf.mxu1 }
 0x5c4   :  { %v4283_v46 = vpop.xlane.xlu1 %4282  ;;  %v3195_v37 = vadd.f32 %v3194_v52, %v6301_v3 }
 0x5c5   :  { %v3700_v41 = vadd.f32 %v3699_v17, %v3531_v27  ;;  %v4443_v60 = vadd.f32 %v6416_v32, %v4283_v46  ;;  %v4167_v48 = vmul.f32 %v6317_v25, %v4033_v9  ;;  %v4168_v14 = vmul.f32 %v6319_v63, %v4034_v11 }
 0x5c6   :  { %v3364_v28 = vadd.f32 %v3363_v35, %v3195_v37 }
 0x5c7   :  { %v3844_v56 = vmax.f32 %v3700_v41, 0.0  ;;  %4508 = vst.msk [vmem:[%s7002_s11 + $0x80] sm:$0xff] %vm4491_vm0, %v4443_v60  ;;  %v4326_v2 = vadd.f32 %v4168_v14, %v4167_v48 }
 0x5c8   :  { %v3845_v18 = vmax.f32 %v3364_v28, 0.0 }
 0x5c9   :  { %v3939_v43 = vpack.c.bf16 %v3844_v56, %v3843_v16  ;;  %4327 = vadd.xlane.f32.xlu1 %v4326_v2 }
 0x5ca   :  { %v3532_v53 = vpop.f32.mrf.mxu2  ;;  %v3701_v49 = vpop.f32.mrf.mxu3 }
 0x5cb   :  { %v4035_v62 = vunpack.c.l.bf16 %v3939_v43  ;;  %v4036_v12 = vunpack.c.h.bf16 %v3939_v43  ;;  %v3533_v22 = vadd.f32 %v3532_v53, %v6307_v58  ;;  %v3197_v19 = vpop.f32.mrf.mxu0  ;;  %v3366_v23 = vpop.f32.mrf.mxu1 }
 0x5cc   :  { %v4286_v15 = vpop.xlane.xlu2 %4285  ;;  %v3198_v59 = vadd.f32 %v3197_v19, %v6301_v3 }
 0x5cd   :  { %v3702_v0 = vadd.f32 %v3701_v49, %v3533_v22  ;;  %v4444_v40 = vadd.f32 %v6416_v32, %v4286_v15  ;;  %v4169_v33 = vmul.f32 %v6317_v25, %v4035_v62  ;;  %v4170_v4 = vmul.f32 %v6319_v63, %v4036_v12  ;;  %3236 = vmatmul.bf16.gmra.mxu0 %v6223_v39 }
 0x5ce   :  { %3405 = vmatmul.bf16.gmra.mxu1 %v6231_v30  ;;  %v3367_v34 = vadd.f32 %v3366_v23, %v3198_v59 }
 0x5cf   :  { %v3846_v21 = vmax.f32 %v3702_v0, 0.0  ;;  %4509 = vst.msk [vmem:[%s7002_s11 + $0x88] sm:$0xff] %vm4491_vm0, %v4444_v40  ;;  %3574 = vmatmul.bf16.gmra.mxu2 %v6223_v39  ;;  %v4329_v57 = vadd.f32 %v4170_v4, %v4169_v33  ;;  %3743 = vmatmul.bf16.gmra.mxu3 %v6231_v30 }
 0x5d0   :  { %v3847_v30 = vmax.f32 %v3367_v34, 0.0 }
 0x5d1   :  { %v3940_v7 = vpack.c.bf16 %v3846_v21, %v3845_v18  ;;  %4330 = vadd.xlane.f32.xlu2 %v4329_v57 }
 0x5d2   :  { %v3535_v29 = vpop.f32.mrf.mxu2  ;;  %v3704_v20 = vpop.f32.mrf.mxu3 }
 0x5d3   :  { %v3536_v42 = vadd.f32 %v3535_v29, %v6307_v58  ;;  %v3199_v8 = vpop.f32.mrf.mxu0  ;;  %v4037_v38 = vunpack.c.l.bf16 %v3940_v7  ;;  %v4038_v24 = vunpack.c.h.bf16 %v3940_v7  ;;  %v3368_v31 = vpop.f32.mrf.mxu1 }
 0x5d4   :  { %v4289_v61 = vpop.xlane.xlu0 %4288  ;;  %v3200_v52 = vadd.f32 %v3199_v8, %v6301_v3 }
 0x5d5   :  { %v3705_v1 = vadd.f32 %v3704_v20, %v3536_v42  ;;  %v4445_v13 = vadd.f32 %v6416_v32, %v4289_v61  ;;  %v4171_v39 = vmul.f32 %v6317_v25, %v4037_v38  ;;  %v4172_v27 = vmul.f32 %v6319_v63, %v4038_v24 }
 0x5d6   :  { %v3369_v60 = vadd.f32 %v3368_v31, %v3200_v52 }
 0x5d7   :  { %v3848_v17 = vmax.f32 %v3705_v1, 0.0  ;;  %4510 = vst.msk [vmem:[%s7002_s11 + $0x90] sm:$0xff] %vm4491_vm0, %v4445_v13  ;;  %v4332_v9 = vadd.f32 %v4172_v27, %v4171_v39 }
 0x5d8   :  { %v3849_v12 = vmax.f32 %v3369_v60, 0.0 }
 0x5d9   :  { %v3941_v11 = vpack.c.bf16 %v3848_v17, %v3847_v30  ;;  %4333 = vadd.xlane.f32.xlu0 %v4332_v9 }
 0x5da   :  { %v3537_v35 = vpop.f32.mrf.mxu2  ;;  %v3706_v14 = vpop.f32.mrf.mxu3 }
 0x5db   :  { %v4039_v46 = vunpack.c.l.bf16 %v3941_v11  ;;  %v4040_v41 = vunpack.c.h.bf16 %v3941_v11  ;;  %v3538_v48 = vadd.f32 %v3537_v35, %v6307_v58  ;;  %v3202_v16 = vpop.f32.mrf.mxu0  ;;  %v3371_v56 = vpop.f32.mrf.mxu1 }
 0x5dc   :  { %v4292_v37 = vpop.xlane.xlu1 %4291  ;;  %v3203_v22 = vadd.f32 %v3202_v16, %v6301_v3 }
 0x5dd   :  { %v3707_v2 = vadd.f32 %v3706_v14, %v3538_v48  ;;  %v4446_v43 = vadd.f32 %v6416_v32, %v4292_v37  ;;  %v4173_v53 = vmul.f32 %v6317_v25, %v4039_v46  ;;  %v4174_v62 = vmul.f32 %v6319_v63, %v4040_v41  ;;  %3241 = vmatmul.bf16.gmra.mxu0 %v6235_v6 }
 0x5de   :  { %3410 = vmatmul.bf16.gmra.mxu1 %v6243_v26  ;;  %v3372_v15 = vadd.f32 %v3371_v56, %v3203_v22 }
 0x5df   :  { %v3850_v28 = vmax.f32 %v3707_v2, 0.0  ;;  %4511 = vst.msk [vmem:[%s7002_s11 + $0x98] sm:$0xff] %vm4491_vm0, %v4446_v43  ;;  %3579 = vmatmul.bf16.gmra.mxu2 %v6235_v6  ;;  %v4335_v49 = vadd.f32 %v4174_v62, %v4173_v53  ;;  %3748 = vmatmul.bf16.gmra.mxu3 %v6243_v26 }
 0x5e0   :  { %v3851_v26 = vmax.f32 %v3372_v15, 0.0 }
 0x5e1   :  { %v3942_v19 = vpack.c.bf16 %v3850_v28, %v3849_v12  ;;  %4336 = vadd.xlane.f32.xlu1 %v4335_v49 }
 0x5e2   :  { %v3540_v23 = vpop.f32.mrf.mxu2  ;;  %v3709_v40 = vpop.f32.mrf.mxu3 }
 0x5e3   :  { %v3541_v0 = vadd.f32 %v3540_v23, %v6307_v58  ;;  %v3204_v33 = vpop.f32.mrf.mxu0  ;;  %v4041_v4 = vunpack.c.l.bf16 %v3942_v19  ;;  %v4042_v18 = vunpack.c.h.bf16 %v3942_v19  ;;  %v3373_v21 = vpop.f32.mrf.mxu1 }
 0x5e4   :  { %v4295_v59 = vpop.xlane.xlu2 %4294  ;;  %v3205_v42 = vadd.f32 %v3204_v33, %v6301_v3 }
 0x5e5   :  { %v3710_v57 = vadd.f32 %v3709_v40, %v3541_v0  ;;  %v4447_v7 = vadd.f32 %v6416_v32, %v4295_v59  ;;  %v4175_v6 = vmul.f32 %v6317_v25, %v4041_v4  ;;  %v4176_v29 = vmul.f32 %v6319_v63, %v4042_v18 }
 0x5e6   :  { %v3374_v61 = vadd.f32 %v3373_v21, %v3205_v42 }
 0x5e7   :  { %v3852_v34 = vmax.f32 %v3710_v57, 0.0  ;;  %4512 = vst.msk [vmem:[%s7002_s11 + $0xa0] sm:$0xff] %vm4491_vm0, %v4447_v7  ;;  %v4338_v20 = vadd.f32 %v4176_v29, %v4175_v6 }
 0x5e8   :  { %v3853_v35 = vmax.f32 %v3374_v61, 0.0 }
 0x5e9   :  { %v3943_v8 = vpack.c.bf16 %v3852_v34, %v3851_v26  ;;  %4339 = vadd.xlane.f32.xlu2 %v4338_v20 }
 0x5ea   :  { %v3542_v38 = vpop.f32.mrf.mxu2  ;;  %v3711_v13 = vpop.f32.mrf.mxu3 }
 0x5eb   :  { %v4043_v24 = vunpack.c.l.bf16 %v3943_v8  ;;  %v4044_v31 = vunpack.c.h.bf16 %v3943_v8  ;;  %v3543_v1 = vadd.f32 %v3542_v38, %v6307_v58  ;;  %v3207_v39 = vpop.f32.mrf.mxu0  ;;  %v3376_v27 = vpop.f32.mrf.mxu1 }
 0x5ec   :  { %v4298_v30 = vpop.xlane.xlu0 %4297  ;;  %v3208_v41 = vadd.f32 %v3207_v39, %v6301_v3 }
 0x5ed   :  { %v3712_v17 = vadd.f32 %v3711_v13, %v3543_v1  ;;  %v4448_v52 = vadd.f32 %v6416_v32, %v4298_v30  ;;  %v4177_v9 = vmul.f32 %v6317_v25, %v4043_v24  ;;  %v4178_v11 = vmul.f32 %v6319_v63, %v4044_v31  ;;  %3246 = vmatmul.bf16.gmra.mxu0 %v6247_v45 }
 0x5ee   :  { %3415 = vmatmul.bf16.gmra.mxu1 %v6255_v36  ;;  %v3377_v16 = vadd.f32 %v3376_v27, %v3208_v41 }
 0x5ef   :  { %v3854_v46 = vmax.f32 %v3712_v17, 0.0  ;;  %4513 = vst.msk [vmem:[%s7002_s11 + $0xa8] sm:$0xff] %vm4491_vm0, %v4448_v52  ;;  %3584 = vmatmul.bf16.gmra.mxu2 %v6247_v45  ;;  %v4341_v60 = vadd.f32 %v4178_v11, %v4177_v9  ;;  %3753 = vmatmul.bf16.gmra.mxu3 %v6255_v36 }
 0x5f0   :  { %v3855_v36 = vmax.f32 %v3377_v16, 0.0 }
 0x5f1   :  { %v3944_v48 = vpack.c.bf16 %v3854_v46, %v3853_v35  ;;  %4342 = vadd.xlane.f32.xlu0 %v4341_v60 }
 0x5f2   :  { %v3545_v14 = vpop.f32.mrf.mxu2  ;;  %v3714_v37 = vpop.f32.mrf.mxu3 }
 0x5f3   :  { %v3546_v56 = vadd.f32 %v3545_v14, %v6307_v58  ;;  %v3209_v2 = vpop.f32.mrf.mxu0  ;;  %v4045_v43 = vunpack.c.l.bf16 %v3944_v48  ;;  %v4046_v53 = vunpack.c.h.bf16 %v3944_v48  ;;  %v3378_v62 = vpop.f32.mrf.mxu1 }
 0x5f4   :  { %v4301_v12 = vpop.xlane.xlu1 %4300  ;;  %v3210_v23 = vadd.f32 %v3209_v2, %v6301_v3 }
 0x5f5   :  { %v3715_v28 = vadd.f32 %v3714_v37, %v3546_v56  ;;  %v4449_v22 = vadd.f32 %v6416_v32, %v4301_v12  ;;  %v4179_v45 = vmul.f32 %v6317_v25, %v4045_v43  ;;  %v4180_v49 = vmul.f32 %v6319_v63, %v4046_v53 }
 0x5f6   :  { %v3379_v18 = vadd.f32 %v3378_v62, %v3210_v23 }
 0x5f7   :  { %v3856_v19 = vmax.f32 %v3715_v28, 0.0  ;;  %4514 = vst.msk [vmem:[%s7002_s11 + $0xb0] sm:$0xff] %vm4491_vm0, %v4449_v22  ;;  %v4344_v15 = vadd.f32 %v4180_v49, %v4179_v45 }
 0x5f8   :  { %v3857_v20 = vmax.f32 %v3379_v18, 0.0 }
 0x5f9   :  { %v3945_v0 = vpack.c.bf16 %v3856_v19, %v3855_v36  ;;  %4345 = vadd.xlane.f32.xlu1 %v4344_v15 }
 0x5fa   :  { %v3547_v40 = vpop.f32.mrf.mxu2  ;;  %v3716_v59 = vpop.f32.mrf.mxu3 }
 0x5fb   :  { %v4047_v33 = vunpack.c.l.bf16 %v3945_v0  ;;  %v4048_v4 = vunpack.c.h.bf16 %v3945_v0  ;;  %v3548_v21 = vadd.f32 %v3547_v40, %v6307_v58  ;;  %v3212_v57 = vpop.f32.mrf.mxu0  ;;  %v3381_v7 = vpop.f32.mrf.mxu1 }
 0x5fc   :  { %v4304_v6 = vpop.xlane.xlu2 %4303  ;;  %v3213_v38 = vadd.f32 %v3212_v57, %v6301_v3 }
 0x5fd   :  { %v3717_v29 = vadd.f32 %v3716_v59, %v3548_v21  ;;  %v4450_v26 = vadd.f32 %v6416_v32, %v4304_v6  ;;  %v4181_v34 = vmul.f32 %v6317_v25, %v4047_v33  ;;  %v4182_v42 = vmul.f32 %v6319_v63, %v4048_v4  ;;  %3251 = vmatmul.bf16.gmra.mxu0 %v6259_v55 }
 0x5fe   :  { %3420 = vmatmul.bf16.gmra.mxu1 %v6267_v5  ;;  %v3382_v1 = vadd.f32 %v3381_v7, %v3213_v38 }
 0x5ff   :  { %v3858_v8 = vmax.f32 %v3717_v29, 0.0  ;;  %4515 = vst.msk [vmem:[%s7002_s11 + $0xb8] sm:$0xff] %vm4491_vm0, %v4450_v26  ;;  %3589 = vmatmul.bf16.gmra.mxu2 %v6259_v55  ;;  %v4347_v24 = vadd.f32 %v4182_v42, %v4181_v34  ;;  %3758 = vmatmul.bf16.gmra.mxu3 %v6267_v5 }
 0x600   :  { %v3859_v5 = vmax.f32 %v3382_v1, 0.0 }
 0x601   :  { %v3946_v31 = vpack.c.bf16 %v3858_v8, %v3857_v20  ;;  %4348 = vadd.xlane.f32.xlu2 %v4347_v24 }
 0x602   :  { %v3550_v61 = vpop.f32.mrf.mxu2  ;;  %v3719_v39 = vpop.f32.mrf.mxu3 }
 0x603   :  { %v3551_v13 = vadd.f32 %v3550_v61, %v6307_v58  ;;  %v3214_v27 = vpop.f32.mrf.mxu0  ;;  %v4049_v30 = vunpack.c.l.bf16 %v3946_v31  ;;  %v4050_v17 = vunpack.c.h.bf16 %v3946_v31  ;;  %v3383_v52 = vpop.f32.mrf.mxu1 }
 0x604   :  { %v4307_v9 = vpop.xlane.xlu0 %4306  ;;  %v3215_v60 = vadd.f32 %v3214_v27, %v6301_v3 }
 0x605   :  { %v3720_v11 = vadd.f32 %v3719_v39, %v3551_v13  ;;  %v4451_v35 = vadd.f32 %v6416_v32, %v4307_v9  ;;  %v4183_v55 = vmul.f32 %v6317_v25, %v4049_v30  ;;  %v4184_v46 = vmul.f32 %v6319_v63, %v4050_v17 }
 0x606   :  { %v3384_v2 = vadd.f32 %v3383_v52, %v3215_v60 }
 0x607   :  { %v3860_v41 = vmax.f32 %v3720_v11, 0.0  ;;  %4516 = vst.msk [vmem:[%s7002_s11 + $0xc0] sm:$0xff] %vm4491_vm0, %v4451_v35  ;;  %v4350_v48 = vadd.f32 %v4184_v46, %v4183_v55 }
 0x608   :  { %v3861_v19 = vmax.f32 %v3384_v2, 0.0 }
 0x609   :  { %v3947_v14 = vpack.c.bf16 %v3860_v41, %v3859_v5  ;;  %4351 = vadd.xlane.f32.xlu0 %v4350_v48 }
 0x60a   :  { %v3552_v16 = vpop.f32.mrf.mxu2  ;;  %v3721_v53 = vpop.f32.mrf.mxu3 }
 0x60b   :  { %v4051_v56 = vunpack.c.l.bf16 %v3947_v14  ;;  %v4052_v37 = vunpack.c.h.bf16 %v3947_v14  ;;  %v3553_v43 = vadd.f32 %v3552_v16, %v6307_v58  ;;  %v3217_v62 = vpop.f32.mrf.mxu0  ;;  %v3386_v12 = vpop.f32.mrf.mxu1 }
 0x60c   :  { %v4310_v28 = vpop.xlane.xlu1 %4309  ;;  %v3218_v15 = vadd.f32 %v3217_v62, %v6301_v3 }
 0x60d   :  { %v3722_v22 = vadd.f32 %v3721_v53, %v3553_v43  ;;  %v4452_v45 = vadd.f32 %v6416_v32, %v4310_v28  ;;  %v4185_v49 = vmul.f32 %v6317_v25, %v4051_v56  ;;  %v4186_v36 = vmul.f32 %v6319_v63, %v4052_v37  ;;  %3256 = vmatmul.bf16.gmra.mxu0 %v6271_v51 }
 0x60e   :  { %3425 = vmatmul.bf16.gmra.mxu1 %v6279_v54  ;;  %v3387_v21 = vadd.f32 %v3386_v12, %v3218_v15 }
 0x60f   :  { %v3862_v23 = vmax.f32 %v3722_v22, 0.0  ;;  %4517 = vst.msk [vmem:[%s7002_s11 + $0xc8] sm:$0xff] %vm4491_vm0, %v4452_v45  ;;  %3594 = vmatmul.bf16.gmra.mxu2 %v6271_v51  ;;  %v4353_v0 = vadd.f32 %v4186_v36, %v4185_v49  ;;  %3763 = vmatmul.bf16.gmra.mxu3 %v6279_v54 }
 0x610   :  { %v3863_v54 = vmax.f32 %v3387_v21, 0.0 }
 0x611   :  { %v3948_v40 = vpack.c.bf16 %v3862_v23, %v3861_v19  ;;  %4354 = vadd.xlane.f32.xlu1 %v4353_v0 }
 0x612   :  { %v3555_v33 = vpop.f32.mrf.mxu2  ;;  %v3724_v57 = vpop.f32.mrf.mxu3 }
 0x613   :  { %v4053_v4 = vunpack.c.l.bf16 %v3948_v40  ;;  %v4054_v18 = vunpack.c.h.bf16 %v3948_v40  ;;  %v3556_v59 = vadd.f32 %v3555_v33, %v6307_v58  ;;  %v3219_v7 = vpop.f32.mrf.mxu0  ;;  %v3388_v6 = vpop.f32.mrf.mxu1 }
 0x614   :  { %v4313_v29 = vpop.xlane.xlu2 %4312  ;;  %v3220_v8 = vadd.f32 %v3219_v7, %v6301_v3 }
 0x615   :  { %v3725_v26 = vadd.f32 %v3724_v57, %v3556_v59  ;;  %v4453_v34 = vadd.f32 %v6416_v32, %v4313_v29  ;;  %v4187_v51 = vmul.f32 %v6317_v25, %v4053_v4  ;;  %v4188_v42 = vmul.f32 %v6319_v63, %v4054_v18 }
 0x616   :  { %v3389_v13 = vadd.f32 %v3388_v6, %v3220_v8 }
 0x617   :  { %v3864_v20 = vmax.f32 %v3725_v26, 0.0  ;;  %4518 = vst.msk [vmem:[%s7002_s11 + $0xd0] sm:$0xff] %vm4491_vm0, %v4453_v34  ;;  %v4356_v38 = vadd.f32 %v4188_v42, %v4187_v51 }
 0x618   :  { %v3865_v46 = vmax.f32 %v3389_v13, 0.0 }
 0x619   :  { %v3949_v24 = vpack.c.bf16 %v3864_v20, %v3863_v54  ;;  %4357 = vadd.xlane.f32.xlu2 %v4356_v38 }
 0x61a   :  { %v3557_v31 = vpop.f32.mrf.mxu2  ;;  %v3726_v27 = vpop.f32.mrf.mxu3 }
 0x61b   :  { %v4055_v61 = vunpack.c.l.bf16 %v3949_v24  ;;  %v4056_v1 = vunpack.c.h.bf16 %v3949_v24  ;;  %v3558_v39 = vadd.f32 %v3557_v31, %v6307_v58  ;;  %v3222_v30 = vpop.f32.mrf.mxu0  ;;  %v3391_v17 = vpop.f32.mrf.mxu1 }
 0x61c   :  { %v4316_v52 = vpop.xlane.xlu0 %4315  ;;  %v3223_v41 = vadd.f32 %v3222_v30, %v6301_v3 }
 0x61d   :  { %v3727_v9 = vadd.f32 %v3726_v27, %v3558_v39  ;;  %v4454_v11 = vadd.f32 %v6416_v32, %v4316_v52  ;;  %v4189_v35 = vmul.f32 %v6317_v25, %v4055_v61  ;;  %v4190_v55 = vmul.f32 %v6319_v63, %v4056_v1  ;;  %3261 = vmatmul.bf16.gmra.mxu0 %v6283_v50 }
 0x61e   :  { %3430 = vmatmul.bf16.gmra.mxu1 %v6291_v47  ;;  %v3392_v37 = vadd.f32 %v3391_v17, %v3223_v41 }
 0x61f   :  { %v3866_v5 = vmax.f32 %v3727_v9, 0.0  ;;  %4519 = vst.msk [vmem:[%s7002_s11 + $0xd8] sm:$0xff] %vm4491_vm0, %v4454_v11  ;;  %3599 = vmatmul.bf16.gmra.mxu2 %v6283_v50  ;;  %v4359_v60 = vadd.f32 %v4190_v55, %v4189_v35  ;;  %3768 = vmatmul.bf16.gmra.mxu3 %v6291_v47 }
 0x620   :  { %v3867_v47 = vmax.f32 %v3392_v37, 0.0 }
 0x621   :  { %v3950_v48 = vpack.c.bf16 %v3866_v5, %v3865_v46  ;;  %4360 = vadd.xlane.f32.xlu0 %v4359_v60 }
 0x622   :  { %v3560_v14 = vpop.f32.mrf.mxu2  ;;  %v3729_v43 = vpop.f32.mrf.mxu3 }
 0x623   :  { %v4057_v16 = vunpack.c.l.bf16 %v3950_v48  ;;  %v4058_v56 = vunpack.c.h.bf16 %v3950_v48  ;;  %v3561_v2 = vadd.f32 %v3560_v14, %v6307_v58  ;;  %v3224_v53 = vpop.f32.mrf.mxu0  ;;  %v3393_v62 = vpop.f32.mrf.mxu1 }
 0x624   :  { %v4319_v12 = vpop.xlane.xlu1 %4318  ;;  %v3225_v36 = vadd.f32 %v3224_v53, %v6301_v3 }
 0x625   :  { %v3730_v28 = vadd.f32 %v3729_v43, %v3561_v2  ;;  %v4455_v22 = vadd.f32 %v6416_v32, %v4319_v12  ;;  %v4191_v50 = vmul.f32 %v6317_v25, %v4057_v16  ;;  %v4192_v45 = vmul.f32 %v6319_v63, %v4058_v56 }
 0x626   :  { %v3394_v33 = vadd.f32 %v3393_v62, %v3225_v36 }
 0x627   :  { %v3868_v49 = vmax.f32 %v3730_v28, 0.0  ;;  %4520 = vst.msk [vmem:[%s7002_s11 + $0xe0] sm:$0xff] %vm4491_vm0, %v4455_v22  ;;  %v4362_v19 = vadd.f32 %v4192_v45, %v4191_v50 }
 0x628   :  { %v3869_v34 = vmax.f32 %v3394_v33, 0.0 }
 0x629   :  { %v3951_v23 = vpack.c.bf16 %v3868_v49, %v3867_v47  ;;  %4363 = vadd.xlane.f32.xlu1 %v4362_v19 }
 0x62a   :  { %v3562_v15 = vpop.f32.mrf.mxu2  ;;  %v3731_v18 = vpop.f32.mrf.mxu3 }
 0x62b   :  { %v4059_v0 = vunpack.c.l.bf16 %v3951_v23  ;;  %v4060_v40 = vunpack.c.h.bf16 %v3951_v23  ;;  %v3563_v4 = vadd.f32 %v3562_v15, %v6307_v58  ;;  %v3227_v21 = vpop.f32.mrf.mxu0  ;;  %v3396_v59 = vpop.f32.mrf.mxu1 }
 0x62c   :  { %v4322_v57 = vpop.xlane.xlu2 %4321  ;;  %v3228_v42 = vadd.f32 %v3227_v21, %v6301_v3 }
 0x62d   :  { %v3732_v7 = vadd.f32 %v3731_v18, %v3563_v4  ;;  %v4456_v6 = vadd.f32 %v6416_v32, %v4322_v57  ;;  %v4193_v29 = vmul.f32 %v6317_v25, %v4059_v0  ;;  %v4194_v26 = vmul.f32 %v6319_v63, %v4060_v40  ;;  %3266 = vmatmul.bf16.gmra.mxu0 %v6298_v10 }
 0x62e   :  { %3435 = vmatmul.bf16.gmra.mxu1 %v6310_v44  ;;  %v3397_v31 = vadd.f32 %v3396_v59, %v3228_v42 }
 0x62f   :  { %v3870_v51 = vmax.f32 %v3732_v7, 0.0  ;;  %4521 = vst.msk [vmem:[%s7002_s11 + $0xe8] sm:$0xff] %vm4491_vm0, %v4456_v6  ;;  %3604 = vmatmul.bf16.gmra.mxu2 %v6298_v10  ;;  %v4365_v54 = vadd.f32 %v4194_v26, %v4193_v29  ;;  %3773 = vmatmul.bf16.gmra.mxu3 %v6310_v44 }
 0x630   :  { %v3871_v44 = vmax.f32 %v3397_v31, 0.0 }
 0x631   :  { %v3952_v20 = vpack.c.bf16 %v3870_v51, %v3869_v34  ;;  %4366 = vadd.xlane.f32.xlu2 %v4365_v54 }
 0x632   :  { %v3565_v8 = vpop.f32.mrf.mxu2  ;;  %v3734_v1 = vpop.f32.mrf.mxu3 }
 0x633   :  { %v4061_v38 = vunpack.c.l.bf16 %v3952_v20  ;;  %v4062_v24 = vunpack.c.h.bf16 %v3952_v20  ;;  %v3566_v61 = vadd.f32 %v3565_v8, %v6307_v58  ;;  %v3229_v13 = vpop.f32.mrf.mxu0  ;;  %v3398_v39 = vpop.f32.mrf.mxu1 }
 0x634   :  { %v4325_v27 = vpop.xlane.xlu0 %4324  ;;  %v3230_v11 = vadd.f32 %v3229_v13, %v6301_v3 }
 0x635   :  { %v3735_v30 = vadd.f32 %v3734_v1, %v3566_v61  ;;  %v4457_v17 = vadd.f32 %v6416_v32, %v4325_v27  ;;  %v4195_v10 = vmul.f32 %v6317_v25, %v4061_v38  ;;  %v4196_v52 = vmul.f32 %v6319_v63, %v4062_v24 }
 0x636   :  { %v3399_v60 = vadd.f32 %v3398_v39, %v3230_v11 }
 0x637   :  { %v3872_v9 = vmax.f32 %v3735_v30, 0.0  ;;  %4522 = vst.msk [vmem:[%s7002_s11 + $0xf0] sm:$0xff] %vm4491_vm0, %v4457_v17  ;;  %v4368_v35 = vadd.f32 %v4196_v52, %v4195_v10 }
 0x638   :  { %v3873_v12 = vmax.f32 %v3399_v60, 0.0 }
 0x639   :  { %v3953_v55 = vpack.c.bf16 %v3872_v9, %v3871_v44  ;;  %4369 = vadd.xlane.f32.xlu0 %v4368_v35 }
 0x63a   :  { %v3567_v46 = vpop.f32.mrf.mxu2  ;;  %v3736_v14 = vpop.f32.mrf.mxu3 }
 0x63b   :  { %v4063_v5 = vunpack.c.l.bf16 %v3953_v55  ;;  %v4064_v41 = vunpack.c.h.bf16 %v3953_v55  ;;  %v3568_v48 = vadd.f32 %v3567_v46, %v6307_v58  ;;  %v3232_v16 = vpop.f32.mrf.mxu0  ;;  %v3401_v56 = vpop.f32.mrf.mxu1 }
 0x63c   :  { %v4328_v37 = vpop.xlane.xlu1 %4327  ;;  %v3233_v22 = vadd.f32 %v3232_v16, %v6301_v3 }
 0x63d   :  { %v3737_v2 = vadd.f32 %v3736_v14, %v3568_v48  ;;  %v4458_v43 = vadd.f32 %v6416_v32, %v4328_v37  ;;  %v4197_v53 = vmul.f32 %v6317_v25, %v4063_v5  ;;  %v4198_v62 = vmul.f32 %v6319_v63, %v4064_v41 }
 0x63e   :  { %v3402_v19 = vadd.f32 %v3401_v56, %v3233_v22 }
 0x63f   :  { %v3874_v28 = vmax.f32 %v3737_v2, 0.0  ;;  %4523 = vst.msk [vmem:[%s7002_s11 + $0xf8] sm:$0xff] %vm4491_vm0, %v4458_v43  ;;  %v4371_v50 = vadd.f32 %v4198_v62, %v4197_v53 }
 0x640   :  { %v3875_v57 = vmax.f32 %v3402_v19, 0.0 }
 0x641   :  { %v3954_v45 = vpack.c.bf16 %v3874_v28, %v3873_v12  ;;  %4372 = vadd.xlane.f32.xlu1 %v4371_v50 }
 0x642   :  { %v3570_v47 = vpop.f32.mrf.mxu2  ;;  %v3739_v15 = vpop.f32.mrf.mxu3 }
 0x643   :  { %v4065_v49 = vunpack.c.l.bf16 %v3954_v45  ;;  %v4066_v36 = vunpack.c.h.bf16 %v3954_v45  ;;  %v3571_v23 = vadd.f32 %v3570_v47, %v6307_v58  ;;  %v3234_v0 = vpop.f32.mrf.mxu0  ;;  %v3403_v40 = vpop.f32.mrf.mxu1 }
 0x644   :  { %v4331_v33 = vpop.xlane.xlu2 %4330  ;;  %v3235_v6 = vadd.f32 %v3234_v0, %v6301_v3 }
 0x645   :  { %v3740_v4 = vadd.f32 %v3739_v15, %v3571_v23  ;;  %v4459_v18 = vadd.f32 %v6416_v32, %v4331_v33  ;;  %v4199_v21 = vmul.f32 %v6317_v25, %v4065_v49  ;;  %v4200_v59 = vmul.f32 %v6319_v63, %v4066_v36 }
 0x646   :  { %v3404_v54 = vadd.f32 %v3403_v40, %v3235_v6 }
 0x647   :  { %v3876_v7 = vmax.f32 %v3740_v4, 0.0  ;;  %4524 = vst.msk [vmem:[%s7002_s11 + $0x100] sm:$0xff] %vm4491_vm0, %v4459_v18  ;;  %v4374_v29 = vadd.f32 %v4200_v59, %v4199_v21 }
 0x648   :  { %v3877_v27 = vmax.f32 %v3404_v54, 0.0 }
 0x649   :  { %v3955_v26 = vpack.c.bf16 %v3876_v7, %v3875_v57  ;;  %4375 = vadd.xlane.f32.xlu2 %v4374_v29 }
 0x64a   :  { %v3572_v34 = vpop.f32.mrf.mxu2  ;;  %v3741_v8 = vpop.f32.mrf.mxu3 }
 0x64b   :  { %v4067_v51 = vunpack.c.l.bf16 %v3955_v26  ;;  %v4068_v42 = vunpack.c.h.bf16 %v3955_v26  ;;  %v3573_v20 = vadd.f32 %v3572_v34, %v6307_v58  ;;  %v3237_v38 = vpop.f32.mrf.mxu0  ;;  %v3406_v24 = vpop.f32.mrf.mxu1 }
 0x64c   :  { %v4334_v31 = vpop.xlane.xlu0 %4333  ;;  %v3238_v17 = vadd.f32 %v3237_v38, %v6301_v3 }
 0x64d   :  { %v3742_v61 = vadd.f32 %v3741_v8, %v3573_v20  ;;  %v4460_v1 = vadd.f32 %v6416_v32, %v4334_v31  ;;  %v4201_v13 = vmul.f32 %v6317_v25, %v4067_v51  ;;  %v4202_v39 = vmul.f32 %v6319_v63, %v4068_v42 }
 0x64e   :  { %v3407_v35 = vadd.f32 %v3406_v24, %v3238_v17 }
 0x64f   :  { %v3878_v30 = vmax.f32 %v3742_v61, 0.0  ;;  %4525 = vst.msk [vmem:[%s7002_s11 + $0x108] sm:$0xff] %vm4491_vm0, %v4460_v1  ;;  %v4377_v10 = vadd.f32 %v4202_v39, %v4201_v13 }
 0x650   :  { %v3879_v37 = vmax.f32 %v3407_v35, 0.0 }
 0x651   :  { %v3956_v52 = vpack.c.bf16 %v3878_v30, %v3877_v27  ;;  %4378 = vadd.xlane.f32.xlu0 %v4377_v10 }
 0x652   :  { %v3575_v44 = vpop.f32.mrf.mxu2  ;;  %v3744_v46 = vpop.f32.mrf.mxu3 }
 0x653   :  { %v4069_v9 = vunpack.c.l.bf16 %v3956_v52  ;;  %v4070_v11 = vunpack.c.h.bf16 %v3956_v52  ;;  %v3576_v55 = vadd.f32 %v3575_v44, %v6307_v58  ;;  %v3239_v5 = vpop.f32.mrf.mxu0  ;;  %v3408_v41 = vpop.f32.mrf.mxu1 }
 0x654   :  { %v4337_v60 = vpop.xlane.xlu1 %4336  ;;  %v3240_v43 = vadd.f32 %v3239_v5, %v6301_v3 }
 0x655   :  { %v3745_v48 = vadd.f32 %v3744_v46, %v3576_v55  ;;  %v4461_v14 = vadd.f32 %v6416_v32, %v4337_v60  ;;  %v4203_v16 = vmul.f32 %v6317_v25, %v4069_v9  ;;  %v4204_v56 = vmul.f32 %v6319_v63, %v4070_v11 }
 0x656   :  { %v3409_v50 = vadd.f32 %v3408_v41, %v3240_v43 }
 0x657   :  { %v3880_v2 = vmax.f32 %v3745_v48, 0.0  ;;  %4526 = vst.msk [vmem:[%s7002_s11 + $0x110] sm:$0xff] %vm4491_vm0, %v4461_v14  ;;  %v4380_v53 = vadd.f32 %v4204_v56, %v4203_v16 }
 0x658   :  { %v3881_v33 = vmax.f32 %v3409_v50, 0.0 }
 0x659   :  { %v3957_v62 = vpack.c.bf16 %v3880_v2, %v3879_v37  ;;  %4381 = vadd.xlane.f32.xlu1 %v4380_v53 }
 0x65a   :  { %v3577_v12 = vpop.f32.mrf.mxu2  ;;  %v3746_v47 = vpop.f32.mrf.mxu3 }
 0x65b   :  { %v4071_v28 = vunpack.c.l.bf16 %v3957_v62  ;;  %v4072_v22 = vunpack.c.h.bf16 %v3957_v62  ;;  %v3578_v45 = vadd.f32 %v3577_v12, %v6307_v58  ;;  %v3242_v49 = vpop.f32.mrf.mxu0  ;;  %v3411_v36 = vpop.f32.mrf.mxu1 }
 0x65c   :  { %v4340_v19 = vpop.xlane.xlu2 %4339  ;;  %v3243_v18 = vadd.f32 %v3242_v49, %v6301_v3 }
 0x65d   :  { %v3747_v23 = vadd.f32 %v3746_v47, %v3578_v45  ;;  %v4462_v15 = vadd.f32 %v6416_v32, %v4340_v19  ;;  %v4205_v0 = vmul.f32 %v6317_v25, %v4071_v28  ;;  %v4206_v40 = vmul.f32 %v6319_v63, %v4072_v22 }
 0x65e   :  { %v3412_v29 = vadd.f32 %v3411_v36, %v3243_v18 }
 0x65f   :  { %v3882_v4 = vmax.f32 %v3747_v23, 0.0  ;;  %4527 = vst.msk [vmem:[%s7002_s11 + $0x118] sm:$0xff] %vm4491_vm0, %v4462_v15  ;;  %v4383_v21 = vadd.f32 %v4206_v40, %v4205_v0 }
 0x660   :  { %v3883_v31 = vmax.f32 %v3412_v29, 0.0 }
 0x661   :  { %v3958_v59 = vpack.c.bf16 %v3882_v4, %v3881_v33  ;;  %4384 = vadd.xlane.f32.xlu2 %v4383_v21 }
 0x662   :  { %v3580_v57 = vpop.f32.mrf.mxu2  ;;  %v3749_v34 = vpop.f32.mrf.mxu3 }
 0x663   :  { %v4073_v7 = vunpack.c.l.bf16 %v3958_v59  ;;  %v4074_v6 = vunpack.c.h.bf16 %v3958_v59  ;;  %v3581_v26 = vadd.f32 %v3580_v57, %v6307_v58  ;;  %v3244_v51 = vpop.f32.mrf.mxu0  ;;  %v3413_v42 = vpop.f32.mrf.mxu1 }
 0x664   :  { %v4343_v54 = vpop.xlane.xlu0 %4342  ;;  %v3245_v1 = vadd.f32 %v3244_v51, %v6301_v3 }
 0x665   :  { %v3750_v20 = vadd.f32 %v3749_v34, %v3581_v26  ;;  %v4463_v8 = vadd.f32 %v6416_v32, %v4343_v54  ;;  %v4207_v38 = vmul.f32 %v6317_v25, %v4073_v7  ;;  %v4208_v24 = vmul.f32 %v6319_v63, %v4074_v6 }
 0x666   :  { %v3414_v10 = vadd.f32 %v3413_v42, %v3245_v1 }
 0x667   :  { %v3884_v61 = vmax.f32 %v3750_v20, 0.0  ;;  %4528 = vst.msk [vmem:[%s7002_s11 + $0x120] sm:$0xff] %vm4491_vm0, %v4463_v8  ;;  %v4386_v13 = vadd.f32 %v4208_v24, %v4207_v38 }
 0x668   :  { %v3885_v60 = vmax.f32 %v3414_v10, 0.0 }
 0x669   :  { %v3959_v39 = vpack.c.bf16 %v3884_v61, %v3883_v31  ;;  %4387 = vadd.xlane.f32.xlu0 %v4386_v13 }
 0x66a   :  { %v3582_v27 = vpop.f32.mrf.mxu2  ;;  %v3751_v44 = vpop.f32.mrf.mxu3 }
 0x66b   :  { %v4075_v30 = vunpack.c.l.bf16 %v3959_v39  ;;  %v4076_v17 = vunpack.c.h.bf16 %v3959_v39  ;;  %v3583_v52 = vadd.f32 %v3582_v27, %v6307_v58  ;;  %v3247_v9 = vpop.f32.mrf.mxu0  ;;  %v3416_v11 = vpop.f32.mrf.mxu1 }
 0x66c   :  { %v4346_v35 = vpop.xlane.xlu1 %4345  ;;  %v3248_v14 = vadd.f32 %v3247_v9, %v6301_v3 }
 0x66d   :  { %v3752_v55 = vadd.f32 %v3751_v44, %v3583_v52  ;;  %v4464_v46 = vadd.f32 %v6416_v32, %v4346_v35  ;;  %v4209_v5 = vmul.f32 %v6317_v25, %v4075_v30  ;;  %v4210_v41 = vmul.f32 %v6319_v63, %v4076_v17 }
 0x66e   :  { %v3417_v53 = vadd.f32 %v3416_v11, %v3248_v14 }
 0x66f   :  { %v3886_v48 = vmax.f32 %v3752_v55, 0.0  ;;  %4529 = vst.msk [vmem:[%s7002_s11 + $0x128] sm:$0xff] %vm4491_vm0, %v4464_v46  ;;  %v4389_v16 = vadd.f32 %v4210_v41, %v4209_v5 }
 0x670   :  { %v3887_v19 = vmax.f32 %v3417_v53, 0.0 }
 0x671   :  { %v3960_v56 = vpack.c.bf16 %v3886_v48, %v3885_v60  ;;  %4390 = vadd.xlane.f32.xlu1 %v4389_v16 }
 0x672   :  { %v3585_v37 = vpop.f32.mrf.mxu2  ;;  %v3754_v12 = vpop.f32.mrf.mxu3 }
 0x673   :  { %v4077_v2 = vunpack.c.l.bf16 %v3960_v56  ;;  %v4078_v43 = vunpack.c.h.bf16 %v3960_v56  ;;  %v3586_v62 = vadd.f32 %v3585_v37, %v6307_v58  ;;  %v3249_v28 = vpop.f32.mrf.mxu0  ;;  %v3418_v22 = vpop.f32.mrf.mxu1 }
 0x674   :  { %v4349_v50 = vpop.xlane.xlu2 %4348  ;;  %v3250_v15 = vadd.f32 %v3249_v28, %v6301_v3 }
 0x675   :  { %v3755_v45 = vadd.f32 %v3754_v12, %v3586_v62  ;;  %v4465_v47 = vadd.f32 %v6416_v32, %v4349_v50  ;;  %v4211_v49 = vmul.f32 %v6317_v25, %v4077_v2  ;;  %v4212_v36 = vmul.f32 %v6319_v63, %v4078_v43 }
 0x676   :  { %v3419_v21 = vadd.f32 %v3418_v22, %v3250_v15 }
 0x677   :  { %v3888_v23 = vmax.f32 %v3755_v45, 0.0  ;;  %4530 = vst.msk [vmem:[%s7002_s11 + $0x130] sm:$0xff] %vm4491_vm0, %v4465_v47  ;;  %v4392_v0 = vadd.f32 %v4212_v36, %v4211_v49 }
 0x678   :  { %v3889_v54 = vmax.f32 %v3419_v21, 0.0 }
 0x679   :  { %v3961_v40 = vpack.c.bf16 %v3888_v23, %v3887_v19  ;;  %4393 = vadd.xlane.f32.xlu2 %v4392_v0 }
 0x67a   :  { %v3587_v33 = vpop.f32.mrf.mxu2  ;;  %v3756_v57 = vpop.f32.mrf.mxu3 }
 0x67b   :  { %v4079_v4 = vunpack.c.l.bf16 %v3961_v40  ;;  %v4080_v18 = vunpack.c.h.bf16 %v3961_v40  ;;  %v3588_v59 = vadd.f32 %v3587_v33, %v6307_v58  ;;  %v3252_v7 = vpop.f32.mrf.mxu0  ;;  %v3421_v6 = vpop.f32.mrf.mxu1 }
 0x67c   :  { %v4352_v29 = vpop.xlane.xlu0 %4351  ;;  %v3253_v8 = vadd.f32 %v3252_v7, %v6301_v3 }
 0x67d   :  { %v3757_v26 = vadd.f32 %v3756_v57, %v3588_v59  ;;  %v4466_v34 = vadd.f32 %v6416_v32, %v4352_v29  ;;  %v4213_v51 = vmul.f32 %v6317_v25, %v4079_v4  ;;  %v4214_v42 = vmul.f32 %v6319_v63, %v4080_v18 }
 0x67e   :  { %v3422_v13 = vadd.f32 %v3421_v6, %v3253_v8 }
 0x67f   :  { %v3890_v20 = vmax.f32 %v3757_v26, 0.0  ;;  %4531 = vst.msk [vmem:[%s7002_s11 + $0x138] sm:$0xff] %vm4491_vm0, %v4466_v34  ;;  %v4395_v38 = vadd.f32 %v4214_v42, %v4213_v51 }
 0x680   :  { %v3891_v35 = vmax.f32 %v3422_v13, 0.0 }
 0x681   :  { %v3962_v24 = vpack.c.bf16 %v3890_v20, %v3889_v54  ;;  %4396 = vadd.xlane.f32.xlu0 %v4395_v38 }
 0x682   :  { %v3590_v31 = vpop.f32.mrf.mxu2  ;;  %v3759_v27 = vpop.f32.mrf.mxu3 }
 0x683   :  { %v4081_v61 = vunpack.c.l.bf16 %v3962_v24  ;;  %v4082_v1 = vunpack.c.h.bf16 %v3962_v24  ;;  %v3591_v39 = vadd.f32 %v3590_v31, %v6307_v58  ;;  %v3254_v30 = vpop.f32.mrf.mxu0  ;;  %v3423_v17 = vpop.f32.mrf.mxu1 }
 0x684   :  { %v4355_v10 = vpop.xlane.xlu1 %4354  ;;  %v3255_v46 = vadd.f32 %v3254_v30, %v6301_v3 }
 0x685   :  { %v3760_v52 = vadd.f32 %v3759_v27, %v3591_v39  ;;  %v4467_v44 = vadd.f32 %v6416_v32, %v4355_v10  ;;  %v4215_v9 = vmul.f32 %v6317_v25, %v4081_v61  ;;  %v4216_v11 = vmul.f32 %v6319_v63, %v4082_v1 }
 0x686   :  { %v3424_v16 = vadd.f32 %v3423_v17, %v3255_v46 }
 0x687   :  { %v3892_v55 = vmax.f32 %v3760_v52, 0.0  ;;  %4532 = vst.msk [vmem:[%s7002_s11 + $0x140] sm:$0xff] %vm4491_vm0, %v4467_v44  ;;  %v4398_v5 = vadd.f32 %v4216_v11, %v4215_v9 }
 0x688   :  { %v3893_v50 = vmax.f32 %v3424_v16, 0.0 }
 0x689   :  { %v3963_v41 = vpack.c.bf16 %v3892_v55, %v3891_v35  ;;  %4399 = vadd.xlane.f32.xlu1 %v4398_v5 }
 0x68a   :  { %v3592_v60 = vpop.f32.mrf.mxu2  ;;  %v3761_v37 = vpop.f32.mrf.mxu3 }
 0x68b   :  { %v4083_v48 = vunpack.c.l.bf16 %v3963_v41  ;;  %v4084_v14 = vunpack.c.h.bf16 %v3963_v41  ;;  %v3593_v56 = vadd.f32 %v3592_v60, %v6307_v58  ;;  %v3257_v2 = vpop.f32.mrf.mxu0  ;;  %v3426_v43 = vpop.f32.mrf.mxu1 }
 0x68c   :  { %v4358_v53 = vpop.xlane.xlu2 %4357  ;;  %v3258_v47 = vadd.f32 %v3257_v2, %v6301_v3 }
 0x68d   :  { %v3762_v62 = vadd.f32 %v3761_v37, %v3593_v56  ;;  %v4468_v12 = vadd.f32 %v6416_v32, %v4358_v53  ;;  %v4217_v28 = vmul.f32 %v6317_v25, %v4083_v48  ;;  %v4218_v22 = vmul.f32 %v6319_v63, %v4084_v14 }
 0x68e   :  { %v3427_v0 = vadd.f32 %v3426_v43, %v3258_v47 }
 0x68f   :  { %v3894_v45 = vmax.f32 %v3762_v62, 0.0  ;;  %4533 = vst.msk [vmem:[%s7002_s11 + $0x148] sm:$0xff] %vm4491_vm0, %v4468_v12  ;;  %v4401_v49 = vadd.f32 %v4218_v22, %v4217_v28 }
 0x690   :  { %v3895_v29 = vmax.f32 %v3427_v0, 0.0 }
 0x691   :  { %v3964_v36 = vpack.c.bf16 %v3894_v45, %v3893_v50  ;;  %4402 = vadd.xlane.f32.xlu2 %v4401_v49 }
 0x692   :  { %v3595_v19 = vpop.f32.mrf.mxu2  ;;  %v3764_v33 = vpop.f32.mrf.mxu3 }
 0x693   :  { %v4085_v23 = vunpack.c.l.bf16 %v3964_v36  ;;  %v4086_v15 = vunpack.c.h.bf16 %v3964_v36  ;;  %v3596_v40 = vadd.f32 %v3595_v19, %v6307_v58  ;;  %v3259_v4 = vpop.f32.mrf.mxu0  ;;  %v3428_v18 = vpop.f32.mrf.mxu1 }
 0x694   :  { %v4361_v21 = vpop.xlane.xlu0 %4360  ;;  %v3260_v34 = vadd.f32 %v3259_v4, %v6301_v3 }
 0x695   :  { %v3765_v59 = vadd.f32 %v3764_v33, %v3596_v40  ;;  %v4469_v57 = vadd.f32 %v6416_v32, %v4361_v21  ;;  %v4219_v7 = vmul.f32 %v6317_v25, %v4085_v23  ;;  %v4220_v6 = vmul.f32 %v6319_v63, %v4086_v15 }
 0x696   :  { %v3429_v38 = vadd.f32 %v3428_v18, %v3260_v34 }
 0x697   :  { %v3896_v26 = vmax.f32 %v3765_v59, 0.0  ;;  %4534 = vst.msk [vmem:[%s7002_s11 + $0x150] sm:$0xff] %vm4491_vm0, %v4469_v57  ;;  %v4404_v51 = vadd.f32 %v4220_v6, %v4219_v7 }
 0x698   :  { %v3897_v10 = vmax.f32 %v3429_v38, 0.0 }
 0x699   :  { %v3965_v42 = vpack.c.bf16 %v3896_v26, %v3895_v29  ;;  %4405 = vadd.xlane.f32.xlu0 %v4404_v51 }
 0x69a   :  { %v3597_v54 = vpop.f32.mrf.mxu2  ;;  %v3766_v31 = vpop.f32.mrf.mxu3 }
 0x69b   :  { %v4087_v20 = vunpack.c.l.bf16 %v3965_v42  ;;  %v4088_v8 = vunpack.c.h.bf16 %v3965_v42  ;;  %v3598_v24 = vadd.f32 %v3597_v54, %v6307_v58  ;;  %v3262_v61 = vpop.f32.mrf.mxu0  ;;  %v3431_v1 = vpop.f32.mrf.mxu1 }
 0x69c   :  { %v4364_v13 = vpop.xlane.xlu1 %4363  ;;  %v3263_v44 = vadd.f32 %v3262_v61, %v6301_v3 }
 0x69d   :  { %v3767_v39 = vadd.f32 %v3766_v31, %v3598_v24  ;;  %v4470_v27 = vadd.f32 %v6416_v32, %v4364_v13  ;;  %v4221_v30 = vmul.f32 %v6317_v25, %v4087_v20  ;;  %v4222_v17 = vmul.f32 %v6319_v63, %v4088_v8 }
 0x69e   :  { %v3432_v5 = vadd.f32 %v3431_v1, %v3263_v44 }
 0x69f   :  { %v3898_v52 = vmax.f32 %v3767_v39, 0.0  ;;  %4535 = vst.msk [vmem:[%s7002_s11 + $0x158] sm:$0xff] %vm4491_vm0, %v4470_v27  ;;  %v4407_v9 = vadd.f32 %v4222_v17, %v4221_v30 }
 0x6a0   :  { %v3899_v53 = vmax.f32 %v3432_v5, 0.0 }
 0x6a1   :  { %v3966_v11 = vpack.c.bf16 %v3898_v52, %v3897_v10  ;;  %4408 = vadd.xlane.f32.xlu1 %v4407_v9 }
 0x6a2   :  { %v3600_v35 = vpop.f32.mrf.mxu2  ;;  %v3769_v60 = vpop.f32.mrf.mxu3 }
 0x6a3   :  { %v4089_v55 = vunpack.c.l.bf16 %v3966_v11  ;;  %v4090_v46 = vunpack.c.h.bf16 %v3966_v11  ;;  %v3601_v41 = vadd.f32 %v3600_v35, %v6307_v58  ;;  %v3264_v48 = vpop.f32.mrf.mxu0  ;;  %v3433_v43 = vpop.f32.mrf.mxu1 }
 0x6a4   :  { %v4367_v14 = vpop.xlane.xlu2 %4366  ;;  %v3265_v12 = vadd.f32 %v3264_v48, %v6301_v3 }
 0x6a5   :  { %v3770_v16 = vadd.f32 %v3769_v60, %v3601_v41  ;;  %v4471_v56 = vadd.f32 %v6416_v32, %v4367_v14  ;;  %v4223_v37 = vmul.f32 %v6317_v25, %v4089_v55  ;;  %v4224_v2 = vmul.f32 %v6319_v63, %v4090_v46 }
 0x6a6   :  { %v3434_v49 = vadd.f32 %v3433_v43, %v3265_v12 }
 0x6a7   :  { %v3900_v62 = vmax.f32 %v3770_v16, 0.0  ;;  %4536 = vst.msk [vmem:[%s7002_s11 + $0x160] sm:$0xff] %vm4491_vm0, %v4471_v56  ;;  %v4410_v28 = vadd.f32 %v4224_v2, %v4223_v37 }
 0x6a8   :  { %v3901_v18 = vmax.f32 %v3434_v49, 0.0 }
 0x6a9   :  { %v3967_v22 = vpack.c.bf16 %v3900_v62, %v3899_v53  ;;  %4411 = vadd.xlane.f32.xlu2 %v4410_v28 }
 0x6aa   :  { %v3602_v50 = vpop.f32.mrf.mxu2  ;;  %v3771_v19 = vpop.f32.mrf.mxu3 }
 0x6ab   :  { %v4091_v45 = vunpack.c.l.bf16 %v3967_v22  ;;  %v4092_v47 = vunpack.c.h.bf16 %v3967_v22  ;;  %v3603_v36 = vadd.f32 %v3602_v50, %v6307_v58  ;;  %v3267_v23 = vpop.f32.mrf.mxu0  ;;  %v3436_v7 = vpop.f32.mrf.mxu1 }
 0x6ac   :  { %v4370_v15 = vpop.xlane.xlu0 %4369  ;;  %v3268_v59 = vadd.f32 %v3267_v23, %v6301_v3 }
 0x6ad   :  { %v3772_v0 = vadd.f32 %v3771_v19, %v3603_v36  ;;  %v4472_v40 = vadd.f32 %v6416_v32, %v4370_v15  ;;  %v4225_v33 = vmul.f32 %v6317_v25, %v4091_v45  ;;  %v4226_v4 = vmul.f32 %v6319_v63, %v4092_v47 }
 0x6ae   :  { %v3437_v51 = vadd.f32 %v3436_v7, %v3268_v59 }
 0x6af   :  { %v3902_v21 = vmax.f32 %v3772_v0, 0.0  ;;  %4537 = vst.msk [vmem:[%s7002_s11 + $0x168] sm:$0xff] %vm4491_vm0, %v4472_v40  ;;  %v4413_v57 = vadd.f32 %v4226_v4, %v4225_v33 }
 0x6b0   :  { %v3903_v1 = vmax.f32 %v3437_v51, 0.0 }
 0x6b1   :  { %v3968_v6 = vpack.c.bf16 %v3902_v21, %v3901_v18  ;;  %4414 = vadd.xlane.f32.xlu0 %v4413_v57 }
 0x6b2   :  { %v3605_v29 = vpop.f32.mrf.mxu2  ;;  %v3774_v54 = vpop.f32.mrf.mxu3 }
 0x6b3   :  { %v4093_v26 = vunpack.c.l.bf16 %v3968_v6  ;;  %v4094_v34 = vunpack.c.h.bf16 %v3968_v6  ;;  %v3606_v42 = vadd.f32 %v3605_v29, %v6307_v58  ;;  %v3269_v20 = vpop.f32.mrf.mxu0  ;;  %v3438_v17 = vpop.f32.mrf.mxu1 }
 0x6b4   :  { %v4373_v8 = vpop.xlane.xlu1 %4372  ;;  %v3270_v39 = vadd.f32 %v3269_v20, %v6301_v3 }
 0x6b5   :  { %v3775_v38 = vadd.f32 %v3774_v54, %v3606_v42  ;;  %v4473_v24 = vadd.f32 %v6416_v32, %v4373_v8  ;;  %v4227_v31 = vmul.f32 %v6317_v25, %v4093_v26  ;;  %v4228_v61 = vmul.f32 %v6319_v63, %v4094_v34 }
 0x6b6   :  { %v3439_v9 = vadd.f32 %v3438_v17, %v3270_v39 }
 0x6b7   :  { %v3904_v13 = vmax.f32 %v3775_v38, 0.0  ;;  %4538 = vst.msk [vmem:[%s7002_s11 + $0x170] sm:$0xff] %vm4491_vm0, %v4473_v24  ;;  %v4416_v27 = vadd.f32 %v4228_v61, %v4227_v31 }
 0x6b8   :  { %v3905_v60 = vmax.f32 %v3439_v9, 0.0 }
 0x6b9   :  { %v3969_v30 = vpack.c.bf16 %v3904_v13, %v3903_v1  ;;  %4417 = vadd.xlane.f32.xlu1 %v4416_v27 }
 0x6ba   :  { %v3607_v10 = vpop.f32.mrf.mxu2  ;;  %v3776_v35 = vpop.f32.mrf.mxu3 }
 0x6bb   :  { %v4095_v52 = vunpack.c.l.bf16 %v3969_v30  ;;  %v4096_v44 = vunpack.c.h.bf16 %v3969_v30  ;;  %v3608_v11 = vadd.f32 %v3607_v10, %v6307_v58 }
 0x6bc   :  { %v4376_v55 = vpop.xlane.xlu2 %4375 }
 0x6bd   :  { %v3777_v46 = vadd.f32 %v3776_v35, %v3608_v11  ;;  %v4474_v3 = vadd.f32 %v6416_v32, %v4376_v55  ;;  %v4229_v5 = vmul.f32 %v6317_v25, %v4095_v52  ;;  %v4230_v41 = vmul.f32 %v6319_v63, %v4096_v44 }
 0x6bf   :  { %v3906_v48 = vmax.f32 %v3777_v46, 0.0  ;;  %4539 = vst.msk [vmem:[%s7002_s11 + $0x178] sm:$0xff] %vm4491_vm0, %v4474_v3  ;;  %v4419_v14 = vadd.f32 %v4230_v41, %v4229_v5 }
 0x6c1   :  { %v3970_v16 = vpack.c.bf16 %v3906_v48, %v3905_v60  ;;  %4420 = vadd.xlane.f32.xlu2 %v4419_v14 }
 0x6c3   :  { %v4097_v58 = vunpack.c.l.bf16 %v3970_v16  ;;  %v4098_v56 = vunpack.c.h.bf16 %v3970_v16 }
 0x6c4   :  { %v4379_v37 = vpop.xlane.xlu0 %4378 }
 0x6c5   :  { %v4475_v2 = vadd.f32 %v6416_v32, %v4379_v37  ;;  %v4231_v43 = vmul.f32 %v6317_v25, %v4097_v58  ;;  %v4232_v53 = vmul.f32 %v6319_v63, %v4098_v56 }
 0x6c7   :  { %4540 = vst.msk [vmem:[%s7002_s11 + $0x180] sm:$0xff] %vm4491_vm0, %v4475_v2  ;;  %v4422_v62 = vadd.f32 %v4232_v53, %v4231_v43 }
 0x6c9   :  { %4423 = vadd.xlane.f32.xlu0 %v4422_v62 }
 0x6cc   :  { %v4382_v12 = vpop.xlane.xlu1 %4381 }
 0x6cd   :  { %v4476_v28 = vadd.f32 %v6416_v32, %v4382_v12 }
 0x6cf   :  { %4541 = vst.msk [vmem:[%s7002_s11 + $0x188] sm:$0xff] %vm4491_vm0, %v4476_v28 }
 0x6d4   :  { %v4385_v22 = vpop.xlane.xlu2 %4384 }
 0x6d5   :  { %v4477_v25 = vadd.f32 %v6416_v32, %v4385_v22 }
 0x6d7   :  { %4542 = vst.msk [vmem:[%s7002_s11 + $0x190] sm:$0xff] %vm4491_vm0, %v4477_v25 }
 0x6dc   :  { %v4388_v63 = vpop.xlane.xlu0 %4387 }
 0x6dd   :  { %v4478_v50 = vadd.f32 %v6416_v32, %v4388_v63 }
 0x6df   :  { %4543 = vst.msk [vmem:[%s7002_s11 + $0x198] sm:$0xff] %vm4491_vm0, %v4478_v50 }
 0x6e4   :  { %v4391_v45 = vpop.xlane.xlu1 %4390 }
 0x6e5   :  { %v4479_v47 = vadd.f32 %v6416_v32, %v4391_v45 }
 0x6e7   :  { %4544 = vst.msk [vmem:[%s7002_s11 + $0x1a0] sm:$0xff] %vm4491_vm0, %v4479_v47 }
 0x6ec   :  { %v4394_v49 = vpop.xlane.xlu2 %4393 }
 0x6ed   :  { %v4480_v36 = vadd.f32 %v6416_v32, %v4394_v49 }
 0x6ef   :  { %4545 = vst.msk [vmem:[%s7002_s11 + $0x1a8] sm:$0xff] %vm4491_vm0, %v4480_v36 }
 0x6f4   :  { %v4397_v19 = vpop.xlane.xlu0 %4396 }
 0x6f5   :  { %v4481_v23 = vadd.f32 %v6416_v32, %v4397_v19 }
 0x6f7   :  { %4546 = vst.msk [vmem:[%s7002_s11 + $0x1b0] sm:$0xff] %vm4491_vm0, %v4481_v23 }
 0x6fc   :  { %v4400_v15 = vpop.xlane.xlu1 %4399 }
 0x6fd   :  { %v4482_v0 = vadd.f32 %v6416_v32, %v4400_v15 }
 0x6ff   :  { %4547 = vst.msk [vmem:[%s7002_s11 + $0x1b8] sm:$0xff] %vm4491_vm0, %v4482_v0 }
 0x704   :  { %v4403_v40 = vpop.xlane.xlu2 %4402 }
 0x705   :  { %v4483_v33 = vadd.f32 %v6416_v32, %v4403_v40 }
 0x707   :  { %4548 = vst.msk [vmem:[%s7002_s11 + $0x1c0] sm:$0xff] %vm4491_vm0, %v4483_v33 }
 0x70c   :  { %v4406_v4 = vpop.xlane.xlu0 %4405 }
 0x70d   :  { %v4484_v18 = vadd.f32 %v6416_v32, %v4406_v4 }
 0x70f   :  { %4549 = vst.msk [vmem:[%s7002_s11 + $0x1c8] sm:$0xff] %vm4491_vm0, %v4484_v18 }
 0x714   :  { %v4409_v21 = vpop.xlane.xlu1 %4408 }
 0x715   :  { %v4485_v59 = vadd.f32 %v6416_v32, %v4409_v21 }
 0x717   :  { %4550 = vst.msk [vmem:[%s7002_s11 + $0x1d0] sm:$0xff] %vm4491_vm0, %v4485_v59 }
 0x71c   :  { %v4412_v57 = vpop.xlane.xlu2 %4411 }
 0x71d   :  { %v4486_v7 = vadd.f32 %v6416_v32, %v4412_v57 }
 0x71f   :  { %4551 = vst.msk [vmem:[%s7002_s11 + $0x1d8] sm:$0xff] %vm4491_vm0, %v4486_v7 }
 0x724   :  { %v4415_v6 = vpop.xlane.xlu0 %4414 }
 0x725   :  { %v4487_v29 = vadd.f32 %v6416_v32, %v4415_v6 }
 0x727   :  { %4552 = vst.msk [vmem:[%s7002_s11 + $0x1e0] sm:$0xff] %vm4491_vm0, %v4487_v29 }
 0x72c   :  { %v4418_v26 = vpop.xlane.xlu1 %4417 }
 0x72d   :  { %v4488_v34 = vadd.f32 %v6416_v32, %v4418_v26 }
 0x72f   :  { %4553 = vst.msk [vmem:[%s7002_s11 + $0x1e8] sm:$0xff] %vm4491_vm0, %v4488_v34 }
 0x734   :  { %v4421_v51 = vpop.xlane.xlu2 %4420 }
 0x735   :  { %v4489_v42 = vadd.f32 %v6416_v32, %v4421_v51 }
 0x737   :  { %4554 = vst.msk [vmem:[%s7002_s11 + $0x1f0] sm:$0xff] %vm4491_vm0, %v4489_v42 }
 0x73c   :  { %v4424_v54 = vpop.xlane.xlu0 %4423 }
 0x73d   :  { %v4490_v20 = vadd.f32 %v6416_v32, %v4424_v54 }
 0x73f   :  { %4555 = vst.msk [vmem:[%s7002_s11 + $0x1f8] sm:$0xff] %vm4491_vm0, %v4490_v20 }
 0x740   :  { %4560 = vsyncpa [#allocation4], 1 }
 0x741   :  { %4561 = vsyncpa [#allocation6], 1 }
 0x742   :  { %4562 = vsyncpa [#allocation9], 1 }
 0x743   :  { %4563 = vsyncpa [#allocation12], 1 }

// kernel: tpu_custom_call.1
= control target key start
LH: loop header
LB: loop body
LE: loop exit
PB: predicated region body
PF: predicated region fallthrough
CT: control target
= control target key end

     0   :  { %17 = vsyncpa [#allocation4], 0  ;;  %s6991_s0 = inlined_call_operand.hbm [shape: bf16[512,128], index: 0, kind: input, shape index: {}]   ;;  %s6992_s1 = inlined_call_operand.hbm [shape: bf16[512,128], index: 1, kind: input, shape index: {}]   ;;  %s6993_s2 = inlined_call_operand.hbm [shape: bf16[128,256], index: 2, kind: input, shape index: {}]   ;;  %s6994_s3 = inlined_call_operand.hbm [shape: bf16[128,256], index: 3, kind: input, shape index: {}]   ;;  %s6995_s4 = inlined_call_operand.vmem [shape: f32[1,256], index: 4, kind: input, shape index: {}]   ;;  %s6996_s5 = inlined_call_operand.hbm [shape: bf16[256,256], index: 5, kind: input, shape index: {}]   ;;  %s6997_s6 = inlined_call_operand.vmem [shape: f32[1,256], index: 6, kind: input, shape index: {}]   ;;  %s6998_s7 = inlined_call_operand.hbm [shape: bf16[256,256], index: 7, kind: input, shape index: {}]   ;;  %s6999_s8 = inlined_call_operand.vmem [shape: f32[1,256], index: 8, kind: input, shape index: {}]   ;;  %s7000_s9 = inlined_call_operand.vmem [shape: f32[1,256], index: 9, kind: input, shape index: {}]   ;;  %s7001_s10 = inlined_call_operand.<no memory space> [shape: f32[1], index: 10, kind: input, shape index: {}]   ;;  %s7002_s11 = inlined_call_operand.vmem [shape: f32[512,1], index: 11, kind: output, shape index: {}]  }
   0x1   :  { %18 = vsyncpa [#allocation6], 0 }
   0x2   :  { %19 = vsyncpa [#allocation9], 0 }
   0x3   :  { %20 = vsyncpa [#allocation12], 0  ;;  %s38_s19 = sshll.u32 %s6992_s1, 4  ;;  %s5526_s20 = smov [#allocation5]   ;;  %s39_s19 = int_to_ptr.hbm [resolvable:$true] %s38_s19 }
   0x4   :  { %s40_s21 = sshll.u32 %s5526_s20, 4  ;;  %s5527_s22 = smov 64   ;;  %s41_s21 = int_to_ptr.vmem [resolvable:$true] %s40_s21 }
   0x5   :  { %s5528_s23 = smov 4   ;;  %s64_s26 = sshll.u32 %s6994_s3, 4  ;;  %s65_s26 = int_to_ptr.hbm [resolvable:$true] %s64_s26 }
   0x6   :  { %46 = dma.hbm_to_vmem [thread:$0]  %s39_s19, 4096, %s41_s21, [#allocation6], %s5527_s22, %s5527_s22, %s5528_s23  }
   0x7   :  { %s5529_s27 = smov [#allocation8]   ;;  %s25_s12 = sshll.u32 %s6991_s0, 4  ;;  %s26_s12 = int_to_ptr.hbm [resolvable:$true] %s25_s12 }
   0x8   :  { %s66_s28 = sshll.u32 %s5529_s27, 4  ;;  %s5530_s1 = smov 128   ;;  %s67_s28 = int_to_ptr.vmem [resolvable:$true] %s66_s28 }
   0x9   :  { %s5531_s13 = smov 8   ;;  %s51_s16 = sshll.u32 %s6993_s2, 4  ;;  %s52_s16 = int_to_ptr.hbm [resolvable:$true] %s51_s16 }
   0xa   :  { %72 = dma.hbm_to_vmem [thread:$0]  %s65_s26, 2048, %s67_s28, [#allocation9], %s5530_s1, %s5530_s1, %s5531_s13  }
   0xb   :  { %s5532_s17 = smov [#allocation3]   ;;  %s5533_s3 = smov [#allocation7]  }
   0xc   :  { %s27_s18 = sshll.u32 %s5532_s17, 4  ;;  %s53_s19 = sshll.u32 %s5533_s3, 4  ;;  %s28_s18 = int_to_ptr.vmem [resolvable:$true] %s27_s18  ;;  %s54_s19 = int_to_ptr.vmem [resolvable:$true] %s53_s19 }
   0xd   :  { %33 = dma.hbm_to_vmem [thread:$0]  %s26_s12, 4096, %s28_s18, [#allocation4], %s5527_s22, %s5527_s22, %s5528_s23  }
   0xe   :  { %s79_s0 = sshll.u32 %s6996_s5, 4  ;;  %s94_s26 = sshll.u32 %s6998_s7, 4  ;;  %s80_s0 = int_to_ptr.hbm [resolvable:$true] %s79_s0  ;;  %s95_s26 = int_to_ptr.hbm [resolvable:$true] %s94_s26 }
   0xf   :  { %59 = dma.hbm_to_vmem [thread:$0]  %s52_s16, 2048, %s54_s19, [#allocation6], %s5530_s1, %s5530_s1, %s5531_s13  }
  0x10   :  { %s5534_s27 = smov [#allocation10]   ;;  %s5535_s28 = smov [#allocation11]  }
  0x11   :  { %s81_s2 = sshll.u32 %s5534_s27, 4  ;;  %s96_s22 = sshll.u32 %s5535_s28, 4  ;;  %s82_s2 = int_to_ptr.vmem [resolvable:$true] %s81_s2  ;;  %s97_s22 = int_to_ptr.vmem [resolvable:$true] %s96_s22 }
  0x12   :  { %87 = dma.hbm_to_vmem [thread:$0]  %s80_s0, 4096, %s82_s2, [#allocation9], %s5530_s1, %s5530_s1, %s5531_s13  }
  0x13   :  { %102 = dma.hbm_to_vmem [thread:$0]  %s95_s26, 4096, %s97_s22, [#allocation12], %s5530_s1, %s5530_s1, %s5531_s13  }
  0x14   :  { %5518 = dma.done.wait [#allocation4], 4096  }
  0x15   :  { %5519 = vsyncadd [#allocation4], 4294963200 }
  0x16   :  { %5520 = dma.done.wait [#allocation6], 6144  }
  0x17   :  { %5521 = vsyncadd [#allocation6], 4294961152 }
  0x18   :  { %5522 = dma.done.wait [#allocation9], 6144  }
  0x19   :  { %5523 = vsyncadd [#allocation9], 4294961152 }
  0x1a   :  { %5524 = dma.done.wait [#allocation12], 4096  }
  0x1b   :  { %5525 = vsyncadd [#allocation12], 4294963200  ;;  %v4750_v0 = vld [vmem:[#allocation8 + $0x70] sm:$0xf]  ;;  %v5299_v1 = vld [vmem:[#allocation8 + $0x74] sm:$0xf0] }
  0x1c   :  { %v5298_v2 = vld [vmem:[#allocation8 + $0x74] sm:$0xf]  ;;  %v4751_v3 = vor.u32 %v5299_v1, %v4750_v0  ;;  %v4752_v4 = vld [vmem:[#allocation8 + $0x78] sm:$0xf0]  ;;  %v4942_v5 = vld [vmem:[#allocation7 + $0x70] sm:$0xf] }
  0x1d   :  { %v5251_v6 = vld [vmem:[#allocation7 + $0x74] sm:$0xf0]  ;;  %v4755_v7 = vor.u32 %v5298_v2, %v4752_v4  ;;  %v5250_v9 = vld [vmem:[#allocation7 + $0x74] sm:$0xf]  ;;  %v4944_v10 = vld [vmem:[#allocation7 + $0x78] sm:$0xf0] }
  0x1e   :  { %v4943_v8 = vor.u32 %v5251_v6, %v4942_v5  ;;  %v4742_v11 = vld [vmem:[#allocation8 + $0x60] sm:$0xf]  ;;  %565 = vmatpush.bf16.msra.mxu0 %v4751_v3  ;;  %v4947_v12 = vor.u32 %v5250_v9, %v4944_v10  ;;  %v5297_v13 = vld [vmem:[#allocation8 + $0x64] sm:$0xf0]  ;;  %v5296_v14 = vld [vmem:[#allocation8 + $0x64] sm:$0xf] }
  0x1f   :  { %v4744_v15 = vld [vmem:[#allocation8 + $0x68] sm:$0xf0]  ;;  %734 = vmatpush.bf16.msra.mxu1 %v4755_v7  ;;  %v4743_v16 = vor.u32 %v5297_v13, %v4742_v11  ;;  %v4934_v18 = vld [vmem:[#allocation7 + $0x60] sm:$0xf]  ;;  %v5249_v19 = vld [vmem:[#allocation7 + $0x64] sm:$0xf0] }
  0x20   :  { %1175 = vmatpush.bf16.msra.mxu2 %v4943_v8  ;;  %v4747_v17 = vor.u32 %v5296_v14, %v4744_v15  ;;  %v5248_v20 = vld [vmem:[#allocation7 + $0x64] sm:$0xf]  ;;  %1344 = vmatpush.bf16.msra.mxu3 %v4947_v12  ;;  %v4935_v21 = vor.u32 %v5249_v19, %v4934_v18  ;;  %v4936_v22 = vld [vmem:[#allocation7 + $0x68] sm:$0xf0]  ;;  %v4734_v23 = vld [vmem:[#allocation8 + $0x50] sm:$0xf] }
  0x21   :  { %v5295_v24 = vld [vmem:[#allocation8 + $0x54] sm:$0xf0]  ;;  %v4939_v25 = vor.u32 %v5248_v20, %v4936_v22  ;;  %v5294_v26 = vld [vmem:[#allocation8 + $0x54] sm:$0xf]  ;;  %v4736_v27 = vld [vmem:[#allocation8 + $0x58] sm:$0xf0] }
  0x22   :  { %v4926_v28 = vld [vmem:[#allocation7 + $0x50] sm:$0xf]  ;;  %566 = vmatpush.bf16.msra.mxu0 %v4743_v16  ;;  %v4735_v29 = vor.u32 %v5295_v24, %v4734_v23  ;;  %v5247_v30 = vld [vmem:[#allocation7 + $0x54] sm:$0xf0]  ;;  %v5246_v31 = vld [vmem:[#allocation7 + $0x54] sm:$0xf]  ;;  %v4739_v33 = vor.u32 %v5294_v26, %v4736_v27 }
  0x23   :  { %v4928_v32 = vld [vmem:[#allocation7 + $0x58] sm:$0xf0]  ;;  %735 = vmatpush.bf16.msra.mxu1 %v4747_v17  ;;  %v4927_v34 = vor.u32 %v5247_v30, %v4926_v28  ;;  %v4726_v35 = vld [vmem:[#allocation8 + $0x40] sm:$0xf]  ;;  %v5293_v36 = vld [vmem:[#allocation8 + $0x44] sm:$0xf0] }
  0x24   :  { %1176 = vmatpush.bf16.msra.mxu2 %v4935_v21  ;;  %v5292_v37 = vld [vmem:[#allocation8 + $0x44] sm:$0xf]  ;;  %1345 = vmatpush.bf16.msra.mxu3 %v4939_v25  ;;  %v4931_v38 = vor.u32 %v5246_v31, %v4928_v32  ;;  %v4728_v39 = vld [vmem:[#allocation8 + $0x48] sm:$0xf0]  ;;  %v4918_v40 = vld [vmem:[#allocation7 + $0x40] sm:$0xf]  ;;  %v4727_v44 = vor.u32 %v5293_v36, %v4726_v35 }
  0x25   :  { %v5245_v41 = vld [vmem:[#allocation7 + $0x44] sm:$0xf0]  ;;  %v5244_v42 = vld [vmem:[#allocation7 + $0x44] sm:$0xf]  ;;  %v4920_v43 = vld [vmem:[#allocation7 + $0x48] sm:$0xf0]  ;;  %v4731_v45 = vor.u32 %v5292_v37, %v4728_v39 }
  0x26   :  { %567 = vmatpush.bf16.msra.mxu0 %v4735_v29  ;;  %v4919_v46 = vor.u32 %v5245_v41, %v4918_v40  ;;  %v4718_v47 = vld [vmem:[#allocation8 + $0x30] sm:$0xf]  ;;  %v5291_v48 = vld [vmem:[#allocation8 + $0x34] sm:$0xf0]  ;;  %v5290_v49 = vld [vmem:[#allocation8 + $0x34] sm:$0xf]  ;;  %v4923_v50 = vor.u32 %v5244_v42, %v4920_v43 }
  0x27   :  { %736 = vmatpush.bf16.msra.mxu1 %v4739_v33  ;;  %v4720_v51 = vld [vmem:[#allocation8 + $0x38] sm:$0xf0]  ;;  %v4910_v52 = vld [vmem:[#allocation7 + $0x30] sm:$0xf]  ;;  %v5243_v53 = vld [vmem:[#allocation7 + $0x34] sm:$0xf0]  ;;  %v4719_v56 = vor.u32 %v5291_v48, %v4718_v47 }
  0x28   :  { %1177 = vmatpush.bf16.msra.mxu2 %v4927_v34  ;;  %1346 = vmatpush.bf16.msra.mxu3 %v4931_v38  ;;  %v5242_v54 = vld [vmem:[#allocation7 + $0x34] sm:$0xf]  ;;  %v4912_v55 = vld [vmem:[#allocation7 + $0x38] sm:$0xf0]  ;;  %v4723_v57 = vor.u32 %v5290_v49, %v4720_v51  ;;  %v4911_v58 = vor.u32 %v5243_v53, %v4910_v52  ;;  %v4710_v59 = vld [vmem:[#allocation8 + $0x20] sm:$0xf] }
  0x29   :  { %v5289_v60 = vld [vmem:[#allocation8 + $0x24] sm:$0xf0]  ;;  %v5288_v61 = vld [vmem:[#allocation8 + $0x24] sm:$0xf]  ;;  %v4915_v62 = vor.u32 %v5242_v54, %v4912_v55  ;;  %v4712_v63 = vld [vmem:[#allocation8 + $0x28] sm:$0xf0] }
  0x2a   :  { %568 = vmatpush.bf16.msra.mxu0 %v4727_v44  ;;  %v4902_v0 = vld [vmem:[#allocation7 + $0x20] sm:$0xf]  ;;  %v5241_v1 = vld [vmem:[#allocation7 + $0x24] sm:$0xf0]  ;;  %v5240_v2 = vld [vmem:[#allocation7 + $0x24] sm:$0xf]  ;;  %v4711_v4 = vor.u32 %v5289_v60, %v4710_v59  ;;  %v4715_v5 = vor.u32 %v5288_v61, %v4712_v63 }
  0x2b   :  { %737 = vmatpush.bf16.msra.mxu1 %v4731_v45  ;;  %v4904_v3 = vld [vmem:[#allocation7 + $0x28] sm:$0xf0]  ;;  %v4903_v6 = vor.u32 %v5241_v1, %v4902_v0  ;;  %v4702_v7 = vld [vmem:[#allocation8 + $0x10] sm:$0xf]  ;;  %v5287_v8 = vld [vmem:[#allocation8 + $0x14] sm:$0xf0] }
  0x2c   :  { %1178 = vmatpush.bf16.msra.mxu2 %v4919_v46  ;;  %1347 = vmatpush.bf16.msra.mxu3 %v4923_v50  ;;  %v5286_v9 = vld [vmem:[#allocation8 + $0x14] sm:$0xf]  ;;  %v4907_v10 = vor.u32 %v5240_v2, %v4904_v3  ;;  %v4704_v11 = vld [vmem:[#allocation8 + $0x18] sm:$0xf0]  ;;  %v4894_v12 = vld [vmem:[#allocation7 + $0x10] sm:$0xf]  ;;  %v4703_v16 = vor.u32 %v5287_v8, %v4702_v7 }
  0x2d   :  { %v5239_v13 = vld [vmem:[#allocation7 + $0x14] sm:$0xf0]  ;;  %v5238_v14 = vld [vmem:[#allocation7 + $0x14] sm:$0xf]  ;;  %v4896_v15 = vld [vmem:[#allocation7 + $0x18] sm:$0xf0]  ;;  %v4707_v18 = vor.u32 %v5286_v9, %v4704_v11 }
  0x2e   :  { %569 = vmatpush.bf16.msra.mxu0 %v4719_v56  ;;  %v4694_v17 = vld [vmem:[#allocation8] sm:$0xf]  ;;  %v4895_v19 = vor.u32 %v5239_v13, %v4894_v12  ;;  %v5285_v20 = vld [vmem:[#allocation8 + $0x4] sm:$0xf0]  ;;  %v5284_v21 = vld [vmem:[#allocation8 + $0x4] sm:$0xf]  ;;  %v4899_v23 = vor.u32 %v5238_v14, %v4896_v15 }
  0x2f   :  { %738 = vmatpush.bf16.msra.mxu1 %v4723_v57  ;;  %v4696_v22 = vld [vmem:[#allocation8 + $0x8] sm:$0xf0]  ;;  %v4886_v24 = vld [vmem:[#allocation7] sm:$0xf]  ;;  %v5237_v25 = vld [vmem:[#allocation7 + $0x4] sm:$0xf0]  ;;  %v4695_v30 = vor.u32 %v5285_v20, %v4694_v17 }
  0x30   :  { %1179 = vmatpush.bf16.msra.mxu2 %v4911_v58  ;;  %1348 = vmatpush.bf16.msra.mxu3 %v4915_v62  ;;  %v5236_v26 = vld [vmem:[#allocation7 + $0x4] sm:$0xf]  ;;  %v4888_v27 = vld [vmem:[#allocation7 + $0x8] sm:$0xf0]  ;;  %v5314_v28 = vld [vmem:[#allocation10 + $0x74] sm:$0xf]  ;;  %v4699_v33 = vor.u32 %v5284_v21, %v4696_v22  ;;  %v4887_v34 = vor.u32 %v5237_v25, %v4886_v24 }
  0x31   :  { %v5008_v29 = vld [vmem:[#allocation10 + $0x78] sm:$0xf0]  ;;  %v5330_v31 = vld [vmem:[#allocation10 + $0xf4] sm:$0xf]  ;;  %v4891_v35 = vor.u32 %v5236_v26, %v4888_v27  ;;  %v5006_v37 = vld [vmem:[#allocation10 + $0x70] sm:$0xf] }
  0x32   :  { %570 = vmatpush.bf16.msra.mxu0 %v4711_v4  ;;  %v5072_v32 = vld [vmem:[#allocation10 + $0xf8] sm:$0xf0]  ;;  %v5011_v36 = vor.u32 %v5314_v28, %v5008_v29  ;;  %v5315_v38 = vld [vmem:[#allocation10 + $0x74] sm:$0xf0]  ;;  %v5252_v39 = vld [vmem:[#allocation5] sm:$0xff]  ;;  %vm4491_vm0 = vcmask 7168  }
  0x33   :  { %739 = vmatpush.bf16.msra.mxu1 %v4715_v5  ;;  %v5075_v40 = vor.u32 %v5330_v31, %v5072_v32  ;;  %v5070_v41 = vld [vmem:[#allocation10 + $0xf0] sm:$0xf]  ;;  %v5331_v42 = vld [vmem:[#allocation10 + $0xf4] sm:$0xf0]  ;;  %v5204_v43 = vld [vmem:[#allocation3] sm:$0xff]  ;;  %v5007_v44 = vor.u32 %v5315_v38, %v5006_v37 }
  0x34   :  { %1180 = vmatpush.bf16.msra.mxu2 %v4903_v6  ;;  %1349 = vmatpush.bf16.msra.mxu3 %v4907_v10  ;;  %v5071_v45 = vor.u32 %v5331_v42, %v5070_v41  ;;  %v5253_v46 = vld [vmem:[#allocation5 + $0x8] sm:$0xff]  ;;  %v5254_v48 = vld [vmem:[#allocation5 + $0x10] sm:$0xff]  ;;  %v5312_v50 = vld [vmem:[#allocation10 + $0x64] sm:$0xf] }
  0x35   :  { %v5205_v47 = vld [vmem:[#allocation3 + $0x8] sm:$0xff]  ;;  %v5206_v49 = vld [vmem:[#allocation3 + $0x10] sm:$0xff]  ;;  %v5328_v52 = vld [vmem:[#allocation10 + $0xe4] sm:$0xf] }
  0x36   :  { %571 = vmatpush.bf16.msra.mxu0 %v4703_v16  ;;  %v5000_v51 = vld [vmem:[#allocation10 + $0x68] sm:$0xf0]  ;;  %v4998_v55 = vld [vmem:[#allocation10 + $0x60] sm:$0xf]  ;;  %v5313_v56 = vld [vmem:[#allocation10 + $0x64] sm:$0xf0] }
  0x37   :  { %740 = vmatpush.bf16.msra.mxu1 %v4707_v18  ;;  %v5003_v53 = vor.u32 %v5312_v50, %v5000_v51  ;;  %v5064_v54 = vld [vmem:[#allocation10 + $0xe8] sm:$0xf0]  ;;  %v4999_v58 = vor.u32 %v5313_v56, %v4998_v55  ;;  %v5062_v59 = vld [vmem:[#allocation10 + $0xe0] sm:$0xf]  ;;  %v5329_v60 = vld [vmem:[#allocation10 + $0xe4] sm:$0xf0] }
  0x38   :  { %1181 = vmatpush.bf16.msra.mxu2 %v4895_v19  ;;  %1350 = vmatpush.bf16.msra.mxu3 %v4899_v23  ;;  %v5067_v57 = vor.u32 %v5328_v52, %v5064_v54  ;;  %v5063_v61 = vor.u32 %v5329_v60, %v5062_v59  ;;  %v5255_v62 = vld [vmem:[#allocation5 + $0x18] sm:$0xff]  ;;  %v5256_v0 = vld [vmem:[#allocation5 + $0x20] sm:$0xff]  ;;  %v5257_v2 = vld [vmem:[#allocation5 + $0x28] sm:$0xff] }
  0x39   :  { %v5207_v63 = vld [vmem:[#allocation3 + $0x18] sm:$0xff]  ;;  %v5208_v1 = vld [vmem:[#allocation3 + $0x20] sm:$0xff]  ;;  %v5209_v3 = vld [vmem:[#allocation3 + $0x28] sm:$0xff] }
  0x3a   :  { %572 = vmatpush.bf16.msra.mxu0 %v4695_v30  ;;  %v5258_v4 = vld [vmem:[#allocation5 + $0x30] sm:$0xff]  ;;  %v4992_v7 = vld [vmem:[#allocation10 + $0x58] sm:$0xf0]  ;;  %v5311_v13 = vld [vmem:[#allocation10 + $0x54] sm:$0xf0] }
  0x3b   :  { %741 = vmatpush.bf16.msra.mxu1 %v4699_v33  ;;  %v5210_v5 = vld [vmem:[#allocation3 + $0x30] sm:$0xff]  ;;  %v5056_v10 = vld [vmem:[#allocation10 + $0xd8] sm:$0xf0]  ;;  %v5327_v16 = vld [vmem:[#allocation10 + $0xd4] sm:$0xf0] }
  0x3c   :  { %1182 = vmatpush.bf16.msra.mxu2 %v4887_v34  ;;  %1351 = vmatpush.bf16.msra.mxu3 %v4891_v35  ;;  %v5310_v6 = vld [vmem:[#allocation10 + $0x54] sm:$0xf]  ;;  %v4990_v12 = vld [vmem:[#allocation10 + $0x50] sm:$0xf]  ;;  %v5259_v17 = vld [vmem:[#allocation5 + $0x38] sm:$0xff] }
  0x3d   :  { %573 = vmatmul.bf16.vlgmr.msra.gmra.mxu0 %v5252_v39  ;;  %v5326_v8 = vld [vmem:[#allocation10 + $0xd4] sm:$0xf]  ;;  %v4995_v9 = vor.u32 %v5310_v6, %v4992_v7  ;;  %v5054_v14 = vld [vmem:[#allocation10 + $0xd0] sm:$0xf]  ;;  %v4991_v15 = vor.u32 %v5311_v13, %v4990_v12  ;;  %v5211_v19 = vld [vmem:[#allocation3 + $0x38] sm:$0xff] }
  0x3e   :  { %742 = vmatmul.bf16.vlgmr.msra.gmra.mxu1 %v5252_v39  ;;  %2037 = vmatpush.bf16.msrb.mxu0 %v5007_v44  ;;  %v5059_v11 = vor.u32 %v5326_v8, %v5056_v10  ;;  %v5055_v18 = vor.u32 %v5327_v16, %v5054_v14  ;;  %v5260_v20 = vld [vmem:[#allocation5 + $0x40] sm:$0xff]  ;;  %v5261_v34 = vld [vmem:[#allocation5 + $0x48] sm:$0xff] }
  0x3f   :  { %1183 = vmatmul.bf16.vlgmr.msra.gmra.mxu2 %v5204_v43  ;;  %1352 = vmatmul.bf16.vlgmr.msra.gmra.mxu3 %v5204_v43  ;;  %v5212_v22 = vld [vmem:[#allocation3 + $0x40] sm:$0xff]  ;;  %v5213_v39 = vld [vmem:[#allocation3 + $0x48] sm:$0xff] }
  0x40   :  { %2375 = vmatpush.bf16.msrb.mxu2 %v5011_v36  ;;  %2544 = vmatpush.bf16.msrb.mxu3 %v5075_v40  ;;  %v1513_v28 = vld [vmem:[%s6995_s4] sm:$0x3]  ;;  %v4984_v10 = vld [vmem:[#allocation10 + $0x48] sm:$0xf0]  ;;  %v5324_v12 = vld [vmem:[#allocation10 + $0xc4] sm:$0xf] }
  0x41   :  { %2206 = vmatpush.bf16.msrb.mxu1 %v5071_v45  ;;  %v5617_v31 = vperm.slane %v1513_v28, 0  ;;  %v5619_v32 = vperm.slane %v1513_v28, 1  ;;  %v5048_v13 = vld [vmem:[#allocation10 + $0xc8] sm:$0xf0] }
  0x42   :  { %2038 = vmatpush.bf16.msrb.mxu0 %v4999_v58  ;;  %v5262_v58 = vld [vmem:[#allocation5 + $0x50] sm:$0xff]  ;;  %v5051_v16 = vor.u32 %v5324_v12, %v5048_v13 }
  0x44   :  { %2376 = vmatpush.bf16.msrb.mxu2 %v5003_v53  ;;  %2545 = vmatpush.bf16.msrb.mxu3 %v5067_v57 }
  0x45   :  { %2207 = vmatpush.bf16.msrb.mxu1 %v5063_v61 }
  0x46   :  { %2039 = vmatpush.bf16.msrb.mxu0 %v4991_v15 }
  0x48   :  { %2377 = vmatpush.bf16.msrb.mxu2 %v4995_v9  ;;  %2546 = vmatpush.bf16.msrb.mxu3 %v5059_v11  ;;  %v5308_v9 = vld [vmem:[#allocation10 + $0x44] sm:$0xf] }
  0x49   :  { %2208 = vmatpush.bf16.msrb.mxu1 %v5055_v18  ;;  %v4987_v11 = vor.u32 %v5308_v9, %v4984_v10 }
  0x4c   :  { %2378 = vmatpush.bf16.msrb.mxu2 %v4987_v11  ;;  %2547 = vmatpush.bf16.msrb.mxu3 %v5051_v16 }
  0x4d   :  { %578 = vmatmul.bf16.gmra.mxu0 %v5253_v46 }
  0x4e   :  { %747 = vmatmul.bf16.gmra.mxu1 %v5253_v46 }
  0x4f   :  { %1188 = vmatmul.bf16.gmra.mxu2 %v5205_v47  ;;  %1357 = vmatmul.bf16.gmra.mxu3 %v5205_v47 }
  0x5d   :  { %583 = vmatmul.bf16.gmra.mxu0 %v5254_v48 }
  0x5e   :  { %752 = vmatmul.bf16.gmra.mxu1 %v5254_v48 }
  0x5f   :  { %1193 = vmatmul.bf16.gmra.mxu2 %v5206_v49  ;;  %1362 = vmatmul.bf16.gmra.mxu3 %v5206_v49 }
  0x6d   :  { %588 = vmatmul.bf16.gmra.mxu0 %v5255_v62 }
  0x6e   :  { %757 = vmatmul.bf16.gmra.mxu1 %v5255_v62 }
  0x6f   :  { %1198 = vmatmul.bf16.gmra.mxu2 %v5207_v63  ;;  %1367 = vmatmul.bf16.gmra.mxu3 %v5207_v63  ;;  %v5214_v63 = vld [vmem:[#allocation3 + $0x50] sm:$0xff] }
  0x7d   :  { %593 = vmatmul.bf16.gmra.mxu0 %v5256_v0 }
  0x7e   :  { %762 = vmatmul.bf16.gmra.mxu1 %v5256_v0 }
  0x7f   :  { %1203 = vmatmul.bf16.gmra.mxu2 %v5208_v1  ;;  %1372 = vmatmul.bf16.gmra.mxu3 %v5208_v1 }
  0x8d   :  { %598 = vmatmul.bf16.gmra.mxu0 %v5257_v2 }
  0x8e   :  { %767 = vmatmul.bf16.gmra.mxu1 %v5257_v2 }
  0x8f   :  { %1208 = vmatmul.bf16.gmra.mxu2 %v5209_v3  ;;  %1377 = vmatmul.bf16.gmra.mxu3 %v5209_v3 }
  0x9d   :  { %603 = vmatmul.bf16.gmra.mxu0 %v5258_v4 }
  0x9e   :  { %772 = vmatmul.bf16.gmra.mxu1 %v5258_v4 }
  0x9f   :  { %1213 = vmatmul.bf16.gmra.mxu2 %v5210_v5  ;;  %1382 = vmatmul.bf16.gmra.mxu3 %v5210_v5 }
  0xad   :  { %608 = vmatmul.bf16.gmra.mxu0 %v5259_v17 }
  0xae   :  { %777 = vmatmul.bf16.gmra.mxu1 %v5259_v17 }
  0xaf   :  { %1218 = vmatmul.bf16.gmra.mxu2 %v5211_v19  ;;  %1387 = vmatmul.bf16.gmra.mxu3 %v5211_v19 }
  0xba   :  { %v574_v21 = vpop.f32.mrf.mxu0 }
  0xbb   :  { %v743_v23 = vpop.f32.mrf.mxu1 }
  0xbd   :  { %613 = vmatmul.bf16.gmra.mxu0 %v5260_v20 }
  0xbe   :  { %782 = vmatmul.bf16.gmra.mxu1 %v5260_v20 }
  0xbf   :  { %1223 = vmatmul.bf16.gmra.mxu2 %v5212_v22  ;;  %1392 = vmatmul.bf16.gmra.mxu3 %v5212_v22 }
  0xc2   :  { %v1184_v24 = vpop.f32.mrf.mxu2  ;;  %v1353_v26 = vpop.f32.mrf.mxu3 }
  0xc3   :  { %v1185_v25 = vadd.f32 %v1184_v24, %v574_v21  ;;  %v576_v27 = vpop.f32.mrf.mxu0  ;;  %v1354_v29 = vadd.f32 %v1353_v26, %v743_v23  ;;  %v745_v30 = vpop.f32.mrf.mxu1  ;;  %v4982_v23 = vld [vmem:[#allocation10 + $0x40] sm:$0xf]  ;;  %v5309_v24 = vld [vmem:[#allocation10 + $0x44] sm:$0xf0] }
  0xc4   :  { %v5046_v26 = vld [vmem:[#allocation10 + $0xc0] sm:$0xf] }
  0xc5   :  { %v1519_v35 = vadd.f32 %v5617_v31, %v1185_v25  ;;  %v1520_v40 = vadd.f32 %v5619_v32, %v1354_v29  ;;  %v4983_v25 = vor.u32 %v5309_v24, %v4982_v23  ;;  %v5263_v29 = vld [vmem:[#allocation5 + $0x58] sm:$0xff] }
  0xc7   :  { %v1647_v45 = vmax.f32 %v1519_v35, 0.0  ;;  %v1648_v47 = vmax.f32 %v1520_v40, 0.0  ;;  %2040 = vmatpush.bf16.msrb.mxu0 %v4983_v25  ;;  %v5217_v25 = vld [vmem:[#allocation3 + $0x68] sm:$0xff] }
  0xca   :  { %v1186_v33 = vpop.f32.mrf.mxu2  ;;  %v1355_v37 = vpop.f32.mrf.mxu3 }
  0xcb   :  { %v1187_v36 = vadd.f32 %v1186_v33, %v576_v27  ;;  %v579_v38 = vpop.f32.mrf.mxu0  ;;  %v1356_v41 = vadd.f32 %v1355_v37, %v745_v30  ;;  %v748_v42 = vpop.f32.mrf.mxu1  ;;  %v5325_v27 = vld [vmem:[#allocation10 + $0xc4] sm:$0xf0]  ;;  %v5215_v37 = vld [vmem:[#allocation3 + $0x58] sm:$0xff] }
  0xcc   :  { %v5047_v30 = vor.u32 %v5325_v27, %v5046_v26 }
  0xcd   :  { %v1521_v43 = vadd.f32 %v5617_v31, %v1187_v36  ;;  %v1522_v44 = vadd.f32 %v5619_v32, %v1356_v41  ;;  %618 = vmatmul.bf16.gmra.mxu0 %v5261_v34 }
  0xce   :  { %787 = vmatmul.bf16.gmra.mxu1 %v5261_v34 }
  0xcf   :  { %v1649_v46 = vmax.f32 %v1521_v43, 0.0  ;;  %1228 = vmatmul.bf16.gmra.mxu2 %v5213_v39  ;;  %v1650_v48 = vmax.f32 %v1522_v44, 0.0  ;;  %1397 = vmatmul.bf16.gmra.mxu3 %v5213_v39 }
  0xd0   :  { %2209 = vmatpush.bf16.msrb.mxu1 %v5047_v30 }
  0xd1   :  { %v5625_v49 = vpack.c.bf16 %v1649_v46, %v1647_v45  ;;  %v5627_v50 = vpack.c.bf16 %v1650_v48, %v1648_v47 }
  0xd2   :  { %v1189_v51 = vpop.f32.mrf.mxu2  ;;  %v1358_v53 = vpop.f32.mrf.mxu3 }
  0xd3   :  { %v1190_v52 = vadd.f32 %v1189_v51, %v579_v38  ;;  %v581_v54 = vpop.f32.mrf.mxu0  ;;  %v1359_v55 = vadd.f32 %v1358_v53, %v748_v42  ;;  %v750_v56 = vpop.f32.mrf.mxu1 }
  0xd5   :  { %v1523_v59 = vadd.f32 %v5617_v31, %v1190_v52  ;;  %v1524_v0 = vadd.f32 %v5619_v32, %v1359_v55 }
  0xd7   :  { %v1651_v5 = vmax.f32 %v1523_v59, 0.0  ;;  %v1652_v7 = vmax.f32 %v1524_v0, 0.0 }
  0xda   :  { %v1191_v57 = vpop.f32.mrf.mxu2  ;;  %v1360_v61 = vpop.f32.mrf.mxu3 }
  0xdb   :  { %v1192_v60 = vadd.f32 %v1191_v57, %v581_v54  ;;  %v584_v62 = vpop.f32.mrf.mxu0  ;;  %v1361_v1 = vadd.f32 %v1360_v61, %v750_v56  ;;  %v753_v2 = vpop.f32.mrf.mxu1 }
  0xdd   :  { %v1525_v3 = vadd.f32 %v5617_v31, %v1192_v60  ;;  %v1526_v4 = vadd.f32 %v5619_v32, %v1361_v1  ;;  %623 = vmatmul.bf16.gmra.mxu0 %v5262_v58 }
  0xde   :  { %792 = vmatmul.bf16.gmra.mxu1 %v5262_v58  ;;  %v5264_v58 = vld [vmem:[#allocation5 + $0x60] sm:$0xff] }
  0xdf   :  { %v1653_v6 = vmax.f32 %v1525_v3, 0.0  ;;  %1233 = vmatmul.bf16.gmra.mxu2 %v5214_v63  ;;  %v1654_v8 = vmax.f32 %v1526_v4, 0.0  ;;  %1402 = vmatmul.bf16.gmra.mxu3 %v5214_v63  ;;  %v5216_v63 = vld [vmem:[#allocation3 + $0x60] sm:$0xff] }
  0xe1   :  { %v5633_v14 = vpack.c.bf16 %v1653_v6, %v1651_v5  ;;  %v5635_v17 = vpack.c.bf16 %v1654_v8, %v1652_v7 }
  0xe2   :  { %v1194_v15 = vpop.f32.mrf.mxu2  ;;  %v1363_v19 = vpop.f32.mrf.mxu3 }
  0xe3   :  { %v1195_v18 = vadd.f32 %v1194_v15, %v584_v62  ;;  %v586_v20 = vpop.f32.mrf.mxu0  ;;  %v1364_v21 = vadd.f32 %v1363_v19, %v753_v2  ;;  %v755_v22 = vpop.f32.mrf.mxu1 }
  0xe5   :  { %v1527_v33 = vadd.f32 %v5617_v31, %v1195_v18  ;;  %v1528_v38 = vadd.f32 %v5619_v32, %v1364_v21 }
  0xe7   :  { %v1655_v43 = vmax.f32 %v1527_v33, 0.0  ;;  %v1656_v45 = vmax.f32 %v1528_v38, 0.0 }
  0xea   :  { %v1196_v28 = vpop.f32.mrf.mxu2  ;;  %v1365_v35 = vpop.f32.mrf.mxu3 }
  0xeb   :  { %v1197_v34 = vadd.f32 %v1196_v28, %v586_v20  ;;  %v589_v36 = vpop.f32.mrf.mxu0  ;;  %v1366_v39 = vadd.f32 %v1365_v35, %v755_v22  ;;  %v758_v40 = vpop.f32.mrf.mxu1  ;;  %v5265_v20 = vld [vmem:[#allocation5 + $0x68] sm:$0xff] }
  0xed   :  { %v1529_v41 = vadd.f32 %v5617_v31, %v1197_v34  ;;  %v1530_v42 = vadd.f32 %v5619_v32, %v1366_v39  ;;  %628 = vmatmul.bf16.gmra.mxu0 %v5263_v29 }
  0xee   :  { %797 = vmatmul.bf16.gmra.mxu1 %v5263_v29 }
  0xef   :  { %v1657_v44 = vmax.f32 %v1529_v41, 0.0  ;;  %1238 = vmatmul.bf16.gmra.mxu2 %v5215_v37  ;;  %v1658_v46 = vmax.f32 %v1530_v42, 0.0  ;;  %1407 = vmatmul.bf16.gmra.mxu3 %v5215_v37 }
  0xf1   :  { %v5641_v47 = vpack.c.bf16 %v1657_v44, %v1655_v43  ;;  %v5643_v51 = vpack.c.bf16 %v1658_v46, %v1656_v45  ;;  %v5266_v46 = vld [vmem:[#allocation5 + $0x70] sm:$0xff] }
  0xf2   :  { %v1199_v48 = vpop.f32.mrf.mxu2  ;;  %v1368_v53 = vpop.f32.mrf.mxu3 }
  0xf3   :  { %v1200_v52 = vadd.f32 %v1199_v48, %v589_v36  ;;  %v591_v54 = vpop.f32.mrf.mxu0  ;;  %v1369_v55 = vadd.f32 %v1368_v53, %v758_v40  ;;  %v760_v56 = vpop.f32.mrf.mxu1 }
  0xf5   :  { %v1531_v59 = vadd.f32 %v5617_v31, %v1200_v52  ;;  %v1532_v0 = vadd.f32 %v5619_v32, %v1369_v55  ;;  %v5218_v55 = vld [vmem:[#allocation3 + $0x70] sm:$0xff] }
  0xf7   :  { %v1659_v5 = vmax.f32 %v1531_v59, 0.0  ;;  %v1660_v7 = vmax.f32 %v1532_v0, 0.0 }
  0xfa   :  { %v1201_v57 = vpop.f32.mrf.mxu2  ;;  %v1370_v61 = vpop.f32.mrf.mxu3 }
  0xfb   :  { %v1202_v60 = vadd.f32 %v1201_v57, %v591_v54  ;;  %v594_v62 = vpop.f32.mrf.mxu0  ;;  %v1371_v1 = vadd.f32 %v1370_v61, %v760_v56  ;;  %v763_v2 = vpop.f32.mrf.mxu1 }
  0xfd   :  { %v1533_v3 = vadd.f32 %v5617_v31, %v1202_v60  ;;  %v1534_v4 = vadd.f32 %v5619_v32, %v1371_v1  ;;  %633 = vmatmul.bf16.gmra.mxu0 %v5264_v58  ;;  %v5306_v1 = vld [vmem:[#allocation10 + $0x34] sm:$0xf] }
  0xfe   :  { %802 = vmatmul.bf16.gmra.mxu1 %v5264_v58 }
  0xff   :  { %v1661_v6 = vmax.f32 %v1533_v3, 0.0  ;;  %1243 = vmatmul.bf16.gmra.mxu2 %v5216_v63  ;;  %v1662_v8 = vmax.f32 %v1534_v4, 0.0  ;;  %1412 = vmatmul.bf16.gmra.mxu3 %v5216_v63  ;;  %v5322_v4 = vld [vmem:[#allocation10 + $0xb4] sm:$0xf] }
 0x101   :  { %v5649_v9 = vpack.c.bf16 %v1661_v6, %v1659_v5  ;;  %v5651_v11 = vpack.c.bf16 %v1662_v8, %v1660_v7  ;;  %v5040_v5 = vld [vmem:[#allocation10 + $0xb8] sm:$0xf0] }
 0x102   :  { %v1204_v10 = vpop.f32.mrf.mxu2  ;;  %v1373_v13 = vpop.f32.mrf.mxu3  ;;  %v5043_v8 = vor.u32 %v5322_v4, %v5040_v5 }
 0x103   :  { %v1205_v12 = vadd.f32 %v1204_v10, %v594_v62  ;;  %v596_v15 = vpop.f32.mrf.mxu0  ;;  %v1374_v16 = vadd.f32 %v1373_v13, %v763_v2  ;;  %v765_v18 = vpop.f32.mrf.mxu1  ;;  %v4976_v2 = vld [vmem:[#allocation10 + $0x38] sm:$0xf0] }
 0x104   :  { %v4979_v3 = vor.u32 %v5306_v1, %v4976_v2  ;;  %2548 = vmatpush.bf16.msrb.mxu3 %v5043_v8 }
 0x105   :  { %v1535_v21 = vadd.f32 %v5617_v31, %v1205_v12  ;;  %v1536_v26 = vadd.f32 %v5619_v32, %v1374_v16 }
 0x106   :  { %2379 = vmatpush.bf16.msrb.mxu2 %v4979_v3 }
 0x107   :  { %v1663_v33 = vmax.f32 %v1535_v21, 0.0  ;;  %v1664_v35 = vmax.f32 %v1536_v26, 0.0 }
 0x10a   :  { %v1206_v19 = vpop.f32.mrf.mxu2  ;;  %v1375_v23 = vpop.f32.mrf.mxu3 }
 0x10b   :  { %v1207_v22 = vadd.f32 %v1206_v19, %v596_v15  ;;  %v599_v24 = vpop.f32.mrf.mxu0  ;;  %v1376_v27 = vadd.f32 %v1375_v23, %v765_v18  ;;  %v768_v28 = vpop.f32.mrf.mxu1  ;;  %v4974_v19 = vld [vmem:[#allocation10 + $0x30] sm:$0xf]  ;;  %v5323_v23 = vld [vmem:[#allocation10 + $0xb4] sm:$0xf0] }
 0x10d   :  { %v1537_v29 = vadd.f32 %v5617_v31, %v1207_v22  ;;  %v1538_v30 = vadd.f32 %v5619_v32, %v1376_v27  ;;  %638 = vmatmul.bf16.gmra.mxu0 %v5265_v20  ;;  %v5038_v22 = vld [vmem:[#allocation10 + $0xb0] sm:$0xf] }
 0x10e   :  { %807 = vmatmul.bf16.gmra.mxu1 %v5265_v20  ;;  %v5307_v20 = vld [vmem:[#allocation10 + $0x34] sm:$0xf0]  ;;  %v5039_v26 = vor.u32 %v5323_v23, %v5038_v22 }
 0x10f   :  { %v1665_v34 = vmax.f32 %v1537_v29, 0.0  ;;  %1248 = vmatmul.bf16.gmra.mxu2 %v5217_v25  ;;  %v1666_v36 = vmax.f32 %v1538_v30, 0.0  ;;  %1417 = vmatmul.bf16.gmra.mxu3 %v5217_v25  ;;  %v4975_v21 = vor.u32 %v5307_v20, %v4974_v19  ;;  %v5267_v25 = vld [vmem:[#allocation5 + $0x78] sm:$0xff] }
 0x110   :  { %2210 = vmatpush.bf16.msrb.mxu1 %v5039_v26 }
 0x111   :  { %v5657_v37 = vpack.c.bf16 %v1665_v34, %v1663_v33  ;;  %v5659_v39 = vpack.c.bf16 %v1666_v36, %v1664_v35  ;;  %v5219_v33 = vld [vmem:[#allocation3 + $0x78] sm:$0xff]  ;;  %2041 = vmatpush.bf16.msrb.mxu0 %v4975_v21 }
 0x112   :  { %v1209_v38 = vpop.f32.mrf.mxu2  ;;  %v1378_v41 = vpop.f32.mrf.mxu3 }
 0x113   :  { %v1210_v40 = vadd.f32 %v1209_v38, %v599_v24  ;;  %v601_v42 = vpop.f32.mrf.mxu0  ;;  %v1379_v43 = vadd.f32 %v1378_v41, %v768_v28  ;;  %v770_v44 = vpop.f32.mrf.mxu1 }
 0x115   :  { %v1539_v48 = vadd.f32 %v5617_v31, %v1210_v40  ;;  %v1540_v56 = vadd.f32 %v5619_v32, %v1379_v43 }
 0x117   :  { %v1667_v61 = vmax.f32 %v1539_v48, 0.0  ;;  %v1668_v63 = vmax.f32 %v1540_v56, 0.0 }
 0x11a   :  { %v1211_v45 = vpop.f32.mrf.mxu2  ;;  %v1380_v53 = vpop.f32.mrf.mxu3 }
 0x11b   :  { %v1212_v52 = vadd.f32 %v1211_v45, %v601_v42  ;;  %v604_v54 = vpop.f32.mrf.mxu0  ;;  %v1381_v57 = vadd.f32 %v1380_v53, %v770_v44  ;;  %v773_v58 = vpop.f32.mrf.mxu1 }
 0x11d   :  { %v1541_v59 = vadd.f32 %v5617_v31, %v1212_v52  ;;  %v1542_v60 = vadd.f32 %v5619_v32, %v1381_v57  ;;  %643 = vmatmul.bf16.gmra.mxu0 %v5266_v46 }
 0x11e   :  { %812 = vmatmul.bf16.gmra.mxu1 %v5266_v46 }
 0x11f   :  { %v1669_v62 = vmax.f32 %v1541_v59, 0.0  ;;  %1253 = vmatmul.bf16.gmra.mxu2 %v5218_v55  ;;  %v1670_v0 = vmax.f32 %v1542_v60, 0.0  ;;  %1422 = vmatmul.bf16.gmra.mxu3 %v5218_v55 }
 0x121   :  { %v5665_v6 = vpack.c.bf16 %v1669_v62, %v1667_v61  ;;  %v5667_v10 = vpack.c.bf16 %v1670_v0, %v1668_v63  ;;  %v5220_v63 = vld [vmem:[#allocation3 + $0x80] sm:$0xff] }
 0x122   :  { %v1214_v7 = vpop.f32.mrf.mxu2  ;;  %v1383_v13 = vpop.f32.mrf.mxu3 }
 0x123   :  { %v1215_v12 = vadd.f32 %v1214_v7, %v604_v54  ;;  %v606_v15 = vpop.f32.mrf.mxu0  ;;  %v1384_v16 = vadd.f32 %v1383_v13, %v773_v58  ;;  %v775_v18 = vpop.f32.mrf.mxu1  ;;  %v5268_v58 = vld [vmem:[#allocation5 + $0x80] sm:$0xff] }
 0x125   :  { %v1543_v27 = vadd.f32 %v5617_v31, %v1215_v12  ;;  %v1544_v34 = vadd.f32 %v5619_v32, %v1384_v16 }
 0x127   :  { %v1671_v41 = vmax.f32 %v1543_v27, 0.0  ;;  %v1672_v43 = vmax.f32 %v1544_v34, 0.0 }
 0x12a   :  { %v1216_v24 = vpop.f32.mrf.mxu2  ;;  %v1385_v29 = vpop.f32.mrf.mxu3 }
 0x12b   :  { %v1217_v28 = vadd.f32 %v1216_v24, %v606_v15  ;;  %v609_v30 = vpop.f32.mrf.mxu0  ;;  %v1386_v35 = vadd.f32 %v1385_v29, %v775_v18  ;;  %v778_v36 = vpop.f32.mrf.mxu1  ;;  %v5269_v24 = vld [vmem:[#allocation5 + $0x88] sm:$0xff] }
 0x12c   :  { %v5221_v29 = vld [vmem:[#allocation3 + $0x88] sm:$0xff] }
 0x12d   :  { %v1545_v38 = vadd.f32 %v5617_v31, %v1217_v28  ;;  %v1546_v40 = vadd.f32 %v5619_v32, %v1386_v35  ;;  %648 = vmatmul.bf16.gmra.mxu0 %v5267_v25 }
 0x12e   :  { %817 = vmatmul.bf16.gmra.mxu1 %v5267_v25 }
 0x12f   :  { %v1673_v42 = vmax.f32 %v1545_v38, 0.0  ;;  %1258 = vmatmul.bf16.gmra.mxu2 %v5219_v33  ;;  %v1674_v44 = vmax.f32 %v1546_v40, 0.0  ;;  %1427 = vmatmul.bf16.gmra.mxu3 %v5219_v33 }
 0x131   :  { %v5673_v45 = vpack.c.bf16 %v1673_v42, %v1671_v41  ;;  %v5675_v48 = vpack.c.bf16 %v1674_v44, %v1672_v43 }
 0x132   :  { %v1219_v46 = vpop.f32.mrf.mxu2  ;;  %v1388_v53 = vpop.f32.mrf.mxu3 }
 0x133   :  { %v1220_v52 = vadd.f32 %v1219_v46, %v609_v30  ;;  %v611_v54 = vpop.f32.mrf.mxu0  ;;  %v1389_v55 = vadd.f32 %v1388_v53, %v778_v36  ;;  %v780_v56 = vpop.f32.mrf.mxu1 }
 0x135   :  { %v1547_v59 = vadd.f32 %v5617_v31, %v1220_v52  ;;  %v1548_v0 = vadd.f32 %v5619_v32, %v1389_v55 }
 0x137   :  { %v1675_v5 = vmax.f32 %v1547_v59, 0.0  ;;  %v1676_v8 = vmax.f32 %v1548_v0, 0.0 }
 0x13a   :  { %v1221_v57 = vpop.f32.mrf.mxu2  ;;  %v1390_v61 = vpop.f32.mrf.mxu3 }
 0x13b   :  { %v1222_v60 = vadd.f32 %v1221_v57, %v611_v54  ;;  %v614_v62 = vpop.f32.mrf.mxu0  ;;  %v1391_v1 = vadd.f32 %v1390_v61, %v780_v56  ;;  %v783_v2 = vpop.f32.mrf.mxu1 }
 0x13d   :  { %v1549_v3 = vadd.f32 %v5617_v31, %v1222_v60  ;;  %v1550_v4 = vadd.f32 %v5619_v32, %v1391_v1  ;;  %653 = vmatmul.bf16.gmra.mxu0 %v5268_v58 }
 0x13e   :  { %822 = vmatmul.bf16.gmra.mxu1 %v5268_v58  ;;  %v5270_v58 = vld [vmem:[#allocation5 + $0x90] sm:$0xff] }
 0x13f   :  { %v1677_v7 = vmax.f32 %v1549_v3, 0.0  ;;  %1263 = vmatmul.bf16.gmra.mxu2 %v5220_v63  ;;  %v1678_v12 = vmax.f32 %v1550_v4, 0.0  ;;  %1432 = vmatmul.bf16.gmra.mxu3 %v5220_v63  ;;  %v5222_v63 = vld [vmem:[#allocation3 + $0x90] sm:$0xff] }
 0x141   :  { %v5681_v13 = vpack.c.bf16 %v1677_v7, %v1675_v5  ;;  %v5683_v16 = vpack.c.bf16 %v1678_v12, %v1676_v8 }
 0x142   :  { %v1224_v15 = vpop.f32.mrf.mxu2  ;;  %v1393_v19 = vpop.f32.mrf.mxu3 }
 0x143   :  { %v1225_v18 = vadd.f32 %v1224_v15, %v614_v62  ;;  %v616_v20 = vpop.f32.mrf.mxu0  ;;  %v1394_v21 = vadd.f32 %v1393_v19, %v783_v2  ;;  %v785_v22 = vpop.f32.mrf.mxu1  ;;  %v5304_v15 = vld [vmem:[#allocation10 + $0x24] sm:$0xf] }
 0x145   :  { %v1551_v25 = vadd.f32 %v5617_v31, %v1225_v18  ;;  %v1552_v30 = vadd.f32 %v5619_v32, %v1394_v21  ;;  %v4968_v18 = vld [vmem:[#allocation10 + $0x28] sm:$0xf0] }
 0x146   :  { %v4971_v19 = vor.u32 %v5304_v15, %v4968_v18  ;;  %v5032_v21 = vld [vmem:[#allocation10 + $0xa8] sm:$0xf0]  ;;  %v5272_v18 = vld [vmem:[#allocation5 + $0xa0] sm:$0xff] }
 0x147   :  { %v1679_v38 = vmax.f32 %v1551_v25, 0.0  ;;  %v1680_v41 = vmax.f32 %v1552_v30, 0.0 }
 0x148   :  { %2380 = vmatpush.bf16.msrb.mxu2 %v4971_v19 }
 0x14a   :  { %v1226_v23 = vpop.f32.mrf.mxu2  ;;  %v1395_v27 = vpop.f32.mrf.mxu3 }
 0x14b   :  { %v1227_v26 = vadd.f32 %v1226_v23, %v616_v20  ;;  %v619_v28 = vpop.f32.mrf.mxu0  ;;  %v1396_v33 = vadd.f32 %v1395_v27, %v785_v22  ;;  %v788_v34 = vpop.f32.mrf.mxu1  ;;  %v5320_v20 = vld [vmem:[#allocation10 + $0xa4] sm:$0xf] }
 0x14d   :  { %v1553_v35 = vadd.f32 %v5617_v31, %v1227_v26  ;;  %v1554_v36 = vadd.f32 %v5619_v32, %v1396_v33  ;;  %658 = vmatmul.bf16.gmra.mxu0 %v5269_v24  ;;  %v4966_v33 = vld [vmem:[#allocation10 + $0x20] sm:$0xf] }
 0x14e   :  { %827 = vmatmul.bf16.gmra.mxu1 %v5269_v24  ;;  %v5035_v24 = vor.u32 %v5320_v20, %v5032_v21 }
 0x14f   :  { %v1681_v40 = vmax.f32 %v1553_v35, 0.0  ;;  %1268 = vmatmul.bf16.gmra.mxu2 %v5221_v29  ;;  %v1682_v42 = vmax.f32 %v1554_v36, 0.0  ;;  %1437 = vmatmul.bf16.gmra.mxu3 %v5221_v29  ;;  %v5030_v36 = vld [vmem:[#allocation10 + $0xa0] sm:$0xf] }
 0x150   :  { %2549 = vmatpush.bf16.msrb.mxu3 %v5035_v24  ;;  %v5224_v24 = vld [vmem:[#allocation3 + $0xa0] sm:$0xff] }
 0x151   :  { %v5689_v43 = vpack.c.bf16 %v1681_v40, %v1679_v38  ;;  %v5691_v46 = vpack.c.bf16 %v1682_v42, %v1680_v41  ;;  %v5321_v38 = vld [vmem:[#allocation10 + $0xa4] sm:$0xf0]  ;;  %v5271_v41 = vld [vmem:[#allocation5 + $0x98] sm:$0xff] }
 0x152   :  { %v1229_v44 = vpop.f32.mrf.mxu2  ;;  %v1398_v53 = vpop.f32.mrf.mxu3  ;;  %v5031_v42 = vor.u32 %v5321_v38, %v5030_v36 }
 0x153   :  { %v1230_v52 = vadd.f32 %v1229_v44, %v619_v28  ;;  %v621_v54 = vpop.f32.mrf.mxu0  ;;  %v1399_v55 = vadd.f32 %v1398_v53, %v788_v34  ;;  %v790_v56 = vpop.f32.mrf.mxu1  ;;  %v5305_v34 = vld [vmem:[#allocation10 + $0x24] sm:$0xf0] }
 0x154   :  { %v4967_v35 = vor.u32 %v5305_v34, %v4966_v33  ;;  %2211 = vmatpush.bf16.msrb.mxu1 %v5031_v42 }
 0x155   :  { %v1555_v59 = vadd.f32 %v5617_v31, %v1230_v52  ;;  %v1556_v0 = vadd.f32 %v5619_v32, %v1399_v55  ;;  %v5223_v55 = vld [vmem:[#allocation3 + $0x98] sm:$0xff] }
 0x156   :  { %2042 = vmatpush.bf16.msrb.mxu0 %v4967_v35 }
 0x157   :  { %v1683_v5 = vmax.f32 %v1555_v59, 0.0  ;;  %v1684_v8 = vmax.f32 %v1556_v0, 0.0 }
 0x15a   :  { %v1231_v57 = vpop.f32.mrf.mxu2  ;;  %v1400_v61 = vpop.f32.mrf.mxu3 }
 0x15b   :  { %v1232_v60 = vadd.f32 %v1231_v57, %v621_v54  ;;  %v624_v62 = vpop.f32.mrf.mxu0  ;;  %v1401_v1 = vadd.f32 %v1400_v61, %v790_v56  ;;  %v793_v2 = vpop.f32.mrf.mxu1 }
 0x15d   :  { %v1557_v3 = vadd.f32 %v5617_v31, %v1232_v60  ;;  %v1558_v4 = vadd.f32 %v5619_v32, %v1401_v1  ;;  %663 = vmatmul.bf16.gmra.mxu0 %v5270_v58 }
 0x15e   :  { %832 = vmatmul.bf16.gmra.mxu1 %v5270_v58 }
 0x15f   :  { %v1685_v7 = vmax.f32 %v1557_v3, 0.0  ;;  %1273 = vmatmul.bf16.gmra.mxu2 %v5222_v63  ;;  %v1686_v12 = vmax.f32 %v1558_v4, 0.0  ;;  %1442 = vmatmul.bf16.gmra.mxu3 %v5222_v63 }
 0x161   :  { %v5697_v22 = vpack.c.bf16 %v1685_v7, %v1683_v5  ;;  %v5699_v25 = vpack.c.bf16 %v1686_v12, %v1684_v8 }
 0x162   :  { %v1234_v23 = vpop.f32.mrf.mxu2  ;;  %v1403_v27 = vpop.f32.mrf.mxu3 }
 0x163   :  { %v1235_v26 = vadd.f32 %v1234_v23, %v624_v62  ;;  %v626_v28 = vpop.f32.mrf.mxu0  ;;  %v1404_v29 = vadd.f32 %v1403_v27, %v793_v2  ;;  %v795_v30 = vpop.f32.mrf.mxu1 }
 0x165   :  { %v1559_v44 = vadd.f32 %v5617_v31, %v1235_v26  ;;  %v1560_v56 = vadd.f32 %v5619_v32, %v1404_v29 }
 0x167   :  { %v1687_v61 = vmax.f32 %v1559_v44, 0.0  ;;  %v1688_v63 = vmax.f32 %v1560_v56, 0.0  ;;  %v5273_v56 = vld [vmem:[#allocation5 + $0xa8] sm:$0xff] }
 0x16a   :  { %v1236_v40 = vpop.f32.mrf.mxu2  ;;  %v1405_v53 = vpop.f32.mrf.mxu3 }
 0x16b   :  { %v1237_v52 = vadd.f32 %v1236_v40, %v626_v28  ;;  %v629_v54 = vpop.f32.mrf.mxu0  ;;  %v1406_v57 = vadd.f32 %v1405_v53, %v795_v30  ;;  %v798_v58 = vpop.f32.mrf.mxu1 }
 0x16d   :  { %v1561_v59 = vadd.f32 %v5617_v31, %v1237_v52  ;;  %v1562_v60 = vadd.f32 %v5619_v32, %v1406_v57  ;;  %668 = vmatmul.bf16.gmra.mxu0 %v5271_v41 }
 0x16e   :  { %837 = vmatmul.bf16.gmra.mxu1 %v5271_v41 }
 0x16f   :  { %v1689_v62 = vmax.f32 %v1561_v59, 0.0  ;;  %1278 = vmatmul.bf16.gmra.mxu2 %v5223_v55  ;;  %v1690_v0 = vmax.f32 %v1562_v60, 0.0  ;;  %1447 = vmatmul.bf16.gmra.mxu3 %v5223_v55 }
 0x171   :  { %v5705_v1 = vpack.c.bf16 %v1689_v62, %v1687_v61  ;;  %v5707_v3 = vpack.c.bf16 %v1690_v0, %v1688_v63  ;;  %v5225_v61 = vld [vmem:[#allocation3 + $0xa8] sm:$0xff] }
 0x172   :  { %v1239_v2 = vpop.f32.mrf.mxu2  ;;  %v1408_v5 = vpop.f32.mrf.mxu3 }
 0x173   :  { %v1240_v4 = vadd.f32 %v1239_v2, %v629_v54  ;;  %v631_v7 = vpop.f32.mrf.mxu0  ;;  %v1409_v8 = vadd.f32 %v1408_v5, %v798_v58  ;;  %v800_v12 = vpop.f32.mrf.mxu1 }
 0x175   :  { %v1563_v19 = vadd.f32 %v5617_v31, %v1240_v4  ;;  %v1564_v26 = vadd.f32 %v5619_v32, %v1409_v8 }
 0x177   :  { %v1691_v33 = vmax.f32 %v1563_v19, 0.0  ;;  %v1692_v35 = vmax.f32 %v1564_v26, 0.0 }
 0x17a   :  { %v1241_v15 = vpop.f32.mrf.mxu2  ;;  %v1410_v21 = vpop.f32.mrf.mxu3 }
 0x17b   :  { %v1242_v20 = vadd.f32 %v1241_v15, %v631_v7  ;;  %v634_v23 = vpop.f32.mrf.mxu0  ;;  %v1411_v27 = vadd.f32 %v1410_v21, %v800_v12  ;;  %v803_v28 = vpop.f32.mrf.mxu1 }
 0x17d   :  { %v1565_v29 = vadd.f32 %v5617_v31, %v1242_v20  ;;  %v1566_v30 = vadd.f32 %v5619_v32, %v1411_v27  ;;  %673 = vmatmul.bf16.gmra.mxu0 %v5272_v18 }
 0x17e   :  { %842 = vmatmul.bf16.gmra.mxu1 %v5272_v18 }
 0x17f   :  { %v1693_v34 = vmax.f32 %v1565_v29, 0.0  ;;  %1283 = vmatmul.bf16.gmra.mxu2 %v5224_v24  ;;  %v1694_v36 = vmax.f32 %v1566_v30, 0.0  ;;  %1452 = vmatmul.bf16.gmra.mxu3 %v5224_v24 }
 0x181   :  { %v5713_v38 = vpack.c.bf16 %v1693_v34, %v1691_v33  ;;  %v5715_v41 = vpack.c.bf16 %v1694_v36, %v1692_v35  ;;  %v5226_v35 = vld [vmem:[#allocation3 + $0xb0] sm:$0xff] }
 0x182   :  { %v1244_v40 = vpop.f32.mrf.mxu2  ;;  %v1413_v44 = vpop.f32.mrf.mxu3 }
 0x183   :  { %v1245_v42 = vadd.f32 %v1244_v40, %v634_v23  ;;  %v636_v52 = vpop.f32.mrf.mxu0  ;;  %v1414_v53 = vadd.f32 %v1413_v44, %v803_v28  ;;  %v805_v54 = vpop.f32.mrf.mxu1  ;;  %v5274_v28 = vld [vmem:[#allocation5 + $0xb0] sm:$0xff] }
 0x185   :  { %v1567_v57 = vadd.f32 %v5617_v31, %v1245_v42  ;;  %v1568_v62 = vadd.f32 %v5619_v32, %v1414_v53 }
 0x187   :  { %v1695_v5 = vmax.f32 %v1567_v57, 0.0  ;;  %v1696_v8 = vmax.f32 %v1568_v62, 0.0  ;;  %v5302_v57 = vld [vmem:[#allocation10 + $0x14] sm:$0xf] }
 0x18a   :  { %v1246_v55 = vpop.f32.mrf.mxu2  ;;  %v1415_v59 = vpop.f32.mrf.mxu3 }
 0x18b   :  { %v1247_v58 = vadd.f32 %v1246_v55, %v636_v52  ;;  %v639_v60 = vpop.f32.mrf.mxu0  ;;  %v1416_v63 = vadd.f32 %v1415_v59, %v805_v54  ;;  %v808_v0 = vpop.f32.mrf.mxu1 }
 0x18d   :  { %v1569_v2 = vadd.f32 %v5617_v31, %v1247_v58  ;;  %v1570_v4 = vadd.f32 %v5619_v32, %v1416_v63  ;;  %678 = vmatmul.bf16.gmra.mxu0 %v5273_v56  ;;  %v4960_v58 = vld [vmem:[#allocation10 + $0x18] sm:$0xf0] }
 0x18e   :  { %847 = vmatmul.bf16.gmra.mxu1 %v5273_v56  ;;  %v4963_v59 = vor.u32 %v5302_v57, %v4960_v58 }
 0x18f   :  { %v1697_v7 = vmax.f32 %v1569_v2, 0.0  ;;  %1288 = vmatmul.bf16.gmra.mxu2 %v5225_v61  ;;  %v1698_v12 = vmax.f32 %v1570_v4, 0.0  ;;  %1457 = vmatmul.bf16.gmra.mxu3 %v5225_v61  ;;  %v5024_v61 = vld [vmem:[#allocation10 + $0x98] sm:$0xf0] }
 0x190   :  { %2381 = vmatpush.bf16.msrb.mxu2 %v4963_v59 }
 0x191   :  { %v5721_v15 = vpack.c.bf16 %v1697_v7, %v1695_v5  ;;  %v5723_v19 = vpack.c.bf16 %v1698_v12, %v1696_v8 }
 0x192   :  { %v1249_v18 = vpop.f32.mrf.mxu2  ;;  %v1418_v21 = vpop.f32.mrf.mxu3 }
 0x193   :  { %v1250_v20 = vadd.f32 %v1249_v18, %v639_v60  ;;  %v641_v23 = vpop.f32.mrf.mxu0  ;;  %v1419_v24 = vadd.f32 %v1418_v21, %v808_v0  ;;  %v810_v26 = vpop.f32.mrf.mxu1  ;;  %v5318_v60 = vld [vmem:[#allocation10 + $0x94] sm:$0xf]  ;;  %v4958_v18 = vld [vmem:[#allocation10 + $0x10] sm:$0xf] }
 0x194   :  { %v5027_v0 = vor.u32 %v5318_v60, %v5024_v61 }
 0x195   :  { %v1571_v29 = vadd.f32 %v5617_v31, %v1250_v20  ;;  %v1572_v36 = vadd.f32 %v5619_v32, %v1419_v24  ;;  %v5303_v20 = vld [vmem:[#allocation10 + $0x14] sm:$0xf0] }
 0x196   :  { %2550 = vmatpush.bf16.msrb.mxu3 %v5027_v0  ;;  %v4959_v21 = vor.u32 %v5303_v20, %v4958_v18  ;;  %v5319_v24 = vld [vmem:[#allocation10 + $0x94] sm:$0xf0] }
 0x197   :  { %v1699_v53 = vmax.f32 %v1571_v29, 0.0  ;;  %v1700_v55 = vmax.f32 %v1572_v36, 0.0 }
 0x198   :  { %2043 = vmatpush.bf16.msrb.mxu0 %v4959_v21  ;;  %v5228_v21 = vld [vmem:[#allocation3 + $0xc0] sm:$0xff] }
 0x19a   :  { %v1251_v27 = vpop.f32.mrf.mxu2  ;;  %v1420_v33 = vpop.f32.mrf.mxu3 }
 0x19b   :  { %v1252_v30 = vadd.f32 %v1251_v27, %v641_v23  ;;  %v644_v34 = vpop.f32.mrf.mxu0  ;;  %v1421_v40 = vadd.f32 %v1420_v33, %v810_v26  ;;  %v813_v42 = vpop.f32.mrf.mxu1  ;;  %v5022_v23 = vld [vmem:[#allocation10 + $0x90] sm:$0xf]  ;;  %v5275_v27 = vld [vmem:[#allocation5 + $0xb8] sm:$0xff] }
 0x19d   :  { %v1573_v44 = vadd.f32 %v5617_v31, %v1252_v30  ;;  %v1574_v52 = vadd.f32 %v5619_v32, %v1421_v40  ;;  %683 = vmatmul.bf16.gmra.mxu0 %v5274_v28 }
 0x19e   :  { %852 = vmatmul.bf16.gmra.mxu1 %v5274_v28  ;;  %v5023_v28 = vor.u32 %v5319_v24, %v5022_v23 }
 0x19f   :  { %v1701_v54 = vmax.f32 %v1573_v44, 0.0  ;;  %1293 = vmatmul.bf16.gmra.mxu2 %v5226_v35  ;;  %v1702_v56 = vmax.f32 %v1574_v52, 0.0  ;;  %1462 = vmatmul.bf16.gmra.mxu3 %v5226_v35 }
 0x1a0   :  { %2212 = vmatpush.bf16.msrb.mxu1 %v5023_v28 }
 0x1a1   :  { %v5729_v62 = vpack.c.bf16 %v1701_v54, %v1699_v53  ;;  %v5731_v2 = vpack.c.bf16 %v1702_v56, %v1700_v55 }
 0x1a2   :  { %v1254_v63 = vpop.f32.mrf.mxu2  ;;  %v1423_v5 = vpop.f32.mrf.mxu3 }
 0x1a3   :  { %v1255_v4 = vadd.f32 %v1254_v63, %v644_v34  ;;  %v646_v7 = vpop.f32.mrf.mxu0  ;;  %v1424_v8 = vadd.f32 %v1423_v5, %v813_v42  ;;  %v815_v12 = vpop.f32.mrf.mxu1  ;;  %v5227_v34 = vld [vmem:[#allocation3 + $0xb8] sm:$0xff] }
 0x1a5   :  { %v1575_v29 = vadd.f32 %v5617_v31, %v1255_v4  ;;  %v1576_v36 = vadd.f32 %v5619_v32, %v1424_v8 }
 0x1a7   :  { %v1703_v53 = vmax.f32 %v1575_v29, 0.0  ;;  %v1704_v55 = vmax.f32 %v1576_v36, 0.0 }
 0x1aa   :  { %v1256_v26 = vpop.f32.mrf.mxu2  ;;  %v1425_v33 = vpop.f32.mrf.mxu3 }
 0x1ab   :  { %v1257_v30 = vadd.f32 %v1256_v26, %v646_v7  ;;  %v649_v35 = vpop.f32.mrf.mxu0  ;;  %v1426_v40 = vadd.f32 %v1425_v33, %v815_v12  ;;  %v818_v42 = vpop.f32.mrf.mxu1  ;;  %v5276_v7 = vld [vmem:[#allocation5 + $0xc0] sm:$0xff] }
 0x1ad   :  { %v1577_v44 = vadd.f32 %v5617_v31, %v1257_v30  ;;  %v1578_v52 = vadd.f32 %v5619_v32, %v1426_v40  ;;  %688 = vmatmul.bf16.gmra.mxu0 %v5275_v27 }
 0x1ae   :  { %857 = vmatmul.bf16.gmra.mxu1 %v5275_v27 }
 0x1af   :  { %v1705_v54 = vmax.f32 %v1577_v44, 0.0  ;;  %1298 = vmatmul.bf16.gmra.mxu2 %v5227_v34  ;;  %v1706_v56 = vmax.f32 %v1578_v52, 0.0  ;;  %1467 = vmatmul.bf16.gmra.mxu3 %v5227_v34 }
 0x1b1   :  { %v5737_v57 = vpack.c.bf16 %v1705_v54, %v1703_v53  ;;  %v5739_v59 = vpack.c.bf16 %v1706_v56, %v1704_v55  ;;  %v5277_v56 = vld [vmem:[#allocation5 + $0xc8] sm:$0xff] }
 0x1b2   :  { %v1259_v58 = vpop.f32.mrf.mxu2  ;;  %v1428_v61 = vpop.f32.mrf.mxu3 }
 0x1b3   :  { %v1260_v60 = vadd.f32 %v1259_v58, %v649_v35  ;;  %v651_v63 = vpop.f32.mrf.mxu0  ;;  %v1429_v0 = vadd.f32 %v1428_v61, %v818_v42  ;;  %v820_v4 = vpop.f32.mrf.mxu1 }
 0x1b5   :  { %v1579_v8 = vadd.f32 %v5617_v31, %v1260_v60  ;;  %v1580_v23 = vadd.f32 %v5619_v32, %v1429_v0  ;;  %v5229_v0 = vld [vmem:[#allocation3 + $0xc8] sm:$0xff] }
 0x1b7   :  { %v1707_v29 = vmax.f32 %v1579_v8, 0.0  ;;  %v1708_v33 = vmax.f32 %v1580_v23, 0.0 }
 0x1ba   :  { %v1261_v5 = vpop.f32.mrf.mxu2  ;;  %v1430_v18 = vpop.f32.mrf.mxu3 }
 0x1bb   :  { %v1262_v12 = vadd.f32 %v1261_v5, %v651_v63  ;;  %v654_v20 = vpop.f32.mrf.mxu0  ;;  %v1431_v24 = vadd.f32 %v1430_v18, %v820_v4  ;;  %v823_v26 = vpop.f32.mrf.mxu1 }
 0x1bd   :  { %v1581_v27 = vadd.f32 %v5617_v31, %v1262_v12  ;;  %v1582_v28 = vadd.f32 %v5619_v32, %v1431_v24  ;;  %693 = vmatmul.bf16.gmra.mxu0 %v5276_v7 }
 0x1be   :  { %862 = vmatmul.bf16.gmra.mxu1 %v5276_v7 }
 0x1bf   :  { %v1709_v30 = vmax.f32 %v1581_v27, 0.0  ;;  %1303 = vmatmul.bf16.gmra.mxu2 %v5228_v21  ;;  %v1710_v35 = vmax.f32 %v1582_v28, 0.0  ;;  %1472 = vmatmul.bf16.gmra.mxu3 %v5228_v21 }
 0x1c1   :  { %v5745_v34 = vpack.c.bf16 %v1709_v30, %v1707_v29  ;;  %v5747_v40 = vpack.c.bf16 %v1710_v35, %v1708_v33 }
 0x1c2   :  { %v1264_v36 = vpop.f32.mrf.mxu2  ;;  %v1433_v44 = vpop.f32.mrf.mxu3 }
 0x1c3   :  { %v1265_v42 = vadd.f32 %v1264_v36, %v654_v20  ;;  %v656_v52 = vpop.f32.mrf.mxu0  ;;  %v1434_v53 = vadd.f32 %v1433_v44, %v823_v26  ;;  %v825_v54 = vpop.f32.mrf.mxu1 }
 0x1c5   :  { %v1583_v58 = vadd.f32 %v5617_v31, %v1265_v42  ;;  %v1584_v4 = vadd.f32 %v5619_v32, %v1434_v53  ;;  %v5278_v42 = vld [vmem:[#allocation5 + $0xd0] sm:$0xff] }
 0x1c7   :  { %v1711_v18 = vmax.f32 %v1583_v58, 0.0  ;;  %v1712_v21 = vmax.f32 %v1584_v4, 0.0 }
 0x1ca   :  { %v1266_v55 = vpop.f32.mrf.mxu2  ;;  %v1435_v61 = vpop.f32.mrf.mxu3 }
 0x1cb   :  { %v1267_v60 = vadd.f32 %v1266_v55, %v656_v52  ;;  %v659_v63 = vpop.f32.mrf.mxu0  ;;  %v1436_v5 = vadd.f32 %v1435_v61, %v825_v54  ;;  %v828_v7 = vpop.f32.mrf.mxu1  ;;  %v5230_v55 = vld [vmem:[#allocation3 + $0xd0] sm:$0xff] }
 0x1cd   :  { %v1585_v8 = vadd.f32 %v5617_v31, %v1267_v60  ;;  %v1586_v12 = vadd.f32 %v5619_v32, %v1436_v5  ;;  %698 = vmatmul.bf16.gmra.mxu0 %v5277_v56 }
 0x1ce   :  { %867 = vmatmul.bf16.gmra.mxu1 %v5277_v56 }
 0x1cf   :  { %v1713_v20 = vmax.f32 %v1585_v8, 0.0  ;;  %1308 = vmatmul.bf16.gmra.mxu2 %v5229_v0  ;;  %v1714_v23 = vmax.f32 %v1586_v12, 0.0  ;;  %1477 = vmatmul.bf16.gmra.mxu3 %v5229_v0  ;;  %v5300_v8 = vld [vmem:[#allocation10 + $0x4] sm:$0xf]  ;;  %v4952_v12 = vld [vmem:[#allocation10 + $0x8] sm:$0xf0] }
 0x1d1   :  { %v5753_v24 = vpack.c.bf16 %v1713_v20, %v1711_v18  ;;  %v5755_v27 = vpack.c.bf16 %v1714_v23, %v1712_v21  ;;  %v4955_v18 = vor.u32 %v5300_v8, %v4952_v12  ;;  %v5316_v20 = vld [vmem:[#allocation10 + $0x84] sm:$0xf]  ;;  %v5016_v21 = vld [vmem:[#allocation10 + $0x88] sm:$0xf0] }
 0x1d2   :  { %v1269_v26 = vpop.f32.mrf.mxu2  ;;  %v1438_v29 = vpop.f32.mrf.mxu3 }
 0x1d3   :  { %v1270_v28 = vadd.f32 %v1269_v26, %v659_v63  ;;  %v661_v30 = vpop.f32.mrf.mxu0  ;;  %v1439_v33 = vadd.f32 %v1438_v29, %v828_v7  ;;  %v830_v35 = vpop.f32.mrf.mxu1  ;;  %2382 = vmatpush.bf16.msrb.mxu2 %v4955_v18 }
 0x1d5   :  { %v1587_v44 = vadd.f32 %v5617_v31, %v1270_v28  ;;  %v1588_v56 = vadd.f32 %v5619_v32, %v1439_v33  ;;  %v5019_v28 = vor.u32 %v5316_v20, %v5016_v21 }
 0x1d7   :  { %v1715_v0 = vmax.f32 %v1587_v44, 0.0  ;;  %v1716_v5 = vmax.f32 %v1588_v56, 0.0  ;;  %2551 = vmatpush.bf16.msrb.mxu3 %v5019_v28  ;;  %v4950_v44 = vld [vmem:[#allocation10] sm:$0xf]  ;;  %v5317_v56 = vld [vmem:[#allocation10 + $0x84] sm:$0xf0] }
 0x1da   :  { %v1271_v36 = vpop.f32.mrf.mxu2  ;;  %v1440_v53 = vpop.f32.mrf.mxu3 }
 0x1db   :  { %v1272_v52 = vadd.f32 %v1271_v36, %v661_v30  ;;  %v664_v54 = vpop.f32.mrf.mxu0  ;;  %v1441_v58 = vadd.f32 %v1440_v53, %v830_v35  ;;  %v833_v60 = vpop.f32.mrf.mxu1 }
 0x1dd   :  { %v1589_v61 = vadd.f32 %v5617_v31, %v1272_v52  ;;  %v1590_v63 = vadd.f32 %v5619_v32, %v1441_v58  ;;  %703 = vmatmul.bf16.gmra.mxu0 %v5278_v42  ;;  %v5301_v52 = vld [vmem:[#allocation10 + $0x4] sm:$0xf0] }
 0x1de   :  { %872 = vmatmul.bf16.gmra.mxu1 %v5278_v42  ;;  %v4951_v53 = vor.u32 %v5301_v52, %v4950_v44 }
 0x1df   :  { %v1717_v4 = vmax.f32 %v1589_v61, 0.0  ;;  %1313 = vmatmul.bf16.gmra.mxu2 %v5230_v55  ;;  %v1718_v7 = vmax.f32 %v1590_v63, 0.0  ;;  %1482 = vmatmul.bf16.gmra.mxu3 %v5230_v55  ;;  %v5014_v55 = vld [vmem:[#allocation10 + $0x80] sm:$0xf]  ;;  %v5279_v61 = vld [vmem:[#allocation5 + $0xd8] sm:$0xff] }
 0x1e0   :  { %v5015_v63 = vor.u32 %v5317_v56, %v5014_v55  ;;  %2044 = vmatpush.bf16.msrb.mxu0 %v4951_v53 }
 0x1e1   :  { %v5761_v23 = vpack.c.bf16 %v1717_v4, %v1715_v0  ;;  %v5763_v29 = vpack.c.bf16 %v1718_v7, %v1716_v5 }
 0x1e2   :  { %v1274_v26 = vpop.f32.mrf.mxu2  ;;  %v1443_v33 = vpop.f32.mrf.mxu3  ;;  %2213 = vmatpush.bf16.msrb.mxu1 %v5015_v63 }
 0x1e3   :  { %v1275_v30 = vadd.f32 %v1274_v26, %v664_v54  ;;  %v666_v35 = vpop.f32.mrf.mxu0  ;;  %v1444_v36 = vadd.f32 %v1443_v33, %v833_v60  ;;  %v835_v42 = vpop.f32.mrf.mxu1  ;;  %v5231_v54 = vld [vmem:[#allocation3 + $0xd8] sm:$0xff] }
 0x1e5   :  { %v1591_v0 = vadd.f32 %v5617_v31, %v1275_v30  ;;  %v1592_v8 = vadd.f32 %v5619_v32, %v1444_v36 }
 0x1e7   :  { %v1719_v21 = vmax.f32 %v1591_v0, 0.0  ;;  %v1720_v28 = vmax.f32 %v1592_v8, 0.0 }
 0x1ea   :  { %v1276_v58 = vpop.f32.mrf.mxu2  ;;  %v1445_v5 = vpop.f32.mrf.mxu3 }
 0x1eb   :  { %v1277_v4 = vadd.f32 %v1276_v58, %v666_v35  ;;  %v669_v7 = vpop.f32.mrf.mxu0  ;;  %v1446_v60 = vadd.f32 %v1445_v5, %v835_v42  ;;  %v838_v12 = vpop.f32.mrf.mxu1  ;;  %v5280_v58 = vld [vmem:[#allocation5 + $0xe0] sm:$0xff] }
 0x1ec   :  { %v5232_v5 = vld [vmem:[#allocation3 + $0xe0] sm:$0xff] }
 0x1ed   :  { %v1593_v18 = vadd.f32 %v5617_v31, %v1277_v4  ;;  %v1594_v20 = vadd.f32 %v5619_v32, %v1446_v60  ;;  %708 = vmatmul.bf16.gmra.mxu0 %v5279_v61 }
 0x1ee   :  { %877 = vmatmul.bf16.gmra.mxu1 %v5279_v61 }
 0x1ef   :  { %v1721_v26 = vmax.f32 %v1593_v18, 0.0  ;;  %1318 = vmatmul.bf16.gmra.mxu2 %v5231_v54  ;;  %v1722_v30 = vmax.f32 %v1594_v20, 0.0  ;;  %1487 = vmatmul.bf16.gmra.mxu3 %v5231_v54 }
 0x1f1   :  { %v5769_v33 = vpack.c.bf16 %v1721_v26, %v1719_v21  ;;  %v5771_v44 = vpack.c.bf16 %v1722_v30, %v1720_v28 }
 0x1f2   :  { %v1279_v35 = vpop.f32.mrf.mxu2  ;;  %v1448_v42 = vpop.f32.mrf.mxu3 }
 0x1f3   :  { %7016 = vst [vmem:[#allocation17_spill] sm:$0xff] %v5771_v44  ;;  %v1280_v36 = vadd.f32 %v1279_v35, %v669_v7  ;;  %v671_v52 = vpop.f32.mrf.mxu0  ;;  %v1449_v53 = vadd.f32 %v1448_v42, %v838_v12  ;;  %v840_v55 = vpop.f32.mrf.mxu1  ;;  %v5283_v44 = vld [vmem:[#allocation5 + $0xf8] sm:$0xff] }
 0x1f5   :  { %v1595_v63 = vadd.f32 %v5617_v31, %v1280_v36  ;;  %v1596_v54 = vadd.f32 %v5619_v32, %v1449_v53 }
 0x1f7   :  { %v1723_v20 = vmax.f32 %v1595_v63, 0.0  ;;  %v1724_v21 = vmax.f32 %v1596_v54, 0.0  ;;  %v5233_v54 = vld [vmem:[#allocation3 + $0xe8] sm:$0xff] }
 0x1fa   :  { %v1281_v56 = vpop.f32.mrf.mxu2  ;;  %v1450_v61 = vpop.f32.mrf.mxu3 }
 0x1fb   :  { %v1282_v0 = vadd.f32 %v1281_v56, %v671_v52  ;;  %v674_v4 = vpop.f32.mrf.mxu0  ;;  %v1451_v8 = vadd.f32 %v1450_v61, %v840_v55  ;;  %v843_v60 = vpop.f32.mrf.mxu1 }
 0x1fd   :  { %v1597_v18 = vadd.f32 %v5617_v31, %v1282_v0  ;;  %v1598_v7 = vadd.f32 %v5619_v32, %v1451_v8  ;;  %713 = vmatmul.bf16.gmra.mxu0 %v5280_v58  ;;  %v5281_v0 = vld [vmem:[#allocation5 + $0xe8] sm:$0xff] }
 0x1fe   :  { %882 = vmatmul.bf16.gmra.mxu1 %v5280_v58 }
 0x1ff   :  { %v1725_v12 = vmax.f32 %v1597_v18, 0.0  ;;  %1323 = vmatmul.bf16.gmra.mxu2 %v5232_v5  ;;  %v1726_v26 = vmax.f32 %v1598_v7, 0.0  ;;  %1492 = vmatmul.bf16.gmra.mxu3 %v5232_v5 }
 0x201   :  { %v5777_v28 = vpack.c.bf16 %v1725_v12, %v1723_v20  ;;  %v5779_v35 = vpack.c.bf16 %v1726_v26, %v1724_v21 }
 0x202   :  { %v1284_v30 = vpop.f32.mrf.mxu2  ;;  %v1453_v42 = vpop.f32.mrf.mxu3 }
 0x203   :  { %7017 = vst [vmem:[#allocation18_spill] sm:$0xff] %v5777_v28  ;;  %v1285_v36 = vadd.f32 %v1284_v30, %v674_v4  ;;  %v676_v52 = vpop.f32.mrf.mxu0  ;;  %v1454_v53 = vadd.f32 %v1453_v42, %v843_v60  ;;  %v845_v55 = vpop.f32.mrf.mxu1  ;;  %v5198_v28 = vld [vmem:[#allocation11 + $0xf0] sm:$0xf] }
 0x204   :  { %7018 = vst [vmem:[#allocation19_spill] sm:$0xff] %v5779_v35 }
 0x205   :  { %v1599_v63 = vadd.f32 %v5617_v31, %v1285_v36  ;;  %v1600_v5 = vadd.f32 %v5619_v32, %v1454_v53 }
 0x207   :  { %v1727_v12 = vmax.f32 %v1599_v63, 0.0  ;;  %v1728_v21 = vmax.f32 %v1600_v5, 0.0  ;;  %v5234_v5 = vld [vmem:[#allocation3 + $0xf0] sm:$0xff] }
 0x20a   :  { %v1286_v56 = vpop.f32.mrf.mxu2  ;;  %v1455_v58 = vpop.f32.mrf.mxu3 }
 0x20b   :  { %v1287_v61 = vadd.f32 %v1286_v56, %v676_v52  ;;  %v679_v8 = vpop.f32.mrf.mxu0  ;;  %v1456_v18 = vadd.f32 %v1455_v58, %v845_v55  ;;  %v848_v7 = vpop.f32.mrf.mxu1 }
 0x20d   :  { %v1601_v20 = vadd.f32 %v5617_v31, %v1287_v61  ;;  %v1602_v4 = vadd.f32 %v5619_v32, %v1456_v18  ;;  %718 = vmatmul.bf16.gmra.mxu0 %v5281_v0  ;;  %v5282_v18 = vld [vmem:[#allocation5 + $0xf0] sm:$0xff] }
 0x20e   :  { %887 = vmatmul.bf16.gmra.mxu1 %v5281_v0 }
 0x20f   :  { %v1729_v60 = vmax.f32 %v1601_v20, 0.0  ;;  %1328 = vmatmul.bf16.gmra.mxu2 %v5233_v54  ;;  %v1730_v26 = vmax.f32 %v1602_v4, 0.0  ;;  %1497 = vmatmul.bf16.gmra.mxu3 %v5233_v54 }
 0x211   :  { %v5785_v30 = vpack.c.bf16 %v1729_v60, %v1727_v12  ;;  %v5787_v42 = vpack.c.bf16 %v1730_v26, %v1728_v21 }
 0x212   :  { %v1289_v36 = vpop.f32.mrf.mxu2  ;;  %v1458_v53 = vpop.f32.mrf.mxu3 }
 0x213   :  { %7019 = vst [vmem:[#allocation20_spill] sm:$0xff] %v5785_v30  ;;  %v1290_v52 = vadd.f32 %v1289_v36, %v679_v8  ;;  %v681_v55 = vpop.f32.mrf.mxu0  ;;  %v1459_v56 = vadd.f32 %v1458_v53, %v848_v7  ;;  %v850_v61 = vpop.f32.mrf.mxu1  ;;  %v5136_v53 = vld [vmem:[#allocation11 + $0x78] sm:$0xf0] }
 0x214   :  { %7020 = vst [vmem:[#allocation21_spill] sm:$0xff] %v5787_v42  ;;  %v5200_v42 = vld [vmem:[#allocation11 + $0xf8] sm:$0xf0] }
 0x215   :  { %v1603_v63 = vadd.f32 %v5617_v31, %v1290_v52  ;;  %v1604_v54 = vadd.f32 %v5619_v32, %v1459_v56  ;;  %v5346_v52 = vld [vmem:[#allocation11 + $0x74] sm:$0xf] }
 0x217   :  { %v1731_v21 = vmax.f32 %v1603_v63, 0.0  ;;  %v1732_v26 = vmax.f32 %v1604_v54, 0.0  ;;  %v5134_v54 = vld [vmem:[#allocation11 + $0x70] sm:$0xf] }
 0x21a   :  { %v1291_v58 = vpop.f32.mrf.mxu2  ;;  %v1460_v0 = vpop.f32.mrf.mxu3 }
 0x21b   :  { %v1292_v20 = vadd.f32 %v1291_v58, %v681_v55  ;;  %v684_v35 = vpop.f32.mrf.mxu0  ;;  %v1461_v4 = vadd.f32 %v1460_v0, %v850_v61  ;;  %v853_v12 = vpop.f32.mrf.mxu1  ;;  %v5139_v55 = vor.u32 %v5346_v52, %v5136_v53  ;;  %v5362_v58 = vld [vmem:[#allocation11 + $0xf4] sm:$0xf]  ;;  %v5363_v52 = vld [vmem:[#allocation11 + $0xf4] sm:$0xf0] }
 0x21c   :  { %v5203_v0 = vor.u32 %v5362_v58, %v5200_v42 }
 0x21d   :  { %v1605_v60 = vadd.f32 %v5617_v31, %v1292_v20  ;;  %v1606_v8 = vadd.f32 %v5619_v32, %v1461_v4  ;;  %723 = vmatmul.bf16.gmra.mxu0 %v5282_v18  ;;  %3441 = vmatpush.bf16.msra.mxu2 %v5139_v55 }
 0x21e   :  { %892 = vmatmul.bf16.gmra.mxu1 %v5282_v18  ;;  %3610 = vmatpush.bf16.msra.mxu3 %v5203_v0 }
 0x21f   :  { %v1733_v7 = vmax.f32 %v1605_v60, 0.0  ;;  %1333 = vmatmul.bf16.gmra.mxu2 %v5234_v5  ;;  %v1734_v36 = vmax.f32 %v1606_v8, 0.0  ;;  %1502 = vmatmul.bf16.gmra.mxu3 %v5234_v5  ;;  %v5347_v5 = vld [vmem:[#allocation11 + $0x74] sm:$0xf0] }
 0x220   :  { %v5135_v8 = vor.u32 %v5347_v5, %v5134_v54 }
 0x221   :  { %v5793_v56 = vpack.c.bf16 %v1733_v7, %v1731_v21  ;;  %v5795_v20 = vpack.c.bf16 %v1734_v36, %v1732_v26  ;;  %v5199_v21 = vor.u32 %v5363_v52, %v5198_v28 }
 0x222   :  { %v1294_v61 = vpop.f32.mrf.mxu2  ;;  %v1463_v30 = vpop.f32.mrf.mxu3  ;;  %3103 = vmatpush.bf16.msra.mxu0 %v5135_v8 }
 0x223   :  { %v1295_v4 = vadd.f32 %v1294_v61, %v684_v35  ;;  %v686_v63 = vpop.f32.mrf.mxu0  ;;  %v1464_v18 = vadd.f32 %v1463_v30, %v853_v12  ;;  %v855_v60 = vpop.f32.mrf.mxu1  ;;  %v5235_v35 = vld [vmem:[#allocation3 + $0xf8] sm:$0xff]  ;;  %3272 = vmatpush.bf16.msra.mxu1 %v5199_v21 }
 0x225   :  { %v1607_v7 = vadd.f32 %v5617_v31, %v1295_v4  ;;  %v1608_v55 = vadd.f32 %v5619_v32, %v1464_v18 }
 0x227   :  { %v1735_v0 = vmax.f32 %v1607_v7, 0.0  ;;  %v1736_v28 = vmax.f32 %v1608_v55, 0.0 }
 0x22a   :  { %v1296_v53 = vpop.f32.mrf.mxu2  ;;  %v1465_v26 = vpop.f32.mrf.mxu3 }
 0x22b   :  { %v1297_v42 = vadd.f32 %v1296_v53, %v686_v63  ;;  %v689_v36 = vpop.f32.mrf.mxu0  ;;  %v1466_v30 = vadd.f32 %v1465_v26, %v855_v60  ;;  %v858_v12 = vpop.f32.mrf.mxu1 }
 0x22d   :  { %v1609_v58 = vadd.f32 %v5617_v31, %v1297_v42  ;;  %v1610_v61 = vadd.f32 %v5619_v32, %v1466_v30  ;;  %728 = vmatmul.bf16.gmra.mxu0 %v5283_v44 }
 0x22e   :  { %897 = vmatmul.bf16.gmra.mxu1 %v5283_v44 }
 0x22f   :  { %v1737_v54 = vmax.f32 %v1609_v58, 0.0  ;;  %1338 = vmatmul.bf16.gmra.mxu2 %v5235_v35  ;;  %v1738_v4 = vmax.f32 %v1610_v61, 0.0  ;;  %1507 = vmatmul.bf16.gmra.mxu3 %v5235_v35 }
 0x231   :  { %v5801_v63 = vpack.c.bf16 %v1737_v54, %v1735_v0  ;;  %v5803_v8 = vpack.c.bf16 %v1738_v4, %v1736_v28 }
 0x232   :  { %v1299_v5 = vpop.f32.mrf.mxu2  ;;  %v1468_v60 = vpop.f32.mrf.mxu3 }
 0x233   :  { %v1300_v18 = vadd.f32 %v1299_v5, %v689_v36  ;;  %v691_v52 = vpop.f32.mrf.mxu0  ;;  %v1469_v53 = vadd.f32 %v1468_v60, %v858_v12  ;;  %v860_v21 = vpop.f32.mrf.mxu1 }
 0x235   :  { %v1611_v26 = vadd.f32 %v5617_v31, %v1300_v18  ;;  %v1612_v55 = vadd.f32 %v5619_v32, %v1469_v53 }
 0x237   :  { %v1739_v36 = vmax.f32 %v1611_v26, 0.0  ;;  %v1740_v12 = vmax.f32 %v1612_v55, 0.0 }
 0x23a   :  { %v1301_v42 = vpop.f32.mrf.mxu2  ;;  %v1470_v30 = vpop.f32.mrf.mxu3 }
 0x23b   :  { %v1302_v7 = vadd.f32 %v1301_v42, %v691_v52  ;;  %v694_v44 = vpop.f32.mrf.mxu0  ;;  %v1471_v58 = vadd.f32 %v1470_v30, %v860_v21  ;;  %v863_v35 = vpop.f32.mrf.mxu1 }
 0x23d   :  { %v1613_v61 = vadd.f32 %v5617_v31, %v1302_v7  ;;  %v1614_v0 = vadd.f32 %v5619_v32, %v1471_v58  ;;  %2045 = vmatmul.bf16.vlgmr.msrb.gmra.mxu0 %v5625_v49 }
 0x23e   :  { %2214 = vmatmul.bf16.vlgmr.msrb.gmra.mxu1 %v5627_v50 }
 0x23f   :  { %v1741_v54 = vmax.f32 %v1613_v61, 0.0  ;;  %2383 = vmatmul.bf16.vlgmr.msrb.gmra.mxu2 %v5625_v49  ;;  %v1742_v28 = vmax.f32 %v1614_v0, 0.0  ;;  %2552 = vmatmul.bf16.vlgmr.msrb.gmra.mxu3 %v5627_v50 }
 0x241   :  { %v5813_v4 = vpack.c.bf16 %v1741_v54, %v1739_v36  ;;  %v5815_v18 = vpack.c.bf16 %v1742_v28, %v1740_v12 }
 0x242   :  { %v1304_v5 = vpop.f32.mrf.mxu2  ;;  %v1473_v52 = vpop.f32.mrf.mxu3 }
 0x243   :  { %v1305_v60 = vadd.f32 %v1304_v5, %v694_v44  ;;  %v696_v53 = vpop.f32.mrf.mxu0  ;;  %v1474_v21 = vadd.f32 %v1473_v52, %v863_v35  ;;  %v865_v42 = vpop.f32.mrf.mxu1 }
 0x245   :  { %v1615_v7 = vadd.f32 %v5617_v31, %v1305_v60  ;;  %v1616_v55 = vadd.f32 %v5619_v32, %v1474_v21 }
 0x247   :  { %v1743_v44 = vmax.f32 %v1615_v7, 0.0  ;;  %v1744_v35 = vmax.f32 %v1616_v55, 0.0 }
 0x24a   :  { %v1306_v26 = vpop.f32.mrf.mxu2  ;;  %v1475_v58 = vpop.f32.mrf.mxu3 }
 0x24b   :  { %v1307_v30 = vadd.f32 %v1306_v26, %v696_v53  ;;  %v699_v49 = vpop.f32.mrf.mxu0  ;;  %v1476_v61 = vadd.f32 %v1475_v58, %v865_v42  ;;  %v868_v50 = vpop.f32.mrf.mxu1 }
 0x24d   :  { %v1617_v0 = vadd.f32 %v5617_v31, %v1307_v30  ;;  %v1618_v36 = vadd.f32 %v5619_v32, %v1476_v61  ;;  %2050 = vmatmul.bf16.gmra.mxu0 %v5633_v14 }
 0x24e   :  { %2219 = vmatmul.bf16.gmra.mxu1 %v5635_v17 }
 0x24f   :  { %v1745_v54 = vmax.f32 %v1617_v0, 0.0  ;;  %2388 = vmatmul.bf16.gmra.mxu2 %v5633_v14  ;;  %v1746_v12 = vmax.f32 %v1618_v36, 0.0  ;;  %2557 = vmatmul.bf16.gmra.mxu3 %v5635_v17 }
 0x251   :  { %v5825_v28 = vpack.c.bf16 %v1745_v54, %v1743_v44  ;;  %v5827_v60 = vpack.c.bf16 %v1746_v12, %v1744_v35  ;;  %v5344_v12 = vld [vmem:[#allocation11 + $0x64] sm:$0xf] }
 0x252   :  { %v1309_v5 = vpop.f32.mrf.mxu2  ;;  %v1478_v53 = vpop.f32.mrf.mxu3 }
 0x253   :  { %7021 = vst [vmem:[#allocation22_spill] sm:$0xff] %v5825_v28  ;;  %v1310_v52 = vadd.f32 %v1309_v5, %v699_v49  ;;  %v701_v21 = vpop.f32.mrf.mxu0  ;;  %v1479_v42 = vadd.f32 %v1478_v53, %v868_v50  ;;  %v870_v26 = vpop.f32.mrf.mxu1  ;;  %v5128_v5 = vld [vmem:[#allocation11 + $0x68] sm:$0xf0]  ;;  %v5360_v53 = vld [vmem:[#allocation11 + $0xe4] sm:$0xf] }
 0x254   :  { %7022 = vst [vmem:[#allocation23_spill] sm:$0xff] %v5827_v60  ;;  %v5190_v60 = vld [vmem:[#allocation11 + $0xe0] sm:$0xf] }
 0x255   :  { %v1619_v30 = vadd.f32 %v5617_v31, %v1310_v52  ;;  %v1620_v55 = vadd.f32 %v5619_v32, %v1479_v42  ;;  %v5131_v52 = vor.u32 %v5344_v12, %v5128_v5  ;;  %v5361_v12 = vld [vmem:[#allocation11 + $0xe4] sm:$0xf0] }
 0x256   :  { %v5191_v28 = vor.u32 %v5361_v12, %v5190_v60 }
 0x257   :  { %v1747_v49 = vmax.f32 %v1619_v30, 0.0  ;;  %v1748_v50 = vmax.f32 %v1620_v55, 0.0  ;;  %3442 = vmatpush.bf16.msra.mxu2 %v5131_v52 }
 0x258   :  { %3273 = vmatpush.bf16.msra.mxu1 %v5191_v28 }
 0x25a   :  { %v1311_v7 = vpop.f32.mrf.mxu2  ;;  %v1480_v61 = vpop.f32.mrf.mxu3 }
 0x25b   :  { %v1312_v58 = vadd.f32 %v1311_v7, %v701_v21  ;;  %v704_v14 = vpop.f32.mrf.mxu0  ;;  %v1481_v0 = vadd.f32 %v1480_v61, %v870_v26  ;;  %v873_v17 = vpop.f32.mrf.mxu1  ;;  %v5192_v21 = vld [vmem:[#allocation11 + $0xe8] sm:$0xf0] }
 0x25c   :  { %v5195_v7 = vor.u32 %v5360_v53, %v5192_v21 }
 0x25d   :  { %v1621_v36 = vadd.f32 %v5617_v31, %v1312_v58  ;;  %v1622_v44 = vadd.f32 %v5619_v32, %v1481_v0  ;;  %2055 = vmatmul.bf16.gmra.mxu0 %v5641_v47 }
 0x25e   :  { %2224 = vmatmul.bf16.gmra.mxu1 %v5643_v51  ;;  %3611 = vmatpush.bf16.msra.mxu3 %v5195_v7 }
 0x25f   :  { %v1749_v54 = vmax.f32 %v1621_v36, 0.0  ;;  %2393 = vmatmul.bf16.gmra.mxu2 %v5641_v47  ;;  %v1750_v35 = vmax.f32 %v1622_v44, 0.0  ;;  %2562 = vmatmul.bf16.gmra.mxu3 %v5643_v51  ;;  %v5126_v36 = vld [vmem:[#allocation11 + $0x60] sm:$0xf]  ;;  %v5345_v51 = vld [vmem:[#allocation11 + $0x64] sm:$0xf0] }
 0x260   :  { %v5127_v44 = vor.u32 %v5345_v51, %v5126_v36 }
 0x261   :  { %v5837_v42 = vpack.c.bf16 %v1749_v54, %v1747_v49  ;;  %v5839_v58 = vpack.c.bf16 %v1750_v35, %v1748_v50 }
 0x262   :  { %v1314_v26 = vpop.f32.mrf.mxu2  ;;  %v1483_v61 = vpop.f32.mrf.mxu3  ;;  %3104 = vmatpush.bf16.msra.mxu0 %v5127_v44 }
 0x263   :  { %v1315_v30 = vadd.f32 %v1314_v26, %v704_v14  ;;  %v706_v0 = vpop.f32.mrf.mxu0  ;;  %v1484_v47 = vadd.f32 %v1483_v61, %v873_v17  ;;  %v875_v55 = vpop.f32.mrf.mxu1 }
 0x265   :  { %v1623_v49 = vadd.f32 %v5617_v31, %v1315_v30  ;;  %v1624_v14 = vadd.f32 %v5619_v32, %v1484_v47 }
 0x267   :  { %v1751_v26 = vmax.f32 %v1623_v49, 0.0  ;;  %v1752_v60 = vmax.f32 %v1624_v14, 0.0 }
 0x26a   :  { %v1316_v5 = vpop.f32.mrf.mxu2  ;;  %v1485_v53 = vpop.f32.mrf.mxu3 }
 0x26b   :  { %v1317_v54 = vadd.f32 %v1316_v5, %v706_v0  ;;  %v709_v50 = vpop.f32.mrf.mxu0  ;;  %v1486_v35 = vadd.f32 %v1485_v53, %v875_v55  ;;  %v878_v52 = vpop.f32.mrf.mxu1 }
 0x26d   :  { %v1625_v17 = vadd.f32 %v5617_v31, %v1317_v54  ;;  %v1626_v21 = vadd.f32 %v5619_v32, %v1486_v35  ;;  %2060 = vmatmul.bf16.gmra.mxu0 %v5649_v9 }
 0x26e   :  { %2229 = vmatmul.bf16.gmra.mxu1 %v5651_v11 }
 0x26f   :  { %v1753_v7 = vmax.f32 %v1625_v17, 0.0  ;;  %2398 = vmatmul.bf16.gmra.mxu2 %v5649_v9  ;;  %v1754_v30 = vmax.f32 %v1626_v21, 0.0  ;;  %2567 = vmatmul.bf16.gmra.mxu3 %v5651_v11 }
 0x271   :  { %v5849_v61 = vpack.c.bf16 %v1753_v7, %v1751_v26  ;;  %v5851_v28 = vpack.c.bf16 %v1754_v30, %v1752_v60 }
 0x272   :  { %v1319_v0 = vpop.f32.mrf.mxu2  ;;  %v1488_v55 = vpop.f32.mrf.mxu3 }
 0x273   :  { %v1320_v47 = vadd.f32 %v1319_v0, %v709_v50  ;;  %v711_v36 = vpop.f32.mrf.mxu0  ;;  %v1489_v51 = vadd.f32 %v1488_v55, %v878_v52  ;;  %v880_v44 = vpop.f32.mrf.mxu1 }
 0x275   :  { %v1627_v5 = vadd.f32 %v5617_v31, %v1320_v47  ;;  %v1628_v53 = vadd.f32 %v5619_v32, %v1489_v51 }
 0x277   :  { %v1755_v50 = vmax.f32 %v1627_v5, 0.0  ;;  %v1756_v52 = vmax.f32 %v1628_v53, 0.0 }
 0x27a   :  { %v1321_v12 = vpop.f32.mrf.mxu2  ;;  %v1490_v54 = vpop.f32.mrf.mxu3 }
 0x27b   :  { %v1322_v49 = vadd.f32 %v1321_v12, %v711_v36  ;;  %v714_v9 = vpop.f32.mrf.mxu0  ;;  %v1491_v14 = vadd.f32 %v1490_v54, %v880_v44  ;;  %v883_v11 = vpop.f32.mrf.mxu1 }
 0x27d   :  { %v1629_v35 = vadd.f32 %v5617_v31, %v1322_v49  ;;  %v1630_v17 = vadd.f32 %v5619_v32, %v1491_v14  ;;  %2065 = vmatmul.bf16.gmra.mxu0 %v5657_v37 }
 0x27e   :  { %2234 = vmatmul.bf16.gmra.mxu1 %v5659_v39 }
 0x27f   :  { %v1757_v21 = vmax.f32 %v1629_v35, 0.0  ;;  %2403 = vmatmul.bf16.gmra.mxu2 %v5657_v37  ;;  %v1758_v26 = vmax.f32 %v1630_v17, 0.0  ;;  %2572 = vmatmul.bf16.gmra.mxu3 %v5659_v39 }
 0x281   :  { %v5861_v7 = vpack.c.bf16 %v1757_v21, %v1755_v50  ;;  %v5863_v30 = vpack.c.bf16 %v1758_v26, %v1756_v52 }
 0x282   :  { %v1324_v60 = vpop.f32.mrf.mxu2  ;;  %v1493_v47 = vpop.f32.mrf.mxu3 }
 0x283   :  { %v1325_v0 = vadd.f32 %v1324_v60, %v714_v9  ;;  %v716_v55 = vpop.f32.mrf.mxu0  ;;  %v1494_v36 = vadd.f32 %v1493_v47, %v883_v11  ;;  %v885_v51 = vpop.f32.mrf.mxu1 }
 0x285   :  { %v1631_v12 = vadd.f32 %v5617_v31, %v1325_v0  ;;  %v1632_v54 = vadd.f32 %v5619_v32, %v1494_v36 }
 0x287   :  { %v1759_v9 = vmax.f32 %v1631_v12, 0.0  ;;  %v1760_v11 = vmax.f32 %v1632_v54, 0.0 }
 0x28a   :  { %v1326_v44 = vpop.f32.mrf.mxu2  ;;  %v1495_v49 = vpop.f32.mrf.mxu3 }
 0x28b   :  { %v1327_v5 = vadd.f32 %v1326_v44, %v716_v55  ;;  %v719_v37 = vpop.f32.mrf.mxu0  ;;  %v1496_v53 = vadd.f32 %v1495_v49, %v885_v51  ;;  %v888_v39 = vpop.f32.mrf.mxu1 }
 0x28d   :  { %v1633_v14 = vadd.f32 %v5617_v31, %v1327_v5  ;;  %v1634_v35 = vadd.f32 %v5619_v32, %v1496_v53  ;;  %2070 = vmatmul.bf16.gmra.mxu0 %v5665_v6 }
 0x28e   :  { %2239 = vmatmul.bf16.gmra.mxu1 %v5667_v10 }
 0x28f   :  { %v1761_v17 = vmax.f32 %v1633_v14, 0.0  ;;  %2408 = vmatmul.bf16.gmra.mxu2 %v5665_v6  ;;  %v1762_v50 = vmax.f32 %v1634_v35, 0.0  ;;  %2577 = vmatmul.bf16.gmra.mxu3 %v5667_v10 }
 0x291   :  { %v5873_v21 = vpack.c.bf16 %v1761_v17, %v1759_v9  ;;  %v5875_v26 = vpack.c.bf16 %v1762_v50, %v1760_v11  ;;  %v5342_v17 = vld [vmem:[#allocation11 + $0x54] sm:$0xf]  ;;  %v5120_v11 = vld [vmem:[#allocation11 + $0x58] sm:$0xf0] }
 0x292   :  { %v1329_v52 = vpop.f32.mrf.mxu2  ;;  %v1498_v0 = vpop.f32.mrf.mxu3  ;;  %v5123_v50 = vor.u32 %v5342_v17, %v5120_v11 }
 0x293   :  { %v1330_v60 = vadd.f32 %v1329_v52, %v719_v37  ;;  %v721_v47 = vpop.f32.mrf.mxu0  ;;  %v1499_v55 = vadd.f32 %v1498_v0, %v888_v39  ;;  %v890_v36 = vpop.f32.mrf.mxu1  ;;  %v5358_v52 = vld [vmem:[#allocation11 + $0xd4] sm:$0xf] }
 0x294   :  { %3443 = vmatpush.bf16.msra.mxu2 %v5123_v50 }
 0x295   :  { %v1635_v44 = vadd.f32 %v5617_v31, %v1330_v60  ;;  %v1636_v49 = vadd.f32 %v5619_v32, %v1499_v55  ;;  %v5184_v60 = vld [vmem:[#allocation11 + $0xd8] sm:$0xf0] }
 0x296   :  { %v5187_v55 = vor.u32 %v5358_v52, %v5184_v60  ;;  %v5359_v52 = vld [vmem:[#allocation11 + $0xd4] sm:$0xf0] }
 0x297   :  { %v1763_v37 = vmax.f32 %v1635_v44, 0.0  ;;  %v1764_v39 = vmax.f32 %v1636_v49, 0.0 }
 0x298   :  { %3612 = vmatpush.bf16.msra.mxu3 %v5187_v55 }
 0x29a   :  { %v1331_v51 = vpop.f32.mrf.mxu2  ;;  %v1500_v5 = vpop.f32.mrf.mxu3 }
 0x29b   :  { %v1332_v12 = vadd.f32 %v1331_v51, %v721_v47  ;;  %v724_v6 = vpop.f32.mrf.mxu0  ;;  %v1501_v54 = vadd.f32 %v1500_v5, %v890_v36  ;;  %v893_v10 = vpop.f32.mrf.mxu1 }
 0x29d   :  { %v1637_v53 = vadd.f32 %v5617_v31, %v1332_v12  ;;  %v1638_v14 = vadd.f32 %v5619_v32, %v1501_v54  ;;  %2075 = vmatmul.bf16.gmra.mxu0 %v5673_v45  ;;  %v5343_v54 = vld [vmem:[#allocation11 + $0x54] sm:$0xf0] }
 0x29e   :  { %2244 = vmatmul.bf16.gmra.mxu1 %v5675_v48 }
 0x29f   :  { %v1765_v35 = vmax.f32 %v1637_v53, 0.0  ;;  %2413 = vmatmul.bf16.gmra.mxu2 %v5673_v45  ;;  %v1766_v9 = vmax.f32 %v1638_v14, 0.0  ;;  %2582 = vmatmul.bf16.gmra.mxu3 %v5675_v48  ;;  %v5118_v48 = vld [vmem:[#allocation11 + $0x50] sm:$0xf] }
 0x2a0   :  { %v5182_v53 = vld [vmem:[#allocation11 + $0xd0] sm:$0xf]  ;;  %v5119_v11 = vor.u32 %v5343_v54, %v5118_v48 }
 0x2a1   :  { %v5885_v0 = vpack.c.bf16 %v1765_v35, %v1763_v37  ;;  %v5887_v36 = vpack.c.bf16 %v1766_v9, %v1764_v39  ;;  %v5183_v60 = vor.u32 %v5359_v52, %v5182_v53 }
 0x2a2   :  { %v1334_v47 = vpop.f32.mrf.mxu2  ;;  %v1503_v44 = vpop.f32.mrf.mxu3  ;;  %3105 = vmatpush.bf16.msra.mxu0 %v5119_v11 }
 0x2a3   :  { %v1335_v51 = vadd.f32 %v1334_v47, %v724_v6  ;;  %v726_v12 = vpop.f32.mrf.mxu0  ;;  %v1504_v45 = vadd.f32 %v1503_v44, %v893_v10  ;;  %v895_v5 = vpop.f32.mrf.mxu1  ;;  %3274 = vmatpush.bf16.msra.mxu1 %v5183_v60 }
 0x2a5   :  { %v1639_v14 = vadd.f32 %v5617_v31, %v1335_v51  ;;  %v1640_v39 = vadd.f32 %v5619_v32, %v1504_v45 }
 0x2a7   :  { %v1767_v47 = vmax.f32 %v1639_v14, 0.0  ;;  %v1768_v51 = vmax.f32 %v1640_v39, 0.0  ;;  %v1871_v14 = vld [vmem:[%s6997_s6] sm:$0x3] }
 0x2aa   :  { %v1336_v49 = vpop.f32.mrf.mxu2  ;;  %v1505_v37 = vpop.f32.mrf.mxu3 }
 0x2ab   :  { %v1337_v17 = vadd.f32 %v1336_v49, %v726_v12  ;;  %v729_v35 = vpop.f32.mrf.mxu0  ;;  %v1506_v6 = vadd.f32 %v1505_v37, %v895_v5  ;;  %v898_v9 = vpop.f32.mrf.mxu1  ;;  %v5904_v37 = vperm.slane %v1871_v14, 0 }
 0x2ad   :  { %v1641_v10 = vadd.f32 %v5617_v31, %v1337_v17  ;;  %v1642_v50 = vadd.f32 %v5619_v32, %v1506_v6  ;;  %2080 = vmatmul.bf16.gmra.mxu0 %v5681_v13 }
 0x2ae   :  { %2249 = vmatmul.bf16.gmra.mxu1 %v5683_v16 }
 0x2af   :  { %v1769_v55 = vmax.f32 %v1641_v10, 0.0  ;;  %2418 = vmatmul.bf16.gmra.mxu2 %v5681_v13  ;;  %v1770_v44 = vmax.f32 %v1642_v50, 0.0  ;;  %2587 = vmatmul.bf16.gmra.mxu3 %v5683_v16 }
 0x2b1   :  { %v5897_v12 = vpack.c.bf16 %v1769_v55, %v1767_v47  ;;  %v5899_v5 = vpack.c.bf16 %v1770_v44, %v1768_v51  ;;  %v5914_v44 = vperm.slane %v1871_v14, 1 }
 0x2b2   :  { %v1339_v45 = vpop.f32.mrf.mxu2  ;;  %v1508_v48 = vpop.f32.mrf.mxu3 }
 0x2b3   :  { %v1340_v49 = vadd.f32 %v1339_v45, %v729_v35  ;;  %v731_v54 = vpop.f32.mrf.mxu0  ;;  %v1509_v53 = vadd.f32 %v1508_v48, %v898_v9  ;;  %v900_v17 = vpop.f32.mrf.mxu1 }
 0x2b5   :  { %v1643_v11 = vadd.f32 %v5617_v31, %v1340_v49  ;;  %v1644_v6 = vadd.f32 %v5619_v32, %v1509_v53 }
 0x2b7   :  { %v1771_v55 = vmax.f32 %v1643_v11, 0.0  ;;  %v1772_v45 = vmax.f32 %v1644_v6, 0.0 }
 0x2ba   :  { %v1341_v13 = vpop.f32.mrf.mxu2  ;;  %v1510_v52 = vpop.f32.mrf.mxu3 }
 0x2bb   :  { %v1342_v16 = vadd.f32 %v1341_v13, %v731_v54  ;;  %v2046_v39 = vpop.f32.mrf.mxu0  ;;  %v1511_v60 = vadd.f32 %v1510_v52, %v900_v17  ;;  %v2215_v10 = vpop.f32.mrf.mxu1 }
 0x2bc   :  { %v2047_v35 = vadd.f32 %v2046_v39, %v5904_v37 }
 0x2bd   :  { %v1645_v9 = vadd.f32 %v5617_v31, %v1342_v16  ;;  %v1646_v50 = vadd.f32 %v5619_v32, %v1511_v60  ;;  %2085 = vmatmul.bf16.gmra.mxu0 %v5689_v43 }
 0x2be   :  { %v2216_v47 = vadd.f32 %v2215_v10, %v2047_v35  ;;  %2254 = vmatmul.bf16.gmra.mxu1 %v5691_v46 }
 0x2bf   :  { %v1773_v51 = vmax.f32 %v1645_v9, 0.0  ;;  %2423 = vmatmul.bf16.gmra.mxu2 %v5689_v43  ;;  %v1774_v49 = vmax.f32 %v1646_v50, 0.0  ;;  %2592 = vmatmul.bf16.gmra.mxu3 %v5691_v46 }
 0x2c0   :  { %v2713_v14 = vmax.f32 %v2216_v47, 0.0 }
 0x2c1   :  { %v5917_v48 = vpack.c.bf16 %v1773_v51, %v1771_v55  ;;  %v5919_v54 = vpack.c.bf16 %v1774_v49, %v1772_v45 }
 0x2c2   :  { %v2384_v31 = vpop.f32.mrf.mxu2  ;;  %v2553_v53 = vpop.f32.mrf.mxu3 }
 0x2c3   :  { %v2385_v32 = vadd.f32 %v2384_v31, %v5914_v44  ;;  %v2048_v17 = vpop.f32.mrf.mxu0  ;;  %v2217_v11 = vpop.f32.mrf.mxu1 }
 0x2c4   :  { %v2049_v13 = vadd.f32 %v2048_v17, %v5904_v37 }
 0x2c5   :  { %v2554_v16 = vadd.f32 %v2553_v53, %v2385_v32 }
 0x2c6   :  { %v2218_v43 = vadd.f32 %v2217_v11, %v2049_v13 }
 0x2c7   :  { %v2714_v51 = vmax.f32 %v2554_v16, 0.0 }
 0x2c8   :  { %v2715_v52 = vmax.f32 %v2218_v43, 0.0 }
 0x2ca   :  { %v5923_v39 = vpack.c.bf16 %v2715_v52, %v2713_v14  ;;  %v2386_v6 = vpop.f32.mrf.mxu2  ;;  %v2555_v60 = vpop.f32.mrf.mxu3 }
 0x2cb   :  { %v2387_v46 = vadd.f32 %v2386_v6, %v5914_v44  ;;  %v2051_v35 = vpop.f32.mrf.mxu0  ;;  %v2220_v9 = vpop.f32.mrf.mxu1 }
 0x2cc   :  { %v2052_v10 = vadd.f32 %v2051_v35, %v5904_v37 }
 0x2cd   :  { %v2556_v50 = vadd.f32 %v2555_v60, %v2387_v46  ;;  %2090 = vmatmul.bf16.gmra.mxu0 %v5697_v22 }
 0x2ce   :  { %v2221_v55 = vadd.f32 %v2220_v9, %v2052_v10  ;;  %2259 = vmatmul.bf16.gmra.mxu1 %v5699_v25 }
 0x2cf   :  { %v2716_v45 = vmax.f32 %v2556_v50, 0.0  ;;  %2428 = vmatmul.bf16.gmra.mxu2 %v5697_v22  ;;  %2597 = vmatmul.bf16.gmra.mxu3 %v5699_v25 }
 0x2d0   :  { %v2717_v16 = vmax.f32 %v2221_v55, 0.0  ;;  %v5340_v55 = vld [vmem:[#allocation11 + $0x44] sm:$0xf] }
 0x2d1   :  { %v5931_v47 = vpack.c.bf16 %v2716_v45, %v2714_v51  ;;  %v5112_v45 = vld [vmem:[#allocation11 + $0x48] sm:$0xf0] }
 0x2d2   :  { %v2389_v49 = vpop.f32.mrf.mxu2  ;;  %v2558_v32 = vpop.f32.mrf.mxu3 }
 0x2d3   :  { %v2390_v31 = vadd.f32 %v2389_v49, %v5914_v44  ;;  %v2053_v53 = vpop.f32.mrf.mxu0  ;;  %v2222_v13 = vpop.f32.mrf.mxu1  ;;  %v5115_v49 = vor.u32 %v5340_v55, %v5112_v45 }
 0x2d4   :  { %v2054_v17 = vadd.f32 %v2053_v53, %v5904_v37 }
 0x2d5   :  { %v2559_v11 = vadd.f32 %v2558_v32, %v2390_v31  ;;  %v5356_v31 = vld [vmem:[#allocation11 + $0xc4] sm:$0xf]  ;;  %v5176_v32 = vld [vmem:[#allocation11 + $0xc8] sm:$0xf0]  ;;  %3444 = vmatpush.bf16.msra.mxu2 %v5115_v49 }
 0x2d6   :  { %v2223_v43 = vadd.f32 %v2222_v13, %v2054_v17  ;;  %v5179_v13 = vor.u32 %v5356_v31, %v5176_v32 }
 0x2d7   :  { %v2718_v50 = vmax.f32 %v2559_v11, 0.0 }
 0x2d8   :  { %v2719_v14 = vmax.f32 %v2223_v43, 0.0  ;;  %3613 = vmatpush.bf16.msra.mxu3 %v5179_v13 }
 0x2da   :  { %v2391_v52 = vpop.f32.mrf.mxu2  ;;  %v5935_v6 = vpack.c.bf16 %v2719_v14, %v2717_v16  ;;  %v2560_v25 = vpop.f32.mrf.mxu3 }
 0x2db   :  { %v2392_v22 = vadd.f32 %v2391_v52, %v5914_v44  ;;  %v2056_v46 = vpop.f32.mrf.mxu0  ;;  %v2225_v35 = vpop.f32.mrf.mxu1 }
 0x2dc   :  { %v2057_v60 = vadd.f32 %v2056_v46, %v5904_v37  ;;  %v5110_v46 = vld [vmem:[#allocation11 + $0x40] sm:$0xf] }
 0x2dd   :  { %v2561_v10 = vadd.f32 %v2560_v25, %v2392_v22  ;;  %2095 = vmatmul.bf16.gmra.mxu0 %v5705_v1 }
 0x2de   :  { %v2226_v9 = vadd.f32 %v2225_v35, %v2057_v60  ;;  %2264 = vmatmul.bf16.gmra.mxu1 %v5707_v3  ;;  %v5341_v60 = vld [vmem:[#allocation11 + $0x44] sm:$0xf0] }
 0x2df   :  { %v2720_v51 = vmax.f32 %v2561_v10, 0.0  ;;  %2433 = vmatmul.bf16.gmra.mxu2 %v5705_v1  ;;  %2602 = vmatmul.bf16.gmra.mxu3 %v5707_v3  ;;  %v5111_v35 = vor.u32 %v5341_v60, %v5110_v46  ;;  %v5174_v10 = vld [vmem:[#allocation11 + $0xc0] sm:$0xf] }
 0x2e0   :  { %v2721_v22 = vmax.f32 %v2226_v9, 0.0 }
 0x2e1   :  { %v5943_v53 = vpack.c.bf16 %v2720_v51, %v2718_v50  ;;  %v5357_v50 = vld [vmem:[#allocation11 + $0xc4] sm:$0xf0]  ;;  %3106 = vmatpush.bf16.msra.mxu0 %v5111_v35 }
 0x2e2   :  { %v2394_v17 = vpop.f32.mrf.mxu2  ;;  %v2563_v16 = vpop.f32.mrf.mxu3  ;;  %v5175_v55 = vor.u32 %v5357_v50, %v5174_v10 }
 0x2e3   :  { %v2395_v43 = vadd.f32 %v2394_v17, %v5914_v44  ;;  %v2058_v11 = vpop.f32.mrf.mxu0  ;;  %v2227_v52 = vpop.f32.mrf.mxu1 }
 0x2e4   :  { %v2059_v14 = vadd.f32 %v2058_v11, %v5904_v37  ;;  %3275 = vmatpush.bf16.msra.mxu1 %v5175_v55 }
 0x2e5   :  { %v2564_v1 = vadd.f32 %v2563_v16, %v2395_v43 }
 0x2e6   :  { %v2228_v3 = vadd.f32 %v2227_v52, %v2059_v14 }
 0x2e7   :  { %v2722_v16 = vmax.f32 %v2564_v1, 0.0 }
 0x2e8   :  { %v2723_v25 = vmax.f32 %v2228_v3, 0.0 }
 0x2ea   :  { %v2396_v51 = vpop.f32.mrf.mxu2  ;;  %v5947_v45 = vpack.c.bf16 %v2723_v25, %v2721_v22  ;;  %v2565_v49 = vpop.f32.mrf.mxu3 }
 0x2eb   :  { %v2397_v31 = vadd.f32 %v2396_v51, %v5914_v44  ;;  %v2061_v32 = vpop.f32.mrf.mxu0  ;;  %v2230_v13 = vpop.f32.mrf.mxu1 }
 0x2ec   :  { %v2062_v17 = vadd.f32 %v2061_v32, %v5904_v37 }
 0x2ed   :  { %v2566_v9 = vadd.f32 %v2565_v49, %v2397_v31  ;;  %2100 = vmatmul.bf16.gmra.mxu0 %v5713_v38 }
 0x2ee   :  { %v2231_v43 = vadd.f32 %v2230_v13, %v2062_v17  ;;  %2269 = vmatmul.bf16.gmra.mxu1 %v5715_v41 }
 0x2ef   :  { %v2724_v11 = vmax.f32 %v2566_v9, 0.0  ;;  %2438 = vmatmul.bf16.gmra.mxu2 %v5713_v38  ;;  %2607 = vmatmul.bf16.gmra.mxu3 %v5715_v41 }
 0x2f0   :  { %v2725_v1 = vmax.f32 %v2231_v43, 0.0 }
 0x2f1   :  { %v5955_v14 = vpack.c.bf16 %v2724_v11, %v2722_v16 }
 0x2f2   :  { %v2399_v52 = vpop.f32.mrf.mxu2  ;;  %v2568_v22 = vpop.f32.mrf.mxu3 }
 0x2f3   :  { %v2400_v3 = vadd.f32 %v2399_v52, %v5914_v44  ;;  %v2063_v25 = vpop.f32.mrf.mxu0  ;;  %v2232_v60 = vpop.f32.mrf.mxu1 }
 0x2f4   :  { %v2064_v46 = vadd.f32 %v2063_v25, %v5904_v37 }
 0x2f5   :  { %v2569_v35 = vadd.f32 %v2568_v22, %v2400_v3 }
 0x2f6   :  { %v2233_v10 = vadd.f32 %v2232_v60, %v2064_v46 }
 0x2f7   :  { %v2726_v9 = vmax.f32 %v2569_v35, 0.0 }
 0x2f8   :  { %v2727_v50 = vmax.f32 %v2233_v10, 0.0 }
 0x2fa   :  { %v2401_v51 = vpop.f32.mrf.mxu2  ;;  %v5959_v55 = vpack.c.bf16 %v2727_v50, %v2725_v1  ;;  %v2570_v41 = vpop.f32.mrf.mxu3 }
 0x2fb   :  { %v2402_v38 = vadd.f32 %v2401_v51, %v5914_v44  ;;  %v2066_v31 = vpop.f32.mrf.mxu0  ;;  %v2235_v32 = vpop.f32.mrf.mxu1 }
 0x2fc   :  { %v2067_v49 = vadd.f32 %v2066_v31, %v5904_v37 }
 0x2fd   :  { %v2571_v17 = vadd.f32 %v2570_v41, %v2402_v38  ;;  %2105 = vmatmul.bf16.gmra.mxu0 %v5721_v15 }
 0x2fe   :  { %v2236_v13 = vadd.f32 %v2235_v32, %v2067_v49  ;;  %2274 = vmatmul.bf16.gmra.mxu1 %v5723_v19 }
 0x2ff   :  { %v2728_v16 = vmax.f32 %v2571_v17, 0.0  ;;  %2443 = vmatmul.bf16.gmra.mxu2 %v5721_v15  ;;  %2612 = vmatmul.bf16.gmra.mxu3 %v5723_v19 }
 0x300   :  { %v2729_v35 = vmax.f32 %v2236_v13, 0.0 }
 0x301   :  { %v5967_v43 = vpack.c.bf16 %v2728_v16, %v2726_v9 }
 0x302   :  { %v2404_v11 = vpop.f32.mrf.mxu2  ;;  %v2573_v3 = vpop.f32.mrf.mxu3 }
 0x303   :  { %v2405_v52 = vadd.f32 %v2404_v11, %v5914_v44  ;;  %v2068_v22 = vpop.f32.mrf.mxu0  ;;  %v2237_v46 = vpop.f32.mrf.mxu1 }
 0x304   :  { %v2069_v25 = vadd.f32 %v2068_v22, %v5904_v37 }
 0x305   :  { %v2574_v60 = vadd.f32 %v2573_v3, %v2405_v52 }
 0x306   :  { %v2238_v10 = vadd.f32 %v2237_v46, %v2069_v25 }
 0x307   :  { %v2730_v17 = vmax.f32 %v2574_v60, 0.0 }
 0x308   :  { %v2731_v1 = vmax.f32 %v2238_v10, 0.0 }
 0x30a   :  { %v2406_v50 = vpop.f32.mrf.mxu2  ;;  %v5971_v51 = vpack.c.bf16 %v2731_v1, %v2729_v35  ;;  %v2575_v19 = vpop.f32.mrf.mxu3 }
 0x30b   :  { %v2407_v15 = vadd.f32 %v2406_v50, %v5914_v44  ;;  %v2071_v38 = vpop.f32.mrf.mxu0  ;;  %v2240_v31 = vpop.f32.mrf.mxu1 }
 0x30c   :  { %v2072_v41 = vadd.f32 %v2071_v38, %v5904_v37 }
 0x30d   :  { %v2576_v49 = vadd.f32 %v2575_v19, %v2407_v15  ;;  %2110 = vmatmul.bf16.gmra.mxu0 %v5729_v62 }
 0x30e   :  { %v2241_v32 = vadd.f32 %v2240_v31, %v2072_v41  ;;  %2279 = vmatmul.bf16.gmra.mxu1 %v5731_v2 }
 0x30f   :  { %v2732_v9 = vmax.f32 %v2576_v49, 0.0  ;;  %2448 = vmatmul.bf16.gmra.mxu2 %v5729_v62  ;;  %2617 = vmatmul.bf16.gmra.mxu3 %v5731_v2 }
 0x310   :  { %v2733_v60 = vmax.f32 %v2241_v32, 0.0  ;;  %v5338_v32 = vld [vmem:[#allocation11 + $0x34] sm:$0xf] }
 0x311   :  { %v5979_v13 = vpack.c.bf16 %v2732_v9, %v2730_v17  ;;  %v5104_v9 = vld [vmem:[#allocation11 + $0x38] sm:$0xf0] }
 0x312   :  { %v2409_v16 = vpop.f32.mrf.mxu2  ;;  %v2578_v52 = vpop.f32.mrf.mxu3 }
 0x313   :  { %v2410_v11 = vadd.f32 %v2409_v16, %v5914_v44  ;;  %v2073_v3 = vpop.f32.mrf.mxu0  ;;  %v2242_v25 = vpop.f32.mrf.mxu1  ;;  %v5107_v16 = vor.u32 %v5338_v32, %v5104_v9 }
 0x314   :  { %v2074_v22 = vadd.f32 %v2073_v3, %v5904_v37 }
 0x315   :  { %v2579_v46 = vadd.f32 %v2578_v52, %v2410_v11  ;;  %v5354_v11 = vld [vmem:[#allocation11 + $0xb4] sm:$0xf]  ;;  %v5168_v52 = vld [vmem:[#allocation11 + $0xb8] sm:$0xf0]  ;;  %3445 = vmatpush.bf16.msra.mxu2 %v5107_v16 }
 0x316   :  { %v2243_v10 = vadd.f32 %v2242_v25, %v2074_v22  ;;  %v5171_v25 = vor.u32 %v5354_v11, %v5168_v52 }
 0x317   :  { %v2734_v49 = vmax.f32 %v2579_v46, 0.0 }
 0x318   :  { %v2735_v35 = vmax.f32 %v2243_v10, 0.0  ;;  %3614 = vmatpush.bf16.msra.mxu3 %v5171_v25 }
 0x31a   :  { %v2411_v1 = vpop.f32.mrf.mxu2  ;;  %v5983_v50 = vpack.c.bf16 %v2735_v35, %v2733_v60  ;;  %v2580_v2 = vpop.f32.mrf.mxu3 }
 0x31b   :  { %v2412_v62 = vadd.f32 %v2411_v1, %v5914_v44  ;;  %v2076_v15 = vpop.f32.mrf.mxu0  ;;  %v2245_v38 = vpop.f32.mrf.mxu1 }
 0x31c   :  { %v2077_v19 = vadd.f32 %v2076_v15, %v5904_v37  ;;  %v5102_v15 = vld [vmem:[#allocation11 + $0x30] sm:$0xf] }
 0x31d   :  { %v2581_v41 = vadd.f32 %v2580_v2, %v2412_v62  ;;  %2115 = vmatmul.bf16.gmra.mxu0 %v5737_v57 }
 0x31e   :  { %v2246_v31 = vadd.f32 %v2245_v38, %v2077_v19  ;;  %2284 = vmatmul.bf16.gmra.mxu1 %v5739_v59  ;;  %v5339_v19 = vld [vmem:[#allocation11 + $0x34] sm:$0xf0] }
 0x31f   :  { %v2736_v17 = vmax.f32 %v2581_v41, 0.0  ;;  %2453 = vmatmul.bf16.gmra.mxu2 %v5737_v57  ;;  %2622 = vmatmul.bf16.gmra.mxu3 %v5739_v59  ;;  %v5103_v38 = vor.u32 %v5339_v19, %v5102_v15  ;;  %v5166_v41 = vld [vmem:[#allocation11 + $0xb0] sm:$0xf] }
 0x320   :  { %v2737_v62 = vmax.f32 %v2246_v31, 0.0 }
 0x321   :  { %v5991_v3 = vpack.c.bf16 %v2736_v17, %v2734_v49  ;;  %v5355_v49 = vld [vmem:[#allocation11 + $0xb4] sm:$0xf0]  ;;  %3107 = vmatpush.bf16.msra.mxu0 %v5103_v38 }
 0x322   :  { %v2414_v22 = vpop.f32.mrf.mxu2  ;;  %v2583_v60 = vpop.f32.mrf.mxu3  ;;  %v5167_v32 = vor.u32 %v5355_v49, %v5166_v41 }
 0x323   :  { %v2415_v10 = vadd.f32 %v2414_v22, %v5914_v44  ;;  %v2078_v46 = vpop.f32.mrf.mxu0  ;;  %v2247_v1 = vpop.f32.mrf.mxu1 }
 0x324   :  { %v2079_v35 = vadd.f32 %v2078_v46, %v5904_v37  ;;  %3276 = vmatpush.bf16.msra.mxu1 %v5167_v32 }
 0x325   :  { %v2584_v57 = vadd.f32 %v2583_v60, %v2415_v10 }
 0x326   :  { %v2248_v59 = vadd.f32 %v2247_v1, %v2079_v35 }
 0x327   :  { %v2738_v60 = vmax.f32 %v2584_v57, 0.0 }
 0x328   :  { %v2739_v2 = vmax.f32 %v2248_v59, 0.0 }
 0x32a   :  { %v2416_v17 = vpop.f32.mrf.mxu2  ;;  %v5995_v9 = vpack.c.bf16 %v2739_v2, %v2737_v62  ;;  %v2585_v16 = vpop.f32.mrf.mxu3 }
 0x32b   :  { %v2417_v11 = vadd.f32 %v2416_v17, %v5914_v44  ;;  %v2081_v52 = vpop.f32.mrf.mxu0  ;;  %v2250_v25 = vpop.f32.mrf.mxu1 }
 0x32c   :  { %v2082_v22 = vadd.f32 %v2081_v52, %v5904_v37 }
 0x32d   :  { %v2586_v31 = vadd.f32 %v2585_v16, %v2417_v11  ;;  %2120 = vmatmul.bf16.gmra.mxu0 %v5745_v34 }
 0x32e   :  { %v2251_v10 = vadd.f32 %v2250_v25, %v2082_v22  ;;  %2289 = vmatmul.bf16.gmra.mxu1 %v5747_v40 }
 0x32f   :  { %v2740_v46 = vmax.f32 %v2586_v31, 0.0  ;;  %2458 = vmatmul.bf16.gmra.mxu2 %v5745_v34  ;;  %2627 = vmatmul.bf16.gmra.mxu3 %v5747_v40 }
 0x330   :  { %v2741_v57 = vmax.f32 %v2251_v10, 0.0 }
 0x331   :  { %v6003_v35 = vpack.c.bf16 %v2740_v46, %v2738_v60 }
 0x332   :  { %v2419_v1 = vpop.f32.mrf.mxu2  ;;  %v2588_v62 = vpop.f32.mrf.mxu3 }
 0x333   :  { %v2420_v59 = vadd.f32 %v2419_v1, %v5914_v44  ;;  %v2083_v2 = vpop.f32.mrf.mxu0  ;;  %v2252_v19 = vpop.f32.mrf.mxu1 }
 0x334   :  { %v2084_v15 = vadd.f32 %v2083_v2, %v5904_v37 }
 0x335   :  { %v2589_v38 = vadd.f32 %v2588_v62, %v2420_v59 }
 0x336   :  { %v2253_v41 = vadd.f32 %v2252_v19, %v2084_v15 }
 0x337   :  { %v2742_v31 = vmax.f32 %v2589_v38, 0.0 }
 0x338   :  { %v2743_v49 = vmax.f32 %v2253_v41, 0.0 }
 0x33a   :  { %v2421_v17 = vpop.f32.mrf.mxu2  ;;  %v6007_v32 = vpack.c.bf16 %v2743_v49, %v2741_v57  ;;  %v2590_v40 = vpop.f32.mrf.mxu3 }
 0x33b   :  { %v2422_v34 = vadd.f32 %v2421_v17, %v5914_v44  ;;  %v2086_v11 = vpop.f32.mrf.mxu0  ;;  %v2255_v52 = vpop.f32.mrf.mxu1 }
 0x33c   :  { %v2087_v16 = vadd.f32 %v2086_v11, %v5904_v37 }
 0x33d   :  { %v2591_v22 = vadd.f32 %v2590_v40, %v2422_v34  ;;  %2125 = vmatmul.bf16.gmra.mxu0 %v5753_v24 }
 0x33e   :  { %v2256_v25 = vadd.f32 %v2255_v52, %v2087_v16  ;;  %2294 = vmatmul.bf16.gmra.mxu1 %v5755_v27 }
 0x33f   :  { %v2744_v60 = vmax.f32 %v2591_v22, 0.0  ;;  %2463 = vmatmul.bf16.gmra.mxu2 %v5753_v24  ;;  %2632 = vmatmul.bf16.gmra.mxu3 %v5755_v27 }
 0x340   :  { %v2745_v38 = vmax.f32 %v2256_v25, 0.0 }
 0x341   :  { %v6015_v10 = vpack.c.bf16 %v2744_v60, %v2742_v31 }
 0x342   :  { %v2424_v46 = vpop.f32.mrf.mxu2  ;;  %v2593_v59 = vpop.f32.mrf.mxu3 }
 0x343   :  { %v2425_v1 = vadd.f32 %v2424_v46, %v5914_v44  ;;  %v2088_v62 = vpop.f32.mrf.mxu0  ;;  %v2257_v15 = vpop.f32.mrf.mxu1 }
 0x344   :  { %v2089_v2 = vadd.f32 %v2088_v62, %v5904_v37 }
 0x345   :  { %v2594_v19 = vadd.f32 %v2593_v59, %v2425_v1 }
 0x346   :  { %v2258_v41 = vadd.f32 %v2257_v15, %v2089_v2 }
 0x347   :  { %v2746_v22 = vmax.f32 %v2594_v19, 0.0 }
 0x348   :  { %v2747_v57 = vmax.f32 %v2258_v41, 0.0 }
 0x34a   :  { %v2426_v49 = vpop.f32.mrf.mxu2  ;;  %v6019_v17 = vpack.c.bf16 %v2747_v57, %v2745_v38  ;;  %v2595_v27 = vpop.f32.mrf.mxu3 }
 0x34b   :  { %v2427_v24 = vadd.f32 %v2426_v49, %v5914_v44  ;;  %v2091_v34 = vpop.f32.mrf.mxu0  ;;  %v2260_v11 = vpop.f32.mrf.mxu1 }
 0x34c   :  { %v2092_v40 = vadd.f32 %v2091_v34, %v5904_v37 }
 0x34d   :  { %v2596_v16 = vadd.f32 %v2595_v27, %v2427_v24  ;;  %2130 = vmatmul.bf16.gmra.mxu0 %v5761_v23 }
 0x34e   :  { %v2261_v52 = vadd.f32 %v2260_v11, %v2092_v40  ;;  %2299 = vmatmul.bf16.gmra.mxu1 %v5763_v29 }
 0x34f   :  { %v2748_v31 = vmax.f32 %v2596_v16, 0.0  ;;  %2468 = vmatmul.bf16.gmra.mxu2 %v5761_v23  ;;  %2637 = vmatmul.bf16.gmra.mxu3 %v5763_v29 }
 0x350   :  { %v2749_v19 = vmax.f32 %v2261_v52, 0.0  ;;  %v5336_v52 = vld [vmem:[#allocation11 + $0x24] sm:$0xf] }
 0x351   :  { %v6027_v25 = vpack.c.bf16 %v2748_v31, %v2746_v22  ;;  %v7023_v31 = vld [vmem:[#allocation17_spill] sm:$0xff] }
 0x352   :  { %v2429_v60 = vpop.f32.mrf.mxu2  ;;  %v2598_v1 = vpop.f32.mrf.mxu3 }
 0x353   :  { %v2430_v46 = vadd.f32 %v2429_v60, %v5914_v44  ;;  %v2093_v59 = vpop.f32.mrf.mxu0  ;;  %v2262_v2 = vpop.f32.mrf.mxu1  ;;  %v5096_v60 = vld [vmem:[#allocation11 + $0x28] sm:$0xf0] }
 0x354   :  { %v2094_v62 = vadd.f32 %v2093_v59, %v5904_v37  ;;  %v5160_v59 = vld [vmem:[#allocation11 + $0xa8] sm:$0xf0] }
 0x355   :  { %v2599_v15 = vadd.f32 %v2598_v1, %v2430_v46  ;;  %v5099_v46 = vor.u32 %v5336_v52, %v5096_v60  ;;  %v5352_v1 = vld [vmem:[#allocation11 + $0xa4] sm:$0xf] }
 0x356   :  { %v2263_v41 = vadd.f32 %v2262_v2, %v2094_v62 }
 0x357   :  { %v2750_v16 = vmax.f32 %v2599_v15, 0.0  ;;  %3446 = vmatpush.bf16.msra.mxu2 %v5099_v46 }
 0x358   :  { %v2751_v38 = vmax.f32 %v2263_v41, 0.0  ;;  %v5163_v41 = vor.u32 %v5352_v1, %v5160_v59 }
 0x35a   :  { %v2431_v57 = vpop.f32.mrf.mxu2  ;;  %v6031_v49 = vpack.c.bf16 %v2751_v38, %v2749_v19  ;;  %v2600_v29 = vpop.f32.mrf.mxu3  ;;  %3615 = vmatpush.bf16.msra.mxu3 %v5163_v41 }
 0x35b   :  { %v2432_v23 = vadd.f32 %v2431_v57, %v5914_v44  ;;  %v2096_v24 = vpop.f32.mrf.mxu0  ;;  %v2265_v34 = vpop.f32.mrf.mxu1 }
 0x35c   :  { %v2097_v27 = vadd.f32 %v2096_v24, %v5904_v37 }
 0x35d   :  { %v2601_v40 = vadd.f32 %v2600_v29, %v2432_v23  ;;  %2135 = vmatmul.bf16.gmra.mxu0 %v5769_v33 }
 0x35e   :  { %v2266_v11 = vadd.f32 %v2265_v34, %v2097_v27  ;;  %2304 = vmatmul.bf16.gmra.mxu1 %v7023_v31  ;;  %v5094_v34 = vld [vmem:[#allocation11 + $0x20] sm:$0xf] }
 0x35f   :  { %v2752_v22 = vmax.f32 %v2601_v40, 0.0  ;;  %2473 = vmatmul.bf16.gmra.mxu2 %v5769_v33  ;;  %2642 = vmatmul.bf16.gmra.mxu3 %v7023_v31  ;;  %v5337_v40 = vld [vmem:[#allocation11 + $0x24] sm:$0xf0] }
 0x360   :  { %v2753_v24 = vmax.f32 %v2266_v11, 0.0  ;;  %v5095_v31 = vor.u32 %v5337_v40, %v5094_v34 }
 0x361   :  { %v6039_v62 = vpack.c.bf16 %v2752_v22, %v2750_v16  ;;  %v5158_v16 = vld [vmem:[#allocation11 + $0xa0] sm:$0xf]  ;;  %v5353_v22 = vld [vmem:[#allocation11 + $0xa4] sm:$0xf0] }
 0x362   :  { %v2434_v2 = vpop.f32.mrf.mxu2  ;;  %v2603_v38 = vpop.f32.mrf.mxu3  ;;  %v5159_v60 = vor.u32 %v5353_v22, %v5158_v16  ;;  %3108 = vmatpush.bf16.msra.mxu0 %v5095_v31 }
 0x363   :  { %v2435_v19 = vadd.f32 %v2434_v2, %v5914_v44  ;;  %v2098_v15 = vpop.f32.mrf.mxu0  ;;  %v2267_v23 = vpop.f32.mrf.mxu1 }
 0x364   :  { %v2099_v57 = vadd.f32 %v2098_v15, %v5904_v37  ;;  %3277 = vmatpush.bf16.msra.mxu1 %v5159_v60  ;;  %v7024_v15 = vld [vmem:[#allocation18_spill] sm:$0xff] }
 0x365   :  { %v2604_v33 = vadd.f32 %v2603_v38, %v2435_v19 }
 0x366   :  { %v2268_v29 = vadd.f32 %v2267_v23, %v2099_v57 }
 0x367   :  { %v2754_v57 = vmax.f32 %v2604_v33, 0.0 }
 0x368   :  { %v2755_v27 = vmax.f32 %v2268_v29, 0.0  ;;  %v7025_v29 = vld [vmem:[#allocation19_spill] sm:$0xff] }
 0x36a   :  { %v2436_v52 = vpop.f32.mrf.mxu2  ;;  %v6043_v1 = vpack.c.bf16 %v2755_v27, %v2753_v24  ;;  %v2605_v46 = vpop.f32.mrf.mxu3 }
 0x36b   :  { %v2437_v59 = vadd.f32 %v2436_v52, %v5914_v44  ;;  %v2101_v2 = vpop.f32.mrf.mxu0  ;;  %v2270_v19 = vpop.f32.mrf.mxu1 }
 0x36c   :  { %v2102_v41 = vadd.f32 %v2101_v2, %v5904_v37 }
 0x36d   :  { %v2606_v11 = vadd.f32 %v2605_v46, %v2437_v59  ;;  %2140 = vmatmul.bf16.gmra.mxu0 %v7024_v15 }
 0x36e   :  { %v2271_v38 = vadd.f32 %v2270_v19, %v2102_v41  ;;  %2309 = vmatmul.bf16.gmra.mxu1 %v7025_v29 }
 0x36f   :  { %v2756_v23 = vmax.f32 %v2606_v11, 0.0  ;;  %2478 = vmatmul.bf16.gmra.mxu2 %v7024_v15  ;;  %2647 = vmatmul.bf16.gmra.mxu3 %v7025_v29 }
 0x370   :  { %v2757_v33 = vmax.f32 %v2271_v38, 0.0 }
 0x371   :  { %v6051_v24 = vpack.c.bf16 %v2756_v23, %v2754_v57 }
 0x372   :  { %v2439_v27 = vpop.f32.mrf.mxu2  ;;  %v2608_v40 = vpop.f32.mrf.mxu3 }
 0x373   :  { %7026 = vst [vmem:[#allocation17_spill] sm:$0xff] %v6051_v24  ;;  %v2440_v34 = vadd.f32 %v2439_v27, %v5914_v44  ;;  %v2103_v31 = vpop.f32.mrf.mxu0  ;;  %v2272_v22 = vpop.f32.mrf.mxu1  ;;  %v7027_v27 = vld [vmem:[#allocation20_spill] sm:$0xff] }
 0x374   :  { %v2104_v16 = vadd.f32 %v2103_v31, %v5904_v37 }
 0x375   :  { %v2609_v52 = vadd.f32 %v2608_v40, %v2440_v34  ;;  %v7028_v34 = vld [vmem:[#allocation21_spill] sm:$0xff] }
 0x376   :  { %v2273_v60 = vadd.f32 %v2272_v22, %v2104_v16 }
 0x377   :  { %v2758_v31 = vmax.f32 %v2609_v52, 0.0 }
 0x378   :  { %v2759_v59 = vmax.f32 %v2273_v60, 0.0 }
 0x37a   :  { %v2441_v46 = vpop.f32.mrf.mxu2  ;;  %v6055_v2 = vpack.c.bf16 %v2759_v59, %v2757_v33  ;;  %v2610_v19 = vpop.f32.mrf.mxu3 }
 0x37b   :  { %v2442_v41 = vadd.f32 %v2441_v46, %v5914_v44  ;;  %v2106_v11 = vpop.f32.mrf.mxu0  ;;  %v2275_v57 = vpop.f32.mrf.mxu1 }
 0x37c   :  { %v2107_v15 = vadd.f32 %v2106_v11, %v5904_v37 }
 0x37d   :  { %v2611_v23 = vadd.f32 %v2610_v19, %v2442_v41  ;;  %2145 = vmatmul.bf16.gmra.mxu0 %v7027_v27 }
 0x37e   :  { %v2276_v29 = vadd.f32 %v2275_v57, %v2107_v15  ;;  %2314 = vmatmul.bf16.gmra.mxu1 %v7028_v34 }
 0x37f   :  { %v2760_v24 = vmax.f32 %v2611_v23, 0.0  ;;  %2483 = vmatmul.bf16.gmra.mxu2 %v7027_v27  ;;  %2652 = vmatmul.bf16.gmra.mxu3 %v7028_v34 }
 0x380   :  { %v2761_v52 = vmax.f32 %v2276_v29, 0.0 }
 0x381   :  { %v6063_v38 = vpack.c.bf16 %v2760_v24, %v2758_v31 }
 0x382   :  { %v2444_v40 = vpop.f32.mrf.mxu2  ;;  %v2613_v22 = vpop.f32.mrf.mxu3 }
 0x383   :  { %7029 = vst [vmem:[#allocation18_spill] sm:$0xff] %v6063_v38  ;;  %v2445_v16 = vadd.f32 %v2444_v40, %v5914_v44  ;;  %v2108_v60 = vpop.f32.mrf.mxu0  ;;  %v2277_v59 = vpop.f32.mrf.mxu1 }
 0x384   :  { %v2109_v33 = vadd.f32 %v2108_v60, %v5904_v37 }
 0x385   :  { %v2614_v46 = vadd.f32 %v2613_v22, %v2445_v16 }
 0x386   :  { %v2278_v41 = vadd.f32 %v2277_v59, %v2109_v33 }
 0x387   :  { %v2762_v60 = vmax.f32 %v2614_v46, 0.0 }
 0x388   :  { %v2763_v19 = vmax.f32 %v2278_v41, 0.0 }
 0x38a   :  { %v2446_v11 = vpop.f32.mrf.mxu2  ;;  %v6067_v15 = vpack.c.bf16 %v2763_v19, %v2761_v52  ;;  %v2615_v23 = vpop.f32.mrf.mxu3 }
 0x38b   :  { %v2447_v57 = vadd.f32 %v2446_v11, %v5914_v44  ;;  %v2111_v24 = vpop.f32.mrf.mxu0  ;;  %v2280_v31 = vpop.f32.mrf.mxu1 }
 0x38c   :  { %v2112_v27 = vadd.f32 %v2111_v24, %v5904_v37 }
 0x38d   :  { %v2616_v34 = vadd.f32 %v2615_v23, %v2447_v57  ;;  %2150 = vmatmul.bf16.gmra.mxu0 %v5793_v56 }
 0x38e   :  { %v2281_v40 = vadd.f32 %v2280_v31, %v2112_v27  ;;  %2319 = vmatmul.bf16.gmra.mxu1 %v5795_v20 }
 0x38f   :  { %v2764_v38 = vmax.f32 %v2616_v34, 0.0  ;;  %2488 = vmatmul.bf16.gmra.mxu2 %v5793_v56  ;;  %2657 = vmatmul.bf16.gmra.mxu3 %v5795_v20 }
 0x390   :  { %v2765_v46 = vmax.f32 %v2281_v40, 0.0  ;;  %v5334_v40 = vld [vmem:[#allocation11 + $0x14] sm:$0xf] }
 0x391   :  { %v6075_v29 = vpack.c.bf16 %v2764_v38, %v2762_v60 }
 0x392   :  { %v2449_v16 = vpop.f32.mrf.mxu2  ;;  %v2618_v33 = vpop.f32.mrf.mxu3 }
 0x393   :  { %v2450_v22 = vadd.f32 %v2449_v16, %v5914_v44  ;;  %v2113_v59 = vpop.f32.mrf.mxu0  ;;  %v2282_v52 = vpop.f32.mrf.mxu1 }
 0x394   :  { %v2114_v41 = vadd.f32 %v2113_v59, %v5904_v37 }
 0x395   :  { %v2619_v19 = vadd.f32 %v2618_v33, %v2450_v22  ;;  %v5088_v22 = vld [vmem:[#allocation11 + $0x18] sm:$0xf0] }
 0x396   :  { %v2283_v11 = vadd.f32 %v2282_v52, %v2114_v41  ;;  %v5091_v33 = vor.u32 %v5334_v40, %v5088_v22  ;;  %v5350_v41 = vld [vmem:[#allocation11 + $0x94] sm:$0xf]  ;;  %v5152_v52 = vld [vmem:[#allocation11 + $0x98] sm:$0xf0]  ;;  %v5335_v40 = vld [vmem:[#allocation11 + $0x14] sm:$0xf0] }
 0x397   :  { %v2766_v16 = vmax.f32 %v2619_v19, 0.0 }
 0x398   :  { %v2767_v57 = vmax.f32 %v2283_v11, 0.0  ;;  %3447 = vmatpush.bf16.msra.mxu2 %v5091_v33 }
 0x39a   :  { %v2451_v23 = vpop.f32.mrf.mxu2  ;;  %v6079_v24 = vpack.c.bf16 %v2767_v57, %v2765_v46  ;;  %v2620_v20 = vpop.f32.mrf.mxu3  ;;  %v5155_v57 = vor.u32 %v5350_v41, %v5152_v52 }
 0x39b   :  { %v2452_v56 = vadd.f32 %v2451_v23, %v5914_v44  ;;  %v2116_v38 = vpop.f32.mrf.mxu0  ;;  %v2285_v31 = vpop.f32.mrf.mxu1 }
 0x39c   :  { %7030 = vst [vmem:[#allocation19_spill] sm:$0xff] %v6079_v24  ;;  %v2117_v27 = vadd.f32 %v2116_v38, %v5904_v37  ;;  %3616 = vmatpush.bf16.msra.mxu3 %v5155_v57 }
 0x39d   :  { %v2621_v34 = vadd.f32 %v2620_v20, %v2452_v56  ;;  %2155 = vmatmul.bf16.gmra.mxu0 %v5801_v63 }
 0x39e   :  { %v2286_v60 = vadd.f32 %v2285_v31, %v2117_v27  ;;  %2324 = vmatmul.bf16.gmra.mxu1 %v5803_v8 }
 0x39f   :  { %v2768_v59 = vmax.f32 %v2621_v34, 0.0  ;;  %2493 = vmatmul.bf16.gmra.mxu2 %v5801_v63  ;;  %2662 = vmatmul.bf16.gmra.mxu3 %v5803_v8  ;;  %v5086_v34 = vld [vmem:[#allocation11 + $0x10] sm:$0xf] }
 0x3a0   :  { %v2769_v27 = vmax.f32 %v2286_v60, 0.0  ;;  %v5087_v22 = vor.u32 %v5335_v40, %v5086_v34 }
 0x3a1   :  { %v6087_v11 = vpack.c.bf16 %v2768_v59, %v2766_v16  ;;  %v5150_v16 = vld [vmem:[#allocation11 + $0x90] sm:$0xf]  ;;  %v5351_v59 = vld [vmem:[#allocation11 + $0x94] sm:$0xf0] }
 0x3a2   :  { %v2454_v46 = vpop.f32.mrf.mxu2  ;;  %v2623_v56 = vpop.f32.mrf.mxu3  ;;  %v5151_v41 = vor.u32 %v5351_v59, %v5150_v16  ;;  %3109 = vmatpush.bf16.msra.mxu0 %v5087_v22 }
 0x3a3   :  { %7031 = vst [vmem:[#allocation20_spill] sm:$0xff] %v6087_v11  ;;  %v2455_v23 = vadd.f32 %v2454_v46, %v5914_v44  ;;  %v2118_v19 = vpop.f32.mrf.mxu0  ;;  %v2287_v38 = vpop.f32.mrf.mxu1 }
 0x3a4   :  { %v2119_v20 = vadd.f32 %v2118_v19, %v5904_v37  ;;  %3278 = vmatpush.bf16.msra.mxu1 %v5151_v41 }
 0x3a5   :  { %v2624_v63 = vadd.f32 %v2623_v56, %v2455_v23 }
 0x3a6   :  { %v2288_v8 = vadd.f32 %v2287_v38, %v2119_v20 }
 0x3a7   :  { %v2770_v19 = vmax.f32 %v2624_v63, 0.0 }
 0x3a8   :  { %v2771_v31 = vmax.f32 %v2288_v8, 0.0 }
 0x3aa   :  { %v2456_v11 = vpop.f32.mrf.mxu2  ;;  %v6091_v52 = vpack.c.bf16 %v2771_v31, %v2769_v27  ;;  %v2625_v33 = vpop.f32.mrf.mxu3 }
 0x3ab   :  { %v2457_v46 = vadd.f32 %v2456_v11, %v5914_v44  ;;  %v2121_v24 = vpop.f32.mrf.mxu0  ;;  %v2290_v23 = vpop.f32.mrf.mxu1 }
 0x3ac   :  { %v2122_v57 = vadd.f32 %v2121_v24, %v5904_v37 }
 0x3ad   :  { %v2626_v60 = vadd.f32 %v2625_v33, %v2457_v46  ;;  %2160 = vmatmul.bf16.gmra.mxu0 %v5813_v4 }
 0x3ae   :  { %v2291_v56 = vadd.f32 %v2290_v23, %v2122_v57  ;;  %2329 = vmatmul.bf16.gmra.mxu1 %v5815_v18 }
 0x3af   :  { %v2772_v20 = vmax.f32 %v2626_v60, 0.0  ;;  %2498 = vmatmul.bf16.gmra.mxu2 %v5813_v4  ;;  %2667 = vmatmul.bf16.gmra.mxu3 %v5815_v18 }
 0x3b0   :  { %v2773_v63 = vmax.f32 %v2291_v56, 0.0 }
 0x3b1   :  { %v6099_v11 = vpack.c.bf16 %v2772_v20, %v2770_v19  ;;  %v7032_v19 = vld [vmem:[#allocation22_spill] sm:$0xff] }
 0x3b2   :  { %v2459_v38 = vpop.f32.mrf.mxu2  ;;  %v2628_v24 = vpop.f32.mrf.mxu3 }
 0x3b3   :  { %v2460_v8 = vadd.f32 %v2459_v38, %v5914_v44  ;;  %v2123_v27 = vpop.f32.mrf.mxu0  ;;  %v2292_v34 = vpop.f32.mrf.mxu1 }
 0x3b4   :  { %v2124_v31 = vadd.f32 %v2123_v27, %v5904_v37 }
 0x3b5   :  { %v2629_v40 = vadd.f32 %v2628_v24, %v2460_v8  ;;  %v7033_v8 = vld [vmem:[#allocation23_spill] sm:$0xff] }
 0x3b6   :  { %v2293_v22 = vadd.f32 %v2292_v34, %v2124_v31 }
 0x3b7   :  { %v2774_v20 = vmax.f32 %v2629_v40, 0.0 }
 0x3b8   :  { %v2775_v16 = vmax.f32 %v2293_v22, 0.0 }
 0x3ba   :  { %v2461_v59 = vpop.f32.mrf.mxu2  ;;  %v6103_v41 = vpack.c.bf16 %v2775_v16, %v2773_v63  ;;  %v2630_v18 = vpop.f32.mrf.mxu3 }
 0x3bb   :  { %v2462_v4 = vadd.f32 %v2461_v59, %v5914_v44  ;;  %v2126_v46 = vpop.f32.mrf.mxu0  ;;  %v2295_v57 = vpop.f32.mrf.mxu1 }
 0x3bc   :  { %v2127_v33 = vadd.f32 %v2126_v46, %v5904_v37 }
 0x3bd   :  { %v2631_v23 = vadd.f32 %v2630_v18, %v2462_v4  ;;  %2165 = vmatmul.bf16.gmra.mxu0 %v7032_v19 }
 0x3be   :  { %v2296_v60 = vadd.f32 %v2295_v57, %v2127_v33  ;;  %2334 = vmatmul.bf16.gmra.mxu1 %v7033_v8 }
 0x3bf   :  { %v2776_v38 = vmax.f32 %v2631_v23, 0.0  ;;  %2503 = vmatmul.bf16.gmra.mxu2 %v7032_v19  ;;  %2672 = vmatmul.bf16.gmra.mxu3 %v7033_v8 }
 0x3c0   :  { %v2777_v40 = vmax.f32 %v2296_v60, 0.0 }
 0x3c1   :  { %v6111_v56 = vpack.c.bf16 %v2776_v38, %v2774_v20 }
 0x3c2   :  { %v2464_v24 = vpop.f32.mrf.mxu2  ;;  %v2633_v31 = vpop.f32.mrf.mxu3 }
 0x3c3   :  { %v2465_v27 = vadd.f32 %v2464_v24, %v5914_v44  ;;  %v2128_v34 = vpop.f32.mrf.mxu0  ;;  %v2297_v63 = vpop.f32.mrf.mxu1 }
 0x3c4   :  { %v2129_v22 = vadd.f32 %v2128_v34, %v5904_v37 }
 0x3c5   :  { %v2634_v16 = vadd.f32 %v2633_v31, %v2465_v27 }
 0x3c6   :  { %v2298_v59 = vadd.f32 %v2297_v63, %v2129_v22 }
 0x3c7   :  { %v2778_v24 = vmax.f32 %v2634_v16, 0.0 }
 0x3c8   :  { %v2779_v4 = vmax.f32 %v2298_v59, 0.0 }
 0x3ca   :  { %v2466_v18 = vpop.f32.mrf.mxu2  ;;  %v6115_v46 = vpack.c.bf16 %v2779_v4, %v2777_v40  ;;  %v2635_v57 = vpop.f32.mrf.mxu3 }
 0x3cb   :  { %v2467_v33 = vadd.f32 %v2466_v18, %v5914_v44  ;;  %v2131_v23 = vpop.f32.mrf.mxu0  ;;  %v2300_v20 = vpop.f32.mrf.mxu1 }
 0x3cc   :  { %v2132_v19 = vadd.f32 %v2131_v23, %v5904_v37 }
 0x3cd   :  { %v2636_v38 = vadd.f32 %v2635_v57, %v2467_v33  ;;  %2170 = vmatmul.bf16.gmra.mxu0 %v5837_v42 }
 0x3ce   :  { %v2301_v8 = vadd.f32 %v2300_v20, %v2132_v19  ;;  %2339 = vmatmul.bf16.gmra.mxu1 %v5839_v58 }
 0x3cf   :  { %v2780_v34 = vmax.f32 %v2636_v38, 0.0  ;;  %2508 = vmatmul.bf16.gmra.mxu2 %v5837_v42  ;;  %2677 = vmatmul.bf16.gmra.mxu3 %v5839_v58 }
 0x3d0   :  { %v2781_v16 = vmax.f32 %v2301_v8, 0.0  ;;  %v5332_v8 = vld [vmem:[#allocation11 + $0x4] sm:$0xf] }
 0x3d1   :  { %v6123_v60 = vpack.c.bf16 %v2780_v34, %v2778_v24 }
 0x3d2   :  { %v2469_v27 = vpop.f32.mrf.mxu2  ;;  %v2638_v22 = vpop.f32.mrf.mxu3 }
 0x3d3   :  { %v2470_v31 = vadd.f32 %v2469_v27, %v5914_v44  ;;  %v2133_v63 = vpop.f32.mrf.mxu0  ;;  %v2302_v40 = vpop.f32.mrf.mxu1 }
 0x3d4   :  { %v2134_v59 = vadd.f32 %v2133_v63, %v5904_v37 }
 0x3d5   :  { %v2639_v4 = vadd.f32 %v2638_v22, %v2470_v31  ;;  %v5080_v31 = vld [vmem:[#allocation11 + $0x8] sm:$0xf0] }
 0x3d6   :  { %v2303_v18 = vadd.f32 %v2302_v40, %v2134_v59  ;;  %v5083_v22 = vor.u32 %v5332_v8, %v5080_v31  ;;  %v5348_v59 = vld [vmem:[#allocation11 + $0x84] sm:$0xf]  ;;  %v5144_v40 = vld [vmem:[#allocation11 + $0x88] sm:$0xf0]  ;;  %v5333_v8 = vld [vmem:[#allocation11 + $0x4] sm:$0xf0] }
 0x3d7   :  { %v2782_v27 = vmax.f32 %v2639_v4, 0.0 }
 0x3d8   :  { %v2783_v33 = vmax.f32 %v2303_v18, 0.0  ;;  %3448 = vmatpush.bf16.msra.mxu2 %v5083_v22 }
 0x3da   :  { %v2471_v57 = vpop.f32.mrf.mxu2  ;;  %v6127_v23 = vpack.c.bf16 %v2783_v33, %v2781_v16  ;;  %v2640_v58 = vpop.f32.mrf.mxu3  ;;  %v5147_v33 = vor.u32 %v5348_v59, %v5144_v40 }
 0x3db   :  { %v2472_v42 = vadd.f32 %v2471_v57, %v5914_v44  ;;  %v2136_v19 = vpop.f32.mrf.mxu0  ;;  %v2305_v38 = vpop.f32.mrf.mxu1 }
 0x3dc   :  { %7034 = vst [vmem:[#allocation21_spill] sm:$0xff] %v6127_v23  ;;  %v2137_v20 = vadd.f32 %v2136_v19, %v5904_v37  ;;  %3617 = vmatpush.bf16.msra.mxu3 %v5147_v33 }
 0x3dd   :  { %v2641_v24 = vadd.f32 %v2640_v58, %v2472_v42  ;;  %2175 = vmatmul.bf16.gmra.mxu0 %v5849_v61 }
 0x3de   :  { %v2306_v34 = vadd.f32 %v2305_v38, %v2137_v20  ;;  %2344 = vmatmul.bf16.gmra.mxu1 %v5851_v28 }
 0x3df   :  { %v2784_v63 = vmax.f32 %v2641_v24, 0.0  ;;  %2513 = vmatmul.bf16.gmra.mxu2 %v5849_v61  ;;  %2682 = vmatmul.bf16.gmra.mxu3 %v5851_v28  ;;  %v5078_v24 = vld [vmem:[#allocation11] sm:$0xf] }
 0x3e0   :  { %v2785_v20 = vmax.f32 %v2306_v34, 0.0  ;;  %v5079_v31 = vor.u32 %v5333_v8, %v5078_v24 }
 0x3e1   :  { %v6135_v18 = vpack.c.bf16 %v2784_v63, %v2782_v27  ;;  %v5142_v27 = vld [vmem:[#allocation11 + $0x80] sm:$0xf]  ;;  %v5349_v63 = vld [vmem:[#allocation11 + $0x84] sm:$0xf0] }
 0x3e2   :  { %v2474_v16 = vpop.f32.mrf.mxu2  ;;  %v2643_v42 = vpop.f32.mrf.mxu3  ;;  %v5143_v59 = vor.u32 %v5349_v63, %v5142_v27  ;;  %3110 = vmatpush.bf16.msra.mxu0 %v5079_v31 }
 0x3e3   :  { %7035 = vst [vmem:[#allocation22_spill] sm:$0xff] %v6135_v18  ;;  %v2475_v57 = vadd.f32 %v2474_v16, %v5914_v44  ;;  %v2138_v4 = vpop.f32.mrf.mxu0  ;;  %v2307_v19 = vpop.f32.mrf.mxu1 }
 0x3e4   :  { %v2139_v58 = vadd.f32 %v2138_v4, %v5904_v37  ;;  %3279 = vmatpush.bf16.msra.mxu1 %v5143_v59 }
 0x3e5   :  { %v2644_v61 = vadd.f32 %v2643_v42, %v2475_v57 }
 0x3e6   :  { %v2308_v28 = vadd.f32 %v2307_v19, %v2139_v58 }
 0x3e7   :  { %v2786_v4 = vmax.f32 %v2644_v61, 0.0 }
 0x3e8   :  { %v2787_v38 = vmax.f32 %v2308_v28, 0.0 }
 0x3ea   :  { %v2476_v18 = vpop.f32.mrf.mxu2  ;;  %v6139_v40 = vpack.c.bf16 %v2787_v38, %v2785_v20  ;;  %v2645_v22 = vpop.f32.mrf.mxu3 }
 0x3eb   :  { %v2477_v16 = vadd.f32 %v2476_v18, %v5914_v44  ;;  %v2141_v23 = vpop.f32.mrf.mxu0  ;;  %v2310_v57 = vpop.f32.mrf.mxu1 }
 0x3ec   :  { %v2142_v33 = vadd.f32 %v2141_v23, %v5904_v37 }
 0x3ed   :  { %v2646_v34 = vadd.f32 %v2645_v22, %v2477_v16  ;;  %2180 = vmatmul.bf16.gmra.mxu0 %v5861_v7 }
 0x3ee   :  { %v2311_v42 = vadd.f32 %v2310_v57, %v2142_v33  ;;  %2349 = vmatmul.bf16.gmra.mxu1 %v5863_v30 }
 0x3ef   :  { %v2788_v58 = vmax.f32 %v2646_v34, 0.0  ;;  %2518 = vmatmul.bf16.gmra.mxu2 %v5861_v7  ;;  %2687 = vmatmul.bf16.gmra.mxu3 %v5863_v30 }
 0x3f0   :  { %v2789_v61 = vmax.f32 %v2311_v42, 0.0 }
 0x3f1   :  { %v6147_v18 = vpack.c.bf16 %v2788_v58, %v2786_v4 }
 0x3f2   :  { %v2479_v19 = vpop.f32.mrf.mxu2  ;;  %v2648_v23 = vpop.f32.mrf.mxu3 }
 0x3f3   :  { %v2480_v28 = vadd.f32 %v2479_v19, %v5914_v44  ;;  %v2143_v20 = vpop.f32.mrf.mxu0  ;;  %v2312_v24 = vpop.f32.mrf.mxu1 }
 0x3f4   :  { %v2144_v38 = vadd.f32 %v2143_v20, %v5904_v37 }
 0x3f5   :  { %v2649_v8 = vadd.f32 %v2648_v23, %v2480_v28 }
 0x3f6   :  { %v2313_v31 = vadd.f32 %v2312_v24, %v2144_v38 }
 0x3f7   :  { %v2790_v4 = vmax.f32 %v2649_v8, 0.0 }
 0x3f8   :  { %v2791_v27 = vmax.f32 %v2313_v31, 0.0 }
 0x3fa   :  { %v2481_v63 = vpop.f32.mrf.mxu2  ;;  %v6151_v59 = vpack.c.bf16 %v2791_v27, %v2789_v61  ;;  %v2650_v30 = vpop.f32.mrf.mxu3 }
 0x3fb   :  { %v2482_v7 = vadd.f32 %v2481_v63, %v5914_v44  ;;  %v2146_v16 = vpop.f32.mrf.mxu0  ;;  %v2315_v33 = vpop.f32.mrf.mxu1 }
 0x3fc   :  { %v2147_v22 = vadd.f32 %v2146_v16, %v5904_v37 }
 0x3fd   :  { %v2651_v57 = vadd.f32 %v2650_v30, %v2482_v7  ;;  %2185 = vmatmul.bf16.gmra.mxu0 %v5873_v21 }
 0x3fe   :  { %v2316_v34 = vadd.f32 %v2315_v33, %v2147_v22  ;;  %2354 = vmatmul.bf16.gmra.mxu1 %v5875_v26 }
 0x3ff   :  { %v2792_v58 = vmax.f32 %v2651_v57, 0.0  ;;  %2523 = vmatmul.bf16.gmra.mxu2 %v5873_v21  ;;  %2692 = vmatmul.bf16.gmra.mxu3 %v5875_v26 }
 0x400   :  { %v2793_v8 = vmax.f32 %v2316_v34, 0.0 }
 0x401   :  { %v6159_v42 = vpack.c.bf16 %v2792_v58, %v2790_v4 }
 0x402   :  { %v2484_v19 = vpop.f32.mrf.mxu2  ;;  %v2653_v23 = vpop.f32.mrf.mxu3 }
 0x403   :  { %v2485_v28 = vadd.f32 %v2484_v19, %v5914_v44  ;;  %v2148_v20 = vpop.f32.mrf.mxu0  ;;  %v2317_v24 = vpop.f32.mrf.mxu1 }
 0x404   :  { %v2149_v38 = vadd.f32 %v2148_v20, %v5904_v37 }
 0x405   :  { %v2654_v31 = vadd.f32 %v2653_v23, %v2485_v28 }
 0x406   :  { %v2318_v61 = vadd.f32 %v2317_v24, %v2149_v38 }
 0x407   :  { %v2794_v4 = vmax.f32 %v2654_v31, 0.0 }
 0x408   :  { %v2795_v27 = vmax.f32 %v2318_v61, 0.0 }
 0x40a   :  { %v2486_v63 = vpop.f32.mrf.mxu2  ;;  %v6163_v7 = vpack.c.bf16 %v2795_v27, %v2793_v8  ;;  %v2655_v26 = vpop.f32.mrf.mxu3 }
 0x40b   :  { %v2487_v21 = vadd.f32 %v2486_v63, %v5914_v44  ;;  %v2151_v30 = vpop.f32.mrf.mxu0  ;;  %v2320_v22 = vpop.f32.mrf.mxu1 }
 0x40c   :  { %v2152_v16 = vadd.f32 %v2151_v30, %v5904_v37 }
 0x40d   :  { %v2656_v33 = vadd.f32 %v2655_v26, %v2487_v21  ;;  %2190 = vmatmul.bf16.gmra.mxu0 %v5885_v0 }
 0x40e   :  { %v2321_v57 = vadd.f32 %v2320_v22, %v2152_v16  ;;  %2359 = vmatmul.bf16.gmra.mxu1 %v5887_v36 }
 0x40f   :  { %v2796_v58 = vmax.f32 %v2656_v33, 0.0  ;;  %2528 = vmatmul.bf16.gmra.mxu2 %v5885_v0  ;;  %2697 = vmatmul.bf16.gmra.mxu3 %v5887_v36 }
 0x410   :  { %v2797_v31 = vmax.f32 %v2321_v57, 0.0 }
 0x411   :  { %v6171_v34 = vpack.c.bf16 %v2796_v58, %v2794_v4 }
 0x412   :  { %v2489_v19 = vpop.f32.mrf.mxu2  ;;  %v2658_v23 = vpop.f32.mrf.mxu3 }
 0x413   :  { %v2490_v28 = vadd.f32 %v2489_v19, %v5914_v44  ;;  %v2153_v20 = vpop.f32.mrf.mxu0  ;;  %v2322_v24 = vpop.f32.mrf.mxu1 }
 0x414   :  { %v2154_v38 = vadd.f32 %v2153_v20, %v5904_v37 }
 0x415   :  { %v2659_v61 = vadd.f32 %v2658_v23, %v2490_v28 }
 0x416   :  { %v2323_v8 = vadd.f32 %v2322_v24, %v2154_v38 }
 0x417   :  { %v2798_v4 = vmax.f32 %v2659_v61, 0.0 }
 0x418   :  { %v2799_v27 = vmax.f32 %v2323_v8, 0.0 }
 0x41a   :  { %v2491_v63 = vpop.f32.mrf.mxu2  ;;  %v6175_v21 = vpack.c.bf16 %v2799_v27, %v2797_v31  ;;  %v2660_v36 = vpop.f32.mrf.mxu3 }
 0x41b   :  { %v2492_v0 = vadd.f32 %v2491_v63, %v5914_v44  ;;  %v2156_v26 = vpop.f32.mrf.mxu0  ;;  %v2325_v16 = vpop.f32.mrf.mxu1 }
 0x41c   :  { %v2157_v30 = vadd.f32 %v2156_v26, %v5904_v37 }
 0x41d   :  { %v2661_v22 = vadd.f32 %v2660_v36, %v2492_v0  ;;  %2195 = vmatmul.bf16.gmra.mxu0 %v5897_v12 }
 0x41e   :  { %v2326_v33 = vadd.f32 %v2325_v16, %v2157_v30  ;;  %2364 = vmatmul.bf16.gmra.mxu1 %v5899_v5 }
 0x41f   :  { %v2800_v58 = vmax.f32 %v2661_v22, 0.0  ;;  %2533 = vmatmul.bf16.gmra.mxu2 %v5897_v12  ;;  %2702 = vmatmul.bf16.gmra.mxu3 %v5899_v5 }
 0x420   :  { %v2801_v61 = vmax.f32 %v2326_v33, 0.0 }
 0x421   :  { %v6183_v57 = vpack.c.bf16 %v2800_v58, %v2798_v4 }
 0x422   :  { %v2494_v19 = vpop.f32.mrf.mxu2  ;;  %v2663_v23 = vpop.f32.mrf.mxu3 }
 0x423   :  { %v2495_v28 = vadd.f32 %v2494_v19, %v5914_v44  ;;  %v2158_v20 = vpop.f32.mrf.mxu0  ;;  %v2327_v24 = vpop.f32.mrf.mxu1 }
 0x424   :  { %v2159_v38 = vadd.f32 %v2158_v20, %v5904_v37 }
 0x425   :  { %v2664_v8 = vadd.f32 %v2663_v23, %v2495_v28 }
 0x426   :  { %v2328_v31 = vadd.f32 %v2327_v24, %v2159_v38 }
 0x427   :  { %v2802_v4 = vmax.f32 %v2664_v8, 0.0 }
 0x428   :  { %v2803_v27 = vmax.f32 %v2328_v31, 0.0 }
 0x42a   :  { %v2496_v63 = vpop.f32.mrf.mxu2  ;;  %v6187_v0 = vpack.c.bf16 %v2803_v27, %v2801_v61  ;;  %v2665_v5 = vpop.f32.mrf.mxu3 }
 0x42b   :  { %v2497_v12 = vadd.f32 %v2496_v63, %v5914_v44  ;;  %v2161_v36 = vpop.f32.mrf.mxu0  ;;  %v2330_v30 = vpop.f32.mrf.mxu1 }
 0x42c   :  { %v2162_v26 = vadd.f32 %v2161_v36, %v5904_v37 }
 0x42d   :  { %v2666_v16 = vadd.f32 %v2665_v5, %v2497_v12  ;;  %2200 = vmatmul.bf16.gmra.mxu0 %v5917_v48 }
 0x42e   :  { %v2331_v22 = vadd.f32 %v2330_v30, %v2162_v26  ;;  %2369 = vmatmul.bf16.gmra.mxu1 %v5919_v54 }
 0x42f   :  { %v2804_v58 = vmax.f32 %v2666_v16, 0.0  ;;  %2538 = vmatmul.bf16.gmra.mxu2 %v5917_v48  ;;  %2707 = vmatmul.bf16.gmra.mxu3 %v5919_v54 }
 0x430   :  { %v2805_v8 = vmax.f32 %v2331_v22, 0.0 }
 0x431   :  { %v6195_v33 = vpack.c.bf16 %v2804_v58, %v2802_v4 }
 0x432   :  { %v2499_v19 = vpop.f32.mrf.mxu2  ;;  %v2668_v23 = vpop.f32.mrf.mxu3 }
 0x433   :  { %v2500_v28 = vadd.f32 %v2499_v19, %v5914_v44  ;;  %v2163_v20 = vpop.f32.mrf.mxu0  ;;  %v2332_v24 = vpop.f32.mrf.mxu1 }
 0x434   :  { %v2164_v38 = vadd.f32 %v2163_v20, %v5904_v37 }
 0x435   :  { %v2669_v31 = vadd.f32 %v2668_v23, %v2500_v28 }
 0x436   :  { %v2333_v61 = vadd.f32 %v2332_v24, %v2164_v38 }
 0x437   :  { %v2806_v4 = vmax.f32 %v2669_v31, 0.0 }
 0x438   :  { %v2807_v27 = vmax.f32 %v2333_v61, 0.0 }
 0x43a   :  { %v2501_v63 = vpop.f32.mrf.mxu2  ;;  %v6199_v12 = vpack.c.bf16 %v2807_v27, %v2805_v8  ;;  %v2670_v54 = vpop.f32.mrf.mxu3 }
 0x43b   :  { %v2502_v48 = vadd.f32 %v2501_v63, %v5914_v44  ;;  %v2166_v5 = vpop.f32.mrf.mxu0  ;;  %v2335_v26 = vpop.f32.mrf.mxu1 }
 0x43c   :  { %v2167_v36 = vadd.f32 %v2166_v5, %v5904_v37 }
 0x43d   :  { %v2671_v30 = vadd.f32 %v2670_v54, %v2502_v48  ;;  %3111 = vmatmul.bf16.vlgmr.msra.gmra.mxu0 %v5923_v39 }
 0x43e   :  { %v2336_v16 = vadd.f32 %v2335_v26, %v2167_v36  ;;  %3280 = vmatmul.bf16.vlgmr.msra.gmra.mxu1 %v5931_v47 }
 0x43f   :  { %v2808_v58 = vmax.f32 %v2671_v30, 0.0  ;;  %3449 = vmatmul.bf16.vlgmr.msra.gmra.mxu2 %v5923_v39  ;;  %3618 = vmatmul.bf16.vlgmr.msra.gmra.mxu3 %v5931_v47 }
 0x440   :  { %v2809_v31 = vmax.f32 %v2336_v16, 0.0 }
 0x441   :  { %v6207_v22 = vpack.c.bf16 %v2808_v58, %v2806_v4 }
 0x442   :  { %v2504_v19 = vpop.f32.mrf.mxu2  ;;  %v2673_v23 = vpop.f32.mrf.mxu3 }
 0x443   :  { %v2505_v28 = vadd.f32 %v2504_v19, %v5914_v44  ;;  %v2168_v20 = vpop.f32.mrf.mxu0  ;;  %v2337_v24 = vpop.f32.mrf.mxu1 }
 0x444   :  { %v2169_v38 = vadd.f32 %v2168_v20, %v5904_v37 }
 0x445   :  { %v2674_v61 = vadd.f32 %v2673_v23, %v2505_v28 }
 0x446   :  { %v2338_v8 = vadd.f32 %v2337_v24, %v2169_v38 }
 0x447   :  { %v2810_v4 = vmax.f32 %v2674_v61, 0.0 }
 0x448   :  { %v2811_v27 = vmax.f32 %v2338_v8, 0.0 }
 0x44a   :  { %v2506_v63 = vpop.f32.mrf.mxu2  ;;  %v6211_v48 = vpack.c.bf16 %v2811_v27, %v2809_v31  ;;  %v2675_v47 = vpop.f32.mrf.mxu3 }
 0x44b   :  { %v2507_v39 = vadd.f32 %v2506_v63, %v5914_v44  ;;  %v2171_v54 = vpop.f32.mrf.mxu0  ;;  %v2340_v36 = vpop.f32.mrf.mxu1 }
 0x44c   :  { %v2172_v5 = vadd.f32 %v2171_v54, %v5904_v37 }
 0x44d   :  { %v2676_v26 = vadd.f32 %v2675_v47, %v2507_v39  ;;  %3116 = vmatmul.bf16.gmra.mxu0 %v5935_v6 }
 0x44e   :  { %v2341_v30 = vadd.f32 %v2340_v36, %v2172_v5  ;;  %3285 = vmatmul.bf16.gmra.mxu1 %v5943_v53 }
 0x44f   :  { %v2812_v58 = vmax.f32 %v2676_v26, 0.0  ;;  %3454 = vmatmul.bf16.gmra.mxu2 %v5935_v6  ;;  %3623 = vmatmul.bf16.gmra.mxu3 %v5943_v53 }
 0x450   :  { %v2813_v61 = vmax.f32 %v2341_v30, 0.0 }
 0x451   :  { %v6219_v16 = vpack.c.bf16 %v2812_v58, %v2810_v4 }
 0x452   :  { %v2509_v19 = vpop.f32.mrf.mxu2  ;;  %v2678_v23 = vpop.f32.mrf.mxu3 }
 0x453   :  { %v2510_v28 = vadd.f32 %v2509_v19, %v5914_v44  ;;  %v2173_v20 = vpop.f32.mrf.mxu0  ;;  %v2342_v24 = vpop.f32.mrf.mxu1 }
 0x454   :  { %v2174_v38 = vadd.f32 %v2173_v20, %v5904_v37 }
 0x455   :  { %v2679_v8 = vadd.f32 %v2678_v23, %v2510_v28 }
 0x456   :  { %v2343_v31 = vadd.f32 %v2342_v24, %v2174_v38 }
 0x457   :  { %v2814_v4 = vmax.f32 %v2679_v8, 0.0 }
 0x458   :  { %v2815_v27 = vmax.f32 %v2343_v31, 0.0 }
 0x45a   :  { %v2511_v63 = vpop.f32.mrf.mxu2  ;;  %v6223_v39 = vpack.c.bf16 %v2815_v27, %v2813_v61  ;;  %v2680_v53 = vpop.f32.mrf.mxu3 }
 0x45b   :  { %v2512_v6 = vadd.f32 %v2511_v63, %v5914_v44  ;;  %v2176_v47 = vpop.f32.mrf.mxu0  ;;  %v2345_v5 = vpop.f32.mrf.mxu1 }
 0x45c   :  { %v2177_v54 = vadd.f32 %v2176_v47, %v5904_v37 }
 0x45d   :  { %v2681_v36 = vadd.f32 %v2680_v53, %v2512_v6  ;;  %3121 = vmatmul.bf16.gmra.mxu0 %v5947_v45 }
 0x45e   :  { %v2346_v26 = vadd.f32 %v2345_v5, %v2177_v54  ;;  %3290 = vmatmul.bf16.gmra.mxu1 %v5955_v14 }
 0x45f   :  { %v2816_v58 = vmax.f32 %v2681_v36, 0.0  ;;  %3459 = vmatmul.bf16.gmra.mxu2 %v5947_v45  ;;  %3628 = vmatmul.bf16.gmra.mxu3 %v5955_v14 }
 0x460   :  { %v2817_v8 = vmax.f32 %v2346_v26, 0.0 }
 0x461   :  { %v6231_v30 = vpack.c.bf16 %v2816_v58, %v2814_v4 }
 0x462   :  { %v2514_v19 = vpop.f32.mrf.mxu2  ;;  %v2683_v23 = vpop.f32.mrf.mxu3 }
 0x463   :  { %v2515_v28 = vadd.f32 %v2514_v19, %v5914_v44  ;;  %v2178_v20 = vpop.f32.mrf.mxu0  ;;  %v2347_v24 = vpop.f32.mrf.mxu1 }
 0x464   :  { %v2179_v38 = vadd.f32 %v2178_v20, %v5904_v37 }
 0x465   :  { %v2684_v31 = vadd.f32 %v2683_v23, %v2515_v28 }
 0x466   :  { %v2348_v61 = vadd.f32 %v2347_v24, %v2179_v38 }
 0x467   :  { %v2818_v4 = vmax.f32 %v2684_v31, 0.0 }
 0x468   :  { %v2819_v27 = vmax.f32 %v2348_v61, 0.0 }
 0x46a   :  { %v2516_v63 = vpop.f32.mrf.mxu2  ;;  %v6235_v6 = vpack.c.bf16 %v2819_v27, %v2817_v8  ;;  %v2685_v14 = vpop.f32.mrf.mxu3 }
 0x46b   :  { %v2517_v45 = vadd.f32 %v2516_v63, %v5914_v44  ;;  %v2181_v53 = vpop.f32.mrf.mxu0  ;;  %v2350_v54 = vpop.f32.mrf.mxu1 }
 0x46c   :  { %v2182_v47 = vadd.f32 %v2181_v53, %v5904_v37 }
 0x46d   :  { %v2686_v5 = vadd.f32 %v2685_v14, %v2517_v45  ;;  %3126 = vmatmul.bf16.gmra.mxu0 %v5959_v55 }
 0x46e   :  { %v2351_v36 = vadd.f32 %v2350_v54, %v2182_v47  ;;  %3295 = vmatmul.bf16.gmra.mxu1 %v5967_v43 }
 0x46f   :  { %v2820_v58 = vmax.f32 %v2686_v5, 0.0  ;;  %3464 = vmatmul.bf16.gmra.mxu2 %v5959_v55  ;;  %3633 = vmatmul.bf16.gmra.mxu3 %v5967_v43 }
 0x470   :  { %v2821_v31 = vmax.f32 %v2351_v36, 0.0 }
 0x471   :  { %v6243_v26 = vpack.c.bf16 %v2820_v58, %v2818_v4 }
 0x472   :  { %v2519_v19 = vpop.f32.mrf.mxu2  ;;  %v2688_v23 = vpop.f32.mrf.mxu3 }
 0x473   :  { %v2520_v28 = vadd.f32 %v2519_v19, %v5914_v44  ;;  %v2183_v20 = vpop.f32.mrf.mxu0  ;;  %v2352_v24 = vpop.f32.mrf.mxu1 }
 0x474   :  { %v2184_v38 = vadd.f32 %v2183_v20, %v5904_v37 }
 0x475   :  { %v2689_v61 = vadd.f32 %v2688_v23, %v2520_v28 }
 0x476   :  { %v2353_v8 = vadd.f32 %v2352_v24, %v2184_v38 }
 0x477   :  { %v2822_v4 = vmax.f32 %v2689_v61, 0.0 }
 0x478   :  { %v2823_v27 = vmax.f32 %v2353_v8, 0.0 }
 0x47a   :  { %v2521_v63 = vpop.f32.mrf.mxu2  ;;  %v6247_v45 = vpack.c.bf16 %v2823_v27, %v2821_v31  ;;  %v2690_v43 = vpop.f32.mrf.mxu3 }
 0x47b   :  { %v2522_v55 = vadd.f32 %v2521_v63, %v5914_v44  ;;  %v2186_v14 = vpop.f32.mrf.mxu0  ;;  %v2355_v47 = vpop.f32.mrf.mxu1 }
 0x47c   :  { %v2187_v53 = vadd.f32 %v2186_v14, %v5904_v37 }
 0x47d   :  { %v2691_v54 = vadd.f32 %v2690_v43, %v2522_v55  ;;  %3131 = vmatmul.bf16.gmra.mxu0 %v5971_v51 }
 0x47e   :  { %v2356_v5 = vadd.f32 %v2355_v47, %v2187_v53  ;;  %3300 = vmatmul.bf16.gmra.mxu1 %v5979_v13 }
 0x47f   :  { %v2824_v58 = vmax.f32 %v2691_v54, 0.0  ;;  %3469 = vmatmul.bf16.gmra.mxu2 %v5971_v51  ;;  %3638 = vmatmul.bf16.gmra.mxu3 %v5979_v13 }
 0x480   :  { %v2825_v61 = vmax.f32 %v2356_v5, 0.0 }
 0x481   :  { %v6255_v36 = vpack.c.bf16 %v2824_v58, %v2822_v4 }
 0x482   :  { %v2524_v19 = vpop.f32.mrf.mxu2  ;;  %v2693_v23 = vpop.f32.mrf.mxu3 }
 0x483   :  { %v2525_v28 = vadd.f32 %v2524_v19, %v5914_v44  ;;  %v2188_v20 = vpop.f32.mrf.mxu0  ;;  %v2357_v24 = vpop.f32.mrf.mxu1 }
 0x484   :  { %v2189_v38 = vadd.f32 %v2188_v20, %v5904_v37 }
 0x485   :  { %v2694_v8 = vadd.f32 %v2693_v23, %v2525_v28 }
 0x486   :  { %v2358_v31 = vadd.f32 %v2357_v24, %v2189_v38 }
 0x487   :  { %v2826_v4 = vmax.f32 %v2694_v8, 0.0 }
 0x488   :  { %v2827_v27 = vmax.f32 %v2358_v31, 0.0 }
 0x48a   :  { %v2526_v63 = vpop.f32.mrf.mxu2  ;;  %v6259_v55 = vpack.c.bf16 %v2827_v27, %v2825_v61  ;;  %v2695_v13 = vpop.f32.mrf.mxu3 }
 0x48b   :  { %v2527_v51 = vadd.f32 %v2526_v63, %v5914_v44  ;;  %v2191_v43 = vpop.f32.mrf.mxu0  ;;  %v2360_v53 = vpop.f32.mrf.mxu1 }
 0x48c   :  { %v2192_v14 = vadd.f32 %v2191_v43, %v5904_v37 }
 0x48d   :  { %v2696_v47 = vadd.f32 %v2695_v13, %v2527_v51  ;;  %3136 = vmatmul.bf16.gmra.mxu0 %v5983_v50 }
 0x48e   :  { %v2361_v54 = vadd.f32 %v2360_v53, %v2192_v14  ;;  %3305 = vmatmul.bf16.gmra.mxu1 %v5991_v3 }
 0x48f   :  { %v2828_v58 = vmax.f32 %v2696_v47, 0.0  ;;  %3474 = vmatmul.bf16.gmra.mxu2 %v5983_v50  ;;  %3643 = vmatmul.bf16.gmra.mxu3 %v5991_v3 }
 0x490   :  { %v2829_v8 = vmax.f32 %v2361_v54, 0.0 }
 0x491   :  { %v6267_v5 = vpack.c.bf16 %v2828_v58, %v2826_v4 }
 0x492   :  { %v2529_v19 = vpop.f32.mrf.mxu2  ;;  %v2698_v23 = vpop.f32.mrf.mxu3 }
 0x493   :  { %v2530_v28 = vadd.f32 %v2529_v19, %v5914_v44  ;;  %v2193_v20 = vpop.f32.mrf.mxu0  ;;  %v2362_v24 = vpop.f32.mrf.mxu1 }
 0x494   :  { %v2194_v38 = vadd.f32 %v2193_v20, %v5904_v37 }
 0x495   :  { %v2699_v31 = vadd.f32 %v2698_v23, %v2530_v28 }
 0x496   :  { %v2363_v61 = vadd.f32 %v2362_v24, %v2194_v38 }
 0x497   :  { %v2830_v4 = vmax.f32 %v2699_v31, 0.0 }
 0x498   :  { %v2831_v27 = vmax.f32 %v2363_v61, 0.0 }
 0x49a   :  { %v2531_v63 = vpop.f32.mrf.mxu2  ;;  %v6271_v51 = vpack.c.bf16 %v2831_v27, %v2829_v8  ;;  %v2700_v3 = vpop.f32.mrf.mxu3 }
 0x49b   :  { %v2532_v50 = vadd.f32 %v2531_v63, %v5914_v44  ;;  %v2196_v13 = vpop.f32.mrf.mxu0  ;;  %v2365_v14 = vpop.f32.mrf.mxu1 }
 0x49c   :  { %v2197_v43 = vadd.f32 %v2196_v13, %v5904_v37 }
 0x49d   :  { %v2701_v53 = vadd.f32 %v2700_v3, %v2532_v50  ;;  %3141 = vmatmul.bf16.gmra.mxu0 %v5995_v9 }
 0x49e   :  { %v2366_v47 = vadd.f32 %v2365_v14, %v2197_v43  ;;  %3310 = vmatmul.bf16.gmra.mxu1 %v6003_v35 }
 0x49f   :  { %v2832_v58 = vmax.f32 %v2701_v53, 0.0  ;;  %3479 = vmatmul.bf16.gmra.mxu2 %v5995_v9  ;;  %3648 = vmatmul.bf16.gmra.mxu3 %v6003_v35 }
 0x4a0   :  { %v2833_v31 = vmax.f32 %v2366_v47, 0.0 }
 0x4a1   :  { %v6279_v54 = vpack.c.bf16 %v2832_v58, %v2830_v4 }
 0x4a2   :  { %v2534_v19 = vpop.f32.mrf.mxu2  ;;  %v2703_v23 = vpop.f32.mrf.mxu3 }
 0x4a3   :  { %v2535_v28 = vadd.f32 %v2534_v19, %v5914_v44  ;;  %v2198_v20 = vpop.f32.mrf.mxu0  ;;  %v2367_v24 = vpop.f32.mrf.mxu1 }
 0x4a4   :  { %v2199_v38 = vadd.f32 %v2198_v20, %v5904_v37 }
 0x4a5   :  { %v2704_v61 = vadd.f32 %v2703_v23, %v2535_v28 }
 0x4a6   :  { %v2368_v8 = vadd.f32 %v2367_v24, %v2199_v38 }
 0x4a7   :  { %v2834_v4 = vmax.f32 %v2704_v61, 0.0 }
 0x4a8   :  { %v2835_v27 = vmax.f32 %v2368_v8, 0.0 }
 0x4aa   :  { %v2536_v63 = vpop.f32.mrf.mxu2  ;;  %v6283_v50 = vpack.c.bf16 %v2835_v27, %v2833_v31  ;;  %v2705_v35 = vpop.f32.mrf.mxu3 }
 0x4ab   :  { %v2537_v9 = vadd.f32 %v2536_v63, %v5914_v44  ;;  %v2201_v3 = vpop.f32.mrf.mxu0  ;;  %v2370_v43 = vpop.f32.mrf.mxu1 }
 0x4ac   :  { %v2202_v13 = vadd.f32 %v2201_v3, %v5904_v37 }
 0x4ad   :  { %v2706_v14 = vadd.f32 %v2705_v35, %v2537_v9  ;;  %3146 = vmatmul.bf16.gmra.mxu0 %v6007_v32 }
 0x4ae   :  { %v2371_v53 = vadd.f32 %v2370_v43, %v2202_v13  ;;  %3315 = vmatmul.bf16.gmra.mxu1 %v6015_v10 }
 0x4af   :  { %v2836_v58 = vmax.f32 %v2706_v14, 0.0  ;;  %3484 = vmatmul.bf16.gmra.mxu2 %v6007_v32  ;;  %3653 = vmatmul.bf16.gmra.mxu3 %v6015_v10  ;;  %v2937_v32 = vld [vmem:[%s6999_s8] sm:$0x3] }
 0x4b0   :  { %v2837_v61 = vmax.f32 %v2371_v53, 0.0  ;;  %v6301_v3 = vperm.slane %v2937_v32, 0 }
 0x4b1   :  { %v6291_v47 = vpack.c.bf16 %v2836_v58, %v2834_v4  ;;  %v6307_v58 = vperm.slane %v2937_v32, 1 }
 0x4b2   :  { %v2539_v19 = vpop.f32.mrf.mxu2  ;;  %v2708_v23 = vpop.f32.mrf.mxu3 }
 0x4b3   :  { %v2540_v28 = vadd.f32 %v2539_v19, %v5914_v44  ;;  %v2203_v20 = vpop.f32.mrf.mxu0  ;;  %v2372_v24 = vpop.f32.mrf.mxu1 }
 0x4b4   :  { %v2204_v38 = vadd.f32 %v2203_v20, %v5904_v37 }
 0x4b5   :  { %v2709_v8 = vadd.f32 %v2708_v23, %v2540_v28 }
 0x4b6   :  { %v2373_v31 = vadd.f32 %v2372_v24, %v2204_v38 }
 0x4b7   :  { %v2838_v14 = vmax.f32 %v2709_v8, 0.0 }
 0x4b8   :  { %v2839_v27 = vmax.f32 %v2373_v31, 0.0  ;;  %v4099_v31 = vld [vmem:[%s7000_s9] sm:$0x3] }
 0x4ba   :  { %v2541_v63 = vpop.f32.mrf.mxu2  ;;  %v6298_v10 = vpack.c.bf16 %v2839_v27, %v2837_v61  ;;  %v2710_v35 = vpop.f32.mrf.mxu3 }
 0x4bb   :  { %v2542_v9 = vadd.f32 %v2541_v63, %v5914_v44  ;;  %v3112_v13 = vpop.f32.mrf.mxu0  ;;  %v3281_v43 = vpop.f32.mrf.mxu1  ;;  %v6319_v63 = vperm.slane %v4099_v31, 1 }
 0x4bc   :  { %v3113_v4 = vadd.f32 %v3112_v13, %v6301_v3 }
 0x4bd   :  { %v2711_v37 = vadd.f32 %v2710_v35, %v2542_v9  ;;  %3151 = vmatmul.bf16.gmra.mxu0 %v6019_v17 }
 0x4be   :  { %3320 = vmatmul.bf16.gmra.mxu1 %v6027_v25  ;;  %v3282_v28 = vadd.f32 %v3281_v43, %v3113_v4 }
 0x4bf   :  { %v2840_v53 = vmax.f32 %v2711_v37, 0.0  ;;  %3489 = vmatmul.bf16.gmra.mxu2 %v6019_v17  ;;  %3658 = vmatmul.bf16.gmra.mxu3 %v6027_v25  ;;  %v6317_v25 = vperm.slane %v4099_v31, 0 }
 0x4c0   :  { %v3779_v61 = vmax.f32 %v3282_v28, 0.0 }
 0x4c1   :  { %v6310_v44 = vpack.c.bf16 %v2840_v53, %v2838_v14 }
 0x4c2   :  { %v3450_v19 = vpop.f32.mrf.mxu2  ;;  %v3619_v20 = vpop.f32.mrf.mxu3 }
 0x4c3   :  { %v3451_v23 = vadd.f32 %v3450_v19, %v6307_v58  ;;  %v3114_v38 = vpop.f32.mrf.mxu0  ;;  %v3283_v24 = vpop.f32.mrf.mxu1 }
 0x4c4   :  { %v3115_v27 = vadd.f32 %v3114_v38, %v6301_v3 }
 0x4c5   :  { %v3620_v8 = vadd.f32 %v3619_v20, %v3451_v23 }
 0x4c6   :  { %v3284_v35 = vadd.f32 %v3283_v24, %v3115_v27 }
 0x4c7   :  { %v3780_v17 = vmax.f32 %v3620_v8, 0.0 }
 0x4c8   :  { %v3781_v20 = vmax.f32 %v3284_v35, 0.0 }
 0x4c9   :  { %v3907_v32 = vpack.c.bf16 %v3780_v17, %v3779_v61 }
 0x4ca   :  { %v3452_v9 = vpop.f32.mrf.mxu2  ;;  %v3621_v43 = vpop.f32.mrf.mxu3 }
 0x4cb   :  { %v3453_v13 = vadd.f32 %v3452_v9, %v6307_v58  ;;  %v3117_v37 = vpop.f32.mrf.mxu0  ;;  %v3971_v14 = vunpack.c.l.bf16 %v3907_v32  ;;  %v3972_v53 = vunpack.c.h.bf16 %v3907_v32  ;;  %v3286_v4 = vpop.f32.mrf.mxu1 }
 0x4cc   :  { %v3118_v8 = vadd.f32 %v3117_v37, %v6301_v3 }
 0x4cd   :  { %v3622_v19 = vadd.f32 %v3621_v43, %v3453_v13  ;;  %v4105_v28 = vmul.f32 %v6317_v25, %v3971_v14  ;;  %v4106_v23 = vmul.f32 %v6319_v63, %v3972_v53  ;;  %3156 = vmatmul.bf16.gmra.mxu0 %v6031_v49 }
 0x4ce   :  { %3325 = vmatmul.bf16.gmra.mxu1 %v6039_v62  ;;  %v3287_v17 = vadd.f32 %v3286_v4, %v3118_v8 }
 0x4cf   :  { %v3782_v38 = vmax.f32 %v3622_v19, 0.0  ;;  %3494 = vmatmul.bf16.gmra.mxu2 %v6031_v49  ;;  %v4233_v24 = vadd.f32 %v4106_v23, %v4105_v28  ;;  %3663 = vmatmul.bf16.gmra.mxu3 %v6039_v62 }
 0x4d0   :  { %v3783_v49 = vmax.f32 %v3287_v17, 0.0 }
 0x4d1   :  { %v3908_v31 = vpack.c.bf16 %v3782_v38, %v3781_v20  ;;  %4234 = vadd.xlane.f32.xlu0 %v4233_v24 }
 0x4d2   :  { %v3455_v61 = vpop.f32.mrf.mxu2  ;;  %v3624_v32 = vpop.f32.mrf.mxu3 }
 0x4d3   :  { %v3456_v27 = vadd.f32 %v3455_v61, %v6307_v58  ;;  %v3119_v9 = vpop.f32.mrf.mxu0  ;;  %v3973_v13 = vunpack.c.l.bf16 %v3908_v31  ;;  %v3974_v35 = vunpack.c.h.bf16 %v3908_v31  ;;  %v3288_v43 = vpop.f32.mrf.mxu1 }
 0x4d4   :  { %v3120_v62 = vadd.f32 %v3119_v9, %v6301_v3 }
 0x4d5   :  { %v3625_v14 = vadd.f32 %v3624_v32, %v3456_v27  ;;  %v4107_v37 = vmul.f32 %v6317_v25, %v3973_v13  ;;  %v4108_v53 = vmul.f32 %v6319_v63, %v3974_v35 }
 0x4d6   :  { %v3289_v20 = vadd.f32 %v3288_v43, %v3120_v62 }
 0x4d7   :  { %v3784_v19 = vmax.f32 %v3625_v14, 0.0  ;;  %v4236_v28 = vadd.f32 %v4108_v53, %v4107_v37  ;;  %v7036_v37 = vld [vmem:[#allocation17_spill] sm:$0xff] }
 0x4d8   :  { %v3785_v9 = vmax.f32 %v3289_v20, 0.0 }
 0x4d9   :  { %v3909_v23 = vpack.c.bf16 %v3784_v19, %v3783_v49  ;;  %4237 = vadd.xlane.f32.xlu0 %v4236_v28 }
 0x4da   :  { %v3457_v4 = vpop.f32.mrf.mxu2  ;;  %v3626_v8 = vpop.f32.mrf.mxu3 }
 0x4db   :  { %v3458_v38 = vadd.f32 %v3457_v4, %v6307_v58  ;;  %v3122_v24 = vpop.f32.mrf.mxu0  ;;  %v3975_v31 = vunpack.c.l.bf16 %v3909_v23  ;;  %v3976_v61 = vunpack.c.h.bf16 %v3909_v23  ;;  %v3291_v27 = vpop.f32.mrf.mxu1 }
 0x4dc   :  { %v3123_v14 = vadd.f32 %v3122_v24, %v6301_v3 }
 0x4dd   :  { %v3627_v32 = vadd.f32 %v3626_v8, %v3458_v38  ;;  %v4109_v13 = vmul.f32 %v6317_v25, %v3975_v31  ;;  %v4110_v17 = vmul.f32 %v6319_v63, %v3976_v61  ;;  %3161 = vmatmul.bf16.gmra.mxu0 %v6043_v1 }
 0x4de   :  { %3330 = vmatmul.bf16.gmra.mxu1 %v7036_v37  ;;  %v3292_v19 = vadd.f32 %v3291_v27, %v3123_v14 }
 0x4df   :  { %v3786_v35 = vmax.f32 %v3627_v32, 0.0  ;;  %3499 = vmatmul.bf16.gmra.mxu2 %v6043_v1  ;;  %v4239_v43 = vadd.f32 %v4110_v17, %v4109_v13  ;;  %3668 = vmatmul.bf16.gmra.mxu3 %v7036_v37 }
 0x4e0   :  { %v3787_v1 = vmax.f32 %v3292_v19, 0.0 }
 0x4e1   :  { %v3910_v53 = vpack.c.bf16 %v3786_v35, %v3785_v9  ;;  %4240 = vadd.xlane.f32.xlu1 %v4239_v43 }
 0x4e2   :  { %v3460_v49 = vpop.f32.mrf.mxu2  ;;  %v3629_v28 = vpop.f32.mrf.mxu3 }
 0x4e3   :  { %v3461_v62 = vadd.f32 %v3460_v49, %v6307_v58  ;;  %v3124_v23 = vpop.f32.mrf.mxu0  ;;  %v3977_v4 = vunpack.c.l.bf16 %v3910_v53  ;;  %v3978_v20 = vunpack.c.h.bf16 %v3910_v53  ;;  %v3293_v38 = vpop.f32.mrf.mxu1 }
 0x4e4   :  { %v3125_v32 = vadd.f32 %v3124_v23, %v6301_v3 }
 0x4e5   :  { %v3630_v8 = vadd.f32 %v3629_v28, %v3461_v62  ;;  %v4111_v24 = vmul.f32 %v6317_v25, %v3977_v4  ;;  %v4112_v31 = vmul.f32 %v6319_v63, %v3978_v20 }
 0x4e6   :  { %v3294_v9 = vadd.f32 %v3293_v38, %v3125_v32 }
 0x4e7   :  { %v3788_v61 = vmax.f32 %v3630_v8, 0.0  ;;  %v4242_v13 = vadd.f32 %v4112_v31, %v4111_v24  ;;  %v7037_v8 = vld [vmem:[#allocation18_spill] sm:$0xff] }
 0x4e8   :  { %v3789_v23 = vmax.f32 %v3294_v9, 0.0 }
 0x4e9   :  { %v3911_v17 = vpack.c.bf16 %v3788_v61, %v3787_v1  ;;  %4243 = vadd.xlane.f32.xlu1 %v4242_v13 }
 0x4ea   :  { %v3462_v27 = vpop.f32.mrf.mxu2  ;;  %v3631_v14 = vpop.f32.mrf.mxu3 }
 0x4eb   :  { %v3463_v35 = vadd.f32 %v3462_v27, %v6307_v58  ;;  %v3127_v37 = vpop.f32.mrf.mxu0  ;;  %v3979_v43 = vunpack.c.l.bf16 %v3911_v17  ;;  %v3980_v53 = vunpack.c.h.bf16 %v3911_v17  ;;  %v3296_v49 = vpop.f32.mrf.mxu1 }
 0x4ec   :  { %v3128_v20 = vadd.f32 %v3127_v37, %v6301_v3 }
 0x4ed   :  { %v3632_v62 = vadd.f32 %v3631_v14, %v3463_v35  ;;  %v4113_v28 = vmul.f32 %v6317_v25, %v3979_v43  ;;  %v4114_v19 = vmul.f32 %v6319_v63, %v3980_v53  ;;  %3166 = vmatmul.bf16.gmra.mxu0 %v6055_v2 }
 0x4ee   :  { %3335 = vmatmul.bf16.gmra.mxu1 %v7037_v8  ;;  %v3297_v1 = vadd.f32 %v3296_v49, %v3128_v20 }
 0x4ef   :  { %v3790_v4 = vmax.f32 %v3632_v62, 0.0  ;;  %3504 = vmatmul.bf16.gmra.mxu2 %v6055_v2  ;;  %v4245_v38 = vadd.f32 %v4114_v19, %v4113_v28  ;;  %3673 = vmatmul.bf16.gmra.mxu3 %v7037_v8 }
 0x4f0   :  { %v3791_v2 = vmax.f32 %v3297_v1, 0.0 }
 0x4f1   :  { %v3912_v24 = vpack.c.bf16 %v3790_v4, %v3789_v23  ;;  %4246 = vadd.xlane.f32.xlu2 %v4245_v38 }
 0x4f2   :  { %v3465_v31 = vpop.f32.mrf.mxu2  ;;  %v3634_v32 = vpop.f32.mrf.mxu3 }
 0x4f3   :  { %v3466_v61 = vadd.f32 %v3465_v31, %v6307_v58  ;;  %v3129_v13 = vpop.f32.mrf.mxu0  ;;  %v3981_v17 = vunpack.c.l.bf16 %v3912_v24  ;;  %v3982_v27 = vunpack.c.h.bf16 %v3912_v24  ;;  %v3298_v9 = vpop.f32.mrf.mxu1 }
 0x4f4   :  { %v3130_v53 = vadd.f32 %v3129_v13, %v6301_v3 }
 0x4f5   :  { %v3635_v35 = vadd.f32 %v3634_v32, %v3466_v61  ;;  %v4115_v14 = vmul.f32 %v6317_v25, %v3981_v17  ;;  %v4116_v37 = vmul.f32 %v6319_v63, %v3982_v27 }
 0x4f6   :  { %v3299_v4 = vadd.f32 %v3298_v9, %v3130_v53 }
 0x4f7   :  { %v3792_v43 = vmax.f32 %v3635_v35, 0.0  ;;  %v4248_v62 = vadd.f32 %v4116_v37, %v4115_v14 }
 0x4f8   :  { %v3793_v32 = vmax.f32 %v3299_v4, 0.0 }
 0x4f9   :  { %v3913_v28 = vpack.c.bf16 %v3792_v43, %v3791_v2  ;;  %4249 = vadd.xlane.f32.xlu2 %v4248_v62 }
 0x4fa   :  { %v3467_v49 = vpop.f32.mrf.mxu2  ;;  %v3636_v8 = vpop.f32.mrf.mxu3 }
 0x4fb   :  { %v3983_v19 = vunpack.c.l.bf16 %v3913_v28  ;;  %v3984_v23 = vunpack.c.h.bf16 %v3913_v28  ;;  %v3468_v20 = vadd.f32 %v3467_v49, %v6307_v58  ;;  %v3132_v38 = vpop.f32.mrf.mxu0  ;;  %v3301_v24 = vpop.f32.mrf.mxu1 }
 0x4fc   :  { %v3133_v17 = vadd.f32 %v3132_v38, %v6301_v3 }
 0x4fd   :  { %v3637_v31 = vadd.f32 %v3636_v8, %v3468_v20  ;;  %v4117_v61 = vmul.f32 %v6317_v25, %v3983_v19  ;;  %v4118_v1 = vmul.f32 %v6319_v63, %v3984_v23  ;;  %3171 = vmatmul.bf16.gmra.mxu0 %v6067_v15 }
 0x4fe   :  { %3340 = vmatmul.bf16.gmra.mxu1 %v6075_v29  ;;  %v3302_v14 = vadd.f32 %v3301_v24, %v3133_v17 }
 0x4ff   :  { %v3794_v13 = vmax.f32 %v3637_v31, 0.0  ;;  %3509 = vmatmul.bf16.gmra.mxu2 %v6067_v15  ;;  %v4251_v27 = vadd.f32 %v4118_v1, %v4117_v61  ;;  %3678 = vmatmul.bf16.gmra.mxu3 %v6075_v29 }
 0x500   :  { %v3795_v15 = vmax.f32 %v3302_v14, 0.0  ;;  %v7038_v14 = vld [vmem:[#allocation19_spill] sm:$0xff] }
 0x501   :  { %v3914_v9 = vpack.c.bf16 %v3794_v13, %v3793_v32  ;;  %4252 = vadd.xlane.f32.xlu0 %v4251_v27 }
 0x502   :  { %v3470_v35 = vpop.f32.mrf.mxu2  ;;  %v3639_v2 = vpop.f32.mrf.mxu3 }
 0x503   :  { %v3471_v37 = vadd.f32 %v3470_v35, %v6307_v58  ;;  %v3134_v43 = vpop.f32.mrf.mxu0  ;;  %v3985_v53 = vunpack.c.l.bf16 %v3914_v9  ;;  %v3986_v62 = vunpack.c.h.bf16 %v3914_v9  ;;  %v3303_v28 = vpop.f32.mrf.mxu1 }
 0x504   :  { %v3135_v29 = vadd.f32 %v3134_v43, %v6301_v3 }
 0x505   :  { %v3640_v49 = vadd.f32 %v3639_v2, %v3471_v37  ;;  %v4119_v19 = vmul.f32 %v6317_v25, %v3985_v53  ;;  %v4120_v23 = vmul.f32 %v6319_v63, %v3986_v62  ;;  %v7039_v53 = vld [vmem:[#allocation20_spill] sm:$0xff] }
 0x506   :  { %v3304_v61 = vadd.f32 %v3303_v28, %v3135_v29 }
 0x507   :  { %v3796_v4 = vmax.f32 %v3640_v49, 0.0  ;;  %v4254_v20 = vadd.f32 %v4120_v23, %v4119_v19 }
 0x508   :  { %v3797_v37 = vmax.f32 %v3304_v61, 0.0 }
 0x509   :  { %v3915_v8 = vpack.c.bf16 %v3796_v4, %v3795_v15  ;;  %4255 = vadd.xlane.f32.xlu1 %v4254_v20 }
 0x50a   :  { %v3472_v38 = vpop.f32.mrf.mxu2  ;;  %v3641_v32 = vpop.f32.mrf.mxu3 }
 0x50b   :  { %v3987_v24 = vunpack.c.l.bf16 %v3915_v8  ;;  %v3988_v31 = vunpack.c.h.bf16 %v3915_v8  ;;  %v3473_v1 = vadd.f32 %v3472_v38, %v6307_v58  ;;  %v3137_v13 = vpop.f32.mrf.mxu0  ;;  %v3306_v17 = vpop.f32.mrf.mxu1 }
 0x50c   :  { %v3138_v43 = vadd.f32 %v3137_v13, %v6301_v3 }
 0x50d   :  { %v3642_v27 = vadd.f32 %v3641_v32, %v3473_v1  ;;  %v4121_v9 = vmul.f32 %v6317_v25, %v3987_v24  ;;  %v4122_v35 = vmul.f32 %v6319_v63, %v3988_v31  ;;  %3176 = vmatmul.bf16.gmra.mxu0 %v7038_v14 }
 0x50e   :  { %3345 = vmatmul.bf16.gmra.mxu1 %v7039_v53  ;;  %v3307_v19 = vadd.f32 %v3306_v17, %v3138_v43 }
 0x50f   :  { %v3798_v2 = vmax.f32 %v3642_v27, 0.0  ;;  %3514 = vmatmul.bf16.gmra.mxu2 %v7038_v14  ;;  %v4257_v62 = vadd.f32 %v4122_v35, %v4121_v9  ;;  %3683 = vmatmul.bf16.gmra.mxu3 %v7039_v53 }
 0x510   :  { %v3799_v61 = vmax.f32 %v3307_v19, 0.0 }
 0x511   :  { %v3916_v28 = vpack.c.bf16 %v3798_v2, %v3797_v37  ;;  %4258 = vadd.xlane.f32.xlu2 %v4257_v62 }
 0x512   :  { %v3475_v49 = vpop.f32.mrf.mxu2  ;;  %v3644_v15 = vpop.f32.mrf.mxu3 }
 0x513   :  { %v3476_v23 = vadd.f32 %v3475_v49, %v6307_v58  ;;  %v3139_v4 = vpop.f32.mrf.mxu0  ;;  %v3989_v29 = vunpack.c.l.bf16 %v3916_v28  ;;  %v3990_v20 = vunpack.c.h.bf16 %v3916_v28  ;;  %v3308_v8 = vpop.f32.mrf.mxu1 }
 0x514   :  { %v3140_v32 = vadd.f32 %v3139_v4, %v6301_v3 }
 0x515   :  { %v3645_v38 = vadd.f32 %v3644_v15, %v3476_v23  ;;  %v4123_v24 = vmul.f32 %v6317_v25, %v3989_v29  ;;  %v4124_v31 = vmul.f32 %v6319_v63, %v3990_v20 }
 0x516   :  { %v3309_v14 = vadd.f32 %v3308_v8, %v3140_v32 }
 0x517   :  { %v3800_v1 = vmax.f32 %v3645_v38, 0.0  ;;  %v4260_v13 = vadd.f32 %v4124_v31, %v4123_v24 }
 0x518   :  { %v3801_v19 = vmax.f32 %v3309_v14, 0.0 }
 0x519   :  { %v3917_v27 = vpack.c.bf16 %v3800_v1, %v3799_v61  ;;  %4261 = vadd.xlane.f32.xlu0 %v4260_v13 }
 0x51a   :  { %v3477_v17 = vpop.f32.mrf.mxu2  ;;  %v3646_v2 = vpop.f32.mrf.mxu3 }
 0x51b   :  { %v3991_v9 = vunpack.c.l.bf16 %v3917_v27  ;;  %v3992_v35 = vunpack.c.h.bf16 %v3917_v27  ;;  %v3478_v37 = vadd.f32 %v3477_v17, %v6307_v58  ;;  %v3142_v43 = vpop.f32.mrf.mxu0  ;;  %v3311_v53 = vpop.f32.mrf.mxu1 }
 0x51c   :  { %v3143_v15 = vadd.f32 %v3142_v43, %v6301_v3 }
 0x51d   :  { %v3647_v62 = vadd.f32 %v3646_v2, %v3478_v37  ;;  %v4125_v28 = vmul.f32 %v6317_v25, %v3991_v9  ;;  %v4126_v49 = vmul.f32 %v6319_v63, %v3992_v35  ;;  %3181 = vmatmul.bf16.gmra.mxu0 %v6091_v52 }
 0x51e   :  { %3350 = vmatmul.bf16.gmra.mxu1 %v6099_v11  ;;  %v3312_v8 = vadd.f32 %v3311_v53, %v3143_v15 }
 0x51f   :  { %v3802_v23 = vmax.f32 %v3647_v62, 0.0  ;;  %3519 = vmatmul.bf16.gmra.mxu2 %v6091_v52  ;;  %v4263_v4 = vadd.f32 %v4126_v49, %v4125_v28  ;;  %3688 = vmatmul.bf16.gmra.mxu3 %v6099_v11 }
 0x520   :  { %v3803_v52 = vmax.f32 %v3312_v8, 0.0 }
 0x521   :  { %v3918_v29 = vpack.c.bf16 %v3802_v23, %v3801_v19  ;;  %4264 = vadd.xlane.f32.xlu1 %v4263_v4 }
 0x522   :  { %v3480_v20 = vpop.f32.mrf.mxu2  ;;  %v3649_v24 = vpop.f32.mrf.mxu3 }
 0x523   :  { %v3481_v38 = vadd.f32 %v3480_v20, %v6307_v58  ;;  %v3144_v31 = vpop.f32.mrf.mxu0  ;;  %v3993_v61 = vunpack.c.l.bf16 %v3918_v29  ;;  %v3994_v1 = vunpack.c.h.bf16 %v3918_v29  ;;  %v3313_v32 = vpop.f32.mrf.mxu1 }
 0x524   :  { %v3145_v11 = vadd.f32 %v3144_v31, %v6301_v3 }
 0x525   :  { %v3650_v13 = vadd.f32 %v3649_v24, %v3481_v38  ;;  %v4127_v27 = vmul.f32 %v6317_v25, %v3993_v61  ;;  %v4128_v17 = vmul.f32 %v6319_v63, %v3994_v1 }
 0x526   :  { %v3314_v53 = vadd.f32 %v3313_v32, %v3145_v11 }
 0x527   :  { %v3804_v9 = vmax.f32 %v3650_v13, 0.0  ;;  %v4266_v35 = vadd.f32 %v4128_v17, %v4127_v27 }
 0x528   :  { %v3805_v29 = vmax.f32 %v3314_v53, 0.0 }
 0x529   :  { %v3919_v14 = vpack.c.bf16 %v3804_v9, %v3803_v52  ;;  %4267 = vadd.xlane.f32.xlu2 %v4266_v35 }
 0x52a   :  { %v3482_v37 = vpop.f32.mrf.mxu2  ;;  %v3651_v28 = vpop.f32.mrf.mxu3 }
 0x52b   :  { %v3995_v2 = vunpack.c.l.bf16 %v3919_v14  ;;  %v3996_v43 = vunpack.c.h.bf16 %v3919_v14  ;;  %v3483_v62 = vadd.f32 %v3482_v37, %v6307_v58  ;;  %v3147_v49 = vpop.f32.mrf.mxu0  ;;  %v3316_v19 = vpop.f32.mrf.mxu1 }
 0x52c   :  { %v3148_v8 = vadd.f32 %v3147_v49, %v6301_v3 }
 0x52d   :  { %v3652_v23 = vadd.f32 %v3651_v28, %v3483_v62  ;;  %v4129_v15 = vmul.f32 %v6317_v25, %v3995_v2  ;;  %v4130_v4 = vmul.f32 %v6319_v63, %v3996_v43  ;;  %3186 = vmatmul.bf16.gmra.mxu0 %v6103_v41 }
 0x52e   :  { %3355 = vmatmul.bf16.gmra.mxu1 %v6111_v56  ;;  %v3317_v61 = vadd.f32 %v3316_v19, %v3148_v8 }
 0x52f   :  { %v3806_v20 = vmax.f32 %v3652_v23, 0.0  ;;  %3524 = vmatmul.bf16.gmra.mxu2 %v6103_v41  ;;  %v4269_v38 = vadd.f32 %v4130_v4, %v4129_v15  ;;  %3693 = vmatmul.bf16.gmra.mxu3 %v6111_v56 }
 0x530   :  { %v3807_v41 = vmax.f32 %v3317_v61, 0.0 }
 0x531   :  { %v3920_v24 = vpack.c.bf16 %v3806_v20, %v3805_v29  ;;  %4270 = vadd.xlane.f32.xlu0 %v4269_v38 }
 0x532   :  { %v3485_v31 = vpop.f32.mrf.mxu2  ;;  %v3654_v32 = vpop.f32.mrf.mxu3 }
 0x533   :  { %v3486_v1 = vadd.f32 %v3485_v31, %v6307_v58  ;;  %v3149_v13 = vpop.f32.mrf.mxu0  ;;  %v3997_v27 = vunpack.c.l.bf16 %v3920_v24  ;;  %v3998_v17 = vunpack.c.h.bf16 %v3920_v24  ;;  %v3318_v52 = vpop.f32.mrf.mxu1 }
 0x534   :  { %v3150_v56 = vadd.f32 %v3149_v13, %v6301_v3 }
 0x535   :  { %v3655_v9 = vadd.f32 %v3654_v32, %v3486_v1  ;;  %v4131_v11 = vmul.f32 %v6317_v25, %v3997_v27  ;;  %v4132_v35 = vmul.f32 %v6319_v63, %v3998_v17  ;;  %v6416_v32 = vstv %s7001_s10 }
 0x536   :  { %v3319_v28 = vadd.f32 %v3318_v52, %v3150_v56 }
 0x537   :  { %v3808_v14 = vmax.f32 %v3655_v9, 0.0  ;;  %v4272_v37 = vadd.f32 %v4132_v35, %v4131_v11 }
 0x538   :  { %v3809_v8 = vmax.f32 %v3319_v28, 0.0 }
 0x539   :  { %v3921_v2 = vpack.c.bf16 %v3808_v14, %v3807_v41  ;;  %4273 = vadd.xlane.f32.xlu1 %v4272_v37 }
 0x53a   :  { %v3487_v43 = vpop.f32.mrf.mxu2  ;;  %v3656_v19 = vpop.f32.mrf.mxu3 }
 0x53b   :  { %v3999_v53 = vunpack.c.l.bf16 %v3921_v2  ;;  %v4000_v62 = vunpack.c.h.bf16 %v3921_v2  ;;  %v3488_v49 = vadd.f32 %v3487_v43, %v6307_v58  ;;  %v3152_v23 = vpop.f32.mrf.mxu0  ;;  %v3321_v15 = vpop.f32.mrf.mxu1 }
 0x53c   :  { %v3153_v24 = vadd.f32 %v3152_v23, %v6301_v3 }
 0x53d   :  { %v3657_v4 = vadd.f32 %v3656_v19, %v3488_v49  ;;  %v4133_v29 = vmul.f32 %v6317_v25, %v3999_v53  ;;  %v4134_v20 = vmul.f32 %v6319_v63, %v4000_v62  ;;  %3191 = vmatmul.bf16.gmra.mxu0 %v6115_v46 }
 0x53e   :  { %3360 = vmatmul.bf16.gmra.mxu1 %v6123_v60  ;;  %v3322_v13 = vadd.f32 %v3321_v15, %v3153_v24 }
 0x53f   :  { %v3810_v38 = vmax.f32 %v3657_v4, 0.0  ;;  %3529 = vmatmul.bf16.gmra.mxu2 %v6115_v46  ;;  %v4275_v31 = vadd.f32 %v4134_v20, %v4133_v29  ;;  %3698 = vmatmul.bf16.gmra.mxu3 %v6123_v60 }
 0x540   :  { %v3811_v37 = vmax.f32 %v3322_v13, 0.0 }
 0x541   :  { %v3922_v61 = vpack.c.bf16 %v3810_v38, %v3809_v8  ;;  %4276 = vadd.xlane.f32.xlu2 %v4275_v31 }
 0x542   :  { %v3490_v1 = vpop.f32.mrf.mxu2  ;;  %v3659_v17 = vpop.f32.mrf.mxu3 }
 0x543   :  { %v3491_v27 = vadd.f32 %v3490_v1, %v6307_v58  ;;  %v3154_v52 = vpop.f32.mrf.mxu0  ;;  %v4001_v9 = vunpack.c.l.bf16 %v3922_v61  ;;  %v4002_v11 = vunpack.c.h.bf16 %v3922_v61  ;;  %v3323_v35 = vpop.f32.mrf.mxu1  ;;  %v7040_v1 = vld [vmem:[#allocation21_spill] sm:$0xff] }
 0x544   :  { %v4235_v46 = vpop.xlane.xlu0 %4234  ;;  %v3155_v43 = vadd.f32 %v3154_v52, %v6301_v3  ;;  %v7041_v52 = vld [vmem:[#allocation22_spill] sm:$0xff] }
 0x545   :  { %v3660_v41 = vadd.f32 %v3659_v17, %v3491_v27  ;;  %v4427_v60 = vadd.f32 %v6416_v32, %v4235_v46  ;;  %v4135_v14 = vmul.f32 %v6317_v25, %v4001_v9  ;;  %v4136_v56 = vmul.f32 %v6319_v63, %v4002_v11 }
 0x546   :  { %v3324_v23 = vadd.f32 %v3323_v35, %v3155_v43 }
 0x547   :  { %v3812_v2 = vmax.f32 %v3660_v41, 0.0  ;;  %4492 = vst.msk [vmem:[%s7002_s11] sm:$0xff] %vm4491_vm0, %v4427_v60  ;;  %v4278_v53 = vadd.f32 %v4136_v56, %v4135_v14 }
 0x548   :  { %v3813_v13 = vmax.f32 %v3324_v23, 0.0 }
 0x549   :  { %v3923_v62 = vpack.c.bf16 %v3812_v2, %v3811_v37  ;;  %4279 = vadd.xlane.f32.xlu0 %v4278_v53 }
 0x54a   :  { %v3492_v28 = vpop.f32.mrf.mxu2  ;;  %v3661_v4 = vpop.f32.mrf.mxu3 }
 0x54b   :  { %v4003_v49 = vunpack.c.l.bf16 %v3923_v62  ;;  %v4004_v19 = vunpack.c.h.bf16 %v3923_v62  ;;  %v3493_v15 = vadd.f32 %v3492_v28, %v6307_v58  ;;  %v3157_v29 = vpop.f32.mrf.mxu0  ;;  %v3326_v20 = vpop.f32.mrf.mxu1 }
 0x54c   :  { %v4238_v8 = vpop.xlane.xlu0 %4237  ;;  %v3158_v17 = vadd.f32 %v3157_v29, %v6301_v3 }
 0x54d   :  { %v3662_v38 = vadd.f32 %v3661_v4, %v3493_v15  ;;  %v4428_v24 = vadd.f32 %v6416_v32, %v4238_v8  ;;  %v4137_v31 = vmul.f32 %v6317_v25, %v4003_v49  ;;  %v4138_v61 = vmul.f32 %v6319_v63, %v4004_v19  ;;  %3196 = vmatmul.bf16.gmra.mxu0 %v7040_v1 }
 0x54e   :  { %3365 = vmatmul.bf16.gmra.mxu1 %v7041_v52  ;;  %v3327_v46 = vadd.f32 %v3326_v20, %v3158_v17 }
 0x54f   :  { %v3814_v27 = vmax.f32 %v3662_v38, 0.0  ;;  %4493 = vst.msk [vmem:[%s7002_s11 + $0x8] sm:$0xff] %vm4491_vm0, %v4428_v24  ;;  %3534 = vmatmul.bf16.gmra.mxu2 %v7040_v1  ;;  %v4281_v9 = vadd.f32 %v4138_v61, %v4137_v31  ;;  %3703 = vmatmul.bf16.gmra.mxu3 %v7041_v52 }
 0x550   :  { %v3815_v19 = vmax.f32 %v3327_v46, 0.0 }
 0x551   :  { %v3924_v11 = vpack.c.bf16 %v3814_v27, %v3813_v13  ;;  %4282 = vadd.xlane.f32.xlu1 %v4281_v9 }
 0x552   :  { %v3495_v35 = vpop.f32.mrf.mxu2  ;;  %v3664_v60 = vpop.f32.mrf.mxu3 }
 0x553   :  { %v3496_v41 = vadd.f32 %v3495_v35, %v6307_v58  ;;  %v3159_v14 = vpop.f32.mrf.mxu0  ;;  %v4005_v56 = vunpack.c.l.bf16 %v3924_v11  ;;  %v4006_v37 = vunpack.c.h.bf16 %v3924_v11  ;;  %v3328_v2 = vpop.f32.mrf.mxu1 }
 0x554   :  { %v4241_v43 = vpop.xlane.xlu1 %4240  ;;  %v3160_v15 = vadd.f32 %v3159_v14, %v6301_v3 }
 0x555   :  { %v3665_v53 = vadd.f32 %v3664_v60, %v3496_v41  ;;  %v4429_v62 = vadd.f32 %v6416_v32, %v4241_v43  ;;  %v4139_v28 = vmul.f32 %v6317_v25, %v4005_v56  ;;  %v4140_v49 = vmul.f32 %v6319_v63, %v4006_v37 }
 0x556   :  { %v3329_v24 = vadd.f32 %v3328_v2, %v3160_v15 }
 0x557   :  { %v3816_v23 = vmax.f32 %v3665_v53, 0.0  ;;  %4494 = vst.msk [vmem:[%s7002_s11 + $0x10] sm:$0xff] %vm4491_vm0, %v4429_v62  ;;  %v4284_v4 = vadd.f32 %v4140_v49, %v4139_v28 }
 0x558   :  { %v3817_v35 = vmax.f32 %v3329_v24, 0.0 }
 0x559   :  { %v3925_v29 = vpack.c.bf16 %v3816_v23, %v3815_v19  ;;  %4285 = vadd.xlane.f32.xlu2 %v4284_v4 }
 0x55a   :  { %v3497_v20 = vpop.f32.mrf.mxu2  ;;  %v3666_v61 = vpop.f32.mrf.mxu3 }
 0x55b   :  { %v4007_v8 = vunpack.c.l.bf16 %v3925_v29  ;;  %v4008_v38 = vunpack.c.h.bf16 %v3925_v29  ;;  %v3498_v31 = vadd.f32 %v3497_v20, %v6307_v58  ;;  %v3162_v1 = vpop.f32.mrf.mxu0  ;;  %v3331_v13 = vpop.f32.mrf.mxu1 }
 0x55c   :  { %v4244_v27 = vpop.xlane.xlu1 %4243  ;;  %v3163_v41 = vadd.f32 %v3162_v1, %v6301_v3 }
 0x55d   :  { %v3667_v17 = vadd.f32 %v3666_v61, %v3498_v31  ;;  %v4430_v52 = vadd.f32 %v6416_v32, %v4244_v27  ;;  %v4141_v9 = vmul.f32 %v6317_v25, %v4007_v8  ;;  %v4142_v11 = vmul.f32 %v6319_v63, %v4008_v38  ;;  %3201 = vmatmul.bf16.gmra.mxu0 %v6139_v40 }
 0x55e   :  { %3370 = vmatmul.bf16.gmra.mxu1 %v6147_v18  ;;  %v3332_v37 = vadd.f32 %v3331_v13, %v3163_v41 }
 0x55f   :  { %v3818_v46 = vmax.f32 %v3667_v17, 0.0  ;;  %4495 = vst.msk [vmem:[%s7002_s11 + $0x18] sm:$0xff] %vm4491_vm0, %v4430_v52  ;;  %3539 = vmatmul.bf16.gmra.mxu2 %v6139_v40  ;;  %v4287_v60 = vadd.f32 %v4142_v11, %v4141_v9  ;;  %3708 = vmatmul.bf16.gmra.mxu3 %v6147_v18 }
 0x560   :  { %v3819_v18 = vmax.f32 %v3332_v37, 0.0 }
 0x561   :  { %v3926_v14 = vpack.c.bf16 %v3818_v46, %v3817_v35  ;;  %4288 = vadd.xlane.f32.xlu0 %v4287_v60 }
 0x562   :  { %v3500_v56 = vpop.f32.mrf.mxu2  ;;  %v3669_v43 = vpop.f32.mrf.mxu3 }
 0x563   :  { %v3501_v2 = vadd.f32 %v3500_v56, %v6307_v58  ;;  %v3164_v53 = vpop.f32.mrf.mxu0  ;;  %v4009_v62 = vunpack.c.l.bf16 %v3926_v14  ;;  %v4010_v28 = vunpack.c.h.bf16 %v3926_v14  ;;  %v3333_v49 = vpop.f32.mrf.mxu1 }
 0x564   :  { %v4247_v19 = vpop.xlane.xlu2 %4246  ;;  %v3165_v20 = vadd.f32 %v3164_v53, %v6301_v3 }
 0x565   :  { %v3670_v23 = vadd.f32 %v3669_v43, %v3501_v2  ;;  %v4431_v15 = vadd.f32 %v6416_v32, %v4247_v19  ;;  %v4143_v40 = vmul.f32 %v6317_v25, %v4009_v62  ;;  %v4144_v4 = vmul.f32 %v6319_v63, %v4010_v28 }
 0x566   :  { %v3334_v1 = vadd.f32 %v3333_v49, %v3165_v20 }
 0x567   :  { %v3820_v29 = vmax.f32 %v3670_v23, 0.0  ;;  %4496 = vst.msk [vmem:[%s7002_s11 + $0x20] sm:$0xff] %vm4491_vm0, %v4431_v15  ;;  %v4290_v8 = vadd.f32 %v4144_v4, %v4143_v40 }
 0x568   :  { %v3821_v60 = vmax.f32 %v3334_v1, 0.0 }
 0x569   :  { %v3927_v38 = vpack.c.bf16 %v3820_v29, %v3819_v18  ;;  %4291 = vadd.xlane.f32.xlu1 %v4290_v8 }
 0x56a   :  { %v3502_v24 = vpop.f32.mrf.mxu2  ;;  %v3671_v27 = vpop.f32.mrf.mxu3 }
 0x56b   :  { %v4011_v31 = vunpack.c.l.bf16 %v3927_v38  ;;  %v4012_v61 = vunpack.c.h.bf16 %v3927_v38  ;;  %v3503_v13 = vadd.f32 %v3502_v24, %v6307_v58  ;;  %v3167_v17 = vpop.f32.mrf.mxu0  ;;  %v3336_v52 = vpop.f32.mrf.mxu1 }
 0x56c   :  { %v4250_v9 = vpop.xlane.xlu2 %4249  ;;  %v3168_v56 = vadd.f32 %v3167_v17, %v6301_v3 }
 0x56d   :  { %v3672_v11 = vadd.f32 %v3671_v27, %v3503_v13  ;;  %v4432_v35 = vadd.f32 %v6416_v32, %v4250_v9  ;;  %v4145_v46 = vmul.f32 %v6317_v25, %v4011_v31  ;;  %v4146_v41 = vmul.f32 %v6319_v63, %v4012_v61  ;;  %3206 = vmatmul.bf16.gmra.mxu0 %v6151_v59 }
 0x56e   :  { %3375 = vmatmul.bf16.gmra.mxu1 %v6159_v42  ;;  %v3337_v53 = vadd.f32 %v3336_v52, %v3168_v56 }
 0x56f   :  { %v3822_v14 = vmax.f32 %v3672_v11, 0.0  ;;  %4497 = vst.msk [vmem:[%s7002_s11 + $0x28] sm:$0xff] %vm4491_vm0, %v4432_v35  ;;  %3544 = vmatmul.bf16.gmra.mxu2 %v6151_v59  ;;  %v4293_v37 = vadd.f32 %v4146_v41, %v4145_v46  ;;  %3713 = vmatmul.bf16.gmra.mxu3 %v6159_v42 }
 0x570   :  { %v3823_v42 = vmax.f32 %v3337_v53, 0.0 }
 0x571   :  { %v3928_v2 = vpack.c.bf16 %v3822_v14, %v3821_v60  ;;  %4294 = vadd.xlane.f32.xlu2 %v4293_v37 }
 0x572   :  { %v3505_v43 = vpop.f32.mrf.mxu2  ;;  %v3674_v28 = vpop.f32.mrf.mxu3 }
 0x573   :  { %v3506_v62 = vadd.f32 %v3505_v43, %v6307_v58  ;;  %v3169_v49 = vpop.f32.mrf.mxu0  ;;  %v4013_v19 = vunpack.c.l.bf16 %v3928_v2  ;;  %v4014_v23 = vunpack.c.h.bf16 %v3928_v2  ;;  %v3338_v15 = vpop.f32.mrf.mxu1 }
 0x574   :  { %v4253_v40 = vpop.xlane.xlu0 %4252  ;;  %v3170_v8 = vadd.f32 %v3169_v49, %v6301_v3 }
 0x575   :  { %v3675_v4 = vadd.f32 %v3674_v28, %v3506_v62  ;;  %v4433_v18 = vadd.f32 %v6416_v32, %v4253_v40  ;;  %v4147_v59 = vmul.f32 %v6317_v25, %v4013_v19  ;;  %v4148_v29 = vmul.f32 %v6319_v63, %v4014_v23 }
 0x576   :  { %v3339_v13 = vadd.f32 %v3338_v15, %v3170_v8 }
 0x577   :  { %v3824_v20 = vmax.f32 %v3675_v4, 0.0  ;;  %4498 = vst.msk [vmem:[%s7002_s11 + $0x30] sm:$0xff] %vm4491_vm0, %v4433_v18  ;;  %v4296_v38 = vadd.f32 %v4148_v29, %v4147_v59 }
 0x578   :  { %v3825_v14 = vmax.f32 %v3339_v13, 0.0 }
 0x579   :  { %v3929_v24 = vpack.c.bf16 %v3824_v20, %v3823_v42  ;;  %4297 = vadd.xlane.f32.xlu0 %v4296_v38 }
 0x57a   :  { %v3507_v31 = vpop.f32.mrf.mxu2  ;;  %v3676_v17 = vpop.f32.mrf.mxu3 }
 0x57b   :  { %v4015_v61 = vunpack.c.l.bf16 %v3929_v24  ;;  %v4016_v1 = vunpack.c.h.bf16 %v3929_v24  ;;  %v3508_v27 = vadd.f32 %v3507_v31, %v6307_v58  ;;  %v3172_v52 = vpop.f32.mrf.mxu0  ;;  %v3341_v9 = vpop.f32.mrf.mxu1 }
 0x57c   :  { %v4256_v11 = vpop.xlane.xlu1 %4255  ;;  %v3173_v37 = vadd.f32 %v3172_v52, %v6301_v3 }
 0x57d   :  { %v3677_v35 = vadd.f32 %v3676_v17, %v3508_v27  ;;  %v4434_v46 = vadd.f32 %v6416_v32, %v4256_v11  ;;  %v4149_v41 = vmul.f32 %v6317_v25, %v4015_v61  ;;  %v4150_v60 = vmul.f32 %v6319_v63, %v4016_v1  ;;  %3211 = vmatmul.bf16.gmra.mxu0 %v6163_v7 }
 0x57e   :  { %3380 = vmatmul.bf16.gmra.mxu1 %v6171_v34  ;;  %v3342_v62 = vadd.f32 %v3341_v9, %v3173_v37 }
 0x57f   :  { %v3826_v56 = vmax.f32 %v3677_v35, 0.0  ;;  %4499 = vst.msk [vmem:[%s7002_s11 + $0x38] sm:$0xff] %vm4491_vm0, %v4434_v46  ;;  %3549 = vmatmul.bf16.gmra.mxu2 %v6163_v7  ;;  %v4299_v2 = vadd.f32 %v4150_v60, %v4149_v41  ;;  %3718 = vmatmul.bf16.gmra.mxu3 %v6171_v34 }
 0x580   :  { %v3827_v34 = vmax.f32 %v3342_v62, 0.0 }
 0x581   :  { %v3930_v43 = vpack.c.bf16 %v3826_v56, %v3825_v14  ;;  %4300 = vadd.xlane.f32.xlu1 %v4299_v2 }
 0x582   :  { %v3510_v53 = vpop.f32.mrf.mxu2  ;;  %v3679_v49 = vpop.f32.mrf.mxu3 }
 0x583   :  { %v3511_v28 = vadd.f32 %v3510_v53, %v6307_v58  ;;  %v3174_v19 = vpop.f32.mrf.mxu0  ;;  %v4017_v23 = vunpack.c.l.bf16 %v3930_v43  ;;  %v4018_v15 = vunpack.c.h.bf16 %v3930_v43  ;;  %v3343_v40 = vpop.f32.mrf.mxu1 }
 0x584   :  { %v4259_v4 = vpop.xlane.xlu2 %4258  ;;  %v3175_v20 = vadd.f32 %v3174_v19, %v6301_v3 }
 0x585   :  { %v3680_v18 = vadd.f32 %v3679_v49, %v3511_v28  ;;  %v4435_v59 = vadd.f32 %v6416_v32, %v4259_v4  ;;  %v4151_v7 = vmul.f32 %v6317_v25, %v4017_v23  ;;  %v4152_v29 = vmul.f32 %v6319_v63, %v4018_v15 }
 0x586   :  { %v3344_v1 = vadd.f32 %v3343_v40, %v3175_v20 }
 0x587   :  { %v3828_v42 = vmax.f32 %v3680_v18, 0.0  ;;  %4500 = vst.msk [vmem:[%s7002_s11 + $0x40] sm:$0xff] %vm4491_vm0, %v4435_v59  ;;  %v4302_v8 = vadd.f32 %v4152_v29, %v4151_v7 }
 0x588   :  { %v3829_v60 = vmax.f32 %v3344_v1, 0.0 }
 0x589   :  { %v3931_v38 = vpack.c.bf16 %v3828_v42, %v3827_v34  ;;  %4303 = vadd.xlane.f32.xlu2 %v4302_v8 }
 0x58a   :  { %v3512_v24 = vpop.f32.mrf.mxu2  ;;  %v3681_v27 = vpop.f32.mrf.mxu3 }
 0x58b   :  { %v4019_v31 = vunpack.c.l.bf16 %v3931_v38  ;;  %v4020_v61 = vunpack.c.h.bf16 %v3931_v38  ;;  %v3513_v13 = vadd.f32 %v3512_v24, %v6307_v58  ;;  %v3177_v17 = vpop.f32.mrf.mxu0  ;;  %v3346_v52 = vpop.f32.mrf.mxu1 }
 0x58c   :  { %v4262_v9 = vpop.xlane.xlu0 %4261  ;;  %v3178_v56 = vadd.f32 %v3177_v17, %v6301_v3 }
 0x58d   :  { %v3682_v11 = vadd.f32 %v3681_v27, %v3513_v13  ;;  %v4436_v35 = vadd.f32 %v6416_v32, %v4262_v9  ;;  %v4153_v46 = vmul.f32 %v6317_v25, %v4019_v31  ;;  %v4154_v41 = vmul.f32 %v6319_v63, %v4020_v61  ;;  %3216 = vmatmul.bf16.gmra.mxu0 %v6175_v21 }
 0x58e   :  { %3385 = vmatmul.bf16.gmra.mxu1 %v6183_v57  ;;  %v3347_v53 = vadd.f32 %v3346_v52, %v3178_v56 }
 0x58f   :  { %v3830_v14 = vmax.f32 %v3682_v11, 0.0  ;;  %4501 = vst.msk [vmem:[%s7002_s11 + $0x48] sm:$0xff] %vm4491_vm0, %v4436_v35  ;;  %3554 = vmatmul.bf16.gmra.mxu2 %v6175_v21  ;;  %v4305_v37 = vadd.f32 %v4154_v41, %v4153_v46  ;;  %3723 = vmatmul.bf16.gmra.mxu3 %v6183_v57 }
 0x590   :  { %v3831_v57 = vmax.f32 %v3347_v53, 0.0 }
 0x591   :  { %v3932_v2 = vpack.c.bf16 %v3830_v14, %v3829_v60  ;;  %4306 = vadd.xlane.f32.xlu0 %v4305_v37 }
 0x592   :  { %v3515_v43 = vpop.f32.mrf.mxu2  ;;  %v3684_v28 = vpop.f32.mrf.mxu3 }
 0x593   :  { %v3516_v62 = vadd.f32 %v3515_v43, %v6307_v58  ;;  %v3179_v49 = vpop.f32.mrf.mxu0  ;;  %v4021_v19 = vunpack.c.l.bf16 %v3932_v2  ;;  %v4022_v23 = vunpack.c.h.bf16 %v3932_v2  ;;  %v3348_v15 = vpop.f32.mrf.mxu1 }
 0x594   :  { %v4265_v40 = vpop.xlane.xlu1 %4264  ;;  %v3180_v29 = vadd.f32 %v3179_v49, %v6301_v3 }
 0x595   :  { %v3685_v4 = vadd.f32 %v3684_v28, %v3516_v62  ;;  %v4437_v18 = vadd.f32 %v6416_v32, %v4265_v40  ;;  %v4155_v21 = vmul.f32 %v6317_v25, %v4021_v19  ;;  %v4156_v59 = vmul.f32 %v6319_v63, %v4022_v23 }
 0x596   :  { %v3349_v24 = vadd.f32 %v3348_v15, %v3180_v29 }
 0x597   :  { %v3832_v7 = vmax.f32 %v3685_v4, 0.0  ;;  %4502 = vst.msk [vmem:[%s7002_s11 + $0x50] sm:$0xff] %vm4491_vm0, %v4437_v18  ;;  %v4308_v34 = vadd.f32 %v4156_v59, %v4155_v21 }
 0x598   :  { %v3833_v35 = vmax.f32 %v3349_v24, 0.0 }
 0x599   :  { %v3933_v42 = vpack.c.bf16 %v3832_v7, %v3831_v57  ;;  %4309 = vadd.xlane.f32.xlu1 %v4308_v34 }
 0x59a   :  { %v3517_v20 = vpop.f32.mrf.mxu2  ;;  %v3686_v61 = vpop.f32.mrf.mxu3 }
 0x59b   :  { %v4023_v8 = vunpack.c.l.bf16 %v3933_v42  ;;  %v4024_v38 = vunpack.c.h.bf16 %v3933_v42  ;;  %v3518_v31 = vadd.f32 %v3517_v20, %v6307_v58  ;;  %v3182_v1 = vpop.f32.mrf.mxu0  ;;  %v3351_v13 = vpop.f32.mrf.mxu1 }
 0x59c   :  { %v4268_v27 = vpop.xlane.xlu2 %4267  ;;  %v3183_v41 = vadd.f32 %v3182_v1, %v6301_v3 }
 0x59d   :  { %v3687_v17 = vadd.f32 %v3686_v61, %v3518_v31  ;;  %v4438_v52 = vadd.f32 %v6416_v32, %v4268_v27  ;;  %v4157_v9 = vmul.f32 %v6317_v25, %v4023_v8  ;;  %v4158_v11 = vmul.f32 %v6319_v63, %v4024_v38  ;;  %3221 = vmatmul.bf16.gmra.mxu0 %v6187_v0 }
 0x59e   :  { %3390 = vmatmul.bf16.gmra.mxu1 %v6195_v33  ;;  %v3352_v37 = vadd.f32 %v3351_v13, %v3183_v41 }
 0x59f   :  { %v3834_v46 = vmax.f32 %v3687_v17, 0.0  ;;  %4503 = vst.msk [vmem:[%s7002_s11 + $0x58] sm:$0xff] %vm4491_vm0, %v4438_v52  ;;  %3559 = vmatmul.bf16.gmra.mxu2 %v6187_v0  ;;  %v4311_v60 = vadd.f32 %v4158_v11, %v4157_v9  ;;  %3728 = vmatmul.bf16.gmra.mxu3 %v6195_v33 }
 0x5a0   :  { %v3835_v33 = vmax.f32 %v3352_v37, 0.0 }
 0x5a1   :  { %v3934_v14 = vpack.c.bf16 %v3834_v46, %v3833_v35  ;;  %4312 = vadd.xlane.f32.xlu2 %v4311_v60 }
 0x5a2   :  { %v3520_v56 = vpop.f32.mrf.mxu2  ;;  %v3689_v43 = vpop.f32.mrf.mxu3 }
 0x5a3   :  { %v3521_v2 = vadd.f32 %v3520_v56, %v6307_v58  ;;  %v3184_v53 = vpop.f32.mrf.mxu0  ;;  %v4025_v62 = vunpack.c.l.bf16 %v3934_v14  ;;  %v4026_v28 = vunpack.c.h.bf16 %v3934_v14  ;;  %v3353_v49 = vpop.f32.mrf.mxu1 }
 0x5a4   :  { %v4271_v19 = vpop.xlane.xlu0 %4270  ;;  %v3185_v18 = vadd.f32 %v3184_v53, %v6301_v3 }
 0x5a5   :  { %v3690_v23 = vadd.f32 %v3689_v43, %v3521_v2  ;;  %v4439_v15 = vadd.f32 %v6416_v32, %v4271_v19  ;;  %v4159_v0 = vmul.f32 %v6317_v25, %v4025_v62  ;;  %v4160_v40 = vmul.f32 %v6319_v63, %v4026_v28 }
 0x5a6   :  { %v3354_v34 = vadd.f32 %v3353_v49, %v3185_v18 }
 0x5a7   :  { %v3836_v4 = vmax.f32 %v3690_v23, 0.0  ;;  %4504 = vst.msk [vmem:[%s7002_s11 + $0x60] sm:$0xff] %vm4491_vm0, %v4439_v15  ;;  %v4314_v21 = vadd.f32 %v4160_v40, %v4159_v0 }
 0x5a8   :  { %v3837_v27 = vmax.f32 %v3354_v34, 0.0 }
 0x5a9   :  { %v3935_v59 = vpack.c.bf16 %v3836_v4, %v3835_v33  ;;  %4315 = vadd.xlane.f32.xlu0 %v4314_v21 }
 0x5aa   :  { %v3522_v57 = vpop.f32.mrf.mxu2  ;;  %v3691_v20 = vpop.f32.mrf.mxu3 }
 0x5ab   :  { %v4027_v7 = vunpack.c.l.bf16 %v3935_v59  ;;  %v4028_v29 = vunpack.c.h.bf16 %v3935_v59  ;;  %v3523_v42 = vadd.f32 %v3522_v57, %v6307_v58  ;;  %v3187_v8 = vpop.f32.mrf.mxu0  ;;  %v3356_v38 = vpop.f32.mrf.mxu1 }
 0x5ac   :  { %v4274_v24 = vpop.xlane.xlu1 %4273  ;;  %v3188_v52 = vadd.f32 %v3187_v8, %v6301_v3 }
 0x5ad   :  { %v3692_v31 = vadd.f32 %v3691_v20, %v3523_v42  ;;  %v4440_v61 = vadd.f32 %v6416_v32, %v4274_v24  ;;  %v4161_v1 = vmul.f32 %v6317_v25, %v4027_v7  ;;  %v4162_v13 = vmul.f32 %v6319_v63, %v4028_v29  ;;  %3226 = vmatmul.bf16.gmra.mxu0 %v6199_v12 }
 0x5ae   :  { %3395 = vmatmul.bf16.gmra.mxu1 %v6207_v22  ;;  %v3357_v46 = vadd.f32 %v3356_v38, %v3188_v52 }
 0x5af   :  { %v3838_v17 = vmax.f32 %v3692_v31, 0.0  ;;  %4505 = vst.msk [vmem:[%s7002_s11 + $0x68] sm:$0xff] %vm4491_vm0, %v4440_v61  ;;  %3564 = vmatmul.bf16.gmra.mxu2 %v6199_v12  ;;  %v4317_v9 = vadd.f32 %v4162_v13, %v4161_v1  ;;  %3733 = vmatmul.bf16.gmra.mxu3 %v6207_v22 }
 0x5b0   :  { %v3839_v22 = vmax.f32 %v3357_v46, 0.0 }
 0x5b1   :  { %v3936_v11 = vpack.c.bf16 %v3838_v17, %v3837_v27  ;;  %4318 = vadd.xlane.f32.xlu1 %v4317_v9 }
 0x5b2   :  { %v3525_v35 = vpop.f32.mrf.mxu2  ;;  %v3694_v60 = vpop.f32.mrf.mxu3 }
 0x5b3   :  { %v3526_v41 = vadd.f32 %v3525_v35, %v6307_v58  ;;  %v3189_v14 = vpop.f32.mrf.mxu0  ;;  %v4029_v56 = vunpack.c.l.bf16 %v3936_v11  ;;  %v4030_v37 = vunpack.c.h.bf16 %v3936_v11  ;;  %v3358_v2 = vpop.f32.mrf.mxu1 }
 0x5b4   :  { %v4277_v43 = vpop.xlane.xlu2 %4276  ;;  %v3190_v19 = vadd.f32 %v3189_v14, %v6301_v3 }
 0x5b5   :  { %v3695_v53 = vadd.f32 %v3694_v60, %v3526_v41  ;;  %v4441_v62 = vadd.f32 %v6416_v32, %v4277_v43  ;;  %v4163_v12 = vmul.f32 %v6317_v25, %v4029_v56  ;;  %v4164_v28 = vmul.f32 %v6319_v63, %v4030_v37 }
 0x5b6   :  { %v3359_v4 = vadd.f32 %v3358_v2, %v3190_v19 }
 0x5b7   :  { %v3840_v49 = vmax.f32 %v3695_v53, 0.0  ;;  %4506 = vst.msk [vmem:[%s7002_s11 + $0x70] sm:$0xff] %vm4491_vm0, %v4441_v62  ;;  %v4320_v23 = vadd.f32 %v4164_v28, %v4163_v12 }
 0x5b8   :  { %v3841_v8 = vmax.f32 %v3359_v4, 0.0 }
 0x5b9   :  { %v3937_v15 = vpack.c.bf16 %v3840_v49, %v3839_v22  ;;  %4321 = vadd.xlane.f32.xlu2 %v4320_v23 }
 0x5ba   :  { %v3527_v0 = vpop.f32.mrf.mxu2  ;;  %v3696_v21 = vpop.f32.mrf.mxu3 }
 0x5bb   :  { %v4031_v40 = vunpack.c.l.bf16 %v3937_v15  ;;  %v4032_v33 = vunpack.c.h.bf16 %v3937_v15  ;;  %v3528_v18 = vadd.f32 %v3527_v0, %v6307_v58  ;;  %v3192_v59 = vpop.f32.mrf.mxu0  ;;  %v3361_v57 = vpop.f32.mrf.mxu1 }
 0x5bc   :  { %v4280_v7 = vpop.xlane.xlu0 %4279  ;;  %v3193_v24 = vadd.f32 %v3192_v59, %v6301_v3 }
 0x5bd   :  { %v3697_v29 = vadd.f32 %v3696_v21, %v3528_v18  ;;  %v4442_v34 = vadd.f32 %v6416_v32, %v4280_v7  ;;  %v4165_v42 = vmul.f32 %v6317_v25, %v4031_v40  ;;  %v4166_v20 = vmul.f32 %v6319_v63, %v4032_v33  ;;  %3231 = vmatmul.bf16.gmra.mxu0 %v6211_v48 }
 0x5be   :  { %3400 = vmatmul.bf16.gmra.mxu1 %v6219_v16  ;;  %v3362_v13 = vadd.f32 %v3361_v57, %v3193_v24 }
 0x5bf   :  { %v3842_v38 = vmax.f32 %v3697_v29, 0.0  ;;  %4507 = vst.msk [vmem:[%s7002_s11 + $0x78] sm:$0xff] %vm4491_vm0, %v4442_v34  ;;  %3569 = vmatmul.bf16.gmra.mxu2 %v6211_v48  ;;  %v4323_v31 = vadd.f32 %v4166_v20, %v4165_v42  ;;  %3738 = vmatmul.bf16.gmra.mxu3 %v6219_v16 }
 0x5c0   :  { %v3843_v16 = vmax.f32 %v3362_v13, 0.0 }
 0x5c1   :  { %v3938_v61 = vpack.c.bf16 %v3842_v38, %v3841_v8  ;;  %4324 = vadd.xlane.f32.xlu0 %v4323_v31 }
 0x5c2   :  { %v3530_v1 = vpop.f32.mrf.mxu2  ;;  %v3699_v17 = vpop.f32.mrf.mxu3 }
 0x5c3   :  { %v3531_v27 = vadd.f32 %v3530_v1, %v6307_v58  ;;  %v3194_v52 = vpop.f32.mrf.mxu0  ;;  %v4033_v9 = vunpack.c.l.bf16 %v3938_v61  ;;  %v4034_v11 = vunpack.c.h.bf16 %v3938_v61  ;;  %v3363_v35 = vpop.f32.mrf.mxu1 }
 0x5c4   :  { %v4283_v46 = vpop.xlane.xlu1 %4282  ;;  %v3195_v37 = vadd.f32 %v3194_v52, %v6301_v3 }
 0x5c5   :  { %v3700_v41 = vadd.f32 %v3699_v17, %v3531_v27  ;;  %v4443_v60 = vadd.f32 %v6416_v32, %v4283_v46  ;;  %v4167_v48 = vmul.f32 %v6317_v25, %v4033_v9  ;;  %v4168_v14 = vmul.f32 %v6319_v63, %v4034_v11 }
 0x5c6   :  { %v3364_v28 = vadd.f32 %v3363_v35, %v3195_v37 }
 0x5c7   :  { %v3844_v56 = vmax.f32 %v3700_v41, 0.0  ;;  %4508 = vst.msk [vmem:[%s7002_s11 + $0x80] sm:$0xff] %vm4491_vm0, %v4443_v60  ;;  %v4326_v2 = vadd.f32 %v4168_v14, %v4167_v48 }
 0x5c8   :  { %v3845_v18 = vmax.f32 %v3364_v28, 0.0 }
 0x5c9   :  { %v3939_v43 = vpack.c.bf16 %v3844_v56, %v3843_v16  ;;  %4327 = vadd.xlane.f32.xlu1 %v4326_v2 }
 0x5ca   :  { %v3532_v53 = vpop.f32.mrf.mxu2  ;;  %v3701_v49 = vpop.f32.mrf.mxu3 }
 0x5cb   :  { %v4035_v62 = vunpack.c.l.bf16 %v3939_v43  ;;  %v4036_v12 = vunpack.c.h.bf16 %v3939_v43  ;;  %v3533_v22 = vadd.f32 %v3532_v53, %v6307_v58  ;;  %v3197_v19 = vpop.f32.mrf.mxu0  ;;  %v3366_v23 = vpop.f32.mrf.mxu1 }
 0x5cc   :  { %v4286_v15 = vpop.xlane.xlu2 %4285  ;;  %v3198_v59 = vadd.f32 %v3197_v19, %v6301_v3 }
 0x5cd   :  { %v3702_v0 = vadd.f32 %v3701_v49, %v3533_v22  ;;  %v4444_v40 = vadd.f32 %v6416_v32, %v4286_v15  ;;  %v4169_v33 = vmul.f32 %v6317_v25, %v4035_v62  ;;  %v4170_v4 = vmul.f32 %v6319_v63, %v4036_v12  ;;  %3236 = vmatmul.bf16.gmra.mxu0 %v6223_v39 }
 0x5ce   :  { %3405 = vmatmul.bf16.gmra.mxu1 %v6231_v30  ;;  %v3367_v34 = vadd.f32 %v3366_v23, %v3198_v59 }
 0x5cf   :  { %v3846_v21 = vmax.f32 %v3702_v0, 0.0  ;;  %4509 = vst.msk [vmem:[%s7002_s11 + $0x88] sm:$0xff] %vm4491_vm0, %v4444_v40  ;;  %3574 = vmatmul.bf16.gmra.mxu2 %v6223_v39  ;;  %v4329_v57 = vadd.f32 %v4170_v4, %v4169_v33  ;;  %3743 = vmatmul.bf16.gmra.mxu3 %v6231_v30 }
 0x5d0   :  { %v3847_v30 = vmax.f32 %v3367_v34, 0.0 }
 0x5d1   :  { %v3940_v7 = vpack.c.bf16 %v3846_v21, %v3845_v18  ;;  %4330 = vadd.xlane.f32.xlu2 %v4329_v57 }
 0x5d2   :  { %v3535_v29 = vpop.f32.mrf.mxu2  ;;  %v3704_v20 = vpop.f32.mrf.mxu3 }
 0x5d3   :  { %v3536_v42 = vadd.f32 %v3535_v29, %v6307_v58  ;;  %v3199_v8 = vpop.f32.mrf.mxu0  ;;  %v4037_v38 = vunpack.c.l.bf16 %v3940_v7  ;;  %v4038_v24 = vunpack.c.h.bf16 %v3940_v7  ;;  %v3368_v31 = vpop.f32.mrf.mxu1 }
 0x5d4   :  { %v4289_v61 = vpop.xlane.xlu0 %4288  ;;  %v3200_v52 = vadd.f32 %v3199_v8, %v6301_v3 }
 0x5d5   :  { %v3705_v1 = vadd.f32 %v3704_v20, %v3536_v42  ;;  %v4445_v13 = vadd.f32 %v6416_v32, %v4289_v61  ;;  %v4171_v39 = vmul.f32 %v6317_v25, %v4037_v38  ;;  %v4172_v27 = vmul.f32 %v6319_v63, %v4038_v24 }
 0x5d6   :  { %v3369_v60 = vadd.f32 %v3368_v31, %v3200_v52 }
 0x5d7   :  { %v3848_v17 = vmax.f32 %v3705_v1, 0.0  ;;  %4510 = vst.msk [vmem:[%s7002_s11 + $0x90] sm:$0xff] %vm4491_vm0, %v4445_v13  ;;  %v4332_v9 = vadd.f32 %v4172_v27, %v4171_v39 }
 0x5d8   :  { %v3849_v12 = vmax.f32 %v3369_v60, 0.0 }
 0x5d9   :  { %v3941_v11 = vpack.c.bf16 %v3848_v17, %v3847_v30  ;;  %4333 = vadd.xlane.f32.xlu0 %v4332_v9 }
 0x5da   :  { %v3537_v35 = vpop.f32.mrf.mxu2  ;;  %v3706_v14 = vpop.f32.mrf.mxu3 }
 0x5db   :  { %v4039_v46 = vunpack.c.l.bf16 %v3941_v11  ;;  %v4040_v41 = vunpack.c.h.bf16 %v3941_v11  ;;  %v3538_v48 = vadd.f32 %v3537_v35, %v6307_v58  ;;  %v3202_v16 = vpop.f32.mrf.mxu0  ;;  %v3371_v56 = vpop.f32.mrf.mxu1 }
 0x5dc   :  { %v4292_v37 = vpop.xlane.xlu1 %4291  ;;  %v3203_v22 = vadd.f32 %v3202_v16, %v6301_v3 }
 0x5dd   :  { %v3707_v2 = vadd.f32 %v3706_v14, %v3538_v48  ;;  %v4446_v43 = vadd.f32 %v6416_v32, %v4292_v37  ;;  %v4173_v53 = vmul.f32 %v6317_v25, %v4039_v46  ;;  %v4174_v62 = vmul.f32 %v6319_v63, %v4040_v41  ;;  %3241 = vmatmul.bf16.gmra.mxu0 %v6235_v6 }
 0x5de   :  { %3410 = vmatmul.bf16.gmra.mxu1 %v6243_v26  ;;  %v3372_v15 = vadd.f32 %v3371_v56, %v3203_v22 }
 0x5df   :  { %v3850_v28 = vmax.f32 %v3707_v2, 0.0  ;;  %4511 = vst.msk [vmem:[%s7002_s11 + $0x98] sm:$0xff] %vm4491_vm0, %v4446_v43  ;;  %3579 = vmatmul.bf16.gmra.mxu2 %v6235_v6  ;;  %v4335_v49 = vadd.f32 %v4174_v62, %v4173_v53  ;;  %3748 = vmatmul.bf16.gmra.mxu3 %v6243_v26 }
 0x5e0   :  { %v3851_v26 = vmax.f32 %v3372_v15, 0.0 }
 0x5e1   :  { %v3942_v19 = vpack.c.bf16 %v3850_v28, %v3849_v12  ;;  %4336 = vadd.xlane.f32.xlu1 %v4335_v49 }
 0x5e2   :  { %v3540_v23 = vpop.f32.mrf.mxu2  ;;  %v3709_v40 = vpop.f32.mrf.mxu3 }
 0x5e3   :  { %v3541_v0 = vadd.f32 %v3540_v23, %v6307_v58  ;;  %v3204_v33 = vpop.f32.mrf.mxu0  ;;  %v4041_v4 = vunpack.c.l.bf16 %v3942_v19  ;;  %v4042_v18 = vunpack.c.h.bf16 %v3942_v19  ;;  %v3373_v21 = vpop.f32.mrf.mxu1 }
 0x5e4   :  { %v4295_v59 = vpop.xlane.xlu2 %4294  ;;  %v3205_v42 = vadd.f32 %v3204_v33, %v6301_v3 }
 0x5e5   :  { %v3710_v57 = vadd.f32 %v3709_v40, %v3541_v0  ;;  %v4447_v7 = vadd.f32 %v6416_v32, %v4295_v59  ;;  %v4175_v6 = vmul.f32 %v6317_v25, %v4041_v4  ;;  %v4176_v29 = vmul.f32 %v6319_v63, %v4042_v18 }
 0x5e6   :  { %v3374_v61 = vadd.f32 %v3373_v21, %v3205_v42 }
 0x5e7   :  { %v3852_v34 = vmax.f32 %v3710_v57, 0.0  ;;  %4512 = vst.msk [vmem:[%s7002_s11 + $0xa0] sm:$0xff] %vm4491_vm0, %v4447_v7  ;;  %v4338_v20 = vadd.f32 %v4176_v29, %v4175_v6 }
 0x5e8   :  { %v3853_v35 = vmax.f32 %v3374_v61, 0.0 }
 0x5e9   :  { %v3943_v8 = vpack.c.bf16 %v3852_v34, %v3851_v26  ;;  %4339 = vadd.xlane.f32.xlu2 %v4338_v20 }
 0x5ea   :  { %v3542_v38 = vpop.f32.mrf.mxu2  ;;  %v3711_v13 = vpop.f32.mrf.mxu3 }
 0x5eb   :  { %v4043_v24 = vunpack.c.l.bf16 %v3943_v8  ;;  %v4044_v31 = vunpack.c.h.bf16 %v3943_v8  ;;  %v3543_v1 = vadd.f32 %v3542_v38, %v6307_v58  ;;  %v3207_v39 = vpop.f32.mrf.mxu0  ;;  %v3376_v27 = vpop.f32.mrf.mxu1 }
 0x5ec   :  { %v4298_v30 = vpop.xlane.xlu0 %4297  ;;  %v3208_v41 = vadd.f32 %v3207_v39, %v6301_v3 }
 0x5ed   :  { %v3712_v17 = vadd.f32 %v3711_v13, %v3543_v1  ;;  %v4448_v52 = vadd.f32 %v6416_v32, %v4298_v30  ;;  %v4177_v9 = vmul.f32 %v6317_v25, %v4043_v24  ;;  %v4178_v11 = vmul.f32 %v6319_v63, %v4044_v31  ;;  %3246 = vmatmul.bf16.gmra.mxu0 %v6247_v45 }
 0x5ee   :  { %3415 = vmatmul.bf16.gmra.mxu1 %v6255_v36  ;;  %v3377_v16 = vadd.f32 %v3376_v27, %v3208_v41 }
 0x5ef   :  { %v3854_v46 = vmax.f32 %v3712_v17, 0.0  ;;  %4513 = vst.msk [vmem:[%s7002_s11 + $0xa8] sm:$0xff] %vm4491_vm0, %v4448_v52  ;;  %3584 = vmatmul.bf16.gmra.mxu2 %v6247_v45  ;;  %v4341_v60 = vadd.f32 %v4178_v11, %v4177_v9  ;;  %3753 = vmatmul.bf16.gmra.mxu3 %v6255_v36 }
 0x5f0   :  { %v3855_v36 = vmax.f32 %v3377_v16, 0.0 }
 0x5f1   :  { %v3944_v48 = vpack.c.bf16 %v3854_v46, %v3853_v35  ;;  %4342 = vadd.xlane.f32.xlu0 %v4341_v60 }
 0x5f2   :  { %v3545_v14 = vpop.f32.mrf.mxu2  ;;  %v3714_v37 = vpop.f32.mrf.mxu3 }
 0x5f3   :  { %v3546_v56 = vadd.f32 %v3545_v14, %v6307_v58  ;;  %v3209_v2 = vpop.f32.mrf.mxu0  ;;  %v4045_v43 = vunpack.c.l.bf16 %v3944_v48  ;;  %v4046_v53 = vunpack.c.h.bf16 %v3944_v48  ;;  %v3378_v62 = vpop.f32.mrf.mxu1 }
 0x5f4   :  { %v4301_v12 = vpop.xlane.xlu1 %4300  ;;  %v3210_v23 = vadd.f32 %v3209_v2, %v6301_v3 }
 0x5f5   :  { %v3715_v28 = vadd.f32 %v3714_v37, %v3546_v56  ;;  %v4449_v22 = vadd.f32 %v6416_v32, %v4301_v12  ;;  %v4179_v45 = vmul.f32 %v6317_v25, %v4045_v43  ;;  %v4180_v49 = vmul.f32 %v6319_v63, %v4046_v53 }
 0x5f6   :  { %v3379_v18 = vadd.f32 %v3378_v62, %v3210_v23 }
 0x5f7   :  { %v3856_v19 = vmax.f32 %v3715_v28, 0.0  ;;  %4514 = vst.msk [vmem:[%s7002_s11 + $0xb0] sm:$0xff] %vm4491_vm0, %v4449_v22  ;;  %v4344_v15 = vadd.f32 %v4180_v49, %v4179_v45 }
 0x5f8   :  { %v3857_v20 = vmax.f32 %v3379_v18, 0.0 }
 0x5f9   :  { %v3945_v0 = vpack.c.bf16 %v3856_v19, %v3855_v36  ;;  %4345 = vadd.xlane.f32.xlu1 %v4344_v15 }
 0x5fa   :  { %v3547_v40 = vpop.f32.mrf.mxu2  ;;  %v3716_v59 = vpop.f32.mrf.mxu3 }
 0x5fb   :  { %v4047_v33 = vunpack.c.l.bf16 %v3945_v0  ;;  %v4048_v4 = vunpack.c.h.bf16 %v3945_v0  ;;  %v3548_v21 = vadd.f32 %v3547_v40, %v6307_v58  ;;  %v3212_v57 = vpop.f32.mrf.mxu0  ;;  %v3381_v7 = vpop.f32.mrf.mxu1 }
 0x5fc   :  { %v4304_v6 = vpop.xlane.xlu2 %4303  ;;  %v3213_v38 = vadd.f32 %v3212_v57, %v6301_v3 }
 0x5fd   :  { %v3717_v29 = vadd.f32 %v3716_v59, %v3548_v21  ;;  %v4450_v26 = vadd.f32 %v6416_v32, %v4304_v6  ;;  %v4181_v34 = vmul.f32 %v6317_v25, %v4047_v33  ;;  %v4182_v42 = vmul.f32 %v6319_v63, %v4048_v4  ;;  %3251 = vmatmul.bf16.gmra.mxu0 %v6259_v55 }
 0x5fe   :  { %3420 = vmatmul.bf16.gmra.mxu1 %v6267_v5  ;;  %v3382_v1 = vadd.f32 %v3381_v7, %v3213_v38 }
 0x5ff   :  { %v3858_v8 = vmax.f32 %v3717_v29, 0.0  ;;  %4515 = vst.msk [vmem:[%s7002_s11 + $0xb8] sm:$0xff] %vm4491_vm0, %v4450_v26  ;;  %3589 = vmatmul.bf16.gmra.mxu2 %v6259_v55  ;;  %v4347_v24 = vadd.f32 %v4182_v42, %v4181_v34  ;;  %3758 = vmatmul.bf16.gmra.mxu3 %v6267_v5 }
 0x600   :  { %v3859_v5 = vmax.f32 %v3382_v1, 0.0 }
 0x601   :  { %v3946_v31 = vpack.c.bf16 %v3858_v8, %v3857_v20  ;;  %4348 = vadd.xlane.f32.xlu2 %v4347_v24 }
 0x602   :  { %v3550_v61 = vpop.f32.mrf.mxu2  ;;  %v3719_v39 = vpop.f32.mrf.mxu3 }
 0x603   :  { %v3551_v13 = vadd.f32 %v3550_v61, %v6307_v58  ;;  %v3214_v27 = vpop.f32.mrf.mxu0  ;;  %v4049_v30 = vunpack.c.l.bf16 %v3946_v31  ;;  %v4050_v17 = vunpack.c.h.bf16 %v3946_v31  ;;  %v3383_v52 = vpop.f32.mrf.mxu1 }
 0x604   :  { %v4307_v9 = vpop.xlane.xlu0 %4306  ;;  %v3215_v60 = vadd.f32 %v3214_v27, %v6301_v3 }
 0x605   :  { %v3720_v11 = vadd.f32 %v3719_v39, %v3551_v13  ;;  %v4451_v35 = vadd.f32 %v6416_v32, %v4307_v9  ;;  %v4183_v55 = vmul.f32 %v6317_v25, %v4049_v30  ;;  %v4184_v46 = vmul.f32 %v6319_v63, %v4050_v17 }
 0x606   :  { %v3384_v2 = vadd.f32 %v3383_v52, %v3215_v60 }
 0x607   :  { %v3860_v41 = vmax.f32 %v3720_v11, 0.0  ;;  %4516 = vst.msk [vmem:[%s7002_s11 + $0xc0] sm:$0xff] %vm4491_vm0, %v4451_v35  ;;  %v4350_v48 = vadd.f32 %v4184_v46, %v4183_v55 }
 0x608   :  { %v3861_v19 = vmax.f32 %v3384_v2, 0.0 }
 0x609   :  { %v3947_v14 = vpack.c.bf16 %v3860_v41, %v3859_v5  ;;  %4351 = vadd.xlane.f32.xlu0 %v4350_v48 }
 0x60a   :  { %v3552_v16 = vpop.f32.mrf.mxu2  ;;  %v3721_v53 = vpop.f32.mrf.mxu3 }
 0x60b   :  { %v4051_v56 = vunpack.c.l.bf16 %v3947_v14  ;;  %v4052_v37 = vunpack.c.h.bf16 %v3947_v14  ;;  %v3553_v43 = vadd.f32 %v3552_v16, %v6307_v58  ;;  %v3217_v62 = vpop.f32.mrf.mxu0  ;;  %v3386_v12 = vpop.f32.mrf.mxu1 }
 0x60c   :  { %v4310_v28 = vpop.xlane.xlu1 %4309  ;;  %v3218_v15 = vadd.f32 %v3217_v62, %v6301_v3 }
 0x60d   :  { %v3722_v22 = vadd.f32 %v3721_v53, %v3553_v43  ;;  %v4452_v45 = vadd.f32 %v6416_v32, %v4310_v28  ;;  %v4185_v49 = vmul.f32 %v6317_v25, %v4051_v56  ;;  %v4186_v36 = vmul.f32 %v6319_v63, %v4052_v37  ;;  %3256 = vmatmul.bf16.gmra.mxu0 %v6271_v51 }
 0x60e   :  { %3425 = vmatmul.bf16.gmra.mxu1 %v6279_v54  ;;  %v3387_v21 = vadd.f32 %v3386_v12, %v3218_v15 }
 0x60f   :  { %v3862_v23 = vmax.f32 %v3722_v22, 0.0  ;;  %4517 = vst.msk [vmem:[%s7002_s11 + $0xc8] sm:$0xff] %vm4491_vm0, %v4452_v45  ;;  %3594 = vmatmul.bf16.gmra.mxu2 %v6271_v51  ;;  %v4353_v0 = vadd.f32 %v4186_v36, %v4185_v49  ;;  %3763 = vmatmul.bf16.gmra.mxu3 %v6279_v54 }
 0x610   :  { %v3863_v54 = vmax.f32 %v3387_v21, 0.0 }
 0x611   :  { %v3948_v40 = vpack.c.bf16 %v3862_v23, %v3861_v19  ;;  %4354 = vadd.xlane.f32.xlu1 %v4353_v0 }
 0x612   :  { %v3555_v33 = vpop.f32.mrf.mxu2  ;;  %v3724_v57 = vpop.f32.mrf.mxu3 }
 0x613   :  { %v4053_v4 = vunpack.c.l.bf16 %v3948_v40  ;;  %v4054_v18 = vunpack.c.h.bf16 %v3948_v40  ;;  %v3556_v59 = vadd.f32 %v3555_v33, %v6307_v58  ;;  %v3219_v7 = vpop.f32.mrf.mxu0  ;;  %v3388_v6 = vpop.f32.mrf.mxu1 }
 0x614   :  { %v4313_v29 = vpop.xlane.xlu2 %4312  ;;  %v3220_v8 = vadd.f32 %v3219_v7, %v6301_v3 }
 0x615   :  { %v3725_v26 = vadd.f32 %v3724_v57, %v3556_v59  ;;  %v4453_v34 = vadd.f32 %v6416_v32, %v4313_v29  ;;  %v4187_v51 = vmul.f32 %v6317_v25, %v4053_v4  ;;  %v4188_v42 = vmul.f32 %v6319_v63, %v4054_v18 }
 0x616   :  { %v3389_v13 = vadd.f32 %v3388_v6, %v3220_v8 }
 0x617   :  { %v3864_v20 = vmax.f32 %v3725_v26, 0.0  ;;  %4518 = vst.msk [vmem:[%s7002_s11 + $0xd0] sm:$0xff] %vm4491_vm0, %v4453_v34  ;;  %v4356_v38 = vadd.f32 %v4188_v42, %v4187_v51 }
 0x618   :  { %v3865_v46 = vmax.f32 %v3389_v13, 0.0 }
 0x619   :  { %v3949_v24 = vpack.c.bf16 %v3864_v20, %v3863_v54  ;;  %4357 = vadd.xlane.f32.xlu2 %v4356_v38 }
 0x61a   :  { %v3557_v31 = vpop.f32.mrf.mxu2  ;;  %v3726_v27 = vpop.f32.mrf.mxu3 }
 0x61b   :  { %v4055_v61 = vunpack.c.l.bf16 %v3949_v24  ;;  %v4056_v1 = vunpack.c.h.bf16 %v3949_v24  ;;  %v3558_v39 = vadd.f32 %v3557_v31, %v6307_v58  ;;  %v3222_v30 = vpop.f32.mrf.mxu0  ;;  %v3391_v17 = vpop.f32.mrf.mxu1 }
 0x61c   :  { %v4316_v52 = vpop.xlane.xlu0 %4315  ;;  %v3223_v41 = vadd.f32 %v3222_v30, %v6301_v3 }
 0x61d   :  { %v3727_v9 = vadd.f32 %v3726_v27, %v3558_v39  ;;  %v4454_v11 = vadd.f32 %v6416_v32, %v4316_v52  ;;  %v4189_v35 = vmul.f32 %v6317_v25, %v4055_v61  ;;  %v4190_v55 = vmul.f32 %v6319_v63, %v4056_v1  ;;  %3261 = vmatmul.bf16.gmra.mxu0 %v6283_v50 }
 0x61e   :  { %3430 = vmatmul.bf16.gmra.mxu1 %v6291_v47  ;;  %v3392_v37 = vadd.f32 %v3391_v17, %v3223_v41 }
 0x61f   :  { %v3866_v5 = vmax.f32 %v3727_v9, 0.0  ;;  %4519 = vst.msk [vmem:[%s7002_s11 + $0xd8] sm:$0xff] %vm4491_vm0, %v4454_v11  ;;  %3599 = vmatmul.bf16.gmra.mxu2 %v6283_v50  ;;  %v4359_v60 = vadd.f32 %v4190_v55, %v4189_v35  ;;  %3768 = vmatmul.bf16.gmra.mxu3 %v6291_v47 }
 0x620   :  { %v3867_v47 = vmax.f32 %v3392_v37, 0.0 }
 0x621   :  { %v3950_v48 = vpack.c.bf16 %v3866_v5, %v3865_v46  ;;  %4360 = vadd.xlane.f32.xlu0 %v4359_v60 }
 0x622   :  { %v3560_v14 = vpop.f32.mrf.mxu2  ;;  %v3729_v43 = vpop.f32.mrf.mxu3 }
 0x623   :  { %v4057_v16 = vunpack.c.l.bf16 %v3950_v48  ;;  %v4058_v56 = vunpack.c.h.bf16 %v3950_v48  ;;  %v3561_v2 = vadd.f32 %v3560_v14, %v6307_v58  ;;  %v3224_v53 = vpop.f32.mrf.mxu0  ;;  %v3393_v62 = vpop.f32.mrf.mxu1 }
 0x624   :  { %v4319_v12 = vpop.xlane.xlu1 %4318  ;;  %v3225_v36 = vadd.f32 %v3224_v53, %v6301_v3 }
 0x625   :  { %v3730_v28 = vadd.f32 %v3729_v43, %v3561_v2  ;;  %v4455_v22 = vadd.f32 %v6416_v32, %v4319_v12  ;;  %v4191_v50 = vmul.f32 %v6317_v25, %v4057_v16  ;;  %v4192_v45 = vmul.f32 %v6319_v63, %v4058_v56 }
 0x626   :  { %v3394_v33 = vadd.f32 %v3393_v62, %v3225_v36 }
 0x627   :  { %v3868_v49 = vmax.f32 %v3730_v28, 0.0  ;;  %4520 = vst.msk [vmem:[%s7002_s11 + $0xe0] sm:$0xff] %vm4491_vm0, %v4455_v22  ;;  %v4362_v19 = vadd.f32 %v4192_v45, %v4191_v50 }
 0x628   :  { %v3869_v34 = vmax.f32 %v3394_v33, 0.0 }
 0x629   :  { %v3951_v23 = vpack.c.bf16 %v3868_v49, %v3867_v47  ;;  %4363 = vadd.xlane.f32.xlu1 %v4362_v19 }
 0x62a   :  { %v3562_v15 = vpop.f32.mrf.mxu2  ;;  %v3731_v18 = vpop.f32.mrf.mxu3 }
 0x62b   :  { %v4059_v0 = vunpack.c.l.bf16 %v3951_v23  ;;  %v4060_v40 = vunpack.c.h.bf16 %v3951_v23  ;;  %v3563_v4 = vadd.f32 %v3562_v15, %v6307_v58  ;;  %v3227_v21 = vpop.f32.mrf.mxu0  ;;  %v3396_v59 = vpop.f32.mrf.mxu1 }
 0x62c   :  { %v4322_v57 = vpop.xlane.xlu2 %4321  ;;  %v3228_v42 = vadd.f32 %v3227_v21, %v6301_v3 }
 0x62d   :  { %v3732_v7 = vadd.f32 %v3731_v18, %v3563_v4  ;;  %v4456_v6 = vadd.f32 %v6416_v32, %v4322_v57  ;;  %v4193_v29 = vmul.f32 %v6317_v25, %v4059_v0  ;;  %v4194_v26 = vmul.f32 %v6319_v63, %v4060_v40  ;;  %3266 = vmatmul.bf16.gmra.mxu0 %v6298_v10 }
 0x62e   :  { %3435 = vmatmul.bf16.gmra.mxu1 %v6310_v44  ;;  %v3397_v31 = vadd.f32 %v3396_v59, %v3228_v42 }
 0x62f   :  { %v3870_v51 = vmax.f32 %v3732_v7, 0.0  ;;  %4521 = vst.msk [vmem:[%s7002_s11 + $0xe8] sm:$0xff] %vm4491_vm0, %v4456_v6  ;;  %3604 = vmatmul.bf16.gmra.mxu2 %v6298_v10  ;;  %v4365_v54 = vadd.f32 %v4194_v26, %v4193_v29  ;;  %3773 = vmatmul.bf16.gmra.mxu3 %v6310_v44 }
 0x630   :  { %v3871_v44 = vmax.f32 %v3397_v31, 0.0 }
 0x631   :  { %v3952_v20 = vpack.c.bf16 %v3870_v51, %v3869_v34  ;;  %4366 = vadd.xlane.f32.xlu2 %v4365_v54 }
 0x632   :  { %v3565_v8 = vpop.f32.mrf.mxu2  ;;  %v3734_v1 = vpop.f32.mrf.mxu3 }
 0x633   :  { %v4061_v38 = vunpack.c.l.bf16 %v3952_v20  ;;  %v4062_v24 = vunpack.c.h.bf16 %v3952_v20  ;;  %v3566_v61 = vadd.f32 %v3565_v8, %v6307_v58  ;;  %v3229_v13 = vpop.f32.mrf.mxu0  ;;  %v3398_v39 = vpop.f32.mrf.mxu1 }
 0x634   :  { %v4325_v27 = vpop.xlane.xlu0 %4324  ;;  %v3230_v11 = vadd.f32 %v3229_v13, %v6301_v3 }
 0x635   :  { %v3735_v30 = vadd.f32 %v3734_v1, %v3566_v61  ;;  %v4457_v17 = vadd.f32 %v6416_v32, %v4325_v27  ;;  %v4195_v10 = vmul.f32 %v6317_v25, %v4061_v38  ;;  %v4196_v52 = vmul.f32 %v6319_v63, %v4062_v24 }
 0x636   :  { %v3399_v60 = vadd.f32 %v3398_v39, %v3230_v11 }
 0x637   :  { %v3872_v9 = vmax.f32 %v3735_v30, 0.0  ;;  %4522 = vst.msk [vmem:[%s7002_s11 + $0xf0] sm:$0xff] %vm4491_vm0, %v4457_v17  ;;  %v4368_v35 = vadd.f32 %v4196_v52, %v4195_v10 }
 0x638   :  { %v3873_v12 = vmax.f32 %v3399_v60, 0.0 }
 0x639   :  { %v3953_v55 = vpack.c.bf16 %v3872_v9, %v3871_v44  ;;  %4369 = vadd.xlane.f32.xlu0 %v4368_v35 }
 0x63a   :  { %v3567_v46 = vpop.f32.mrf.mxu2  ;;  %v3736_v14 = vpop.f32.mrf.mxu3 }
 0x63b   :  { %v4063_v5 = vunpack.c.l.bf16 %v3953_v55  ;;  %v4064_v41 = vunpack.c.h.bf16 %v3953_v55  ;;  %v3568_v48 = vadd.f32 %v3567_v46, %v6307_v58  ;;  %v3232_v16 = vpop.f32.mrf.mxu0  ;;  %v3401_v56 = vpop.f32.mrf.mxu1 }
 0x63c   :  { %v4328_v37 = vpop.xlane.xlu1 %4327  ;;  %v3233_v22 = vadd.f32 %v3232_v16, %v6301_v3 }
 0x63d   :  { %v3737_v2 = vadd.f32 %v3736_v14, %v3568_v48  ;;  %v4458_v43 = vadd.f32 %v6416_v32, %v4328_v37  ;;  %v4197_v53 = vmul.f32 %v6317_v25, %v4063_v5  ;;  %v4198_v62 = vmul.f32 %v6319_v63, %v4064_v41 }
 0x63e   :  { %v3402_v19 = vadd.f32 %v3401_v56, %v3233_v22 }
 0x63f   :  { %v3874_v28 = vmax.f32 %v3737_v2, 0.0  ;;  %4523 = vst.msk [vmem:[%s7002_s11 + $0xf8] sm:$0xff] %vm4491_vm0, %v4458_v43  ;;  %v4371_v50 = vadd.f32 %v4198_v62, %v4197_v53 }
 0x640   :  { %v3875_v57 = vmax.f32 %v3402_v19, 0.0 }
 0x641   :  { %v3954_v45 = vpack.c.bf16 %v3874_v28, %v3873_v12  ;;  %4372 = vadd.xlane.f32.xlu1 %v4371_v50 }
 0x642   :  { %v3570_v47 = vpop.f32.mrf.mxu2  ;;  %v3739_v15 = vpop.f32.mrf.mxu3 }
 0x643   :  { %v4065_v49 = vunpack.c.l.bf16 %v3954_v45  ;;  %v4066_v36 = vunpack.c.h.bf16 %v3954_v45  ;;  %v3571_v23 = vadd.f32 %v3570_v47, %v6307_v58  ;;  %v3234_v0 = vpop.f32.mrf.mxu0  ;;  %v3403_v40 = vpop.f32.mrf.mxu1 }
 0x644   :  { %v4331_v33 = vpop.xlane.xlu2 %4330  ;;  %v3235_v6 = vadd.f32 %v3234_v0, %v6301_v3 }
 0x645   :  { %v3740_v4 = vadd.f32 %v3739_v15, %v3571_v23  ;;  %v4459_v18 = vadd.f32 %v6416_v32, %v4331_v33  ;;  %v4199_v21 = vmul.f32 %v6317_v25, %v4065_v49  ;;  %v4200_v59 = vmul.f32 %v6319_v63, %v4066_v36 }
 0x646   :  { %v3404_v54 = vadd.f32 %v3403_v40, %v3235_v6 }
 0x647   :  { %v3876_v7 = vmax.f32 %v3740_v4, 0.0  ;;  %4524 = vst.msk [vmem:[%s7002_s11 + $0x100] sm:$0xff] %vm4491_vm0, %v4459_v18  ;;  %v4374_v29 = vadd.f32 %v4200_v59, %v4199_v21 }
 0x648   :  { %v3877_v27 = vmax.f32 %v3404_v54, 0.0 }
 0x649   :  { %v3955_v26 = vpack.c.bf16 %v3876_v7, %v3875_v57  ;;  %4375 = vadd.xlane.f32.xlu2 %v4374_v29 }
 0x64a   :  { %v3572_v34 = vpop.f32.mrf.mxu2  ;;  %v3741_v8 = vpop.f32.mrf.mxu3 }
 0x64b   :  { %v4067_v51 = vunpack.c.l.bf16 %v3955_v26  ;;  %v4068_v42 = vunpack.c.h.bf16 %v3955_v26  ;;  %v3573_v20 = vadd.f32 %v3572_v34, %v6307_v58  ;;  %v3237_v38 = vpop.f32.mrf.mxu0  ;;  %v3406_v24 = vpop.f32.mrf.mxu1 }
 0x64c   :  { %v4334_v31 = vpop.xlane.xlu0 %4333  ;;  %v3238_v17 = vadd.f32 %v3237_v38, %v6301_v3 }
 0x64d   :  { %v3742_v61 = vadd.f32 %v3741_v8, %v3573_v20  ;;  %v4460_v1 = vadd.f32 %v6416_v32, %v4334_v31  ;;  %v4201_v13 = vmul.f32 %v6317_v25, %v4067_v51  ;;  %v4202_v39 = vmul.f32 %v6319_v63, %v4068_v42 }
 0x64e   :  { %v3407_v35 = vadd.f32 %v3406_v24, %v3238_v17 }
 0x64f   :  { %v3878_v30 = vmax.f32 %v3742_v61, 0.0  ;;  %4525 = vst.msk [vmem:[%s7002_s11 + $0x108] sm:$0xff] %vm4491_vm0, %v4460_v1  ;;  %v4377_v10 = vadd.f32 %v4202_v39, %v4201_v13 }
 0x650   :  { %v3879_v37 = vmax.f32 %v3407_v35, 0.0 }
 0x651   :  { %v3956_v52 = vpack.c.bf16 %v3878_v30, %v3877_v27  ;;  %4378 = vadd.xlane.f32.xlu0 %v4377_v10 }
 0x652   :  { %v3575_v44 = vpop.f32.mrf.mxu2  ;;  %v3744_v46 = vpop.f32.mrf.mxu3 }
 0x653   :  { %v4069_v9 = vunpack.c.l.bf16 %v3956_v52  ;;  %v4070_v11 = vunpack.c.h.bf16 %v3956_v52  ;;  %v3576_v55 = vadd.f32 %v3575_v44, %v6307_v58  ;;  %v3239_v5 = vpop.f32.mrf.mxu0  ;;  %v3408_v41 = vpop.f32.mrf.mxu1 }
 0x654   :  { %v4337_v60 = vpop.xlane.xlu1 %4336  ;;  %v3240_v43 = vadd.f32 %v3239_v5, %v6301_v3 }
 0x655   :  { %v3745_v48 = vadd.f32 %v3744_v46, %v3576_v55  ;;  %v4461_v14 = vadd.f32 %v6416_v32, %v4337_v60  ;;  %v4203_v16 = vmul.f32 %v6317_v25, %v4069_v9  ;;  %v4204_v56 = vmul.f32 %v6319_v63, %v4070_v11 }
 0x656   :  { %v3409_v50 = vadd.f32 %v3408_v41, %v3240_v43 }
 0x657   :  { %v3880_v2 = vmax.f32 %v3745_v48, 0.0  ;;  %4526 = vst.msk [vmem:[%s7002_s11 + $0x110] sm:$0xff] %vm4491_vm0, %v4461_v14  ;;  %v4380_v53 = vadd.f32 %v4204_v56, %v4203_v16 }
 0x658   :  { %v3881_v33 = vmax.f32 %v3409_v50, 0.0 }
 0x659   :  { %v3957_v62 = vpack.c.bf16 %v3880_v2, %v3879_v37  ;;  %4381 = vadd.xlane.f32.xlu1 %v4380_v53 }
 0x65a   :  { %v3577_v12 = vpop.f32.mrf.mxu2  ;;  %v3746_v47 = vpop.f32.mrf.mxu3 }
 0x65b   :  { %v4071_v28 = vunpack.c.l.bf16 %v3957_v62  ;;  %v4072_v22 = vunpack.c.h.bf16 %v3957_v62  ;;  %v3578_v45 = vadd.f32 %v3577_v12, %v6307_v58  ;;  %v3242_v49 = vpop.f32.mrf.mxu0  ;;  %v3411_v36 = vpop.f32.mrf.mxu1 }
 0x65c   :  { %v4340_v19 = vpop.xlane.xlu2 %4339  ;;  %v3243_v18 = vadd.f32 %v3242_v49, %v6301_v3 }
 0x65d   :  { %v3747_v23 = vadd.f32 %v3746_v47, %v3578_v45  ;;  %v4462_v15 = vadd.f32 %v6416_v32, %v4340_v19  ;;  %v4205_v0 = vmul.f32 %v6317_v25, %v4071_v28  ;;  %v4206_v40 = vmul.f32 %v6319_v63, %v4072_v22 }
 0x65e   :  { %v3412_v29 = vadd.f32 %v3411_v36, %v3243_v18 }
 0x65f   :  { %v3882_v4 = vmax.f32 %v3747_v23, 0.0  ;;  %4527 = vst.msk [vmem:[%s7002_s11 + $0x118] sm:$0xff] %vm4491_vm0, %v4462_v15  ;;  %v4383_v21 = vadd.f32 %v4206_v40, %v4205_v0 }
 0x660   :  { %v3883_v31 = vmax.f32 %v3412_v29, 0.0 }
 0x661   :  { %v3958_v59 = vpack.c.bf16 %v3882_v4, %v3881_v33  ;;  %4384 = vadd.xlane.f32.xlu2 %v4383_v21 }
 0x662   :  { %v3580_v57 = vpop.f32.mrf.mxu2  ;;  %v3749_v34 = vpop.f32.mrf.mxu3 }
 0x663   :  { %v4073_v7 = vunpack.c.l.bf16 %v3958_v59  ;;  %v4074_v6 = vunpack.c.h.bf16 %v3958_v59  ;;  %v3581_v26 = vadd.f32 %v3580_v57, %v6307_v58  ;;  %v3244_v51 = vpop.f32.mrf.mxu0  ;;  %v3413_v42 = vpop.f32.mrf.mxu1 }
 0x664   :  { %v4343_v54 = vpop.xlane.xlu0 %4342  ;;  %v3245_v1 = vadd.f32 %v3244_v51, %v6301_v3 }
 0x665   :  { %v3750_v20 = vadd.f32 %v3749_v34, %v3581_v26  ;;  %v4463_v8 = vadd.f32 %v6416_v32, %v4343_v54  ;;  %v4207_v38 = vmul.f32 %v6317_v25, %v4073_v7  ;;  %v4208_v24 = vmul.f32 %v6319_v63, %v4074_v6 }
 0x666   :  { %v3414_v10 = vadd.f32 %v3413_v42, %v3245_v1 }
 0x667   :  { %v3884_v61 = vmax.f32 %v3750_v20, 0.0  ;;  %4528 = vst.msk [vmem:[%s7002_s11 + $0x120] sm:$0xff] %vm4491_vm0, %v4463_v8  ;;  %v4386_v13 = vadd.f32 %v4208_v24, %v4207_v38 }
 0x668   :  { %v3885_v60 = vmax.f32 %v3414_v10, 0.0 }
 0x669   :  { %v3959_v39 = vpack.c.bf16 %v3884_v61, %v3883_v31  ;;  %4387 = vadd.xlane.f32.xlu0 %v4386_v13 }
 0x66a   :  { %v3582_v27 = vpop.f32.mrf.mxu2  ;;  %v3751_v44 = vpop.f32.mrf.mxu3 }
 0x66b   :  { %v4075_v30 = vunpack.c.l.bf16 %v3959_v39  ;;  %v4076_v17 = vunpack.c.h.bf16 %v3959_v39  ;;  %v3583_v52 = vadd.f32 %v3582_v27, %v6307_v58  ;;  %v3247_v9 = vpop.f32.mrf.mxu0  ;;  %v3416_v11 = vpop.f32.mrf.mxu1 }
 0x66c   :  { %v4346_v35 = vpop.xlane.xlu1 %4345  ;;  %v3248_v14 = vadd.f32 %v3247_v9, %v6301_v3 }
 0x66d   :  { %v3752_v55 = vadd.f32 %v3751_v44, %v3583_v52  ;;  %v4464_v46 = vadd.f32 %v6416_v32, %v4346_v35  ;;  %v4209_v5 = vmul.f32 %v6317_v25, %v4075_v30  ;;  %v4210_v41 = vmul.f32 %v6319_v63, %v4076_v17 }
 0x66e   :  { %v3417_v53 = vadd.f32 %v3416_v11, %v3248_v14 }
 0x66f   :  { %v3886_v48 = vmax.f32 %v3752_v55, 0.0  ;;  %4529 = vst.msk [vmem:[%s7002_s11 + $0x128] sm:$0xff] %vm4491_vm0, %v4464_v46  ;;  %v4389_v16 = vadd.f32 %v4210_v41, %v4209_v5 }
 0x670   :  { %v3887_v19 = vmax.f32 %v3417_v53, 0.0 }
 0x671   :  { %v3960_v56 = vpack.c.bf16 %v3886_v48, %v3885_v60  ;;  %4390 = vadd.xlane.f32.xlu1 %v4389_v16 }
 0x672   :  { %v3585_v37 = vpop.f32.mrf.mxu2  ;;  %v3754_v12 = vpop.f32.mrf.mxu3 }
 0x673   :  { %v4077_v2 = vunpack.c.l.bf16 %v3960_v56  ;;  %v4078_v43 = vunpack.c.h.bf16 %v3960_v56  ;;  %v3586_v62 = vadd.f32 %v3585_v37, %v6307_v58  ;;  %v3249_v28 = vpop.f32.mrf.mxu0  ;;  %v3418_v22 = vpop.f32.mrf.mxu1 }
 0x674   :  { %v4349_v50 = vpop.xlane.xlu2 %4348  ;;  %v3250_v15 = vadd.f32 %v3249_v28, %v6301_v3 }
 0x675   :  { %v3755_v45 = vadd.f32 %v3754_v12, %v3586_v62  ;;  %v4465_v47 = vadd.f32 %v6416_v32, %v4349_v50  ;;  %v4211_v49 = vmul.f32 %v6317_v25, %v4077_v2  ;;  %v4212_v36 = vmul.f32 %v6319_v63, %v4078_v43 }
 0x676   :  { %v3419_v21 = vadd.f32 %v3418_v22, %v3250_v15 }
 0x677   :  { %v3888_v23 = vmax.f32 %v3755_v45, 0.0  ;;  %4530 = vst.msk [vmem:[%s7002_s11 + $0x130] sm:$0xff] %vm4491_vm0, %v4465_v47  ;;  %v4392_v0 = vadd.f32 %v4212_v36, %v4211_v49 }
 0x678   :  { %v3889_v54 = vmax.f32 %v3419_v21, 0.0 }
 0x679   :  { %v3961_v40 = vpack.c.bf16 %v3888_v23, %v3887_v19  ;;  %4393 = vadd.xlane.f32.xlu2 %v4392_v0 }
 0x67a   :  { %v3587_v33 = vpop.f32.mrf.mxu2  ;;  %v3756_v57 = vpop.f32.mrf.mxu3 }
 0x67b   :  { %v4079_v4 = vunpack.c.l.bf16 %v3961_v40  ;;  %v4080_v18 = vunpack.c.h.bf16 %v3961_v40  ;;  %v3588_v59 = vadd.f32 %v3587_v33, %v6307_v58  ;;  %v3252_v7 = vpop.f32.mrf.mxu0  ;;  %v3421_v6 = vpop.f32.mrf.mxu1 }
 0x67c   :  { %v4352_v29 = vpop.xlane.xlu0 %4351  ;;  %v3253_v8 = vadd.f32 %v3252_v7, %v6301_v3 }
 0x67d   :  { %v3757_v26 = vadd.f32 %v3756_v57, %v3588_v59  ;;  %v4466_v34 = vadd.f32 %v6416_v32, %v4352_v29  ;;  %v4213_v51 = vmul.f32 %v6317_v25, %v4079_v4  ;;  %v4214_v42 = vmul.f32 %v6319_v63, %v4080_v18 }
 0x67e   :  { %v3422_v13 = vadd.f32 %v3421_v6, %v3253_v8 }
 0x67f   :  { %v3890_v20 = vmax.f32 %v3757_v26, 0.0  ;;  %4531 = vst.msk [vmem:[%s7002_s11 + $0x138] sm:$0xff] %vm4491_vm0, %v4466_v34  ;;  %v4395_v38 = vadd.f32 %v4214_v42, %v4213_v51 }
 0x680   :  { %v3891_v35 = vmax.f32 %v3422_v13, 0.0 }
 0x681   :  { %v3962_v24 = vpack.c.bf16 %v3890_v20, %v3889_v54  ;;  %4396 = vadd.xlane.f32.xlu0 %v4395_v38 }
 0x682   :  { %v3590_v31 = vpop.f32.mrf.mxu2  ;;  %v3759_v27 = vpop.f32.mrf.mxu3 }
 0x683   :  { %v4081_v61 = vunpack.c.l.bf16 %v3962_v24  ;;  %v4082_v1 = vunpack.c.h.bf16 %v3962_v24  ;;  %v3591_v39 = vadd.f32 %v3590_v31, %v6307_v58  ;;  %v3254_v30 = vpop.f32.mrf.mxu0  ;;  %v3423_v17 = vpop.f32.mrf.mxu1 }
 0x684   :  { %v4355_v10 = vpop.xlane.xlu1 %4354  ;;  %v3255_v46 = vadd.f32 %v3254_v30, %v6301_v3 }
 0x685   :  { %v3760_v52 = vadd.f32 %v3759_v27, %v3591_v39  ;;  %v4467_v44 = vadd.f32 %v6416_v32, %v4355_v10  ;;  %v4215_v9 = vmul.f32 %v6317_v25, %v4081_v61  ;;  %v4216_v11 = vmul.f32 %v6319_v63, %v4082_v1 }
 0x686   :  { %v3424_v16 = vadd.f32 %v3423_v17, %v3255_v46 }
 0x687   :  { %v3892_v55 = vmax.f32 %v3760_v52, 0.0  ;;  %4532 = vst.msk [vmem:[%s7002_s11 + $0x140] sm:$0xff] %vm4491_vm0, %v4467_v44  ;;  %v4398_v5 = vadd.f32 %v4216_v11, %v4215_v9 }
 0x688   :  { %v3893_v50 = vmax.f32 %v3424_v16, 0.0 }
 0x689   :  { %v3963_v41 = vpack.c.bf16 %v3892_v55, %v3891_v35  ;;  %4399 = vadd.xlane.f32.xlu1 %v4398_v5 }
 0x68a   :  { %v3592_v60 = vpop.f32.mrf.mxu2  ;;  %v3761_v37 = vpop.f32.mrf.mxu3 }
 0x68b   :  { %v4083_v48 = vunpack.c.l.bf16 %v3963_v41  ;;  %v4084_v14 = vunpack.c.h.bf16 %v3963_v41  ;;  %v3593_v56 = vadd.f32 %v3592_v60, %v6307_v58  ;;  %v3257_v2 = vpop.f32.mrf.mxu0  ;;  %v3426_v43 = vpop.f32.mrf.mxu1 }
 0x68c   :  { %v4358_v53 = vpop.xlane.xlu2 %4357  ;;  %v3258_v47 = vadd.f32 %v3257_v2, %v6301_v3 }
 0x68d   :  { %v3762_v62 = vadd.f32 %v3761_v37, %v3593_v56  ;;  %v4468_v12 = vadd.f32 %v6416_v32, %v4358_v53  ;;  %v4217_v28 = vmul.f32 %v6317_v25, %v4083_v48  ;;  %v4218_v22 = vmul.f32 %v6319_v63, %v4084_v14 }
 0x68e   :  { %v3427_v0 = vadd.f32 %v3426_v43, %v3258_v47 }
 0x68f   :  { %v3894_v45 = vmax.f32 %v3762_v62, 0.0  ;;  %4533 = vst.msk [vmem:[%s7002_s11 + $0x148] sm:$0xff] %vm4491_vm0, %v4468_v12  ;;  %v4401_v49 = vadd.f32 %v4218_v22, %v4217_v28 }
 0x690   :  { %v3895_v29 = vmax.f32 %v3427_v0, 0.0 }
 0x691   :  { %v3964_v36 = vpack.c.bf16 %v3894_v45, %v3893_v50  ;;  %4402 = vadd.xlane.f32.xlu2 %v4401_v49 }
 0x692   :  { %v3595_v19 = vpop.f32.mrf.mxu2  ;;  %v3764_v33 = vpop.f32.mrf.mxu3 }
 0x693   :  { %v4085_v23 = vunpack.c.l.bf16 %v3964_v36  ;;  %v4086_v15 = vunpack.c.h.bf16 %v3964_v36  ;;  %v3596_v40 = vadd.f32 %v3595_v19, %v6307_v58  ;;  %v3259_v4 = vpop.f32.mrf.mxu0  ;;  %v3428_v18 = vpop.f32.mrf.mxu1 }
 0x694   :  { %v4361_v21 = vpop.xlane.xlu0 %4360  ;;  %v3260_v34 = vadd.f32 %v3259_v4, %v6301_v3 }
 0x695   :  { %v3765_v59 = vadd.f32 %v3764_v33, %v3596_v40  ;;  %v4469_v57 = vadd.f32 %v6416_v32, %v4361_v21  ;;  %v4219_v7 = vmul.f32 %v6317_v25, %v4085_v23  ;;  %v4220_v6 = vmul.f32 %v6319_v63, %v4086_v15 }
 0x696   :  { %v3429_v38 = vadd.f32 %v3428_v18, %v3260_v34 }
 0x697   :  { %v3896_v26 = vmax.f32 %v3765_v59, 0.0  ;;  %4534 = vst.msk [vmem:[%s7002_s11 + $0x150] sm:$0xff] %vm4491_vm0, %v4469_v57  ;;  %v4404_v51 = vadd.f32 %v4220_v6, %v4219_v7 }
 0x698   :  { %v3897_v10 = vmax.f32 %v3429_v38, 0.0 }
 0x699   :  { %v3965_v42 = vpack.c.bf16 %v3896_v26, %v3895_v29  ;;  %4405 = vadd.xlane.f32.xlu0 %v4404_v51 }
 0x69a   :  { %v3597_v54 = vpop.f32.mrf.mxu2  ;;  %v3766_v31 = vpop.f32.mrf.mxu3 }
 0x69b   :  { %v4087_v20 = vunpack.c.l.bf16 %v3965_v42  ;;  %v4088_v8 = vunpack.c.h.bf16 %v3965_v42  ;;  %v3598_v24 = vadd.f32 %v3597_v54, %v6307_v58  ;;  %v3262_v61 = vpop.f32.mrf.mxu0  ;;  %v3431_v1 = vpop.f32.mrf.mxu1 }
 0x69c   :  { %v4364_v13 = vpop.xlane.xlu1 %4363  ;;  %v3263_v44 = vadd.f32 %v3262_v61, %v6301_v3 }
 0x69d   :  { %v3767_v39 = vadd.f32 %v3766_v31, %v3598_v24  ;;  %v4470_v27 = vadd.f32 %v6416_v32, %v4364_v13  ;;  %v4221_v30 = vmul.f32 %v6317_v25, %v4087_v20  ;;  %v4222_v17 = vmul.f32 %v6319_v63, %v4088_v8 }
 0x69e   :  { %v3432_v5 = vadd.f32 %v3431_v1, %v3263_v44 }
 0x69f   :  { %v3898_v52 = vmax.f32 %v3767_v39, 0.0  ;;  %4535 = vst.msk [vmem:[%s7002_s11 + $0x158] sm:$0xff] %vm4491_vm0, %v4470_v27  ;;  %v4407_v9 = vadd.f32 %v4222_v17, %v4221_v30 }
 0x6a0   :  { %v3899_v53 = vmax.f32 %v3432_v5, 0.0 }
 0x6a1   :  { %v3966_v11 = vpack.c.bf16 %v3898_v52, %v3897_v10  ;;  %4408 = vadd.xlane.f32.xlu1 %v4407_v9 }
 0x6a2   :  { %v3600_v35 = vpop.f32.mrf.mxu2  ;;  %v3769_v60 = vpop.f32.mrf.mxu3 }
 0x6a3   :  { %v4089_v55 = vunpack.c.l.bf16 %v3966_v11  ;;  %v4090_v46 = vunpack.c.h.bf16 %v3966_v11  ;;  %v3601_v41 = vadd.f32 %v3600_v35, %v6307_v58  ;;  %v3264_v48 = vpop.f32.mrf.mxu0  ;;  %v3433_v43 = vpop.f32.mrf.mxu1 }
 0x6a4   :  { %v4367_v14 = vpop.xlane.xlu2 %4366  ;;  %v3265_v12 = vadd.f32 %v3264_v48, %v6301_v3 }
 0x6a5   :  { %v3770_v16 = vadd.f32 %v3769_v60, %v3601_v41  ;;  %v4471_v56 = vadd.f32 %v6416_v32, %v4367_v14  ;;  %v4223_v37 = vmul.f32 %v6317_v25, %v4089_v55  ;;  %v4224_v2 = vmul.f32 %v6319_v63, %v4090_v46 }
 0x6a6   :  { %v3434_v49 = vadd.f32 %v3433_v43, %v3265_v12 }
 0x6a7   :  { %v3900_v62 = vmax.f32 %v3770_v16, 0.0  ;;  %4536 = vst.msk [vmem:[%s7002_s11 + $0x160] sm:$0xff] %vm4491_vm0, %v4471_v56  ;;  %v4410_v28 = vadd.f32 %v4224_v2, %v4223_v37 }
 0x6a8   :  { %v3901_v18 = vmax.f32 %v3434_v49, 0.0 }
 0x6a9   :  { %v3967_v22 = vpack.c.bf16 %v3900_v62, %v3899_v53  ;;  %4411 = vadd.xlane.f32.xlu2 %v4410_v28 }
 0x6aa   :  { %v3602_v50 = vpop.f32.mrf.mxu2  ;;  %v3771_v19 = vpop.f32.mrf.mxu3 }
 0x6ab   :  { %v4091_v45 = vunpack.c.l.bf16 %v3967_v22  ;;  %v4092_v47 = vunpack.c.h.bf16 %v3967_v22  ;;  %v3603_v36 = vadd.f32 %v3602_v50, %v6307_v58  ;;  %v3267_v23 = vpop.f32.mrf.mxu0  ;;  %v3436_v7 = vpop.f32.mrf.mxu1 }
 0x6ac   :  { %v4370_v15 = vpop.xlane.xlu0 %4369  ;;  %v3268_v59 = vadd.f32 %v3267_v23, %v6301_v3 }
 0x6ad   :  { %v3772_v0 = vadd.f32 %v3771_v19, %v3603_v36  ;;  %v4472_v40 = vadd.f32 %v6416_v32, %v4370_v15  ;;  %v4225_v33 = vmul.f32 %v6317_v25, %v4091_v45  ;;  %v4226_v4 = vmul.f32 %v6319_v63, %v4092_v47 }
 0x6ae   :  { %v3437_v51 = vadd.f32 %v3436_v7, %v3268_v59 }
 0x6af   :  { %v3902_v21 = vmax.f32 %v3772_v0, 0.0  ;;  %4537 = vst.msk [vmem:[%s7002_s11 + $0x168] sm:$0xff] %vm4491_vm0, %v4472_v40  ;;  %v4413_v57 = vadd.f32 %v4226_v4, %v4225_v33 }
 0x6b0   :  { %v3903_v1 = vmax.f32 %v3437_v51, 0.0 }
 0x6b1   :  { %v3968_v6 = vpack.c.bf16 %v3902_v21, %v3901_v18  ;;  %4414 = vadd.xlane.f32.xlu0 %v4413_v57 }
 0x6b2   :  { %v3605_v29 = vpop.f32.mrf.mxu2  ;;  %v3774_v54 = vpop.f32.mrf.mxu3 }
 0x6b3   :  { %v4093_v26 = vunpack.c.l.bf16 %v3968_v6  ;;  %v4094_v34 = vunpack.c.h.bf16 %v3968_v6  ;;  %v3606_v42 = vadd.f32 %v3605_v29, %v6307_v58  ;;  %v3269_v20 = vpop.f32.mrf.mxu0  ;;  %v3438_v17 = vpop.f32.mrf.mxu1 }
 0x6b4   :  { %v4373_v8 = vpop.xlane.xlu1 %4372  ;;  %v3270_v39 = vadd.f32 %v3269_v20, %v6301_v3 }
 0x6b5   :  { %v3775_v38 = vadd.f32 %v3774_v54, %v3606_v42  ;;  %v4473_v24 = vadd.f32 %v6416_v32, %v4373_v8  ;;  %v4227_v31 = vmul.f32 %v6317_v25, %v4093_v26  ;;  %v4228_v61 = vmul.f32 %v6319_v63, %v4094_v34 }
 0x6b6   :  { %v3439_v9 = vadd.f32 %v3438_v17, %v3270_v39 }
 0x6b7   :  { %v3904_v13 = vmax.f32 %v3775_v38, 0.0  ;;  %4538 = vst.msk [vmem:[%s7002_s11 + $0x170] sm:$0xff] %vm4491_vm0, %v4473_v24  ;;  %v4416_v27 = vadd.f32 %v4228_v61, %v4227_v31 }
 0x6b8   :  { %v3905_v60 = vmax.f32 %v3439_v9, 0.0 }
 0x6b9   :  { %v3969_v30 = vpack.c.bf16 %v3904_v13, %v3903_v1  ;;  %4417 = vadd.xlane.f32.xlu1 %v4416_v27 }
 0x6ba   :  { %v3607_v10 = vpop.f32.mrf.mxu2  ;;  %v3776_v35 = vpop.f32.mrf.mxu3 }
 0x6bb   :  { %v4095_v52 = vunpack.c.l.bf16 %v3969_v30  ;;  %v4096_v44 = vunpack.c.h.bf16 %v3969_v30  ;;  %v3608_v11 = vadd.f32 %v3607_v10, %v6307_v58 }
 0x6bc   :  { %v4376_v55 = vpop.xlane.xlu2 %4375 }
 0x6bd   :  { %v3777_v46 = vadd.f32 %v3776_v35, %v3608_v11  ;;  %v4474_v3 = vadd.f32 %v6416_v32, %v4376_v55  ;;  %v4229_v5 = vmul.f32 %v6317_v25, %v4095_v52  ;;  %v4230_v41 = vmul.f32 %v6319_v63, %v4096_v44 }
 0x6bf   :  { %v3906_v48 = vmax.f32 %v3777_v46, 0.0  ;;  %4539 = vst.msk [vmem:[%s7002_s11 + $0x178] sm:$0xff] %vm4491_vm0, %v4474_v3  ;;  %v4419_v14 = vadd.f32 %v4230_v41, %v4229_v5 }
 0x6c1   :  { %v3970_v16 = vpack.c.bf16 %v3906_v48, %v3905_v60  ;;  %4420 = vadd.xlane.f32.xlu2 %v4419_v14 }
 0x6c3   :  { %v4097_v58 = vunpack.c.l.bf16 %v3970_v16  ;;  %v4098_v56 = vunpack.c.h.bf16 %v3970_v16 }
 0x6c4   :  { %v4379_v37 = vpop.xlane.xlu0 %4378 }
 0x6c5   :  { %v4475_v2 = vadd.f32 %v6416_v32, %v4379_v37  ;;  %v4231_v43 = vmul.f32 %v6317_v25, %v4097_v58  ;;  %v4232_v53 = vmul.f32 %v6319_v63, %v4098_v56 }
 0x6c7   :  { %4540 = vst.msk [vmem:[%s7002_s11 + $0x180] sm:$0xff] %vm4491_vm0, %v4475_v2  ;;  %v4422_v62 = vadd.f32 %v4232_v53, %v4231_v43 }
 0x6c9   :  { %4423 = vadd.xlane.f32.xlu0 %v4422_v62 }
 0x6cc   :  { %v4382_v12 = vpop.xlane.xlu1 %4381 }
 0x6cd   :  { %v4476_v28 = vadd.f32 %v6416_v32, %v4382_v12 }
 0x6cf   :  { %4541 = vst.msk [vmem:[%s7002_s11 + $0x188] sm:$0xff] %vm4491_vm0, %v4476_v28 }
 0x6d4   :  { %v4385_v22 = vpop.xlane.xlu2 %4384 }
 0x6d5   :  { %v4477_v25 = vadd.f32 %v6416_v32, %v4385_v22 }
 0x6d7   :  { %4542 = vst.msk [vmem:[%s7002_s11 + $0x190] sm:$0xff] %vm4491_vm0, %v4477_v25 }
 0x6dc   :  { %v4388_v63 = vpop.xlane.xlu0 %4387 }
 0x6dd   :  { %v4478_v50 = vadd.f32 %v6416_v32, %v4388_v63 }
 0x6df   :  { %4543 = vst.msk [vmem:[%s7002_s11 + $0x198] sm:$0xff] %vm4491_vm0, %v4478_v50 }
 0x6e4   :  { %v4391_v45 = vpop.xlane.xlu1 %4390 }
 0x6e5   :  { %v4479_v47 = vadd.f32 %v6416_v32, %v4391_v45 }
 0x6e7   :  { %4544 = vst.msk [vmem:[%s7002_s11 + $0x1a0] sm:$0xff] %vm4491_vm0, %v4479_v47 }
 0x6ec   :  { %v4394_v49 = vpop.xlane.xlu2 %4393 }
 0x6ed   :  { %v4480_v36 = vadd.f32 %v6416_v32, %v4394_v49 }
 0x6ef   :  { %4545 = vst.msk [vmem:[%s7002_s11 + $0x1a8] sm:$0xff] %vm4491_vm0, %v4480_v36 }
 0x6f4   :  { %v4397_v19 = vpop.xlane.xlu0 %4396 }
 0x6f5   :  { %v4481_v23 = vadd.f32 %v6416_v32, %v4397_v19 }
 0x6f7   :  { %4546 = vst.msk [vmem:[%s7002_s11 + $0x1b0] sm:$0xff] %vm4491_vm0, %v4481_v23 }
 0x6fc   :  { %v4400_v15 = vpop.xlane.xlu1 %4399 }
 0x6fd   :  { %v4482_v0 = vadd.f32 %v6416_v32, %v4400_v15 }
 0x6ff   :  { %4547 = vst.msk [vmem:[%s7002_s11 + $0x1b8] sm:$0xff] %vm4491_vm0, %v4482_v0 }
 0x704   :  { %v4403_v40 = vpop.xlane.xlu2 %4402 }
 0x705   :  { %v4483_v33 = vadd.f32 %v6416_v32, %v4403_v40 }
 0x707   :  { %4548 = vst.msk [vmem:[%s7002_s11 + $0x1c0] sm:$0xff] %vm4491_vm0, %v4483_v33 }
 0x70c   :  { %v4406_v4 = vpop.xlane.xlu0 %4405 }
 0x70d   :  { %v4484_v18 = vadd.f32 %v6416_v32, %v4406_v4 }
 0x70f   :  { %4549 = vst.msk [vmem:[%s7002_s11 + $0x1c8] sm:$0xff] %vm4491_vm0, %v4484_v18 }
 0x714   :  { %v4409_v21 = vpop.xlane.xlu1 %4408 }
 0x715   :  { %v4485_v59 = vadd.f32 %v6416_v32, %v4409_v21 }
 0x717   :  { %4550 = vst.msk [vmem:[%s7002_s11 + $0x1d0] sm:$0xff] %vm4491_vm0, %v4485_v59 }
 0x71c   :  { %v4412_v57 = vpop.xlane.xlu2 %4411 }
 0x71d   :  { %v4486_v7 = vadd.f32 %v6416_v32, %v4412_v57 }
 0x71f   :  { %4551 = vst.msk [vmem:[%s7002_s11 + $0x1d8] sm:$0xff] %vm4491_vm0, %v4486_v7 }
 0x724   :  { %v4415_v6 = vpop.xlane.xlu0 %4414 }
 0x725   :  { %v4487_v29 = vadd.f32 %v6416_v32, %v4415_v6 }
 0x727   :  { %4552 = vst.msk [vmem:[%s7002_s11 + $0x1e0] sm:$0xff] %vm4491_vm0, %v4487_v29 }
 0x72c   :  { %v4418_v26 = vpop.xlane.xlu1 %4417 }
 0x72d   :  { %v4488_v34 = vadd.f32 %v6416_v32, %v4418_v26 }
 0x72f   :  { %4553 = vst.msk [vmem:[%s7002_s11 + $0x1e8] sm:$0xff] %vm4491_vm0, %v4488_v34 }
 0x734   :  { %v4421_v51 = vpop.xlane.xlu2 %4420 }
 0x735   :  { %v4489_v42 = vadd.f32 %v6416_v32, %v4421_v51 }
 0x737   :  { %4554 = vst.msk [vmem:[%s7002_s11 + $0x1f0] sm:$0xff] %vm4491_vm0, %v4489_v42 }
 0x73c   :  { %v4424_v54 = vpop.xlane.xlu0 %4423 }
 0x73d   :  { %v4490_v20 = vadd.f32 %v6416_v32, %v4424_v54 }
 0x73f   :  { %4555 = vst.msk [vmem:[%s7002_s11 + $0x1f8] sm:$0xff] %vm4491_vm0, %v4490_v20 }
 0x740   :  { %4560 = vsyncpa [#allocation4], 1 }
 0x741   :  { %4561 = vsyncpa [#allocation6], 1 }
 0x742   :  { %4562 = vsyncpa [#allocation9], 1 }
 0x743   :  { %4563 = vsyncpa [#allocation12], 1 }

</bundles_post_ra>
